<compile_context>
chip_gen: v5e
topology: v5e:2x2
jax: 0.10.0
libtpu: 0.0.40
codegen_flags: <defaults>
</compile_context>

<pallas_src>
import jax
import jax.numpy as jnp
from jax.experimental import pallas as pl
from jax.experimental.pallas import tpu as pltpu

PADW = 8    # 8-aligned left margin for in-kernel zero padding along W (sublane dim)
CPAD = 128  # conv output channels zero-padded to a full 128-lane vreg width (item 3)


def _cnn_fused_kernel(x_ref, w1_ref, s1_ref, b1_ref, w2_ref, s2_ref, b2_ref,
                      wfc_ref, bfc_ref, o_ref,
                      xpad1_ref, tmp1_ref, xpad2_ref, tmp2_ref):
    """Whole CNN forward for the full batch in a single kernel invocation.

    x_ref   : (N, H, W, 4)        NHWC input
    w*_ref  : (9, Cin, 128)       per-tap conv weights, Cout zero-padded to 128 lanes
    s*/b*   : (1, 128)            folded BatchNorm scale / shift (includes conv bias)
    wfc_ref : (Ho2*Wo2, 128, 10)  per-position fc weight, channel dim zero-padded to 128
    bfc_ref : (1, 10)
    o_ref   : (N, 10)
    """
    N, H1, W1, C0 = x_ref.shape
    Cp = w1_ref.shape[-1]                       # 128 (lane-dense channel width)
    C1 = w2_ref.shape[1]                        # live channels entering layer 2 (8)
    Ho1, Wo1 = H1 // 2, W1 // 2
    H2, W2 = Ho1, Wo1
    Ho2, Wo2 = H2 // 2, W2 // 2

    def pad_store(xpad_ref, src, H, W):
        """Zero ONLY the read halo (item 2), then store the interior at an aligned offset."""
        C = xpad_ref.shape[-1]
        zrow = jnp.zeros((N, 1, W + 2, C), jnp.float32)
        zcol = jnp.zeros((N, H, 1, C), jnp.float32)
        xpad_ref[:, 0:1, PADW - 1:PADW + W + 1, :] = zrow             # top halo row
        xpad_ref[:, H + 1:H + 2, PADW - 1:PADW + W + 1, :] = zrow     # bottom halo row
        xpad_ref[:, 1:H + 1, PADW - 1:PADW, :] = zcol                 # left halo column
        xpad_ref[:, 1:H + 1, PADW + W:PADW + W + 1, :] = zcol         # right halo column
        xpad_ref[:, 1:1 + H, PADW:PADW + W, :] = src                  # interior (8-aligned)

    def conv_bn_relu_pool(xpad_ref, tmp_ref, w_ref, s_ref, b_ref, H, W, Cin):
        M = N * H * W
        # --- conv: 9 per-tap accumulating MXU dots, no patch scratch (item 1) ---
        acc = None
        for t in range(9):
            dy, dx = divmod(t, 3)
            tap = xpad_ref[:, dy:dy + H, PADW - 1 + dx:PADW - 1 + dx + W, 0:Cin]
            d = jnp.dot(tap.reshape(M, Cin), w_ref[t],
                        preferred_element_type=jnp.float32)           # (M, Cp), lane-dense
            acc = d if acc is None else acc + d
        # --- folded BatchNorm (eval) + conv bias, then ReLU on full 128-lane vregs (item 3) ---
        y = jnp.maximum(acc * s_ref[...] + b_ref[...], 0.0)
        # --- MaxPool 2x2: H-halving is a free major-dim reshape; W-halving via one lane-dense
        #     store + strided sublane reads (item-5 note in header) ---
        y = jnp.max(y.reshape(N * (H // 2), 2, W, Cp), axis=1)        # (N*H/2, W, Cp)
        tmp_ref[...] = y                                              # unmasked 128-lane store
        return jnp.maximum(tmp_ref[:, pl.ds(0, W // 2, stride=2), :],
                           tmp_ref[:, pl.ds(1, W // 2, stride=2), :])  # (N*H/2, W/2, Cp)

    # ---- layer 1 ----
    pad_store(xpad1_ref, x_ref[...], H1, W1)
    p1 = conv_bn_relu_pool(xpad1_ref, tmp1_ref, w1_ref, s1_ref, b1_ref, H1, W1, C0)

    # ---- layer 2 (padded channels of p1 are exactly zero; tap reads slice the live lanes) ----
    pad_store(xpad2_ref, p1.reshape(N, H2, W2, Cp), H2, W2)
    p2 = conv_bn_relu_pool(xpad2_ref, tmp2_ref, w2_ref, s2_ref, b2_ref, H2, W2, C1)

    # ---- fc: Ho2*Wo2 accumulating register dots, no flatten scratch (item 4) ----
    p2 = p2.reshape(N, Ho2, Wo2, Cp)
    fc_acc = None
    for hw in range(Ho2 * Wo2):
        h, w = divmod(hw, Wo2)
        d = jnp.dot(p2[:, h, w, :], wfc_ref[hw], preferred_element_type=jnp.float32)
        fc_acc = d if fc_acc is None else fc_acc + d
    o_ref[...] = fc_acc + bfc_ref[...]


def cnn_forward_impl(x_nhwc, kp):
    """Forward pass.  Takes NHWC input (item 9: no per-call layout transpose)."""
    x = x_nhwc.astype(jnp.float32)
    N, H, W, C0 = x.shape
    assert H % 4 == 0 and W % 4 == 0, "two MaxPool2d(2) layers need H, W divisible by 4"
    O = kp["bfc"].shape[1]
    Ho1, Wo1 = H // 2, W // 2
    Ho2, Wo2 = Ho1 // 2, Wo1 // 2
    assert kp["wfc"].shape[0] == Ho2 * Wo2
    f32 = jnp.float32
    return pl.pallas_call(
        _cnn_fused_kernel,
        out_shape=jax.ShapeDtypeStruct((N, O), f32),
        scratch_shapes=[
            pltpu.VMEM((N, H + 2, W + 2 * PADW, C0), f32),          # padded input, layer 1
            pltpu.VMEM((N * Ho1, W, CPAD), f32),                    # H-pooled rows, layer 1
            pltpu.VMEM((N, Ho1 + 2, Wo1 + 2 * PADW, CPAD), f32),    # padded input, layer 2
            pltpu.VMEM((N * Ho2, Wo1, CPAD), f32),                  # H-pooled rows, layer 2
        ],
    )(x, kp["w1"], kp["scale1"], kp["shift1"],
      kp["w2"], kp["scale2"], kp["shift2"], kp["wfc"], kp["bfc"])


cnn_forward = jax.jit(cnn_forward_impl)


def init_params(key):
    """PyTorch-semantics parameters (conv HWIO, BN gamma/beta/running stats, fc (out,in))."""
    ks = jax.random.split(key, 16)
    f32 = jnp.float32
    p = {}
    # layer 1: Conv2d(4 -> 8, k=3, pad=1), BatchNorm2d(8)
    p["w1"] = 0.1 * jax.random.normal(ks[0], (3, 3, 4, 8), f32)
    p["b1"] = 0.1 * jax.random.normal(ks[1], (8,), f32)
    p["g1"] = 1.0 + 0.1 * jax.random.normal(ks[2], (8,), f32)
    p["beta1"] = 0.1 * jax.random.normal(ks[3], (8,), f32)
    p["mean1"] = 0.1 * jax.random.normal(ks[4], (8,), f32)
    p["var1"] = 1.0 + 0.1 * jax.random.uniform(ks[5], (8,), f32)
    # layer 2: Conv2d(8 -> 16, k=3, pad=1), BatchNorm2d(16)
    p["w2"] = 0.1 * jax.random.normal(ks[6], (3, 3, 8, 16), f32)
    p["b2"] = 0.1 * jax.random.normal(ks[7], (16,), f32)
    p["g2"] = 1.0 + 0.1 * jax.random.normal(ks[8], (16,), f32)
    p["beta2"] = 0.1 * jax.random.normal(ks[9], (16,), f32)
    p["mean2"] = 0.1 * jax.random.normal(ks[10], (16,), f32)
    p["var2"] = 1.0 + 0.1 * jax.random.uniform(ks[11], (16,), f32)
    # fc: Linear(16*4*4 -> 10), PyTorch layout (out_features, in_features), NCHW flatten order
    p["fc_w"] = 0.1 * jax.random.normal(ks[12], (10, 16 * 4 * 4), f32)
    p["fc_b"] = 0.1 * jax.random.normal(ks[13], (10,), f32)
    return p


def prepare_kernel_params(p, input_hw, eps=1e-5):
    """One-time re-layout of PyTorch-style params into the kernel's lane-dense layout."""
    f32 = jnp.float32

    def fold(w, b, g, beta, mean, var):
        s = (g / jnp.sqrt(var + eps)).astype(f32)
        shift = (beta + s * (b - mean)).astype(f32)
        kh, kw, cin, cout = w.shape
        w9 = w.reshape(kh * kw, cin, cout).astype(f32)
        # zero-pad Cout / scale / shift to 128 lanes (item 3); padded channels stay exactly 0
        w9p = jnp.zeros((kh * kw, cin, CPAD), f32).at[:, :, :cout].set(w9)
        sp = jnp.zeros((1, CPAD), f32).at[0, :cout].set(s)
        shp = jnp.zeros((1, CPAD), f32).at[0, :cout].set(shift)
        return w9p, sp, shp

    w1m, s1, sh1 = fold(p["w1"], p["b1"], p["g1"], p["beta1"], p["mean1"], p["var1"])
    w2m, s2, sh2 = fold(p["w2"], p["b2"], p["g2"], p["beta2"], p["mean2"], p["var2"])

    C2 = p["w2"].shape[-1]
    H, W = input_hw
    Ho2, Wo2 = H // 4, W // 4                      # independently derived (review concern)
    O, F = p["fc_w"].shape
    assert Ho2 * Wo2 * C2 == F, (Ho2, Wo2, C2, F)
    # PyTorch flattens NCHW (c, h, w); the kernel contracts per (h, w) position over channels.
    wfc = (p["fc_w"].reshape(O, C2, Ho2, Wo2)
           .transpose(2, 3, 1, 0)                  # (Ho2, Wo2, C2, O)
           .reshape(Ho2 * Wo2, C2, O).astype(f32))
    wfcp = jnp.zeros((Ho2 * Wo2, CPAD, O), f32).at[:, :C2, :].set(wfc)
    return dict(w1=w1m, scale1=s1, shift1=sh1,
                w2=w2m, scale2=s2, shift2=sh2,
                wfc=wfcp, bfc=p["fc_b"].reshape(1, O).astype(f32))


def ref_forward(x_nchw, p, eps=1e-5):
    """Pure-JAX reference with explicit conv-bias / BatchNorm(eval) / ReLU / pool / fc."""
    hi = jax.lax.Precision.HIGHEST

    def layer(x, w, b, g, beta, mean, var):
        y = jax.lax.conv_general_dilated(
            x, w, (1, 1), ((1, 1), (1, 1)),
            dimension_numbers=("NHWC", "HWIO", "NHWC"), precision=hi) + b
        y = (y - mean) / jnp.sqrt(var + eps) * g + beta
        y = jnp.maximum(y, 0.0)
        return jax.lax.reduce_window(y, -jnp.inf, jax.lax.max,
                                     (1, 2, 2, 1), (1, 2, 2, 1), "VALID")

    x = jnp.transpose(x_nchw, (0, 2, 3, 1))
    y = layer(x, p["w1"], p["b1"], p["g1"], p["beta1"], p["mean1"], p["var1"])
    y = layer(y, p["w2"], p["b2"], p["g2"], p["beta2"], p["mean2"], p["var2"])
    y = jnp.transpose(y, (0, 3, 1, 2)).reshape(y.shape[0], -1)    # PyTorch NCHW flatten
    return jnp.dot(y, p["fc_w"].T, precision=hi) + p["fc_b"]


if __name__ == "__main__":
    key = jax.random.PRNGKey(0)
    k_x, k_p = jax.random.split(key)
    x_nchw = jax.random.normal(k_x, (2, 4, 16, 16), jnp.float32)   # NCHW, like PyTorch
    params = init_params(k_p)
    kparams = prepare_kernel_params(params, input_hw=(16, 16))

    # Item 9: NCHW -> NHWC is one-time data prep, not part of the per-call forward.
    x_nhwc = jnp.transpose(x_nchw, (0, 2, 3, 1))

    out = jax.block_until_ready(cnn_forward(x_nhwc, kparams))
    assert out.shape == (2, 10), out.shape

    ref = ref_forward(x_nchw, params)
    max_err = float(jnp.max(jnp.abs(out - ref)))
    assert max_err < 1e-3, f"mismatch vs reference: {max_err}"
    print(f"output shape: {out.shape}, max |pallas - ref| = {max_err:.3e}")

    print("KERNEL_OK")
</pallas_src>

<mosaic_0001>
module attributes {stable_mosaic.version = 11 : i64} {
  func.func @_cnn_fused_kernel(%arg0: memref<2x16x16x4xf32, #tpu.memory_space<vmem>>, %arg1: memref<9x4x128xf32, #tpu.memory_space<vmem>>, %arg2: memref<1x128xf32, #tpu.memory_space<vmem>>, %arg3: memref<1x128xf32, #tpu.memory_space<vmem>>, %arg4: memref<9x8x128xf32, #tpu.memory_space<vmem>>, %arg5: memref<1x128xf32, #tpu.memory_space<vmem>>, %arg6: memref<1x128xf32, #tpu.memory_space<vmem>>, %arg7: memref<16x128x10xf32, #tpu.memory_space<vmem>>, %arg8: memref<1x10xf32, #tpu.memory_space<vmem>>, %arg9: memref<2x10xf32, #tpu.memory_space<vmem>>, %arg10: memref<2x18x32x4xf32, #tpu.memory_space<vmem>>, %arg11: memref<16x16x128xf32, #tpu.memory_space<vmem>>, %arg12: memref<2x10x24x128xf32, #tpu.memory_space<vmem>>, %arg13: memref<8x8x128xf32, #tpu.memory_space<vmem>>) attributes {dimension_semantics = [], scalar_prefetch = 0 : i64, scratch_operands = 4 : i64, tpu.core_type = #tpu.core_type<tc>} {
    %c0 = arith.constant 0 : index
    %c0_0 = arith.constant 0 : index
    %c0_1 = arith.constant 0 : index
    %c0_2 = arith.constant 0 : index
    %0 = vector.load %arg0[%c0, %c0_0, %c0_1, %c0_2] : memref<2x16x16x4xf32, #tpu.memory_space<vmem>>, vector<2x16x16x4xf32>
    %cst = arith.constant 0.000000e+00 : f32
    %1 = vector.broadcast %cst : f32 to vector<2x1x18x4xf32>
    %cst_3 = arith.constant 0.000000e+00 : f32
    %2 = vector.broadcast %cst_3 : f32 to vector<2x16x1x4xf32>
    %c0_4 = arith.constant 0 : index
    %c0_5 = arith.constant 0 : index
    %c7 = arith.constant 7 : index
    %c0_6 = arith.constant 0 : index
    %3 = vector.load %arg10[%c0_4, %c0_5, %c7, %c0_6] : memref<2x18x32x4xf32, #tpu.memory_space<vmem>>, vector<2x1x18x4xf32>
    tpu.vector_store %arg10[%c0_4, %c0_5, %c7, %c0_6], %1 {strides = array<i32>} : memref<2x18x32x4xf32, #tpu.memory_space<vmem>>, vector<2x1x18x4xf32>,
    %c0_7 = arith.constant 0 : index
    %c17 = arith.constant 17 : index
    %c7_8 = arith.constant 7 : index
    %c0_9 = arith.constant 0 : index
    %4 = vector.load %arg10[%c0_7, %c17, %c7_8, %c0_9] : memref<2x18x32x4xf32, #tpu.memory_space<vmem>>, vector<2x1x18x4xf32>
    tpu.vector_store %arg10[%c0_7, %c17, %c7_8, %c0_9], %1 {strides = array<i32>} : memref<2x18x32x4xf32, #tpu.memory_space<vmem>>, vector<2x1x18x4xf32>,
    %c0_10 = arith.constant 0 : index
    %c1 = arith.constant 1 : index
    %c7_11 = arith.constant 7 : index
    %c0_12 = arith.constant 0 : index
    %5 = vector.load %arg10[%c0_10, %c1, %c7_11, %c0_12] : memref<2x18x32x4xf32, #tpu.memory_space<vmem>>, vector<2x16x1x4xf32>
    tpu.vector_store %arg10[%c0_10, %c1, %c7_11, %c0_12], %2 {strides = array<i32>} : memref<2x18x32x4xf32, #tpu.memory_space<vmem>>, vector<2x16x1x4xf32>,
    %c0_13 = arith.constant 0 : index
    %c1_14 = arith.constant 1 : index
    %c24 = arith.constant 24 : index
    %c0_15 = arith.constant 0 : index
    %6 = vector.load %arg10[%c0_13, %c1_14, %c24, %c0_15] : memref<2x18x32x4xf32, #tpu.memory_space<vmem>>, vector<2x16x1x4xf32>
    tpu.vector_store %arg10[%c0_13, %c1_14, %c24, %c0_15], %2 {strides = array<i32>} : memref<2x18x32x4xf32, #tpu.memory_space<vmem>>, vector<2x16x1x4xf32>,
    %c0_16 = arith.constant 0 : index
    %c1_17 = arith.constant 1 : index
    %c8 = arith.constant 8 : index
    %c0_18 = arith.constant 0 : index
    %7 = vector.load %arg10[%c0_16, %c1_17, %c8, %c0_18] : memref<2x18x32x4xf32, #tpu.memory_space<vmem>>, vector<2x16x16x4xf32>
    tpu.vector_store %arg10[%c0_16, %c1_17, %c8, %c0_18], %0 {strides = array<i32>} : memref<2x18x32x4xf32, #tpu.memory_space<vmem>>, vector<2x16x16x4xf32>,
    %c0_19 = arith.constant 0 : index
    %c0_20 = arith.constant 0 : index
    %c7_21 = arith.constant 7 : index
    %c0_22 = arith.constant 0 : index
    %8 = vector.load %arg10[%c0_19, %c0_20, %c7_21, %c0_22] : memref<2x18x32x4xf32, #tpu.memory_space<vmem>>, vector<2x16x16x4xf32>
    %9 = vector.shape_cast %8 : vector<2x16x16x4xf32> to vector<512x4xf32>
    %c0_23 = arith.constant 0 : index
    %c0_24 = arith.constant 0 : index
    %c0_25 = arith.constant 0 : index
    %10 = vector.load %arg1[%c0_23, %c0_24, %c0_25] : memref<9x4x128xf32, #tpu.memory_space<vmem>>, vector<1x4x128xf32>
    %11 = vector.shape_cast %10 : vector<1x4x128xf32> to vector<4x128xf32>
    %cst_26 = arith.constant dense<0.000000e+00> : vector<512x128xf32>
    %12 = tpu.matmul %9, %11, %cst_26 {dimension_numbers = #tpu.dot_dimension_numbers<[1], [0], [0], [1], [0, 0, 1, 1], [], []>} : vector<512x4xf32>, vector<4x128xf32>, vector<512x128xf32> -> vector<512x128xf32>
    %c0_27 = arith.constant 0 : index
    %c0_28 = arith.constant 0 : index
    %c8_29 = arith.constant 8 : index
    %c0_30 = arith.constant 0 : index
    %13 = vector.load %arg10[%c0_27, %c0_28, %c8_29, %c0_30] : memref<2x18x32x4xf32, #tpu.memory_space<vmem>>, vector<2x16x16x4xf32>
    %14 = vector.shape_cast %13 : vector<2x16x16x4xf32> to vector<512x4xf32>
    %c1_31 = arith.constant 1 : index
    %c0_32 = arith.constant 0 : index
    %c0_33 = arith.constant 0 : index
    %15 = vector.load %arg1[%c1_31, %c0_32, %c0_33] : memref<9x4x128xf32, #tpu.memory_space<vmem>>, vector<1x4x128xf32>
    %16 = vector.shape_cast %15 : vector<1x4x128xf32> to vector<4x128xf32>
    %cst_34 = arith.constant dense<0.000000e+00> : vector<512x128xf32>
    %17 = tpu.matmul %14, %16, %cst_34 {dimension_numbers = #tpu.dot_dimension_numbers<[1], [0], [0], [1], [0, 0, 1, 1], [], []>} : vector<512x4xf32>, vector<4x128xf32>, vector<512x128xf32> -> vector<512x128xf32>
    %18 = arith.addf %12, %17 : vector<512x128xf32>
    %c0_35 = arith.constant 0 : index
    %c0_36 = arith.constant 0 : index
    %c9 = arith.constant 9 : index
    %c0_37 = arith.constant 0 : index
    %19 = vector.load %arg10[%c0_35, %c0_36, %c9, %c0_37] : memref<2x18x32x4xf32, #tpu.memory_space<vmem>>, vector<2x16x16x4xf32>
    %20 = vector.shape_cast %19 : vector<2x16x16x4xf32> to vector<512x4xf32>
    %c2 = arith.constant 2 : index
    %c0_38 = arith.constant 0 : index
    %c0_39 = arith.constant 0 : index
    %21 = vector.load %arg1[%c2, %c0_38, %c0_39] : memref<9x4x128xf32, #tpu.memory_space<vmem>>, vector<1x4x128xf32>
    %22 = vector.shape_cast %21 : vector<1x4x128xf32> to vector<4x128xf32>
    %cst_40 = arith.constant dense<0.000000e+00> : vector<512x128xf32>
    %23 = tpu.matmul %20, %22, %cst_40 {dimension_numbers = #tpu.dot_dimension_numbers<[1], [0], [0], [1], [0, 0, 1, 1], [], []>} : vector<512x4xf32>, vector<4x128xf32>, vector<512x128xf32> -> vector<512x128xf32>
    %24 = arith.addf %18, %23 : vector<512x128xf32>
    %c0_41 = arith.constant 0 : index
    %c1_42 = arith.constant 1 : index
    %c7_43 = arith.constant 7 : index
    %c0_44 = arith.constant 0 : index
    %25 = vector.load %arg10[%c0_41, %c1_42, %c7_43, %c0_44] : memref<2x18x32x4xf32, #tpu.memory_space<vmem>>, vector<2x16x16x4xf32>
    %26 = vector.shape_cast %25 : vector<2x16x16x4xf32> to vector<512x4xf32>
    %c3 = arith.constant 3 : index
    %c0_45 = arith.constant 0 : index
    %c0_46 = arith.constant 0 : index
    %27 = vector.load %arg1[%c3, %c0_45, %c0_46] : memref<9x4x128xf32, #tpu.memory_space<vmem>>, vector<1x4x128xf32>
    %28 = vector.shape_cast %27 : vector<1x4x128xf32> to vector<4x128xf32>
    %cst_47 = arith.constant dense<0.000000e+00> : vector<512x128xf32>
    %29 = tpu.matmul %26, %28, %cst_47 {dimension_numbers = #tpu.dot_dimension_numbers<[1], [0], [0], [1], [0, 0, 1, 1], [], []>} : vector<512x4xf32>, vector<4x128xf32>, vector<512x128xf32> -> vector<512x128xf32>
    %30 = arith.addf %24, %29 : vector<512x128xf32>
    %c0_48 = arith.constant 0 : index
    %c1_49 = arith.constant 1 : index
    %c8_50 = arith.constant 8 : index
    %c0_51 = arith.constant 0 : index
    %31 = vector.load %arg10[%c0_48, %c1_49, %c8_50, %c0_51] : memref<2x18x32x4xf32, #tpu.memory_space<vmem>>, vector<2x16x16x4xf32>
    %32 = vector.shape_cast %31 : vector<2x16x16x4xf32> to vector<512x4xf32>
    %c4 = arith.constant 4 : index
    %c0_52 = arith.constant 0 : index
    %c0_53 = arith.constant 0 : index
    %33 = vector.load %arg1[%c4, %c0_52, %c0_53] : memref<9x4x128xf32, #tpu.memory_space<vmem>>, vector<1x4x128xf32>
    %34 = vector.shape_cast %33 : vector<1x4x128xf32> to vector<4x128xf32>
    %cst_54 = arith.constant dense<0.000000e+00> : vector<512x128xf32>
    %35 = tpu.matmul %32, %34, %cst_54 {dimension_numbers = #tpu.dot_dimension_numbers<[1], [0], [0], [1], [0, 0, 1, 1], [], []>} : vector<512x4xf32>, vector<4x128xf32>, vector<512x128xf32> -> vector<512x128xf32>
    %36 = arith.addf %30, %35 : vector<512x128xf32>
    %c0_55 = arith.constant 0 : index
    %c1_56 = arith.constant 1 : index
    %c9_57 = arith.constant 9 : index
    %c0_58 = arith.constant 0 : index
    %37 = vector.load %arg10[%c0_55, %c1_56, %c9_57, %c0_58] : memref<2x18x32x4xf32, #tpu.memory_space<vmem>>, vector<2x16x16x4xf32>
    %38 = vector.shape_cast %37 : vector<2x16x16x4xf32> to vector<512x4xf32>
    %c5 = arith.constant 5 : index
    %c0_59 = arith.constant 0 : index
    %c0_60 = arith.constant 0 : index
    %39 = vector.load %arg1[%c5, %c0_59, %c0_60] : memref<9x4x128xf32, #tpu.memory_space<vmem>>, vector<1x4x128xf32>
    %40 = vector.shape_cast %39 : vector<1x4x128xf32> to vector<4x128xf32>
    %cst_61 = arith.constant dense<0.000000e+00> : vector<512x128xf32>
    %41 = tpu.matmul %38, %40, %cst_61 {dimension_numbers = #tpu.dot_dimension_numbers<[1], [0], [0], [1], [0, 0, 1, 1], [], []>} : vector<512x4xf32>, vector<4x128xf32>, vector<512x128xf32> -> vector<512x128xf32>
    %42 = arith.addf %36, %41 : vector<512x128xf32>
    %c0_62 = arith.constant 0 : index
    %c2_63 = arith.constant 2 : index
    %c7_64 = arith.constant 7 : index
    %c0_65 = arith.constant 0 : index
    %43 = vector.load %arg10[%c0_62, %c2_63, %c7_64, %c0_65] : memref<2x18x32x4xf32, #tpu.memory_space<vmem>>, vector<2x16x16x4xf32>
    %44 = vector.shape_cast %43 : vector<2x16x16x4xf32> to vector<512x4xf32>
    %c6 = arith.constant 6 : index
    %c0_66 = arith.constant 0 : index
    %c0_67 = arith.constant 0 : index
    %45 = vector.load %arg1[%c6, %c0_66, %c0_67] : memref<9x4x128xf32, #tpu.memory_space<vmem>>, vector<1x4x128xf32>
    %46 = vector.shape_cast %45 : vector<1x4x128xf32> to vector<4x128xf32>
    %cst_68 = arith.constant dense<0.000000e+00> : vector<512x128xf32>
    %47 = tpu.matmul %44, %46, %cst_68 {dimension_numbers = #tpu.dot_dimension_numbers<[1], [0], [0], [1], [0, 0, 1, 1], [], []>} : vector<512x4xf32>, vector<4x128xf32>, vector<512x128xf32> -> vector<512x128xf32>
    %48 = arith.addf %42, %47 : vector<512x128xf32>
    %c0_69 = arith.constant 0 : index
    %c2_70 = arith.constant 2 : index
    %c8_71 = arith.constant 8 : index
    %c0_72 = arith.constant 0 : index
    %49 = vector.load %arg10[%c0_69, %c2_70, %c8_71, %c0_72] : memref<2x18x32x4xf32, #tpu.memory_space<vmem>>, vector<2x16x16x4xf32>
    %50 = vector.shape_cast %49 : vector<2x16x16x4xf32> to vector<512x4xf32>
    %c7_73 = arith.constant 7 : index
    %c0_74 = arith.constant 0 : index
    %c0_75 = arith.constant 0 : index
    %51 = vector.load %arg1[%c7_73, %c0_74, %c0_75] : memref<9x4x128xf32, #tpu.memory_space<vmem>>, vector<1x4x128xf32>
    %52 = vector.shape_cast %51 : vector<1x4x128xf32> to vector<4x128xf32>
    %cst_76 = arith.constant dense<0.000000e+00> : vector<512x128xf32>
    %53 = tpu.matmul %50, %52, %cst_76 {dimension_numbers = #tpu.dot_dimension_numbers<[1], [0], [0], [1], [0, 0, 1, 1], [], []>} : vector<512x4xf32>, vector<4x128xf32>, vector<512x128xf32> -> vector<512x128xf32>
    %54 = arith.addf %48, %53 : vector<512x128xf32>
    %c0_77 = arith.constant 0 : index
    %c2_78 = arith.constant 2 : index
    %c9_79 = arith.constant 9 : index
    %c0_80 = arith.constant 0 : index
    %55 = vector.load %arg10[%c0_77, %c2_78, %c9_79, %c0_80] : memref<2x18x32x4xf32, #tpu.memory_space<vmem>>, vector<2x16x16x4xf32>
    %56 = vector.shape_cast %55 : vector<2x16x16x4xf32> to vector<512x4xf32>
    %c8_81 = arith.constant 8 : index
    %c0_82 = arith.constant 0 : index
    %c0_83 = arith.constant 0 : index
    %57 = vector.load %arg1[%c8_81, %c0_82, %c0_83] : memref<9x4x128xf32, #tpu.memory_space<vmem>>, vector<1x4x128xf32>
    %58 = vector.shape_cast %57 : vector<1x4x128xf32> to vector<4x128xf32>
    %cst_84 = arith.constant dense<0.000000e+00> : vector<512x128xf32>
    %59 = tpu.matmul %56, %58, %cst_84 {dimension_numbers = #tpu.dot_dimension_numbers<[1], [0], [0], [1], [0, 0, 1, 1], [], []>} : vector<512x4xf32>, vector<4x128xf32>, vector<512x128xf32> -> vector<512x128xf32>
    %60 = arith.addf %54, %59 : vector<512x128xf32>
    %c0_85 = arith.constant 0 : index
    %c0_86 = arith.constant 0 : index
    %61 = vector.load %arg2[%c0_85, %c0_86] : memref<1x128xf32, #tpu.memory_space<vmem>>, vector<1x128xf32>
    %62 = vector.broadcast %61 : vector<1x128xf32> to vector<512x128xf32>
    %63 = arith.mulf %60, %62 : vector<512x128xf32>
    %c0_87 = arith.constant 0 : index
    %c0_88 = arith.constant 0 : index
    %64 = vector.load %arg3[%c0_87, %c0_88] : memref<1x128xf32, #tpu.memory_space<vmem>>, vector<1x128xf32>
    %65 = vector.broadcast %64 : vector<1x128xf32> to vector<512x128xf32>
    %66 = arith.addf %63, %65 : vector<512x128xf32>
    %cst_89 = arith.constant 0.000000e+00 : f32
    %67 = vector.broadcast %cst_89 : f32 to vector<512x128xf32>
    %68 = arith.maximumf %66, %67 : vector<512x128xf32>
    %69 = vector.shape_cast %68 : vector<512x128xf32> to vector<16x2x16x128xf32>
    %cst_90 = arith.constant dense<0xFF800000> : vector<16x16x128xf32>
    %70 = vector.multi_reduction <maximumf>, %69, %cst_90 [1] : vector<16x2x16x128xf32> to vector<16x16x128xf32>
    %c0_91 = arith.constant 0 : index
    %c0_92 = arith.constant 0 : index
    %c0_93 = arith.constant 0 : index
    %71 = vector.load %arg11[%c0_91, %c0_92, %c0_93] : memref<16x16x128xf32, #tpu.memory_space<vmem>>, vector<16x16x128xf32>
    tpu.vector_store %arg11[%c0_91, %c0_92, %c0_93], %70 {strides = array<i32>} : memref<16x16x128xf32, #tpu.memory_space<vmem>>, vector<16x16x128xf32>,
    %c0_94 = arith.constant 0 : index
    %c0_95 = arith.constant 0 : index
    %c0_96 = arith.constant 0 : index
    %72 = tpu.strided_load %arg11[%c0_94, %c0_95, %c0_96] {strides = array<i32: 1, 2, 1>} : memref<16x16x128xf32, #tpu.memory_space<vmem>>, vector<16x8x128xf32>
    %c0_97 = arith.constant 0 : index
    %c1_98 = arith.constant 1 : index
    %c0_99 = arith.constant 0 : index
    %73 = tpu.strided_load %arg11[%c0_97, %c1_98, %c0_99] {strides = array<i32: 1, 2, 1>} : memref<16x16x128xf32, #tpu.memory_space<vmem>>, vector<16x8x128xf32>
    %74 = arith.maximumf %72, %73 : vector<16x8x128xf32>
    %75 = vector.shape_cast %74 : vector<16x8x128xf32> to vector<2x8x8x128xf32>
    %cst_100 = arith.constant 0.000000e+00 : f32
    %76 = vector.broadcast %cst_100 : f32 to vector<2x1x10x128xf32>
    %cst_101 = arith.constant 0.000000e+00 : f32
    %77 = vector.broadcast %cst_101 : f32 to vector<2x8x1x128xf32>
    %c0_102 = arith.constant 0 : index
    %c0_103 = arith.constant 0 : index
    %c7_104 = arith.constant 7 : index
    %c0_105 = arith.constant 0 : index
    %78 = vector.load %arg12[%c0_102, %c0_103, %c7_104, %c0_105] : memref<2x10x24x128xf32, #tpu.memory_space<vmem>>, vector<2x1x10x128xf32>
    tpu.vector_store %arg12[%c0_102, %c0_103, %c7_104, %c0_105], %76 {strides = array<i32>} : memref<2x10x24x128xf32, #tpu.memory_space<vmem>>, vector<2x1x10x128xf32>,
    %c0_106 = arith.constant 0 : index
    %c9_107 = arith.constant 9 : index
    %c7_108 = arith.constant 7 : index
    %c0_109 = arith.constant 0 : index
    %79 = vector.load %arg12[%c0_106, %c9_107, %c7_108, %c0_109] : memref<2x10x24x128xf32, #tpu.memory_space<vmem>>, vector<2x1x10x128xf32>
    tpu.vector_store %arg12[%c0_106, %c9_107, %c7_108, %c0_109], %76 {strides = array<i32>} : memref<2x10x24x128xf32, #tpu.memory_space<vmem>>, vector<2x1x10x128xf32>,
    %c0_110 = arith.constant 0 : index
    %c1_111 = arith.constant 1 : index
    %c7_112 = arith.constant 7 : index
    %c0_113 = arith.constant 0 : index
    %80 = vector.load %arg12[%c0_110, %c1_111, %c7_112, %c0_113] : memref<2x10x24x128xf32, #tpu.memory_space<vmem>>, vector<2x8x1x128xf32>
    tpu.vector_store %arg12[%c0_110, %c1_111, %c7_112, %c0_113], %77 {strides = array<i32>} : memref<2x10x24x128xf32, #tpu.memory_space<vmem>>, vector<2x8x1x128xf32>,
    %c0_114 = arith.constant 0 : index
    %c1_115 = arith.constant 1 : index
    %c16 = arith.constant 16 : index
    %c0_116 = arith.constant 0 : index
    %81 = vector.load %arg12[%c0_114, %c1_115, %c16, %c0_116] : memref<2x10x24x128xf32, #tpu.memory_space<vmem>>, vector<2x8x1x128xf32>
    tpu.vector_store %arg12[%c0_114, %c1_115, %c16, %c0_116], %77 {strides = array<i32>} : memref<2x10x24x128xf32, #tpu.memory_space<vmem>>, vector<2x8x1x128xf32>,
    %c0_117 = arith.constant 0 : index
    %c1_118 = arith.constant 1 : index
    %c8_119 = arith.constant 8 : index
    %c0_120 = arith.constant 0 : index
    %82 = vector.load %arg12[%c0_117, %c1_118, %c8_119, %c0_120] : memref<2x10x24x128xf32, #tpu.memory_space<vmem>>, vector<2x8x8x128xf32>
    tpu.vector_store %arg12[%c0_117, %c1_118, %c8_119, %c0_120], %75 {strides = array<i32>} : memref<2x10x24x128xf32, #tpu.memory_space<vmem>>, vector<2x8x8x128xf32>,
    %c0_121 = arith.constant 0 : index
    %c0_122 = arith.constant 0 : index
    %c7_123 = arith.constant 7 : index
    %c0_124 = arith.constant 0 : index
    %83 = vector.load %arg12[%c0_121, %c0_122, %c7_123, %c0_124] : memref<2x10x24x128xf32, #tpu.memory_space<vmem>>, vector<2x8x8x8xf32>
    %84 = vector.shape_cast %83 : vector<2x8x8x8xf32> to vector<128x8xf32>
    %c0_125 = arith.constant 0 : index
    %c0_126 = arith.constant 0 : index
    %c0_127 = arith.constant 0 : index
    %85 = vector.load %arg4[%c0_125, %c0_126, %c0_127] : memref<9x8x128xf32, #tpu.memory_space<vmem>>, vector<1x8x128xf32>
    %86 = vector.shape_cast %85 : vector<1x8x128xf32> to vector<8x128xf32>
    %cst_128 = arith.constant dense<0.000000e+00> : vector<128x128xf32>
    %87 = tpu.matmul %84, %86, %cst_128 {dimension_numbers = #tpu.dot_dimension_numbers<[1], [0], [0], [1], [0, 0, 1, 1], [], []>} : vector<128x8xf32>, vector<8x128xf32>, vector<128x128xf32> -> vector<128x128xf32>
    %c0_129 = arith.constant 0 : index
    %c0_130 = arith.constant 0 : index
    %c8_131 = arith.constant 8 : index
    %c0_132 = arith.constant 0 : index
    %88 = vector.load %arg12[%c0_129, %c0_130, %c8_131, %c0_132] : memref<2x10x24x128xf32, #tpu.memory_space<vmem>>, vector<2x8x8x8xf32>
    %89 = vector.shape_cast %88 : vector<2x8x8x8xf32> to vector<128x8xf32>
    %c1_133 = arith.constant 1 : index
    %c0_134 = arith.constant 0 : index
    %c0_135 = arith.constant 0 : index
    %90 = vector.load %arg4[%c1_133, %c0_134, %c0_135] : memref<9x8x128xf32, #tpu.memory_space<vmem>>, vector<1x8x128xf32>
    %91 = vector.shape_cast %90 : vector<1x8x128xf32> to vector<8x128xf32>
    %cst_136 = arith.constant dense<0.000000e+00> : vector<128x128xf32>
    %92 = tpu.matmul %89, %91, %cst_136 {dimension_numbers = #tpu.dot_dimension_numbers<[1], [0], [0], [1], [0, 0, 1, 1], [], []>} : vector<128x8xf32>, vector<8x128xf32>, vector<128x128xf32> -> vector<128x128xf32>
    %93 = arith.addf %87, %92 : vector<128x128xf32>
    %c0_137 = arith.constant 0 : index
    %c0_138 = arith.constant 0 : index
    %c9_139 = arith.constant 9 : index
    %c0_140 = arith.constant 0 : index
    %94 = vector.load %arg12[%c0_137, %c0_138, %c9_139, %c0_140] : memref<2x10x24x128xf32, #tpu.memory_space<vmem>>, vector<2x8x8x8xf32>
    %95 = vector.shape_cast %94 : vector<2x8x8x8xf32> to vector<128x8xf32>
    %c2_141 = arith.constant 2 : index
    %c0_142 = arith.constant 0 : index
    %c0_143 = arith.constant 0 : index
    %96 = vector.load %arg4[%c2_141, %c0_142, %c0_143] : memref<9x8x128xf32, #tpu.memory_space<vmem>>, vector<1x8x128xf32>
    %97 = vector.shape_cast %96 : vector<1x8x128xf32> to vector<8x128xf32>
    %cst_144 = arith.constant dense<0.000000e+00> : vector<128x128xf32>
    %98 = tpu.matmul %95, %97, %cst_144 {dimension_numbers = #tpu.dot_dimension_numbers<[1], [0], [0], [1], [0, 0, 1, 1], [], []>} : vector<128x8xf32>, vector<8x128xf32>, vector<128x128xf32> -> vector<128x128xf32>
    %99 = arith.addf %93, %98 : vector<128x128xf32>
    %c0_145 = arith.constant 0 : index
    %c1_146 = arith.constant 1 : index
    %c7_147 = arith.constant 7 : index
    %c0_148 = arith.constant 0 : index
    %100 = vector.load %arg12[%c0_145, %c1_146, %c7_147, %c0_148] : memref<2x10x24x128xf32, #tpu.memory_space<vmem>>, vector<2x8x8x8xf32>
    %101 = vector.shape_cast %100 : vector<2x8x8x8xf32> to vector<128x8xf32>
    %c3_149 = arith.constant 3 : index
    %c0_150 = arith.constant 0 : index
    %c0_151 = arith.constant 0 : index
    %102 = vector.load %arg4[%c3_149, %c0_150, %c0_151] : memref<9x8x128xf32, #tpu.memory_space<vmem>>, vector<1x8x128xf32>
    %103 = vector.shape_cast %102 : vector<1x8x128xf32> to vector<8x128xf32>
    %cst_152 = arith.constant dense<0.000000e+00> : vector<128x128xf32>
    %104 = tpu.matmul %101, %103, %cst_152 {dimension_numbers = #tpu.dot_dimension_numbers<[1], [0], [0], [1], [0, 0, 1, 1], [], []>} : vector<128x8xf32>, vector<8x128xf32>, vector<128x128xf32> -> vector<128x128xf32>
    %105 = arith.addf %99, %104 : vector<128x128xf32>
    %c0_153 = arith.constant 0 : index
    %c1_154 = arith.constant 1 : index
    %c8_155 = arith.constant 8 : index
    %c0_156 = arith.constant 0 : index
    %106 = vector.load %arg12[%c0_153, %c1_154, %c8_155, %c0_156] : memref<2x10x24x128xf32, #tpu.memory_space<vmem>>, vector<2x8x8x8xf32>
    %107 = vector.shape_cast %106 : vector<2x8x8x8xf32> to vector<128x8xf32>
    %c4_157 = arith.constant 4 : index
    %c0_158 = arith.constant 0 : index
    %c0_159 = arith.constant 0 : index
    %108 = vector.load %arg4[%c4_157, %c0_158, %c0_159] : memref<9x8x128xf32, #tpu.memory_space<vmem>>, vector<1x8x128xf32>
    %109 = vector.shape_cast %108 : vector<1x8x128xf32> to vector<8x128xf32>
    %cst_160 = arith.constant dense<0.000000e+00> : vector<128x128xf32>
    %110 = tpu.matmul %107, %109, %cst_160 {dimension_numbers = #tpu.dot_dimension_numbers<[1], [0], [0], [1], [0, 0, 1, 1], [], []>} : vector<128x8xf32>, vector<8x128xf32>, vector<128x128xf32> -> vector<128x128xf32>
    %111 = arith.addf %105, %110 : vector<128x128xf32>
    %c0_161 = arith.constant 0 : index
    %c1_162 = arith.constant 1 : index
    %c9_163 = arith.constant 9 : index
    %c0_164 = arith.constant 0 : index
    %112 = vector.load %arg12[%c0_161, %c1_162, %c9_163, %c0_164] : memref<2x10x24x128xf32, #tpu.memory_space<vmem>>, vector<2x8x8x8xf32>
    %113 = vector.shape_cast %112 : vector<2x8x8x8xf32> to vector<128x8xf32>
    %c5_165 = arith.constant 5 : index
    %c0_166 = arith.constant 0 : index
    %c0_167 = arith.constant 0 : index
    %114 = vector.load %arg4[%c5_165, %c0_166, %c0_167] : memref<9x8x128xf32, #tpu.memory_space<vmem>>, vector<1x8x128xf32>
    %115 = vector.shape_cast %114 : vector<1x8x128xf32> to vector<8x128xf32>
    %cst_168 = arith.constant dense<0.000000e+00> : vector<128x128xf32>
    %116 = tpu.matmul %113, %115, %cst_168 {dimension_numbers = #tpu.dot_dimension_numbers<[1], [0], [0], [1], [0, 0, 1, 1], [], []>} : vector<128x8xf32>, vector<8x128xf32>, vector<128x128xf32> -> vector<128x128xf32>
    %117 = arith.addf %111, %116 : vector<128x128xf32>
    %c0_169 = arith.constant 0 : index
    %c2_170 = arith.constant 2 : index
    %c7_171 = arith.constant 7 : index
    %c0_172 = arith.constant 0 : index
    %118 = vector.load %arg12[%c0_169, %c2_170, %c7_171, %c0_172] : memref<2x10x24x128xf32, #tpu.memory_space<vmem>>, vector<2x8x8x8xf32>
    %119 = vector.shape_cast %118 : vector<2x8x8x8xf32> to vector<128x8xf32>
    %c6_173 = arith.constant 6 : index
    %c0_174 = arith.constant 0 : index
    %c0_175 = arith.constant 0 : index
    %120 = vector.load %arg4[%c6_173, %c0_174, %c0_175] : memref<9x8x128xf32, #tpu.memory_space<vmem>>, vector<1x8x128xf32>
    %121 = vector.shape_cast %120 : vector<1x8x128xf32> to vector<8x128xf32>
    %cst_176 = arith.constant dense<0.000000e+00> : vector<128x128xf32>
    %122 = tpu.matmul %119, %121, %cst_176 {dimension_numbers = #tpu.dot_dimension_numbers<[1], [0], [0], [1], [0, 0, 1, 1], [], []>} : vector<128x8xf32>, vector<8x128xf32>, vector<128x128xf32> -> vector<128x128xf32>
    %123 = arith.addf %117, %122 : vector<128x128xf32>
    %c0_177 = arith.constant 0 : index
    %c2_178 = arith.constant 2 : index
    %c8_179 = arith.constant 8 : index
    %c0_180 = arith.constant 0 : index
    %124 = vector.load %arg12[%c0_177, %c2_178, %c8_179, %c0_180] : memref<2x10x24x128xf32, #tpu.memory_space<vmem>>, vector<2x8x8x8xf32>
    %125 = vector.shape_cast %124 : vector<2x8x8x8xf32> to vector<128x8xf32>
    %c7_181 = arith.constant 7 : index
    %c0_182 = arith.constant 0 : index
    %c0_183 = arith.constant 0 : index
    %126 = vector.load %arg4[%c7_181, %c0_182, %c0_183] : memref<9x8x128xf32, #tpu.memory_space<vmem>>, vector<1x8x128xf32>
    %127 = vector.shape_cast %126 : vector<1x8x128xf32> to vector<8x128xf32>
    %cst_184 = arith.constant dense<0.000000e+00> : vector<128x128xf32>
    %128 = tpu.matmul %125, %127, %cst_184 {dimension_numbers = #tpu.dot_dimension_numbers<[1], [0], [0], [1], [0, 0, 1, 1], [], []>} : vector<128x8xf32>, vector<8x128xf32>, vector<128x128xf32> -> vector<128x128xf32>
    %129 = arith.addf %123, %128 : vector<128x128xf32>
    %c0_185 = arith.constant 0 : index
    %c2_186 = arith.constant 2 : index
    %c9_187 = arith.constant 9 : index
    %c0_188 = arith.constant 0 : index
    %130 = vector.load %arg12[%c0_185, %c2_186, %c9_187, %c0_188] : memref<2x10x24x128xf32, #tpu.memory_space<vmem>>, vector<2x8x8x8xf32>
    %131 = vector.shape_cast %130 : vector<2x8x8x8xf32> to vector<128x8xf32>
    %c8_189 = arith.constant 8 : index
    %c0_190 = arith.constant 0 : index
    %c0_191 = arith.constant 0 : index
    %132 = vector.load %arg4[%c8_189, %c0_190, %c0_191] : memref<9x8x128xf32, #tpu.memory_space<vmem>>, vector<1x8x128xf32>
    %133 = vector.shape_cast %132 : vector<1x8x128xf32> to vector<8x128xf32>
    %cst_192 = arith.constant dense<0.000000e+00> : vector<128x128xf32>
    %134 = tpu.matmul %131, %133, %cst_192 {dimension_numbers = #tpu.dot_dimension_numbers<[1], [0], [0], [1], [0, 0, 1, 1], [], []>} : vector<128x8xf32>, vector<8x128xf32>, vector<128x128xf32> -> vector<128x128xf32>
    %135 = arith.addf %129, %134 : vector<128x128xf32>
    %c0_193 = arith.constant 0 : index
    %c0_194 = arith.constant 0 : index
    %136 = vector.load %arg5[%c0_193, %c0_194] : memref<1x128xf32, #tpu.memory_space<vmem>>, vector<1x128xf32>
    %137 = vector.broadcast %136 : vector<1x128xf32> to vector<128x128xf32>
    %138 = arith.mulf %135, %137 : vector<128x128xf32>
    %c0_195 = arith.constant 0 : index
    %c0_196 = arith.constant 0 : index
    %139 = vector.load %arg6[%c0_195, %c0_196] : memref<1x128xf32, #tpu.memory_space<vmem>>, vector<1x128xf32>
    %140 = vector.broadcast %139 : vector<1x128xf32> to vector<128x128xf32>
    %141 = arith.addf %138, %140 : vector<128x128xf32>
    %cst_197 = arith.constant 0.000000e+00 : f32
    %142 = vector.broadcast %cst_197 : f32 to vector<128x128xf32>
    %143 = arith.maximumf %141, %142 : vector<128x128xf32>
    %144 = vector.shape_cast %143 : vector<128x128xf32> to vector<8x2x8x128xf32>
    %cst_198 = arith.constant dense<0xFF800000> : vector<8x8x128xf32>
    %145 = vector.multi_reduction <maximumf>, %144, %cst_198 [1] : vector<8x2x8x128xf32> to vector<8x8x128xf32>
    %c0_199 = arith.constant 0 : index
    %c0_200 = arith.constant 0 : index
    %c0_201 = arith.constant 0 : index
    %146 = vector.load %arg13[%c0_199, %c0_200, %c0_201] : memref<8x8x128xf32, #tpu.memory_space<vmem>>, vector<8x8x128xf32>
    tpu.vector_store %arg13[%c0_199, %c0_200, %c0_201], %145 {strides = array<i32>} : memref<8x8x128xf32, #tpu.memory_space<vmem>>, vector<8x8x128xf32>,
    %c0_202 = arith.constant 0 : index
    %c0_203 = arith.constant 0 : index
    %c0_204 = arith.constant 0 : index
    %147 = tpu.strided_load %arg13[%c0_202, %c0_203, %c0_204] {strides = array<i32: 1, 2, 1>} : memref<8x8x128xf32, #tpu.memory_space<vmem>>, vector<8x4x128xf32>
    %c0_205 = arith.constant 0 : index
    %c1_206 = arith.constant 1 : index
    %c0_207 = arith.constant 0 : index
    %148 = tpu.strided_load %arg13[%c0_205, %c1_206, %c0_207] {strides = array<i32: 1, 2, 1>} : memref<8x8x128xf32, #tpu.memory_space<vmem>>, vector<8x4x128xf32>
    %149 = arith.maximumf %147, %148 : vector<8x4x128xf32>
    %150 = vector.shape_cast %149 : vector<8x4x128xf32> to vector<2x4x4x128xf32>
    %151 = vector.extract_strided_slice %150 {offsets = [0, 0, 0, 0], sizes = [2, 1, 1, 128], strides = [1, 1, 1, 1]} : vector<2x4x4x128xf32> to vector<2x1x1x128xf32>
    %152 = vector.shape_cast %151 : vector<2x1x1x128xf32> to vector<2x128xf32>
    %c0_208 = arith.constant 0 : index
    %c0_209 = arith.constant 0 : index
    %c0_210 = arith.constant 0 : index
    %153 = vector.load %arg7[%c0_208, %c0_209, %c0_210] : memref<16x128x10xf32, #tpu.memory_space<vmem>>, vector<1x128x10xf32>
    %154 = vector.shape_cast %153 : vector<1x128x10xf32> to vector<128x10xf32>
    %cst_211 = arith.constant dense<0.000000e+00> : vector<2x10xf32>
    %155 = tpu.matmul %152, %154, %cst_211 {dimension_numbers = #tpu.dot_dimension_numbers<[1], [0], [0], [1], [0, 0, 1, 1], [], []>} : vector<2x128xf32>, vector<128x10xf32>, vector<2x10xf32> -> vector<2x10xf32>
    %156 = vector.extract_strided_slice %150 {offsets = [0, 0, 1, 0], sizes = [2, 1, 1, 128], strides = [1, 1, 1, 1]} : vector<2x4x4x128xf32> to vector<2x1x1x128xf32>
    %157 = vector.shape_cast %156 : vector<2x1x1x128xf32> to vector<2x128xf32>
    %c1_212 = arith.constant 1 : index
    %c0_213 = arith.constant 0 : index
    %c0_214 = arith.constant 0 : index
    %158 = vector.load %arg7[%c1_212, %c0_213, %c0_214] : memref<16x128x10xf32, #tpu.memory_space<vmem>>, vector<1x128x10xf32>
    %159 = vector.shape_cast %158 : vector<1x128x10xf32> to vector<128x10xf32>
    %cst_215 = arith.constant dense<0.000000e+00> : vector<2x10xf32>
    %160 = tpu.matmul %157, %159, %cst_215 {dimension_numbers = #tpu.dot_dimension_numbers<[1], [0], [0], [1], [0, 0, 1, 1], [], []>} : vector<2x128xf32>, vector<128x10xf32>, vector<2x10xf32> -> vector<2x10xf32>
    %161 = arith.addf %155, %160 : vector<2x10xf32>
    %162 = vector.extract_strided_slice %150 {offsets = [0, 0, 2, 0], sizes = [2, 1, 1, 128], strides = [1, 1, 1, 1]} : vector<2x4x4x128xf32> to vector<2x1x1x128xf32>
    %163 = vector.shape_cast %162 : vector<2x1x1x128xf32> to vector<2x128xf32>
    %c2_216 = arith.constant 2 : index
    %c0_217 = arith.constant 0 : index
    %c0_218 = arith.constant 0 : index
    %164 = vector.load %arg7[%c2_216, %c0_217, %c0_218] : memref<16x128x10xf32, #tpu.memory_space<vmem>>, vector<1x128x10xf32>
    %165 = vector.shape_cast %164 : vector<1x128x10xf32> to vector<128x10xf32>
    %cst_219 = arith.constant dense<0.000000e+00> : vector<2x10xf32>
    %166 = tpu.matmul %163, %165, %cst_219 {dimension_numbers = #tpu.dot_dimension_numbers<[1], [0], [0], [1], [0, 0, 1, 1], [], []>} : vector<2x128xf32>, vector<128x10xf32>, vector<2x10xf32> -> vector<2x10xf32>
    %167 = arith.addf %161, %166 : vector<2x10xf32>
    %168 = vector.extract_strided_slice %150 {offsets = [0, 0, 3, 0], sizes = [2, 1, 1, 128], strides = [1, 1, 1, 1]} : vector<2x4x4x128xf32> to vector<2x1x1x128xf32>
    %169 = vector.shape_cast %168 : vector<2x1x1x128xf32> to vector<2x128xf32>
    %c3_220 = arith.constant 3 : index
    %c0_221 = arith.constant 0 : index
    %c0_222 = arith.constant 0 : index
    %170 = vector.load %arg7[%c3_220, %c0_221, %c0_222] : memref<16x128x10xf32, #tpu.memory_space<vmem>>, vector<1x128x10xf32>
    %171 = vector.shape_cast %170 : vector<1x128x10xf32> to vector<128x10xf32>
    %cst_223 = arith.constant dense<0.000000e+00> : vector<2x10xf32>
    %172 = tpu.matmul %169, %171, %cst_223 {dimension_numbers = #tpu.dot_dimension_numbers<[1], [0], [0], [1], [0, 0, 1, 1], [], []>} : vector<2x128xf32>, vector<128x10xf32>, vector<2x10xf32> -> vector<2x10xf32>
    %173 = arith.addf %167, %172 : vector<2x10xf32>
    %174 = vector.extract_strided_slice %150 {offsets = [0, 1, 0, 0], sizes = [2, 1, 1, 128], strides = [1, 1, 1, 1]} : vector<2x4x4x128xf32> to vector<2x1x1x128xf32>
    %175 = vector.shape_cast %174 : vector<2x1x1x128xf32> to vector<2x128xf32>
    %c4_224 = arith.constant 4 : index
    %c0_225 = arith.constant 0 : index
    %c0_226 = arith.constant 0 : index
    %176 = vector.load %arg7[%c4_224, %c0_225, %c0_226] : memref<16x128x10xf32, #tpu.memory_space<vmem>>, vector<1x128x10xf32>
    %177 = vector.shape_cast %176 : vector<1x128x10xf32> to vector<128x10xf32>
    %cst_227 = arith.constant dense<0.000000e+00> : vector<2x10xf32>
    %178 = tpu.matmul %175, %177, %cst_227 {dimension_numbers = #tpu.dot_dimension_numbers<[1], [0], [0], [1], [0, 0, 1, 1], [], []>} : vector<2x128xf32>, vector<128x10xf32>, vector<2x10xf32> -> vector<2x10xf32>
    %179 = arith.addf %173, %178 : vector<2x10xf32>
    %180 = vector.extract_strided_slice %150 {offsets = [0, 1, 1, 0], sizes = [2, 1, 1, 128], strides = [1, 1, 1, 1]} : vector<2x4x4x128xf32> to vector<2x1x1x128xf32>
    %181 = vector.shape_cast %180 : vector<2x1x1x128xf32> to vector<2x128xf32>
    %c5_228 = arith.constant 5 : index
    %c0_229 = arith.constant 0 : index
    %c0_230 = arith.constant 0 : index
    %182 = vector.load %arg7[%c5_228, %c0_229, %c0_230] : memref<16x128x10xf32, #tpu.memory_space<vmem>>, vector<1x128x10xf32>
    %183 = vector.shape_cast %182 : vector<1x128x10xf32> to vector<128x10xf32>
    %cst_231 = arith.constant dense<0.000000e+00> : vector<2x10xf32>
    %184 = tpu.matmul %181, %183, %cst_231 {dimension_numbers = #tpu.dot_dimension_numbers<[1], [0], [0], [1], [0, 0, 1, 1], [], []>} : vector<2x128xf32>, vector<128x10xf32>, vector<2x10xf32> -> vector<2x10xf32>
    %185 = arith.addf %179, %184 : vector<2x10xf32>
    %186 = vector.extract_strided_slice %150 {offsets = [0, 1, 2, 0], sizes = [2, 1, 1, 128], strides = [1, 1, 1, 1]} : vector<2x4x4x128xf32> to vector<2x1x1x128xf32>
    %187 = vector.shape_cast %186 : vector<2x1x1x128xf32> to vector<2x128xf32>
    %c6_232 = arith.constant 6 : index
    %c0_233 = arith.constant 0 : index
    %c0_234 = arith.constant 0 : index
    %188 = vector.load %arg7[%c6_232, %c0_233, %c0_234] : memref<16x128x10xf32, #tpu.memory_space<vmem>>, vector<1x128x10xf32>
    %189 = vector.shape_cast %188 : vector<1x128x10xf32> to vector<128x10xf32>
    %cst_235 = arith.constant dense<0.000000e+00> : vector<2x10xf32>
    %190 = tpu.matmul %187, %189, %cst_235 {dimension_numbers = #tpu.dot_dimension_numbers<[1], [0], [0], [1], [0, 0, 1, 1], [], []>} : vector<2x128xf32>, vector<128x10xf32>, vector<2x10xf32> -> vector<2x10xf32>
    %191 = arith.addf %185, %190 : vector<2x10xf32>
    %192 = vector.extract_strided_slice %150 {offsets = [0, 1, 3, 0], sizes = [2, 1, 1, 128], strides = [1, 1, 1, 1]} : vector<2x4x4x128xf32> to vector<2x1x1x128xf32>
    %193 = vector.shape_cast %192 : vector<2x1x1x128xf32> to vector<2x128xf32>
    %c7_236 = arith.constant 7 : index
    %c0_237 = arith.constant 0 : index
    %c0_238 = arith.constant 0 : index
    %194 = vector.load %arg7[%c7_236, %c0_237, %c0_238] : memref<16x128x10xf32, #tpu.memory_space<vmem>>, vector<1x128x10xf32>
    %195 = vector.shape_cast %194 : vector<1x128x10xf32> to vector<128x10xf32>
    %cst_239 = arith.constant dense<0.000000e+00> : vector<2x10xf32>
    %196 = tpu.matmul %193, %195, %cst_239 {dimension_numbers = #tpu.dot_dimension_numbers<[1], [0], [0], [1], [0, 0, 1, 1], [], []>} : vector<2x128xf32>, vector<128x10xf32>, vector<2x10xf32> -> vector<2x10xf32>
    %197 = arith.addf %191, %196 : vector<2x10xf32>
    %198 = vector.extract_strided_slice %150 {offsets = [0, 2, 0, 0], sizes = [2, 1, 1, 128], strides = [1, 1, 1, 1]} : vector<2x4x4x128xf32> to vector<2x1x1x128xf32>
    %199 = vector.shape_cast %198 : vector<2x1x1x128xf32> to vector<2x128xf32>
    %c8_240 = arith.constant 8 : index
    %c0_241 = arith.constant 0 : index
    %c0_242 = arith.constant 0 : index
    %200 = vector.load %arg7[%c8_240, %c0_241, %c0_242] : memref<16x128x10xf32, #tpu.memory_space<vmem>>, vector<1x128x10xf32>
    %201 = vector.shape_cast %200 : vector<1x128x10xf32> to vector<128x10xf32>
    %cst_243 = arith.constant dense<0.000000e+00> : vector<2x10xf32>
    %202 = tpu.matmul %199, %201, %cst_243 {dimension_numbers = #tpu.dot_dimension_numbers<[1], [0], [0], [1], [0, 0, 1, 1], [], []>} : vector<2x128xf32>, vector<128x10xf32>, vector<2x10xf32> -> vector<2x10xf32>
    %203 = arith.addf %197, %202 : vector<2x10xf32>
    %204 = vector.extract_strided_slice %150 {offsets = [0, 2, 1, 0], sizes = [2, 1, 1, 128], strides = [1, 1, 1, 1]} : vector<2x4x4x128xf32> to vector<2x1x1x128xf32>
    %205 = vector.shape_cast %204 : vector<2x1x1x128xf32> to vector<2x128xf32>
    %c9_244 = arith.constant 9 : index
    %c0_245 = arith.constant 0 : index
    %c0_246 = arith.constant 0 : index
    %206 = vector.load %arg7[%c9_244, %c0_245, %c0_246] : memref<16x128x10xf32, #tpu.memory_space<vmem>>, vector<1x128x10xf32>
    %207 = vector.shape_cast %206 : vector<1x128x10xf32> to vector<128x10xf32>
    %cst_247 = arith.constant dense<0.000000e+00> : vector<2x10xf32>
    %208 = tpu.matmul %205, %207, %cst_247 {dimension_numbers = #tpu.dot_dimension_numbers<[1], [0], [0], [1], [0, 0, 1, 1], [], []>} : vector<2x128xf32>, vector<128x10xf32>, vector<2x10xf32> -> vector<2x10xf32>
    %209 = arith.addf %203, %208 : vector<2x10xf32>
    %210 = vector.extract_strided_slice %150 {offsets = [0, 2, 2, 0], sizes = [2, 1, 1, 128], strides = [1, 1, 1, 1]} : vector<2x4x4x128xf32> to vector<2x1x1x128xf32>
    %211 = vector.shape_cast %210 : vector<2x1x1x128xf32> to vector<2x128xf32>
    %c10 = arith.constant 10 : index
    %c0_248 = arith.constant 0 : index
    %c0_249 = arith.constant 0 : index
    %212 = vector.load %arg7[%c10, %c0_248, %c0_249] : memref<16x128x10xf32, #tpu.memory_space<vmem>>, vector<1x128x10xf32>
    %213 = vector.shape_cast %212 : vector<1x128x10xf32> to vector<128x10xf32>
    %cst_250 = arith.constant dense<0.000000e+00> : vector<2x10xf32>
    %214 = tpu.matmul %211, %213, %cst_250 {dimension_numbers = #tpu.dot_dimension_numbers<[1], [0], [0], [1], [0, 0, 1, 1], [], []>} : vector<2x128xf32>, vector<128x10xf32>, vector<2x10xf32> -> vector<2x10xf32>
    %215 = arith.addf %209, %214 : vector<2x10xf32>
    %216 = vector.extract_strided_slice %150 {offsets = [0, 2, 3, 0], sizes = [2, 1, 1, 128], strides = [1, 1, 1, 1]} : vector<2x4x4x128xf32> to vector<2x1x1x128xf32>
    %217 = vector.shape_cast %216 : vector<2x1x1x128xf32> to vector<2x128xf32>
    %c11 = arith.constant 11 : index
    %c0_251 = arith.constant 0 : index
    %c0_252 = arith.constant 0 : index
    %218 = vector.load %arg7[%c11, %c0_251, %c0_252] : memref<16x128x10xf32, #tpu.memory_space<vmem>>, vector<1x128x10xf32>
    %219 = vector.shape_cast %218 : vector<1x128x10xf32> to vector<128x10xf32>
    %cst_253 = arith.constant dense<0.000000e+00> : vector<2x10xf32>
    %220 = tpu.matmul %217, %219, %cst_253 {dimension_numbers = #tpu.dot_dimension_numbers<[1], [0], [0], [1], [0, 0, 1, 1], [], []>} : vector<2x128xf32>, vector<128x10xf32>, vector<2x10xf32> -> vector<2x10xf32>
    %221 = arith.addf %215, %220 : vector<2x10xf32>
    %222 = vector.extract_strided_slice %150 {offsets = [0, 3, 0, 0], sizes = [2, 1, 1, 128], strides = [1, 1, 1, 1]} : vector<2x4x4x128xf32> to vector<2x1x1x128xf32>
    %223 = vector.shape_cast %222 : vector<2x1x1x128xf32> to vector<2x128xf32>
    %c12 = arith.constant 12 : index
    %c0_254 = arith.constant 0 : index
    %c0_255 = arith.constant 0 : index
    %224 = vector.load %arg7[%c12, %c0_254, %c0_255] : memref<16x128x10xf32, #tpu.memory_space<vmem>>, vector<1x128x10xf32>
    %225 = vector.shape_cast %224 : vector<1x128x10xf32> to vector<128x10xf32>
    %cst_256 = arith.constant dense<0.000000e+00> : vector<2x10xf32>
    %226 = tpu.matmul %223, %225, %cst_256 {dimension_numbers = #tpu.dot_dimension_numbers<[1], [0], [0], [1], [0, 0, 1, 1], [], []>} : vector<2x128xf32>, vector<128x10xf32>, vector<2x10xf32> -> vector<2x10xf32>
    %227 = arith.addf %221, %226 : vector<2x10xf32>
    %228 = vector.extract_strided_slice %150 {offsets = [0, 3, 1, 0], sizes = [2, 1, 1, 128], strides = [1, 1, 1, 1]} : vector<2x4x4x128xf32> to vector<2x1x1x128xf32>
    %229 = vector.shape_cast %228 : vector<2x1x1x128xf32> to vector<2x128xf32>
    %c13 = arith.constant 13 : index
    %c0_257 = arith.constant 0 : index
    %c0_258 = arith.constant 0 : index
    %230 = vector.load %arg7[%c13, %c0_257, %c0_258] : memref<16x128x10xf32, #tpu.memory_space<vmem>>, vector<1x128x10xf32>
    %231 = vector.shape_cast %230 : vector<1x128x10xf32> to vector<128x10xf32>
    %cst_259 = arith.constant dense<0.000000e+00> : vector<2x10xf32>
    %232 = tpu.matmul %229, %231, %cst_259 {dimension_numbers = #tpu.dot_dimension_numbers<[1], [0], [0], [1], [0, 0, 1, 1], [], []>} : vector<2x128xf32>, vector<128x10xf32>, vector<2x10xf32> -> vector<2x10xf32>
    %233 = arith.addf %227, %232 : vector<2x10xf32>
    %234 = vector.extract_strided_slice %150 {offsets = [0, 3, 2, 0], sizes = [2, 1, 1, 128], strides = [1, 1, 1, 1]} : vector<2x4x4x128xf32> to vector<2x1x1x128xf32>
    %235 = vector.shape_cast %234 : vector<2x1x1x128xf32> to vector<2x128xf32>
    %c14 = arith.constant 14 : index
    %c0_260 = arith.constant 0 : index
    %c0_261 = arith.constant 0 : index
    %236 = vector.load %arg7[%c14, %c0_260, %c0_261] : memref<16x128x10xf32, #tpu.memory_space<vmem>>, vector<1x128x10xf32>
    %237 = vector.shape_cast %236 : vector<1x128x10xf32> to vector<128x10xf32>
    %cst_262 = arith.constant dense<0.000000e+00> : vector<2x10xf32>
    %238 = tpu.matmul %235, %237, %cst_262 {dimension_numbers = #tpu.dot_dimension_numbers<[1], [0], [0], [1], [0, 0, 1, 1], [], []>} : vector<2x128xf32>, vector<128x10xf32>, vector<2x10xf32> -> vector<2x10xf32>
    %239 = arith.addf %233, %238 : vector<2x10xf32>
    %240 = vector.extract_strided_slice %150 {offsets = [0, 3, 3, 0], sizes = [2, 1, 1, 128], strides = [1, 1, 1, 1]} : vector<2x4x4x128xf32> to vector<2x1x1x128xf32>
    %241 = vector.shape_cast %240 : vector<2x1x1x128xf32> to vector<2x128xf32>
    %c15 = arith.constant 15 : index
    %c0_263 = arith.constant 0 : index
    %c0_264 = arith.constant 0 : index
    %242 = vector.load %arg7[%c15, %c0_263, %c0_264] : memref<16x128x10xf32, #tpu.memory_space<vmem>>, vector<1x128x10xf32>
    %243 = vector.shape_cast %242 : vector<1x128x10xf32> to vector<128x10xf32>
    %cst_265 = arith.constant dense<0.000000e+00> : vector<2x10xf32>
    %244 = tpu.matmul %241, %243, %cst_265 {dimension_numbers = #tpu.dot_dimension_numbers<[1], [0], [0], [1], [0, 0, 1, 1], [], []>} : vector<2x128xf32>, vector<128x10xf32>, vector<2x10xf32> -> vector<2x10xf32>
    %245 = arith.addf %239, %244 : vector<2x10xf32>
    %c0_266 = arith.constant 0 : index
    %c0_267 = arith.constant 0 : index
    %246 = vector.load %arg8[%c0_266, %c0_267] : memref<1x10xf32, #tpu.memory_space<vmem>>, vector<1x10xf32>
    %247 = vector.broadcast %246 : vector<1x10xf32> to vector<2x10xf32>
    %248 = arith.addf %245, %247 : vector<2x10xf32>
    %c0_268 = arith.constant 0 : index
    %c0_269 = arith.constant 0 : index
    %249 = vector.load %arg9[%c0_268, %c0_269] : memref<2x10xf32, #tpu.memory_space<vmem>>, vector<2x10xf32>
    tpu.vector_store %arg9[%c0_268, %c0_269], %248 {strides = array<i32>} : memref<2x10xf32, #tpu.memory_space<vmem>>, vector<2x10xf32>,
    return
  }
}

</mosaic_0001>

<bundles_post_ra>
// kernel: cnn_forward_impl.1
= control target key start
LH: loop header
LB: loop body
LE: loop exit
PB: predicated region body
PF: predicated region fallthrough
CT: control target
= control target key end

     0   :  { %vm565_vm0 = vcmask 1043456   ;;  %vm97_vm1 = vcmask 31744   ;;  %v8455_v4 = vmov 0.0   ;;  %s11655_s0 = inlined_call_operand.vmem [shape: f32[2,16,16,4], index: 0, kind: input, shape index: {}]   ;;  %s11656_s1 = inlined_call_operand.vmem [shape: f32[9,4,128], index: 1, kind: input, shape index: {}]   ;;  %s11657_s2 = inlined_call_operand.vmem [shape: f32[1,128], index: 2, kind: input, shape index: {}]   ;;  %s11658_s3 = inlined_call_operand.vmem [shape: f32[1,128], index: 3, kind: input, shape index: {}]   ;;  %s11659_s4 = inlined_call_operand.vmem [shape: f32[9,8,128], index: 4, kind: input, shape index: {}]   ;;  %s11660_s5 = inlined_call_operand.vmem [shape: f32[1,128], index: 5, kind: input, shape index: {}]   ;;  %s11661_s6 = inlined_call_operand.vmem [shape: f32[1,128], index: 6, kind: input, shape index: {}]   ;;  %s11662_s7 = inlined_call_operand.vmem [shape: f32[16,128,10], index: 7, kind: input, shape index: {}]   ;;  %s11663_s8 = inlined_call_operand.vmem [shape: f32[1,10], index: 8, kind: input, shape index: {}]   ;;  %s11664_s9 = inlined_call_operand.hbm [shape: f32[2,10], index: 9, kind: output, shape index: {}]  }
   0x1   :  { %v7418_v0 = vld [vmem:[%s11656_s1 + $0x4] sm:$0xf]  ;;  %v306_v1 = vld [vmem:[%s11656_s1] sm:$0xf]  ;;  %v7549_v2 = vld [vmem:[%s11656_s1 + $0x8] sm:$0xf] }
   0x2   :  { %7419 = vmatpush.msk.msra.mxu0 %vm565_vm0, %v7418_v0  ;;  %7484 = vmatpush.msk.msra.mxu1 %vm565_vm0, %v306_v1  ;;  %v7615_v3 = vld [vmem:[%s11656_s1 + $0xc] sm:$0xf]  ;;  %98 = vst.msk [vmem:[#allocation2 + $0x7] sm:$0xff] %vm97_vm1, %v8455_v4 }
   0x3   :  { %7550 = vmatpush.msk.msra.mxu2 %vm565_vm0, %v7549_v2  ;;  %7616 = vmatpush.msk.msra.mxu3 %vm565_vm0, %v7615_v3  ;;  %99 = vst.msk [vmem:[#allocation2 + $0xf] sm:$0xff] %vm97_vm1, %v8455_v4 }
   0x4   :  { %102 = vst.msk [vmem:[#allocation2 + $0x247] sm:$0xff] %vm97_vm1, %v8455_v4 }
   0x5   :  { %14 = vsyncpa [#allocation7], 0  ;;  %103 = vst.msk [vmem:[#allocation2 + $0x24f] sm:$0xff] %vm97_vm1, %v8455_v4  ;;  %vm113_vm2 = vcmask 24576   ;;  %v33_v8 = vld [vmem:[%s11655_s0] sm:$0xff]  ;;  %vm100_vm3 = vcmask 25600  }
   0x6   :  { %106 = vst.msk [vmem:[#allocation2 + $0x227] sm:$0xff] %vm97_vm1, %v8455_v4  ;;  %v7681_v11 = vld [vmem:[%s11656_s1 + $0x10] sm:$0xf]  ;;  %v34_v12 = vld [vmem:[%s11655_s0 + $0x8] sm:$0xff]  ;;  %v36_v14 = vld [vmem:[%s11655_s0 + $0x18] sm:$0xff]  ;;  %vm5357_vm4 = vcmask 64512  }
   0x7   :  { %107 = vst.msk [vmem:[#allocation2 + $0x22f] sm:$0xff] %vm97_vm1, %v8455_v4  ;;  %7682 = vmatpush.msk.msrb.mxu0 %vm565_vm0, %v7681_v11  ;;  %v35_v13 = vld [vmem:[%s11655_s0 + $0x10] sm:$0xff]  ;;  %v37_v15 = vld [vmem:[%s11655_s0 + $0x20] sm:$0xff]  ;;  %v38_v16 = vld [vmem:[%s11655_s0 + $0x28] sm:$0xff]  ;;  %vm6761_vm5 = vcmask 1041409   ;;  %s7409_s22 = sshll.u32 %s11664_s9, 4  ;;  %s7410_s22 = int_to_ptr.hbm [resolvable:$true] %s7409_s22 }
   0x8   :  { %109 = vst.msk [vmem:[#allocation2 + $0x467] sm:$0xff] %vm97_vm1, %v8455_v4  ;;  %v39_v22 = vld [vmem:[%s11655_s0 + $0x30] sm:$0xff]  ;;  %v40_v24 = vld [vmem:[%s11655_s0 + $0x38] sm:$0xff]  ;;  %v41_v28 = vld [vmem:[%s11655_s0 + $0x40] sm:$0xff]  ;;  %vm7400_vm6 = vcmask 74752  }
   0x9   :  { %110 = vst.msk [vmem:[#allocation2 + $0x46f] sm:$0xff] %vm97_vm1, %v8455_v4  ;;  %v242_v5 = vld [vmem:[#allocation2 + $0x7] sm:$0xff]  ;;  %v43_v36 = vld [vmem:[%s11655_s0 + $0x50] sm:$0xff]  ;;  %v44_v40 = vld [vmem:[%s11655_s0 + $0x58] sm:$0xff] }
   0xa   :  { %v307_v6 = vld [vmem:[#allocation2 + $0x8] sm:$0xff]  ;;  %5264 = vst [vmem:[#allocation4 + $0x7] sm:$0xff] %v8455_v4  ;;  %7485 = vmatmul.msk.f32.vlgmr.msra.gmra.mxu1 %vm97_vm1, %v242_v5  ;;  %v45_v44 = vld [vmem:[%s11655_s0 + $0x60] sm:$0xff]  ;;  %v47_v52 = vld [vmem:[%s11655_s0 + $0x70] sm:$0xff] }
   0xb   :  { %v1182_v7 = vld [vmem:[#allocation2 + $0x9] sm:$0xff]  ;;  %7420 = vmatmul.msk.f32.vlgmr.msra.gmra.mxu0 %vm97_vm1, %v307_v6  ;;  %5265 = vst [vmem:[#allocation4 + $0xf] sm:$0x3] %v8455_v4  ;;  %v48_v56 = vld [vmem:[%s11655_s0 + $0x78] sm:$0xff]  ;;  %v49_v60 = vld [vmem:[%s11655_s0 + $0x80] sm:$0xff] }
   0xc   :  { %7551 = vmatmul.msk.f32.vlgmr.msra.gmra.mxu2 %vm97_vm1, %v1182_v7  ;;  %5266 = vst [vmem:[#allocation4 + $0xf7] sm:$0xff] %v8455_v4  ;;  %v243_v10 = vld [vmem:[#allocation2 + $0xf] sm:$0xff] }
   0xd   :  { %5267 = vst [vmem:[#allocation4 + $0xff] sm:$0x3] %v8455_v4  ;;  %v42_v32 = vld [vmem:[%s11655_s0 + $0x48] sm:$0xff]  ;;  %v51_v5 = vld [vmem:[%s11655_s0 + $0x90] sm:$0xff] }
   0xe   :  { %5269 = vst [vmem:[#allocation4 + $0xdf] sm:$0xff] %v8455_v4  ;;  %v46_v48 = vld [vmem:[%s11655_s0 + $0x68] sm:$0xff] }
   0xf   :  { %5270 = vst [vmem:[#allocation4 + $0xe7] sm:$0x3] %v8455_v4  ;;  %v50_v0 = vld [vmem:[%s11655_s0 + $0x88] sm:$0xff] }
  0x10   :  { %5271 = vst [vmem:[#allocation4 + $0x1cf] sm:$0xff] %v8455_v4 }
  0x11   :  { %5272 = vst [vmem:[#allocation4 + $0x1d7] sm:$0x3] %v8455_v4 }
  0x12   :  { %5274 = vst [vmem:[#allocation4 + $0x1f] sm:$0x1] %v8455_v4  ;;  %7486 = vmatmul.msk.f32.gmra.mxu1 %vm97_vm1, %v243_v10 }
  0x13   :  { %5275 = vst [vmem:[#allocation4 + $0x37] sm:$0x1] %v8455_v4 }
  0x14   :  { %5276 = vst [vmem:[#allocation4 + $0x4f] sm:$0x1] %v8455_v4 }
  0x15   :  { %5277 = vst [vmem:[#allocation4 + $0x67] sm:$0x1] %v8455_v4 }
  0x16   :  { %5278 = vst [vmem:[#allocation4 + $0x7f] sm:$0x1] %v8455_v4 }
  0x17   :  { %5279 = vst [vmem:[#allocation4 + $0x97] sm:$0x1] %v8455_v4 }
  0x18   :  { %5280 = vst [vmem:[#allocation4 + $0xaf] sm:$0x1] %v8455_v4 }
  0x19   :  { %5281 = vst [vmem:[#allocation4 + $0xc7] sm:$0x1] %v8455_v4 }
  0x1a   :  { %5282 = vst [vmem:[#allocation4 + $0x10f] sm:$0x1] %v8455_v4 }
  0x1b   :  { %5283 = vst [vmem:[#allocation4 + $0x127] sm:$0x1] %v8455_v4 }
  0x1c   :  { %5284 = vst [vmem:[#allocation4 + $0x13f] sm:$0x1] %v8455_v4 }
  0x1d   :  { %5285 = vst [vmem:[#allocation4 + $0x157] sm:$0x1] %v8455_v4 }
  0x1e   :  { %5286 = vst [vmem:[#allocation4 + $0x16f] sm:$0x1] %v8455_v4 }
  0x1f   :  { %5287 = vst [vmem:[#allocation4 + $0x187] sm:$0x1] %v8455_v4 }
  0x20   :  { %5288 = vst [vmem:[#allocation4 + $0x19f] sm:$0x1] %v8455_v4 }
  0x21   :  { %5289 = vst [vmem:[#allocation4 + $0x1b7] sm:$0x1] %v8455_v4 }
  0x22   :  { %5290 = vst [vmem:[#allocation4 + $0x28] sm:$0x1] %v8455_v4 }
  0x23   :  { %5291 = vst [vmem:[#allocation4 + $0x40] sm:$0x1] %v8455_v4 }
  0x24   :  { %5292 = vst [vmem:[#allocation4 + $0x58] sm:$0x1] %v8455_v4 }
  0x25   :  { %5293 = vst [vmem:[#allocation4 + $0x70] sm:$0x1] %v8455_v4 }
  0x26   :  { %5294 = vst [vmem:[#allocation4 + $0x88] sm:$0x1] %v8455_v4 }
  0x27   :  { %5295 = vst [vmem:[#allocation4 + $0xa0] sm:$0x1] %v8455_v4 }
  0x28   :  { %5296 = vst [vmem:[#allocation4 + $0xb8] sm:$0x1] %v8455_v4 }
  0x29   :  { %5297 = vst [vmem:[#allocation4 + $0xd0] sm:$0x1] %v8455_v4 }
  0x2a   :  { %5298 = vst [vmem:[#allocation4 + $0x118] sm:$0x1] %v8455_v4 }
  0x2b   :  { %5299 = vst [vmem:[#allocation4 + $0x130] sm:$0x1] %v8455_v4 }
  0x2c   :  { %5300 = vst [vmem:[#allocation4 + $0x148] sm:$0x1] %v8455_v4 }
  0x2d   :  { %5301 = vst [vmem:[#allocation4 + $0x160] sm:$0x1] %v8455_v4 }
  0x2e   :  { %5302 = vst [vmem:[#allocation4 + $0x178] sm:$0x1] %v8455_v4 }
  0x2f   :  { %5303 = vst [vmem:[#allocation4 + $0x190] sm:$0x1] %v8455_v4 }
  0x30   :  { %5304 = vst [vmem:[#allocation4 + $0x1a8] sm:$0x1] %v8455_v4 }
  0x31   :  { %5305 = vst [vmem:[#allocation4 + $0x1c0] sm:$0x1] %v8455_v4 }
  0x32   :  { %114 = vst.msk [vmem:[#allocation2 + $0x27] sm:$0x1] %vm113_vm2, %v8455_v4 }
  0x33   :  { %178 = vst.msk [vmem:[#allocation2 + $0x28] sm:$0xff] %vm97_vm1, %v33_v8 }
  0x34   :  { %115 = vst.msk [vmem:[#allocation2 + $0x47] sm:$0x1] %vm113_vm2, %v8455_v4 }
  0x35   :  { %116 = vst.msk [vmem:[#allocation2 + $0x67] sm:$0x1] %vm113_vm2, %v8455_v4 }
  0x36   :  { %117 = vst.msk [vmem:[#allocation2 + $0x87] sm:$0x1] %vm113_vm2, %v8455_v4 }
  0x37   :  { %118 = vst.msk [vmem:[#allocation2 + $0xa7] sm:$0x1] %vm113_vm2, %v8455_v4 }
  0x38   :  { %119 = vst.msk [vmem:[#allocation2 + $0xc7] sm:$0x1] %vm113_vm2, %v8455_v4 }
  0x39   :  { %120 = vst.msk [vmem:[#allocation2 + $0xe7] sm:$0x1] %vm113_vm2, %v8455_v4 }
  0x3a   :  { %v1716_v9 = vld [vmem:[#allocation2 + $0x27] sm:$0xff]  ;;  %121 = vst.msk [vmem:[#allocation2 + $0x107] sm:$0x1] %vm113_vm2, %v8455_v4 }
  0x3b   :  { %7617 = vmatmul.msk.f32.vlgmr.msra.gmra.mxu3 %vm97_vm1, %v1716_v9  ;;  %122 = vst.msk [vmem:[#allocation2 + $0x127] sm:$0x1] %vm113_vm2, %v8455_v4  ;;  %7487 = vmatmul.msk.f32.gmra.mxu1 %vm97_vm1, %v1716_v9  ;;  %v309_v20 = vld [vmem:[#allocation2 + $0x28] sm:$0xff]  ;;  %v52_v9 = vld [vmem:[%s11655_s0 + $0x98] sm:$0xff] }
  0x3c   :  { %123 = vst.msk [vmem:[#allocation2 + $0x147] sm:$0x1] %vm113_vm2, %v8455_v4 }
  0x3d   :  { %124 = vst.msk [vmem:[#allocation2 + $0x167] sm:$0x1] %vm113_vm2, %v8455_v4 }
  0x3e   :  { %125 = vst.msk [vmem:[#allocation2 + $0x187] sm:$0x1] %vm113_vm2, %v8455_v4 }
  0x3f   :  { %126 = vst.msk [vmem:[#allocation2 + $0x1a7] sm:$0x1] %vm113_vm2, %v8455_v4 }
  0x40   :  { %127 = vst.msk [vmem:[#allocation2 + $0x1c7] sm:$0x1] %vm113_vm2, %v8455_v4 }
  0x41   :  { %128 = vst.msk [vmem:[#allocation2 + $0x1e7] sm:$0x1] %vm113_vm2, %v8455_v4 }
  0x42   :  { %129 = vst.msk [vmem:[#allocation2 + $0x207] sm:$0x1] %vm113_vm2, %v8455_v4 }
  0x43   :  { %130 = vst.msk [vmem:[#allocation2 + $0x267] sm:$0x1] %vm113_vm2, %v8455_v4 }
  0x44   :  { %131 = vst.msk [vmem:[#allocation2 + $0x287] sm:$0x1] %vm113_vm2, %v8455_v4 }
  0x45   :  { %132 = vst.msk [vmem:[#allocation2 + $0x2a7] sm:$0x1] %vm113_vm2, %v8455_v4 }
  0x46   :  { %133 = vst.msk [vmem:[#allocation2 + $0x2c7] sm:$0x1] %vm113_vm2, %v8455_v4 }
  0x47   :  { %134 = vst.msk [vmem:[#allocation2 + $0x2e7] sm:$0x1] %vm113_vm2, %v8455_v4 }
  0x48   :  { %135 = vst.msk [vmem:[#allocation2 + $0x307] sm:$0x1] %vm113_vm2, %v8455_v4 }
  0x49   :  { %136 = vst.msk [vmem:[#allocation2 + $0x327] sm:$0x1] %vm113_vm2, %v8455_v4 }
  0x4a   :  { %137 = vst.msk [vmem:[#allocation2 + $0x347] sm:$0x1] %vm113_vm2, %v8455_v4 }
  0x4b   :  { %138 = vst.msk [vmem:[#allocation2 + $0x367] sm:$0x1] %vm113_vm2, %v8455_v4 }
  0x4c   :  { %139 = vst.msk [vmem:[#allocation2 + $0x387] sm:$0x1] %vm113_vm2, %v8455_v4 }
  0x4d   :  { %140 = vst.msk [vmem:[#allocation2 + $0x3a7] sm:$0x1] %vm113_vm2, %v8455_v4 }
  0x4e   :  { %141 = vst.msk [vmem:[#allocation2 + $0x3c7] sm:$0x1] %vm113_vm2, %v8455_v4 }
  0x4f   :  { %142 = vst.msk [vmem:[#allocation2 + $0x3e7] sm:$0x1] %vm113_vm2, %v8455_v4 }
  0x50   :  { %143 = vst.msk [vmem:[#allocation2 + $0x407] sm:$0x1] %vm113_vm2, %v8455_v4 }
  0x51   :  { %144 = vst.msk [vmem:[#allocation2 + $0x427] sm:$0x1] %vm113_vm2, %v8455_v4 }
  0x52   :  { %145 = vst.msk [vmem:[#allocation2 + $0x447] sm:$0x1] %vm113_vm2, %v8455_v4 }
  0x53   :  { %146 = vst.msk [vmem:[#allocation2 + $0x38] sm:$0x1] %vm113_vm2, %v8455_v4 }
  0x54   :  { %147 = vst.msk [vmem:[#allocation2 + $0x58] sm:$0x1] %vm113_vm2, %v8455_v4 }
  0x55   :  { %148 = vst.msk [vmem:[#allocation2 + $0x78] sm:$0x1] %vm113_vm2, %v8455_v4 }
  0x56   :  { %149 = vst.msk [vmem:[#allocation2 + $0x98] sm:$0x1] %vm113_vm2, %v8455_v4 }
  0x57   :  { %150 = vst.msk [vmem:[#allocation2 + $0xb8] sm:$0x1] %vm113_vm2, %v8455_v4 }
  0x58   :  { %151 = vst.msk [vmem:[#allocation2 + $0xd8] sm:$0x1] %vm113_vm2, %v8455_v4 }
  0x59   :  { %152 = vst.msk [vmem:[#allocation2 + $0xf8] sm:$0x1] %vm113_vm2, %v8455_v4 }
  0x5a   :  { %153 = vst.msk [vmem:[#allocation2 + $0x118] sm:$0x1] %vm113_vm2, %v8455_v4 }
  0x5b   :  { %154 = vst.msk [vmem:[#allocation2 + $0x138] sm:$0x1] %vm113_vm2, %v8455_v4 }
  0x5c   :  { %155 = vst.msk [vmem:[#allocation2 + $0x158] sm:$0x1] %vm113_vm2, %v8455_v4 }
  0x5d   :  { %156 = vst.msk [vmem:[#allocation2 + $0x178] sm:$0x1] %vm113_vm2, %v8455_v4 }
  0x5e   :  { %157 = vst.msk [vmem:[#allocation2 + $0x198] sm:$0x1] %vm113_vm2, %v8455_v4 }
  0x5f   :  { %158 = vst.msk [vmem:[#allocation2 + $0x1b8] sm:$0x1] %vm113_vm2, %v8455_v4 }
  0x60   :  { %159 = vst.msk [vmem:[#allocation2 + $0x1d8] sm:$0x1] %vm113_vm2, %v8455_v4 }
  0x61   :  { %160 = vst.msk [vmem:[#allocation2 + $0x1f8] sm:$0x1] %vm113_vm2, %v8455_v4 }
  0x62   :  { %161 = vst.msk [vmem:[#allocation2 + $0x218] sm:$0x1] %vm113_vm2, %v8455_v4 }
  0x63   :  { %162 = vst.msk [vmem:[#allocation2 + $0x278] sm:$0x1] %vm113_vm2, %v8455_v4 }
  0x64   :  { %163 = vst.msk [vmem:[#allocation2 + $0x298] sm:$0x1] %vm113_vm2, %v8455_v4 }
  0x65   :  { %164 = vst.msk [vmem:[#allocation2 + $0x2b8] sm:$0x1] %vm113_vm2, %v8455_v4 }
  0x66   :  { %165 = vst.msk [vmem:[#allocation2 + $0x2d8] sm:$0x1] %vm113_vm2, %v8455_v4 }
  0x67   :  { %166 = vst.msk [vmem:[#allocation2 + $0x2f8] sm:$0x1] %vm113_vm2, %v8455_v4 }
  0x68   :  { %167 = vst.msk [vmem:[#allocation2 + $0x318] sm:$0x1] %vm113_vm2, %v8455_v4 }
  0x69   :  { %168 = vst.msk [vmem:[#allocation2 + $0x338] sm:$0x1] %vm113_vm2, %v8455_v4 }
  0x6a   :  { %169 = vst.msk [vmem:[#allocation2 + $0x358] sm:$0x1] %vm113_vm2, %v8455_v4 }
  0x6b   :  { %170 = vst.msk [vmem:[#allocation2 + $0x378] sm:$0x1] %vm113_vm2, %v8455_v4 }
  0x6c   :  { %171 = vst.msk [vmem:[#allocation2 + $0x398] sm:$0x1] %vm113_vm2, %v8455_v4 }
  0x6d   :  { %172 = vst.msk [vmem:[#allocation2 + $0x3b8] sm:$0x1] %vm113_vm2, %v8455_v4 }
  0x6e   :  { %173 = vst.msk [vmem:[#allocation2 + $0x3d8] sm:$0x1] %vm113_vm2, %v8455_v4 }
  0x6f   :  { %174 = vst.msk [vmem:[#allocation2 + $0x3f8] sm:$0x1] %vm113_vm2, %v8455_v4 }
  0x70   :  { %175 = vst.msk [vmem:[#allocation2 + $0x418] sm:$0x1] %vm113_vm2, %v8455_v4 }
  0x71   :  { %176 = vst.msk [vmem:[#allocation2 + $0x438] sm:$0x1] %vm113_vm2, %v8455_v4 }
  0x72   :  { %177 = vst.msk [vmem:[#allocation2 + $0x458] sm:$0x1] %vm113_vm2, %v8455_v4 }
  0x73   :  { %101 = vst.msk [vmem:[#allocation2 + $0x17] sm:$0x3] %vm100_vm3, %v8455_v4 }
  0x74   :  { %104 = vst.msk [vmem:[#allocation2 + $0x257] sm:$0x3] %vm100_vm3, %v8455_v4 }
  0x75   :  { %108 = vst.msk [vmem:[#allocation2 + $0x237] sm:$0x3] %vm100_vm3, %v8455_v4 }
  0x76   :  { %111 = vst.msk [vmem:[#allocation2 + $0x477] sm:$0x3] %vm100_vm3, %v8455_v4 }
  0x77   :  { %179 = vst.msk [vmem:[#allocation2 + $0x30] sm:$0xff] %vm97_vm1, %v34_v12 }
  0x78   :  { %180 = vst.msk [vmem:[#allocation2 + $0x48] sm:$0xff] %vm97_vm1, %v35_v13 }
  0x79   :  { %181 = vst.msk [vmem:[#allocation2 + $0x50] sm:$0xff] %vm97_vm1, %v36_v14 }
  0x7a   :  { %v308_v17 = vld [vmem:[#allocation2 + $0x10] sm:$0xff]  ;;  %182 = vst.msk [vmem:[#allocation2 + $0x68] sm:$0xff] %vm97_vm1, %v37_v15  ;;  %v53_v15 = vld [vmem:[%s11655_s0 + $0xa0] sm:$0xff] }
  0x7b   :  { %v1183_v18 = vld [vmem:[#allocation2 + $0x11] sm:$0xff]  ;;  %7421 = vmatmul.msk.f32.gmra.mxu0 %vm97_vm1, %v308_v17  ;;  %183 = vst.msk [vmem:[#allocation2 + $0x70] sm:$0xff] %vm97_vm1, %v38_v16 }
  0x7c   :  { %7552 = vmatmul.msk.f32.gmra.mxu2 %vm97_vm1, %v1183_v18  ;;  %184 = vst.msk [vmem:[#allocation2 + $0x88] sm:$0xff] %vm97_vm1, %v39_v22 }
  0x7d   :  { %185 = vst.msk [vmem:[#allocation2 + $0x90] sm:$0xff] %vm97_vm1, %v40_v24 }
  0x7e   :  { %v1717_v19 = vld [vmem:[#allocation2 + $0x2f] sm:$0xff]  ;;  %186 = vst.msk [vmem:[#allocation2 + $0xa8] sm:$0xff] %vm97_vm1, %v41_v28 }
  0x7f   :  { %7618 = vmatmul.msk.f32.gmra.mxu3 %vm97_vm1, %v1717_v19  ;;  %7488 = vmatmul.msk.f32.gmra.mxu1 %vm97_vm1, %v1717_v19  ;;  %v1184_v21 = vld [vmem:[#allocation2 + $0x29] sm:$0xff]  ;;  %v1185_v26 = vld [vmem:[#allocation2 + $0x31] sm:$0xff]  ;;  %187 = vst.msk [vmem:[#allocation2 + $0xb0] sm:$0xff] %vm97_vm1, %v42_v32 }
  0x80   :  { %v1718_v23 = vld [vmem:[#allocation2 + $0x47] sm:$0xff]  ;;  %v310_v25 = vld [vmem:[#allocation2 + $0x30] sm:$0xff]  ;;  %188 = vst.msk [vmem:[#allocation2 + $0xc8] sm:$0xff] %vm97_vm1, %v43_v36 }
  0x81   :  { %v1719_v27 = vld [vmem:[#allocation2 + $0x4f] sm:$0xff]  ;;  %v1720_v31 = vld [vmem:[#allocation2 + $0x67] sm:$0xff]  ;;  %189 = vst.msk [vmem:[#allocation2 + $0xd0] sm:$0xff] %vm97_vm1, %v44_v40 }
  0x82   :  { %v311_v29 = vld [vmem:[#allocation2 + $0x48] sm:$0xff]  ;;  %v312_v33 = vld [vmem:[#allocation2 + $0x50] sm:$0xff]  ;;  %190 = vst.msk [vmem:[#allocation2 + $0xe8] sm:$0xff] %vm97_vm1, %v45_v44 }
  0x83   :  { %7422 = vmatmul.msk.f32.gmra.mxu0 %vm97_vm1, %v309_v20  ;;  %v1186_v30 = vld [vmem:[#allocation2 + $0x49] sm:$0xff]  ;;  %v1187_v34 = vld [vmem:[#allocation2 + $0x51] sm:$0xff]  ;;  %191 = vst.msk [vmem:[#allocation2 + $0xf0] sm:$0xff] %vm97_vm1, %v46_v48 }
  0x84   :  { %7553 = vmatmul.msk.f32.gmra.mxu2 %vm97_vm1, %v1184_v21  ;;  %v1721_v35 = vld [vmem:[#allocation2 + $0x6f] sm:$0xff]  ;;  %v1722_v39 = vld [vmem:[#allocation2 + $0x87] sm:$0xff]  ;;  %192 = vst.msk [vmem:[#allocation2 + $0x108] sm:$0xff] %vm97_vm1, %v47_v52 }
  0x85   :  { %v313_v37 = vld [vmem:[#allocation2 + $0x68] sm:$0xff]  ;;  %v314_v41 = vld [vmem:[#allocation2 + $0x70] sm:$0xff]  ;;  %193 = vst.msk [vmem:[#allocation2 + $0x110] sm:$0xff] %vm97_vm1, %v48_v56  ;;  %v57_v52 = vld [vmem:[%s11655_s0 + $0xc0] sm:$0xff] }
  0x86   :  { %v1188_v38 = vld [vmem:[#allocation2 + $0x69] sm:$0xff]  ;;  %v1189_v42 = vld [vmem:[#allocation2 + $0x71] sm:$0xff]  ;;  %194 = vst.msk [vmem:[#allocation2 + $0x128] sm:$0xff] %vm97_vm1, %v49_v60 }
  0x87   :  { %7619 = vmatmul.msk.f32.gmra.mxu3 %vm97_vm1, %v1718_v23  ;;  %7489 = vmatmul.msk.f32.gmra.mxu1 %vm97_vm1, %v1718_v23  ;;  %v1723_v43 = vld [vmem:[#allocation2 + $0x8f] sm:$0xff]  ;;  %v1724_v47 = vld [vmem:[#allocation2 + $0xa7] sm:$0xff]  ;;  %195 = vst.msk [vmem:[#allocation2 + $0x130] sm:$0xff] %vm97_vm1, %v50_v0  ;;  %v8843_v4 = vpop.f32.mrf.mxu1 }
  0x88   :  { %v315_v45 = vld [vmem:[#allocation2 + $0x88] sm:$0xff]  ;;  %v316_v49 = vld [vmem:[#allocation2 + $0x90] sm:$0xff]  ;;  %196 = vst.msk [vmem:[#allocation2 + $0x148] sm:$0xff] %vm97_vm1, %v51_v5  ;;  %v8861_v14 = vpop.f32.mrf.mxu0 }
  0x89   :  { %v1190_v46 = vld [vmem:[#allocation2 + $0x89] sm:$0xff]  ;;  %v1191_v50 = vld [vmem:[#allocation2 + $0x91] sm:$0xff]  ;;  %197 = vst.msk [vmem:[#allocation2 + $0x150] sm:$0xff] %vm97_vm1, %v52_v9 }
  0x8a   :  { %v1725_v51 = vld [vmem:[#allocation2 + $0xaf] sm:$0xff]  ;;  %v1726_v55 = vld [vmem:[#allocation2 + $0xc7] sm:$0xff]  ;;  %198 = vst.msk [vmem:[#allocation2 + $0x168] sm:$0xff] %vm97_vm1, %v53_v15 }
  0x8b   :  { %7423 = vmatmul.msk.f32.gmra.mxu0 %vm97_vm1, %v310_v25  ;;  %v317_v53 = vld [vmem:[#allocation2 + $0xa8] sm:$0xff]  ;;  %v318_v57 = vld [vmem:[#allocation2 + $0xb0] sm:$0xff]  ;;  %202 = vst.msk [vmem:[#allocation2 + $0x1a8] sm:$0xff] %vm97_vm1, %v57_v52 }
  0x8c   :  { %7554 = vmatmul.msk.f32.gmra.mxu2 %vm97_vm1, %v1185_v26  ;;  %v1192_v54 = vld [vmem:[#allocation2 + $0xa9] sm:$0xff]  ;;  %v1193_v58 = vld [vmem:[#allocation2 + $0xb1] sm:$0xff] }
  0x8d   :  { %v1727_v59 = vld [vmem:[#allocation2 + $0xcf] sm:$0xff]  ;;  %v1728_v63 = vld [vmem:[#allocation2 + $0xe7] sm:$0xff] }
  0x8e   :  { %v319_v61 = vld [vmem:[#allocation2 + $0xc8] sm:$0xff]  ;;  %v320_v1 = vld [vmem:[#allocation2 + $0xd0] sm:$0xff] }
  0x8f   :  { %7620 = vmatmul.msk.f32.gmra.mxu3 %vm97_vm1, %v1719_v27  ;;  %7490 = vmatmul.msk.f32.gmra.mxu1 %vm97_vm1, %v1719_v27  ;;  %v1194_v62 = vld [vmem:[#allocation2 + $0xc9] sm:$0xff]  ;;  %v1195_v2 = vld [vmem:[#allocation2 + $0xd1] sm:$0xff]  ;;  %v993_v12 = vpop.f32.mrf.mxu1  ;;  %v8871_v20 = vpop.f32.mrf.mxu2 }
  0x90   :  { %v1729_v3 = vld [vmem:[#allocation2 + $0xef] sm:$0xff]  ;;  %v1730_v8 = vld [vmem:[#allocation2 + $0x107] sm:$0xff] }
  0x91   :  { %v321_v6 = vld [vmem:[#allocation2 + $0xe8] sm:$0xff]  ;;  %v322_v10 = vld [vmem:[#allocation2 + $0xf0] sm:$0xff] }
  0x92   :  { %v1196_v7 = vld [vmem:[#allocation2 + $0xe9] sm:$0xff]  ;;  %v1197_v11 = vld [vmem:[#allocation2 + $0xf1] sm:$0xff] }
  0x93   :  { %7424 = vmatmul.msk.f32.gmra.mxu0 %vm97_vm1, %v311_v29  ;;  %v1731_v13 = vld [vmem:[#allocation2 + $0x10f] sm:$0xff]  ;;  %v1732_v19 = vld [vmem:[#allocation2 + $0x127] sm:$0xff] }
  0x94   :  { %7555 = vmatmul.msk.f32.gmra.mxu2 %vm97_vm1, %v1186_v30  ;;  %v323_v16 = vld [vmem:[#allocation2 + $0x108] sm:$0xff]  ;;  %v324_v24 = vld [vmem:[#allocation2 + $0x110] sm:$0xff] }
  0x95   :  { %v1198_v17 = vld [vmem:[#allocation2 + $0x109] sm:$0xff]  ;;  %v1199_v25 = vld [vmem:[#allocation2 + $0x111] sm:$0xff] }
  0x96   :  { %v54_v21 = vld [vmem:[%s11655_s0 + $0xa8] sm:$0xff]  ;;  %v55_v30 = vld [vmem:[%s11655_s0 + $0xb0] sm:$0xff] }
  0x97   :  { %7621 = vmatmul.msk.f32.gmra.mxu3 %vm97_vm1, %v1720_v31  ;;  %7491 = vmatmul.msk.f32.gmra.mxu1 %vm97_vm1, %v1720_v31  ;;  %199 = vst.msk [vmem:[#allocation2 + $0x170] sm:$0xff] %vm97_vm1, %v54_v21  ;;  %v1733_v26 = vld [vmem:[#allocation2 + $0x12f] sm:$0xff] }
  0x98   :  { %200 = vst.msk [vmem:[#allocation2 + $0x188] sm:$0xff] %vm97_vm1, %v55_v30  ;;  %v326_v44 = vld [vmem:[#allocation2 + $0x130] sm:$0xff]  ;;  %v329_v15 = vld [vmem:[#allocation2 + $0x168] sm:$0xff] }
  0x99   :  { %v1735_v48 = vld [vmem:[#allocation2 + $0x14f] sm:$0xff] }
  0x9a   :  { %v1202_v56 = vld [vmem:[#allocation2 + $0x149] sm:$0xff] }
  0x9b   :  { %7425 = vmatmul.msk.f32.gmra.mxu0 %vm97_vm1, %v312_v33  ;;  %v325_v33 = vld [vmem:[#allocation2 + $0x128] sm:$0xff] }
  0x9c   :  { %7556 = vmatmul.msk.f32.gmra.mxu2 %vm97_vm1, %v1187_v34  ;;  %v1200_v34 = vld [vmem:[#allocation2 + $0x129] sm:$0xff] }
  0x9f   :  { %7622 = vmatmul.msk.f32.gmra.mxu3 %vm97_vm1, %v1721_v35  ;;  %7492 = vmatmul.msk.f32.gmra.mxu1 %vm97_vm1, %v1721_v35 }
  0xa3   :  { %7426 = vmatmul.msk.f32.gmra.mxu0 %vm97_vm1, %v313_v37  ;;  %v1734_v37 = vld [vmem:[#allocation2 + $0x147] sm:$0xff] }
  0xa4   :  { %7557 = vmatmul.msk.f32.gmra.mxu2 %vm97_vm1, %v1188_v38 }
  0xa7   :  { %7623 = vmatmul.msk.f32.gmra.mxu3 %vm97_vm1, %v1722_v39  ;;  %7493 = vmatmul.msk.f32.gmra.mxu1 %vm97_vm1, %v1722_v39 }
  0xab   :  { %7427 = vmatmul.msk.f32.gmra.mxu0 %vm97_vm1, %v314_v41  ;;  %v56_v41 = vld [vmem:[%s11655_s0 + $0xb8] sm:$0xff] }
  0xac   :  { %7558 = vmatmul.msk.f32.gmra.mxu2 %vm97_vm1, %v1189_v42  ;;  %201 = vst.msk [vmem:[#allocation2 + $0x190] sm:$0xff] %vm97_vm1, %v56_v41 }
  0xaf   :  { %7624 = vmatmul.msk.f32.gmra.mxu3 %vm97_vm1, %v1723_v43  ;;  %7494 = vmatmul.msk.f32.gmra.mxu1 %vm97_vm1, %v1723_v43 }
  0xb3   :  { %7428 = vmatmul.msk.f32.gmra.mxu0 %vm97_vm1, %v315_v45  ;;  %v1201_v45 = vld [vmem:[#allocation2 + $0x131] sm:$0xff]  ;;  %v1206_v41 = vld [vmem:[#allocation2 + $0x189] sm:$0xff] }
  0xb4   :  { %7559 = vmatmul.msk.f32.gmra.mxu2 %vm97_vm1, %v1190_v46  ;;  %v332_v52 = vld [vmem:[#allocation2 + $0x190] sm:$0xff] }
  0xb7   :  { %7625 = vmatmul.msk.f32.gmra.mxu3 %vm97_vm1, %v1724_v47  ;;  %7495 = vmatmul.msk.f32.gmra.mxu1 %vm97_vm1, %v1724_v47 }
  0xb8   :  { %v996_v18 = vpop.f32.mrf.mxu1 }
  0xbb   :  { %7429 = vmatmul.msk.f32.gmra.mxu0 %vm97_vm1, %v316_v49 }
  0xbc   :  { %7560 = vmatmul.msk.f32.gmra.mxu2 %vm97_vm1, %v1191_v50 }
  0xbe   :  { %v8879_v23 = vpop.f32.mrf.mxu3 }
  0xbf   :  { %7626 = vmatmul.msk.f32.gmra.mxu3 %vm97_vm1, %v1725_v51  ;;  %7496 = vmatmul.msk.f32.gmra.mxu1 %vm97_vm1, %v1725_v51 }
  0xc3   :  { %7430 = vmatmul.msk.f32.gmra.mxu0 %vm97_vm1, %v317_v53 }
  0xc4   :  { %7561 = vmatmul.msk.f32.gmra.mxu2 %vm97_vm1, %v1192_v54 }
  0xc7   :  { %7627 = vmatmul.msk.f32.gmra.mxu3 %vm97_vm1, %v1726_v55  ;;  %7497 = vmatmul.msk.f32.gmra.mxu1 %vm97_vm1, %v1726_v55  ;;  %v327_v55 = vld [vmem:[#allocation2 + $0x148] sm:$0xff] }
  0xcb   :  { %7431 = vmatmul.msk.f32.gmra.mxu0 %vm97_vm1, %v318_v57 }
  0xcc   :  { %7562 = vmatmul.msk.f32.gmra.mxu2 %vm97_vm1, %v1193_v58 }
  0xcf   :  { %7628 = vmatmul.msk.f32.gmra.mxu3 %vm97_vm1, %v1727_v59  ;;  %7498 = vmatmul.msk.f32.gmra.mxu1 %vm97_vm1, %v1727_v59  ;;  %v1736_v59 = vld [vmem:[#allocation2 + $0x167] sm:$0xff] }
  0xd3   :  { %7432 = vmatmul.msk.f32.gmra.mxu0 %vm97_vm1, %v319_v61 }
  0xd4   :  { %7563 = vmatmul.msk.f32.gmra.mxu2 %vm97_vm1, %v1194_v62 }
  0xd7   :  { %7629 = vmatmul.msk.f32.gmra.mxu3 %vm97_vm1, %v1728_v63  ;;  %7499 = vmatmul.msk.f32.gmra.mxu1 %vm97_vm1, %v1728_v63  ;;  %v58_v63 = vld [vmem:[%s11655_s0 + $0xc8] sm:$0xff] }
  0xd8   :  { %203 = vst.msk [vmem:[#allocation2 + $0x1b0] sm:$0xff] %vm97_vm1, %v58_v63 }
  0xdb   :  { %7433 = vmatmul.msk.f32.gmra.mxu0 %vm97_vm1, %v320_v1 }
  0xdc   :  { %7564 = vmatmul.msk.f32.gmra.mxu2 %vm97_vm1, %v1195_v2  ;;  %v328_v2 = vld [vmem:[#allocation2 + $0x150] sm:$0xff] }
  0xdf   :  { %7630 = vmatmul.msk.f32.gmra.mxu3 %vm97_vm1, %v1729_v3  ;;  %7500 = vmatmul.msk.f32.gmra.mxu1 %vm97_vm1, %v1729_v3  ;;  %v1203_v3 = vld [vmem:[#allocation2 + $0x151] sm:$0xff] }
  0xe3   :  { %7434 = vmatmul.msk.f32.gmra.mxu0 %vm97_vm1, %v321_v6 }
  0xe4   :  { %7565 = vmatmul.msk.f32.gmra.mxu2 %vm97_vm1, %v1196_v7  ;;  %v1737_v7 = vld [vmem:[#allocation2 + $0x16f] sm:$0xff] }
  0xe7   :  { %7631 = vmatmul.msk.f32.gmra.mxu3 %vm97_vm1, %v1730_v8  ;;  %7501 = vmatmul.msk.f32.gmra.mxu1 %vm97_vm1, %v1730_v8 }
  0xeb   :  { %7435 = vmatmul.msk.f32.gmra.mxu0 %vm97_vm1, %v322_v10 }
  0xec   :  { %7566 = vmatmul.msk.f32.gmra.mxu2 %vm97_vm1, %v1197_v11  ;;  %v59_v11 = vld [vmem:[%s11655_s0 + $0xd0] sm:$0xff] }
  0xed   :  { %204 = vst.msk [vmem:[#allocation2 + $0x1c8] sm:$0xff] %vm97_vm1, %v59_v11 }
  0xef   :  { %7632 = vmatmul.msk.f32.gmra.mxu3 %vm97_vm1, %v1731_v13  ;;  %7502 = vmatmul.msk.f32.gmra.mxu1 %vm97_vm1, %v1731_v13 }
  0xf3   :  { %7436 = vmatmul.msk.f32.gmra.mxu0 %vm97_vm1, %v323_v16  ;;  %v1204_v16 = vld [vmem:[#allocation2 + $0x169] sm:$0xff] }
  0xf4   :  { %7567 = vmatmul.msk.f32.gmra.mxu2 %vm97_vm1, %v1198_v17 }
  0xf7   :  { %7633 = vmatmul.msk.f32.gmra.mxu3 %vm97_vm1, %v1732_v19  ;;  %7503 = vmatmul.msk.f32.gmra.mxu1 %vm97_vm1, %v1732_v19  ;;  %v1738_v19 = vld [vmem:[#allocation2 + $0x187] sm:$0xff] }
  0xf8   :  { %v589_v22 = vpop.f32.mrf.mxu0 }
  0xf9   :  { %v994_v28 = vadd.f32 %v993_v12, %v589_v22 }
  0xfb   :  { %7437 = vmatmul.msk.f32.gmra.mxu0 %vm97_vm1, %v324_v24 }
  0xfc   :  { %7568 = vmatmul.msk.f32.gmra.mxu2 %vm97_vm1, %v1199_v25  ;;  %v999_v27 = vpop.f32.mrf.mxu1  ;;  %v60_v25 = vld [vmem:[%s11655_s0 + $0xd8] sm:$0xff] }
  0xfd   :  { %205 = vst.msk [vmem:[#allocation2 + $0x1d0] sm:$0xff] %vm97_vm1, %v60_v25  ;;  %v65_v25 = vld [vmem:[%s11655_s0 + $0x100] sm:$0xff] }
  0xfe   :  { %210 = vst.msk [vmem:[#allocation2 + $0x268] sm:$0xff] %vm97_vm1, %v65_v25  ;;  %v1214_v25 = vld [vmem:[#allocation2 + $0x249] sm:$0xff] }
  0xff   :  { %v1463_v29 = vpop.f32.mrf.mxu2  ;;  %7634 = vmatmul.msk.f32.gmra.mxu3 %vm97_vm1, %v1733_v26  ;;  %7504 = vmatmul.msk.f32.gmra.mxu1 %vm97_vm1, %v1733_v26 }
 0x100   :  { %v1653_v31 = vadd.f32 %v1463_v29, %v994_v28  ;;  %v592_v32 = vpop.f32.mrf.mxu0  ;;  %v330_v28 = vld [vmem:[#allocation2 + $0x170] sm:$0xff] }
 0x101   :  { %v997_v39 = vadd.f32 %v996_v18, %v592_v32  ;;  %v1205_v29 = vld [vmem:[#allocation2 + $0x171] sm:$0xff] }
 0x102   :  { %v1997_v35 = vpop.f32.mrf.mxu3  ;;  %v1739_v32 = vld [vmem:[#allocation2 + $0x18f] sm:$0xff] }
 0x103   :  { %v8889_v36 = vadd.f32 %v1997_v35, %v1653_v31  ;;  %7438 = vmatmul.msk.f32.gmra.mxu0 %vm97_vm1, %v325_v33 }
 0x104   :  { %7569 = vmatmul.msk.f32.gmra.mxu2 %vm97_vm1, %v1200_v34  ;;  %v1002_v38 = vpop.f32.mrf.mxu1 }
 0x107   :  { %v1466_v40 = vpop.f32.mrf.mxu2  ;;  %7635 = vmatmul.msk.f32.gmra.mxu3 %vm97_vm1, %v1734_v37  ;;  %7505 = vmatmul.msk.f32.gmra.mxu1 %vm97_vm1, %v1734_v37  ;;  %v61_v37 = vld [vmem:[%s11655_s0 + $0xe0] sm:$0xff] }
 0x108   :  { %v1654_v42 = vadd.f32 %v1466_v40, %v997_v39  ;;  %v595_v43 = vpop.f32.mrf.mxu0  ;;  %206 = vst.msk [vmem:[#allocation2 + $0x1e8] sm:$0xff] %vm97_vm1, %v61_v37  ;;  %v331_v40 = vld [vmem:[#allocation2 + $0x188] sm:$0xff] }
 0x109   :  { %v1000_v50 = vadd.f32 %v999_v27, %v595_v43 }
 0x10a   :  { %v2000_v46 = vpop.f32.mrf.mxu3 }
 0x10b   :  { %v8899_v47 = vadd.f32 %v2000_v46, %v1654_v42  ;;  %7439 = vmatmul.msk.f32.gmra.mxu0 %vm97_vm1, %v326_v44  ;;  %v1740_v44 = vld [vmem:[#allocation2 + $0x1a7] sm:$0xff] }
 0x10c   :  { %7570 = vmatmul.msk.f32.gmra.mxu2 %vm97_vm1, %v1201_v45  ;;  %v1005_v49 = vpop.f32.mrf.mxu1 }
 0x10f   :  { %v1469_v51 = vpop.f32.mrf.mxu2  ;;  %7636 = vmatmul.msk.f32.gmra.mxu3 %vm97_vm1, %v1735_v48  ;;  %7506 = vmatmul.msk.f32.gmra.mxu1 %vm97_vm1, %v1735_v48 }
 0x110   :  { %v1655_v53 = vadd.f32 %v1469_v51, %v1000_v50  ;;  %v598_v54 = vpop.f32.mrf.mxu0 }
 0x111   :  { %v1003_v61 = vadd.f32 %v1002_v38, %v598_v54 }
 0x112   :  { %v2003_v57 = vpop.f32.mrf.mxu3 }
 0x113   :  { %v8909_v58 = vadd.f32 %v2003_v57, %v1655_v53  ;;  %7440 = vmatmul.msk.f32.gmra.mxu0 %vm97_vm1, %v327_v55  ;;  %v1207_v53 = vld [vmem:[#allocation2 + $0x191] sm:$0xff] }
 0x114   :  { %7571 = vmatmul.msk.f32.gmra.mxu2 %vm97_vm1, %v1202_v56  ;;  %v1008_v60 = vpop.f32.mrf.mxu1  ;;  %v1741_v56 = vld [vmem:[#allocation2 + $0x1af] sm:$0xff] }
 0x117   :  { %v1472_v62 = vpop.f32.mrf.mxu2  ;;  %7637 = vmatmul.msk.f32.gmra.mxu3 %vm97_vm1, %v1736_v59  ;;  %7507 = vmatmul.msk.f32.gmra.mxu1 %vm97_vm1, %v1736_v59 }
 0x118   :  { %v1656_v0 = vadd.f32 %v1472_v62, %v1003_v61  ;;  %v601_v1 = vpop.f32.mrf.mxu0  ;;  %v63_v61 = vld [vmem:[%s11655_s0 + $0xf0] sm:$0xff] }
 0x119   :  { %v1006_v9 = vadd.f32 %v1005_v49, %v601_v1  ;;  %v62_v49 = vld [vmem:[%s11655_s0 + $0xe8] sm:$0xff]  ;;  %208 = vst.msk [vmem:[#allocation2 + $0x208] sm:$0xff] %vm97_vm1, %v63_v61 }
 0x11a   :  { %v2006_v5 = vpop.f32.mrf.mxu3  ;;  %207 = vst.msk [vmem:[#allocation2 + $0x1f0] sm:$0xff] %vm97_vm1, %v62_v49  ;;  %v1208_v1 = vld [vmem:[#allocation2 + $0x1a9] sm:$0xff] }
 0x11b   :  { %v8919_v6 = vadd.f32 %v2006_v5, %v1656_v0  ;;  %7441 = vmatmul.msk.f32.gmra.mxu0 %vm97_vm1, %v328_v2  ;;  %v333_v0 = vld [vmem:[#allocation2 + $0x1a8] sm:$0xff] }
 0x11c   :  { %7572 = vmatmul.msk.f32.gmra.mxu2 %vm97_vm1, %v1203_v3  ;;  %v1011_v8 = vpop.f32.mrf.mxu1  ;;  %v1742_v5 = vld [vmem:[#allocation2 + $0x1c7] sm:$0xff] }
 0x11f   :  { %v1475_v10 = vpop.f32.mrf.mxu2  ;;  %7638 = vmatmul.msk.f32.gmra.mxu3 %vm97_vm1, %v1737_v7  ;;  %7508 = vmatmul.msk.f32.gmra.mxu1 %vm97_vm1, %v1737_v7 }
 0x120   :  { %v1657_v12 = vadd.f32 %v1475_v10, %v1006_v9  ;;  %v604_v13 = vpop.f32.mrf.mxu0  ;;  %v64_v10 = vld [vmem:[%s11655_s0 + $0xf8] sm:$0xff] }
 0x121   :  { %v1009_v22 = vadd.f32 %v1008_v60, %v604_v13  ;;  %209 = vst.msk [vmem:[#allocation2 + $0x210] sm:$0xff] %vm97_vm1, %v64_v10  ;;  %v334_v13 = vld [vmem:[#allocation2 + $0x1b0] sm:$0xff] }
 0x122   :  { %v2009_v17 = vpop.f32.mrf.mxu3 }
 0x123   :  { %v8929_v18 = vadd.f32 %v2009_v17, %v1657_v12  ;;  %7442 = vmatmul.msk.f32.gmra.mxu0 %vm97_vm1, %v329_v15  ;;  %v1209_v15 = vld [vmem:[#allocation2 + $0x1b1] sm:$0xff] }
 0x124   :  { %7573 = vmatmul.msk.f32.gmra.mxu2 %vm97_vm1, %v1204_v16  ;;  %v1014_v21 = vpop.f32.mrf.mxu1 }
 0x127   :  { %v1478_v24 = vpop.f32.mrf.mxu2  ;;  %7639 = vmatmul.msk.f32.gmra.mxu3 %vm97_vm1, %v1738_v19  ;;  %7509 = vmatmul.msk.f32.gmra.mxu1 %vm97_vm1, %v1738_v19  ;;  %v1743_v19 = vld [vmem:[#allocation2 + $0x1cf] sm:$0xff] }
 0x128   :  { %v1658_v26 = vadd.f32 %v1478_v24, %v1009_v22  ;;  %v607_v27 = vpop.f32.mrf.mxu0 }
 0x129   :  { %v1012_v34 = vadd.f32 %v1011_v8, %v607_v27 }
 0x12a   :  { %v2012_v30 = vpop.f32.mrf.mxu3 }
 0x12b   :  { %v8939_v31 = vadd.f32 %v2012_v30, %v1658_v26  ;;  %7443 = vmatmul.msk.f32.gmra.mxu0 %vm97_vm1, %v330_v28  ;;  %v335_v28 = vld [vmem:[#allocation2 + $0x1c8] sm:$0xff] }
 0x12c   :  { %7574 = vmatmul.msk.f32.gmra.mxu2 %vm97_vm1, %v1205_v29  ;;  %v1017_v33 = vpop.f32.mrf.mxu1  ;;  %v1210_v29 = vld [vmem:[#allocation2 + $0x1c9] sm:$0xff] }
 0x12f   :  { %v1481_v35 = vpop.f32.mrf.mxu2  ;;  %7640 = vmatmul.msk.f32.gmra.mxu3 %vm97_vm1, %v1739_v32  ;;  %7510 = vmatmul.msk.f32.gmra.mxu1 %vm97_vm1, %v1739_v32 }
 0x130   :  { %v1659_v38 = vadd.f32 %v1481_v35, %v1012_v34  ;;  %v610_v39 = vpop.f32.mrf.mxu0 }
 0x131   :  { %v1015_v46 = vadd.f32 %v1014_v21, %v610_v39 }
 0x132   :  { %v2015_v42 = vpop.f32.mrf.mxu3 }
 0x133   :  { %v8949_v43 = vadd.f32 %v2015_v42, %v1659_v38  ;;  %7444 = vmatmul.msk.f32.gmra.mxu0 %vm97_vm1, %v331_v40  ;;  %v66_v38 = vld [vmem:[%s11655_s0 + $0x108] sm:$0xff]  ;;  %v1211_v42 = vld [vmem:[#allocation2 + $0x1d1] sm:$0xff] }
 0x134   :  { %7575 = vmatmul.msk.f32.gmra.mxu2 %vm97_vm1, %v1206_v41  ;;  %v1020_v45 = vpop.f32.mrf.mxu1  ;;  %211 = vst.msk [vmem:[#allocation2 + $0x270] sm:$0xff] %vm97_vm1, %v66_v38  ;;  %v336_v41 = vld [vmem:[#allocation2 + $0x1d0] sm:$0xff] }
 0x135   :  { %v340_v38 = vld [vmem:[#allocation2 + $0x250] sm:$0xff] }
 0x137   :  { %v1484_v48 = vpop.f32.mrf.mxu2  ;;  %7641 = vmatmul.msk.f32.gmra.mxu3 %vm97_vm1, %v1740_v44  ;;  %7511 = vmatmul.msk.f32.gmra.mxu1 %vm97_vm1, %v1740_v44 }
 0x138   :  { %v1660_v50 = vadd.f32 %v1484_v48, %v1015_v46  ;;  %v613_v51 = vpop.f32.mrf.mxu0  ;;  %v1745_v46 = vld [vmem:[#allocation2 + $0x1ef] sm:$0xff] }
 0x139   :  { %v1018_v59 = vadd.f32 %v1017_v33, %v613_v51  ;;  %v1744_v33 = vld [vmem:[#allocation2 + $0x1e7] sm:$0xff]  ;;  %v67_v51 = vld [vmem:[%s11655_s0 + $0x110] sm:$0xff] }
 0x13a   :  { %v2018_v54 = vpop.f32.mrf.mxu3  ;;  %212 = vst.msk [vmem:[#allocation2 + $0x288] sm:$0xff] %vm97_vm1, %v67_v51 }
 0x13b   :  { %v8959_v55 = vadd.f32 %v2018_v54, %v1660_v50  ;;  %7445 = vmatmul.msk.f32.gmra.mxu0 %vm97_vm1, %v332_v52  ;;  %v337_v54 = vld [vmem:[#allocation2 + $0x1e8] sm:$0xff] }
 0x13c   :  { %7576 = vmatmul.msk.f32.gmra.mxu2 %vm97_vm1, %v1207_v53  ;;  %v1023_v57 = vpop.f32.mrf.mxu1 }
 0x13f   :  { %v1487_v60 = vpop.f32.mrf.mxu2  ;;  %7642 = vmatmul.msk.f32.gmra.mxu3 %vm97_vm1, %v1741_v56  ;;  %7512 = vmatmul.msk.f32.gmra.mxu1 %vm97_vm1, %v1741_v56  ;;  %v1212_v56 = vld [vmem:[#allocation2 + $0x1e9] sm:$0xff] }
 0x140   :  { %v1661_v62 = vadd.f32 %v1487_v60, %v1018_v59  ;;  %v616_v63 = vpop.f32.mrf.mxu0  ;;  %v1746_v60 = vld [vmem:[#allocation2 + $0x207] sm:$0xff] }
 0x141   :  { %v1021_v8 = vadd.f32 %v1020_v45, %v616_v63 }
 0x142   :  { %v2021_v2 = vpop.f32.mrf.mxu3 }
 0x143   :  { %v8969_v3 = vadd.f32 %v2021_v2, %v1661_v62  ;;  %7446 = vmatmul.msk.f32.gmra.mxu0 %vm97_vm1, %v333_v0  ;;  %v274_v62 = vld [vmem:[#allocation2 + $0x247] sm:$0xff] }
 0x144   :  { %7577 = vmatmul.msk.f32.gmra.mxu2 %vm97_vm1, %v1208_v1  ;;  %v1026_v7 = vpop.f32.mrf.mxu1  ;;  %v68_v1 = vld [vmem:[%s11655_s0 + $0x118] sm:$0xff] }
 0x145   :  { %213 = vst.msk [vmem:[#allocation2 + $0x290] sm:$0xff] %vm97_vm1, %v68_v1 }
 0x147   :  { %v1490_v9 = vpop.f32.mrf.mxu2  ;;  %7643 = vmatmul.msk.f32.gmra.mxu3 %vm97_vm1, %v1742_v5  ;;  %7513 = vmatmul.msk.f32.gmra.mxu1 %vm97_vm1, %v1742_v5 }
 0x148   :  { %v1662_v11 = vadd.f32 %v1490_v9, %v1021_v8  ;;  %v619_v12 = vpop.f32.mrf.mxu0  ;;  %v1213_v8 = vld [vmem:[#allocation2 + $0x1f1] sm:$0xff] }
 0x149   :  { %v1024_v22 = vadd.f32 %v1023_v57, %v619_v12 }
 0x14a   :  { %v2024_v16 = vpop.f32.mrf.mxu3 }
 0x14b   :  { %v8979_v17 = vadd.f32 %v2024_v16, %v1662_v11  ;;  %7447 = vmatmul.msk.f32.gmra.mxu0 %vm97_vm1, %v334_v13  ;;  %v1747_v11 = vld [vmem:[#allocation2 + $0x20f] sm:$0xff] }
 0x14c   :  { %7578 = vmatmul.msk.f32.gmra.mxu2 %vm97_vm1, %v1209_v15  ;;  %v1029_v21 = vpop.f32.mrf.mxu1  ;;  %v275_v13 = vld [vmem:[#allocation2 + $0x24f] sm:$0xff] }
 0x14f   :  { %v1493_v24 = vpop.f32.mrf.mxu2  ;;  %7644 = vmatmul.msk.f32.gmra.mxu3 %vm97_vm1, %v1743_v19  ;;  %7514 = vmatmul.msk.f32.gmra.mxu1 %vm97_vm1, %v1743_v19  ;;  %v69_v19 = vld [vmem:[%s11655_s0 + $0x120] sm:$0xff] }
 0x150   :  { %v1663_v26 = vadd.f32 %v1493_v24, %v1024_v22  ;;  %v622_v27 = vpop.f32.mrf.mxu0  ;;  %214 = vst.msk [vmem:[#allocation2 + $0x2a8] sm:$0xff] %vm97_vm1, %v69_v19  ;;  %v339_v24 = vld [vmem:[#allocation2 + $0x248] sm:$0xff] }
 0x151   :  { %v1027_v35 = vadd.f32 %v1026_v7, %v622_v27  ;;  %v338_v7 = vld [vmem:[#allocation2 + $0x1f0] sm:$0xff] }
 0x152   :  { %v2027_v30 = vpop.f32.mrf.mxu3 }
 0x153   :  { %v8989_v32 = vadd.f32 %v2027_v30, %v1663_v26  ;;  %7448 = vmatmul.msk.f32.gmra.mxu0 %vm97_vm1, %v335_v28  ;;  %v1748_v28 = vld [vmem:[#allocation2 + $0x267] sm:$0xff] }
 0x154   :  { %7579 = vmatmul.msk.f32.gmra.mxu2 %vm97_vm1, %v1210_v29  ;;  %v1032_v34 = vpop.f32.mrf.mxu1 }
 0x157   :  { %v1496_v37 = vpop.f32.mrf.mxu2  ;;  %7645 = vmatmul.msk.f32.gmra.mxu3 %vm97_vm1, %v1744_v33  ;;  %7515 = vmatmul.msk.f32.gmra.mxu1 %vm97_vm1, %v1744_v33 }
 0x158   :  { %v1664_v39 = vadd.f32 %v1496_v37, %v1027_v35  ;;  %v625_v40 = vpop.f32.mrf.mxu0 }
 0x159   :  { %v1030_v49 = vadd.f32 %v1029_v21, %v625_v40 }
 0x15a   :  { %v2030_v44 = vpop.f32.mrf.mxu3 }
 0x15b   :  { %v8999_v45 = vadd.f32 %v2030_v44, %v1664_v39  ;;  %7449 = vmatmul.msk.f32.gmra.mxu0 %vm97_vm1, %v336_v41  ;;  %v1215_v39 = vld [vmem:[#allocation2 + $0x251] sm:$0xff] }
 0x15c   :  { %7580 = vmatmul.msk.f32.gmra.mxu2 %vm97_vm1, %v1211_v42  ;;  %v1035_v48 = vpop.f32.mrf.mxu1  ;;  %v1749_v42 = vld [vmem:[#allocation2 + $0x26f] sm:$0xff] }
 0x15f   :  { %v1499_v50 = vpop.f32.mrf.mxu2  ;;  %7646 = vmatmul.msk.f32.gmra.mxu3 %vm97_vm1, %v1745_v46  ;;  %7516 = vmatmul.msk.f32.gmra.mxu1 %vm97_vm1, %v1745_v46 }
 0x160   :  { %v1665_v52 = vadd.f32 %v1499_v50, %v1030_v49  ;;  %v628_v53 = vpop.f32.mrf.mxu0  ;;  %v71_v49 = vld [vmem:[%s11655_s0 + $0x130] sm:$0xff] }
 0x161   :  { %v1033_v63 = vadd.f32 %v1032_v34, %v628_v53  ;;  %v70_v34 = vld [vmem:[%s11655_s0 + $0x128] sm:$0xff]  ;;  %216 = vst.msk [vmem:[#allocation2 + $0x2c8] sm:$0xff] %vm97_vm1, %v71_v49  ;;  %v75_v49 = vld [vmem:[%s11655_s0 + $0x150] sm:$0xff] }
 0x162   :  { %v2033_v57 = vpop.f32.mrf.mxu3  ;;  %215 = vst.msk [vmem:[#allocation2 + $0x2b0] sm:$0xff] %vm97_vm1, %v70_v34  ;;  %v1216_v53 = vld [vmem:[#allocation2 + $0x269] sm:$0xff] }
 0x163   :  { %v9009_v59 = vadd.f32 %v2033_v57, %v1665_v52  ;;  %7450 = vmatmul.msk.f32.gmra.mxu0 %vm97_vm1, %v337_v54  ;;  %v341_v52 = vld [vmem:[#allocation2 + $0x268] sm:$0xff]  ;;  %220 = vst.msk [vmem:[#allocation2 + $0x308] sm:$0xff] %vm97_vm1, %v75_v49 }
 0x164   :  { %7581 = vmatmul.msk.f32.gmra.mxu2 %vm97_vm1, %v1212_v56  ;;  %v1038_v61 = vpop.f32.mrf.mxu1  ;;  %v1750_v57 = vld [vmem:[#allocation2 + $0x287] sm:$0xff] }
 0x167   :  { %v1502_v0 = vpop.f32.mrf.mxu2  ;;  %7647 = vmatmul.msk.f32.gmra.mxu3 %vm97_vm1, %v1746_v60  ;;  %7517 = vmatmul.msk.f32.gmra.mxu1 %vm97_vm1, %v274_v62 }
 0x168   :  { %v1666_v2 = vadd.f32 %v1502_v0, %v1033_v63  ;;  %v631_v5 = vpop.f32.mrf.mxu0  ;;  %v72_v63 = vld [vmem:[%s11655_s0 + $0x138] sm:$0xff] }
 0x169   :  { %v1036_v15 = vadd.f32 %v1035_v48, %v631_v5  ;;  %217 = vst.msk [vmem:[#allocation2 + $0x2d0] sm:$0xff] %vm97_vm1, %v72_v63  ;;  %v1217_v5 = vld [vmem:[#allocation2 + $0x271] sm:$0xff] }
 0x16a   :  { %v2036_v9 = vpop.f32.mrf.mxu3 }
 0x16b   :  { %v9019_v10 = vadd.f32 %v2036_v9, %v1666_v2  ;;  %7451 = vmatmul.msk.f32.gmra.mxu0 %vm97_vm1, %v338_v7  ;;  %v342_v2 = vld [vmem:[#allocation2 + $0x270] sm:$0xff] }
 0x16c   :  { %7582 = vmatmul.msk.f32.gmra.mxu2 %vm97_vm1, %v1213_v8  ;;  %v1041_v12 = vpop.f32.mrf.mxu1  ;;  %v1751_v9 = vld [vmem:[#allocation2 + $0x28f] sm:$0xff] }
 0x16f   :  { %v1505_v16 = vpop.f32.mrf.mxu2  ;;  %7648 = vmatmul.msk.f32.gmra.mxu3 %vm97_vm1, %v1747_v11  ;;  %7518 = vmatmul.msk.f32.gmra.mxu1 %vm97_vm1, %v275_v13 }
 0x170   :  { %v1667_v21 = vadd.f32 %v1505_v16, %v1036_v15  ;;  %v634_v22 = vpop.f32.mrf.mxu0  ;;  %v73_v15 = vld [vmem:[%s11655_s0 + $0x140] sm:$0xff] }
 0x171   :  { %v1039_v30 = vadd.f32 %v1038_v61, %v634_v22  ;;  %218 = vst.msk [vmem:[#allocation2 + $0x2e8] sm:$0xff] %vm97_vm1, %v73_v15  ;;  %v1218_v22 = vld [vmem:[#allocation2 + $0x289] sm:$0xff] }
 0x172   :  { %v2039_v26 = vpop.f32.mrf.mxu3 }
 0x173   :  { %v9029_v27 = vadd.f32 %v2039_v26, %v1667_v21  ;;  %7452 = vmatmul.msk.f32.gmra.mxu0 %vm97_vm1, %v339_v24  ;;  %v343_v21 = vld [vmem:[#allocation2 + $0x288] sm:$0xff] }
 0x174   :  { %7583 = vmatmul.msk.f32.gmra.mxu2 %vm97_vm1, %v1214_v25  ;;  %v1044_v29 = vpop.f32.mrf.mxu1  ;;  %v1752_v26 = vld [vmem:[#allocation2 + $0x2a7] sm:$0xff] }
 0x177   :  { %v1508_v33 = vpop.f32.mrf.mxu2  ;;  %7649 = vmatmul.msk.f32.gmra.mxu3 %vm97_vm1, %v1748_v28  ;;  %7519 = vmatmul.msk.f32.gmra.mxu1 %vm97_vm1, %v1748_v28 }
 0x178   :  { %v1668_v35 = vadd.f32 %v1508_v33, %v1039_v30  ;;  %v637_v37 = vpop.f32.mrf.mxu0  ;;  %v74_v33 = vld [vmem:[%s11655_s0 + $0x148] sm:$0xff] }
 0x179   :  { %v1042_v46 = vadd.f32 %v1041_v12, %v637_v37  ;;  %219 = vst.msk [vmem:[#allocation2 + $0x2f0] sm:$0xff] %vm97_vm1, %v74_v33  ;;  %v344_v37 = vld [vmem:[#allocation2 + $0x290] sm:$0xff] }
 0x17a   :  { %v2042_v40 = vpop.f32.mrf.mxu3 }
 0x17b   :  { %v9039_v41 = vadd.f32 %v2042_v40, %v1668_v35  ;;  %7453 = vmatmul.msk.f32.gmra.mxu0 %vm97_vm1, %v340_v38  ;;  %v1219_v38 = vld [vmem:[#allocation2 + $0x291] sm:$0xff] }
 0x17c   :  { %7584 = vmatmul.msk.f32.gmra.mxu2 %vm97_vm1, %v1215_v39  ;;  %v1047_v44 = vpop.f32.mrf.mxu1 }
 0x17f   :  { %v1511_v48 = vpop.f32.mrf.mxu2  ;;  %7650 = vmatmul.msk.f32.gmra.mxu3 %vm97_vm1, %v1749_v42  ;;  %7520 = vmatmul.msk.f32.gmra.mxu1 %vm97_vm1, %v1749_v42  ;;  %v1753_v42 = vld [vmem:[#allocation2 + $0x2af] sm:$0xff] }
 0x180   :  { %v1669_v50 = vadd.f32 %v1511_v48, %v1042_v46  ;;  %v640_v51 = vpop.f32.mrf.mxu0  ;;  %v1757_v49 = vld [vmem:[#allocation2 + $0x2ef] sm:$0xff] }
 0x181   :  { %v1045_v61 = vadd.f32 %v1044_v29, %v640_v51 }
 0x182   :  { %v2045_v54 = vpop.f32.mrf.mxu3 }
 0x183   :  { %v9049_v56 = vadd.f32 %v2045_v54, %v1669_v50  ;;  %7454 = vmatmul.msk.f32.gmra.mxu0 %vm97_vm1, %v341_v52  ;;  %v345_v52 = vld [vmem:[#allocation2 + $0x2a8] sm:$0xff] }
 0x184   :  { %7585 = vmatmul.msk.f32.gmra.mxu2 %vm97_vm1, %v1216_v53  ;;  %v1050_v60 = vpop.f32.mrf.mxu1  ;;  %v1220_v53 = vld [vmem:[#allocation2 + $0x2a9] sm:$0xff] }
 0x187   :  { %v1514_v62 = vpop.f32.mrf.mxu2  ;;  %7651 = vmatmul.msk.f32.gmra.mxu3 %vm97_vm1, %v1750_v57  ;;  %7521 = vmatmul.msk.f32.gmra.mxu1 %vm97_vm1, %v1750_v57 }
 0x188   :  { %v1670_v0 = vadd.f32 %v1514_v62, %v1045_v61  ;;  %v643_v1 = vpop.f32.mrf.mxu0 }
 0x189   :  { %v1048_v12 = vadd.f32 %v1047_v44, %v643_v1 }
 0x18a   :  { %v2048_v7 = vpop.f32.mrf.mxu3 }
 0x18b   :  { %v9059_v8 = vadd.f32 %v2048_v7, %v1670_v0  ;;  %7455 = vmatmul.msk.f32.gmra.mxu0 %vm97_vm1, %v342_v2  ;;  %v76_v0 = vld [vmem:[%s11655_s0 + $0x158] sm:$0xff] }
 0x18c   :  { %7586 = vmatmul.msk.f32.gmra.mxu2 %vm97_vm1, %v1217_v5  ;;  %v1053_v11 = vpop.f32.mrf.mxu1  ;;  %221 = vst.msk [vmem:[#allocation2 + $0x310] sm:$0xff] %vm97_vm1, %v76_v0  ;;  %v346_v5 = vld [vmem:[#allocation2 + $0x2b0] sm:$0xff] }
 0x18d   :  { %v1221_v7 = vld [vmem:[#allocation2 + $0x2b1] sm:$0xff] }
 0x18f   :  { %v1517_v13 = vpop.f32.mrf.mxu2  ;;  %7652 = vmatmul.msk.f32.gmra.mxu3 %vm97_vm1, %v1751_v9  ;;  %7522 = vmatmul.msk.f32.gmra.mxu1 %vm97_vm1, %v1751_v9 }
 0x190   :  { %v1671_v16 = vadd.f32 %v1517_v13, %v1048_v12  ;;  %v646_v19 = vpop.f32.mrf.mxu0  ;;  %v1755_v12 = vld [vmem:[#allocation2 + $0x2cf] sm:$0xff] }
 0x191   :  { %v1051_v29 = vadd.f32 %v1050_v60, %v646_v19  ;;  %v1754_v60 = vld [vmem:[#allocation2 + $0x2c7] sm:$0xff] }
 0x192   :  { %v2051_v24 = vpop.f32.mrf.mxu3  ;;  %v77_v19 = vld [vmem:[%s11655_s0 + $0x160] sm:$0xff] }
 0x193   :  { %v9069_v25 = vadd.f32 %v2051_v24, %v1671_v16  ;;  %7456 = vmatmul.msk.f32.gmra.mxu0 %vm97_vm1, %v343_v21  ;;  %222 = vst.msk [vmem:[#allocation2 + $0x328] sm:$0xff] %vm97_vm1, %v77_v19  ;;  %v347_v24 = vld [vmem:[#allocation2 + $0x2c8] sm:$0xff] }
 0x194   :  { %7587 = vmatmul.msk.f32.gmra.mxu2 %vm97_vm1, %v1218_v22  ;;  %v1056_v28 = vpop.f32.mrf.mxu1 }
 0x197   :  { %v1520_v30 = vpop.f32.mrf.mxu2  ;;  %7653 = vmatmul.msk.f32.gmra.mxu3 %vm97_vm1, %v1752_v26  ;;  %7523 = vmatmul.msk.f32.gmra.mxu1 %vm97_vm1, %v1752_v26  ;;  %v1222_v26 = vld [vmem:[#allocation2 + $0x2c9] sm:$0xff] }
 0x198   :  { %v1672_v34 = vadd.f32 %v1520_v30, %v1051_v29  ;;  %v649_v35 = vpop.f32.mrf.mxu0  ;;  %v1756_v30 = vld [vmem:[#allocation2 + $0x2e7] sm:$0xff] }
 0x199   :  { %v1054_v46 = vadd.f32 %v1053_v11, %v649_v35 }
 0x19a   :  { %v2054_v39 = vpop.f32.mrf.mxu3 }
 0x19b   :  { %v9079_v40 = vadd.f32 %v2054_v39, %v1672_v34  ;;  %7457 = vmatmul.msk.f32.gmra.mxu0 %vm97_vm1, %v344_v37  ;;  %v78_v37 = vld [vmem:[%s11655_s0 + $0x168] sm:$0xff] }
 0x19c   :  { %7588 = vmatmul.msk.f32.gmra.mxu2 %vm97_vm1, %v1219_v38  ;;  %v1059_v44 = vpop.f32.mrf.mxu1  ;;  %223 = vst.msk [vmem:[#allocation2 + $0x330] sm:$0xff] %vm97_vm1, %v78_v37  ;;  %v1226_v37 = vld [vmem:[#allocation2 + $0x309] sm:$0xff] }
 0x19f   :  { %v1523_v48 = vpop.f32.mrf.mxu2  ;;  %7654 = vmatmul.msk.f32.gmra.mxu3 %vm97_vm1, %v1753_v42  ;;  %7524 = vmatmul.msk.f32.gmra.mxu1 %vm97_vm1, %v1753_v42  ;;  %v348_v42 = vld [vmem:[#allocation2 + $0x2d0] sm:$0xff] }
 0x1a0   :  { %v1673_v50 = vadd.f32 %v1523_v48, %v1054_v46  ;;  %v652_v51 = vpop.f32.mrf.mxu0 }
 0x1a1   :  { %v1057_v62 = vadd.f32 %v1056_v28, %v652_v51 }
 0x1a2   :  { %v2057_v54 = vpop.f32.mrf.mxu3 }
 0x1a3   :  { %v9089_v57 = vadd.f32 %v2057_v54, %v1673_v50  ;;  %7458 = vmatmul.msk.f32.gmra.mxu0 %vm97_vm1, %v345_v52 }
 0x1a4   :  { %7589 = vmatmul.msk.f32.gmra.mxu2 %vm97_vm1, %v1220_v53  ;;  %v1062_v61 = vpop.f32.mrf.mxu1  ;;  %v79_v53 = vld [vmem:[%s11655_s0 + $0x170] sm:$0xff] }
 0x1a5   :  { %224 = vst.msk [vmem:[#allocation2 + $0x348] sm:$0xff] %vm97_vm1, %v79_v53  ;;  %v352_v53 = vld [vmem:[#allocation2 + $0x310] sm:$0xff] }
 0x1a7   :  { %v1526_v63 = vpop.f32.mrf.mxu2  ;;  %7655 = vmatmul.msk.f32.gmra.mxu3 %vm97_vm1, %v1754_v60  ;;  %7525 = vmatmul.msk.f32.gmra.mxu1 %vm97_vm1, %v1754_v60 }
 0x1a8   :  { %v1674_v1 = vadd.f32 %v1526_v63, %v1057_v62  ;;  %v655_v2 = vpop.f32.mrf.mxu0  ;;  %v1224_v62 = vld [vmem:[#allocation2 + $0x2e9] sm:$0xff] }
 0x1a9   :  { %v1060_v15 = vadd.f32 %v1059_v44, %v655_v2  ;;  %v1223_v44 = vld [vmem:[#allocation2 + $0x2d1] sm:$0xff] }
 0x1aa   :  { %v2060_v9 = vpop.f32.mrf.mxu3 }
 0x1ab   :  { %v9099_v11 = vadd.f32 %v2060_v9, %v1674_v1  ;;  %7459 = vmatmul.msk.f32.gmra.mxu0 %vm97_vm1, %v346_v5  ;;  %v1758_v1 = vld [vmem:[#allocation2 + $0x307] sm:$0xff]  ;;  %v80_v9 = vld [vmem:[%s11655_s0 + $0x178] sm:$0xff] }
 0x1ac   :  { %7590 = vmatmul.msk.f32.gmra.mxu2 %vm97_vm1, %v1221_v7  ;;  %v1065_v13 = vpop.f32.mrf.mxu1  ;;  %225 = vst.msk [vmem:[#allocation2 + $0x350] sm:$0xff] %vm97_vm1, %v80_v9 }
 0x1af   :  { %v1529_v16 = vpop.f32.mrf.mxu2  ;;  %7656 = vmatmul.msk.f32.gmra.mxu3 %vm97_vm1, %v1755_v12  ;;  %7526 = vmatmul.msk.f32.gmra.mxu1 %vm97_vm1, %v1755_v12 }
 0x1b0   :  { %v1675_v21 = vadd.f32 %v1529_v16, %v1060_v15  ;;  %v658_v22 = vpop.f32.mrf.mxu0  ;;  %v350_v15 = vld [vmem:[#allocation2 + $0x2f0] sm:$0xff] }
 0x1b1   :  { %v1063_v34 = vadd.f32 %v1062_v61, %v658_v22  ;;  %v349_v61 = vld [vmem:[#allocation2 + $0x2e8] sm:$0xff]  ;;  %v1225_v16 = vld [vmem:[#allocation2 + $0x2f1] sm:$0xff] }
 0x1b2   :  { %v2063_v28 = vpop.f32.mrf.mxu3  ;;  %v1759_v22 = vld [vmem:[#allocation2 + $0x30f] sm:$0xff] }
 0x1b3   :  { %v9109_v29 = vadd.f32 %v2063_v28, %v1675_v21  ;;  %7460 = vmatmul.msk.f32.gmra.mxu0 %vm97_vm1, %v347_v24 }
 0x1b4   :  { %7591 = vmatmul.msk.f32.gmra.mxu2 %vm97_vm1, %v1222_v26  ;;  %v1068_v33 = vpop.f32.mrf.mxu1 }
 0x1b7   :  { %v1532_v35 = vpop.f32.mrf.mxu2  ;;  %7657 = vmatmul.msk.f32.gmra.mxu3 %vm97_vm1, %v1756_v30  ;;  %7527 = vmatmul.msk.f32.gmra.mxu1 %vm97_vm1, %v1756_v30  ;;  %v81_v30 = vld [vmem:[%s11655_s0 + $0x180] sm:$0xff] }
 0x1b8   :  { %v1676_v38 = vadd.f32 %v1532_v35, %v1063_v34  ;;  %v661_v39 = vpop.f32.mrf.mxu0  ;;  %226 = vst.msk [vmem:[#allocation2 + $0x368] sm:$0xff] %vm97_vm1, %v81_v30  ;;  %v351_v35 = vld [vmem:[#allocation2 + $0x308] sm:$0xff] }
 0x1b9   :  { %v1066_v51 = vadd.f32 %v1065_v13, %v661_v39 }
 0x1ba   :  { %v2066_v46 = vpop.f32.mrf.mxu3 }
 0x1bb   :  { %v9119_v48 = vadd.f32 %v2066_v46, %v1676_v38  ;;  %7461 = vmatmul.msk.f32.gmra.mxu0 %vm97_vm1, %v348_v42  ;;  %v1760_v42 = vld [vmem:[#allocation2 + $0x327] sm:$0xff] }
 0x1bc   :  { %7592 = vmatmul.msk.f32.gmra.mxu2 %vm97_vm1, %v1223_v44  ;;  %v1071_v50 = vpop.f32.mrf.mxu1 }
 0x1bf   :  { %v1535_v52 = vpop.f32.mrf.mxu2  ;;  %7658 = vmatmul.msk.f32.gmra.mxu3 %vm97_vm1, %v1757_v49  ;;  %7528 = vmatmul.msk.f32.gmra.mxu1 %vm97_vm1, %v1757_v49 }
 0x1c0   :  { %v1677_v54 = vadd.f32 %v1535_v52, %v1066_v51  ;;  %v664_v60 = vpop.f32.mrf.mxu0 }
 0x1c1   :  { %v1069_v5 = vadd.f32 %v1068_v33, %v664_v60 }
 0x1c2   :  { %v2069_v63 = vpop.f32.mrf.mxu3 }
 0x1c3   :  { %v9129_v0 = vadd.f32 %v2069_v63, %v1677_v54  ;;  %7462 = vmatmul.msk.f32.gmra.mxu0 %vm97_vm1, %v349_v61  ;;  %v1227_v54 = vld [vmem:[#allocation2 + $0x311] sm:$0xff] }
 0x1c4   :  { %7593 = vmatmul.msk.f32.gmra.mxu2 %vm97_vm1, %v1224_v62  ;;  %v1074_v2 = vpop.f32.mrf.mxu1  ;;  %v1761_v62 = vld [vmem:[#allocation2 + $0x32f] sm:$0xff] }
 0x1c7   :  { %v1538_v7 = vpop.f32.mrf.mxu2  ;;  %7659 = vmatmul.msk.f32.gmra.mxu3 %vm97_vm1, %v1758_v1  ;;  %7529 = vmatmul.msk.f32.gmra.mxu1 %vm97_vm1, %v1758_v1 }
 0x1c8   :  { %v1678_v12 = vadd.f32 %v1538_v7, %v1069_v5  ;;  %v667_v13 = vpop.f32.mrf.mxu0  ;;  %v83_v5 = vld [vmem:[%s11655_s0 + $0x190] sm:$0xff] }
 0x1c9   :  { %v1072_v26 = vadd.f32 %v1071_v50, %v667_v13  ;;  %v82_v50 = vld [vmem:[%s11655_s0 + $0x188] sm:$0xff]  ;;  %228 = vst.msk [vmem:[#allocation2 + $0x388] sm:$0xff] %vm97_vm1, %v83_v5 }
 0x1ca   :  { %v2072_v19 = vpop.f32.mrf.mxu3  ;;  %227 = vst.msk [vmem:[#allocation2 + $0x370] sm:$0xff] %vm97_vm1, %v82_v50  ;;  %v1228_v13 = vld [vmem:[#allocation2 + $0x329] sm:$0xff]  ;;  %v85_v50 = vld [vmem:[%s11655_s0 + $0x1a0] sm:$0xff] }
 0x1cb   :  { %v9139_v21 = vadd.f32 %v2072_v19, %v1678_v12  ;;  %7463 = vmatmul.msk.f32.gmra.mxu0 %vm97_vm1, %v350_v15  ;;  %v353_v12 = vld [vmem:[#allocation2 + $0x328] sm:$0xff]  ;;  %230 = vst.msk [vmem:[#allocation2 + $0x3a8] sm:$0xff] %vm97_vm1, %v85_v50 }
 0x1cc   :  { %7594 = vmatmul.msk.f32.gmra.mxu2 %vm97_vm1, %v1225_v16  ;;  %v1077_v24 = vpop.f32.mrf.mxu1  ;;  %v1762_v19 = vld [vmem:[#allocation2 + $0x347] sm:$0xff] }
 0x1cf   :  { %v1541_v28 = vpop.f32.mrf.mxu2  ;;  %7660 = vmatmul.msk.f32.gmra.mxu3 %vm97_vm1, %v1759_v22  ;;  %7530 = vmatmul.msk.f32.gmra.mxu1 %vm97_vm1, %v1759_v22 }
 0x1d0   :  { %v1679_v33 = vadd.f32 %v1541_v28, %v1072_v26  ;;  %v670_v34 = vpop.f32.mrf.mxu0  ;;  %v84_v28 = vld [vmem:[%s11655_s0 + $0x198] sm:$0xff] }
 0x1d1   :  { %v1075_v46 = vadd.f32 %v1074_v2, %v670_v34  ;;  %229 = vst.msk [vmem:[#allocation2 + $0x390] sm:$0xff] %vm97_vm1, %v84_v28  ;;  %v354_v34 = vld [vmem:[#allocation2 + $0x330] sm:$0xff] }
 0x1d2   :  { %v2075_v38 = vpop.f32.mrf.mxu3 }
 0x1d3   :  { %v9149_v39 = vadd.f32 %v2075_v38, %v1679_v33  ;;  %7464 = vmatmul.msk.f32.gmra.mxu0 %vm97_vm1, %v351_v35  ;;  %v1229_v35 = vld [vmem:[#allocation2 + $0x331] sm:$0xff] }
 0x1d4   :  { %7595 = vmatmul.msk.f32.gmra.mxu2 %vm97_vm1, %v1226_v37  ;;  %v1080_v44 = vpop.f32.mrf.mxu1 }
 0x1d7   :  { %v1544_v49 = vpop.f32.mrf.mxu2  ;;  %7661 = vmatmul.msk.f32.gmra.mxu3 %vm97_vm1, %v1760_v42  ;;  %7531 = vmatmul.msk.f32.gmra.mxu1 %vm97_vm1, %v1760_v42  ;;  %v1763_v42 = vld [vmem:[#allocation2 + $0x34f] sm:$0xff] }
 0x1d8   :  { %v1680_v51 = vadd.f32 %v1544_v49, %v1075_v46  ;;  %v673_v52 = vpop.f32.mrf.mxu0 }
 0x1d9   :  { %v1078_v1 = vadd.f32 %v1077_v24, %v673_v52 }
 0x1da   :  { %v2078_v60 = vpop.f32.mrf.mxu3 }
 0x1db   :  { %v9159_v61 = vadd.f32 %v2078_v60, %v1680_v51  ;;  %7465 = vmatmul.msk.f32.gmra.mxu0 %vm97_vm1, %v352_v53  ;;  %v355_v53 = vld [vmem:[#allocation2 + $0x348] sm:$0xff] }
 0x1dc   :  { %7596 = vmatmul.msk.f32.gmra.mxu2 %vm97_vm1, %v1227_v54  ;;  %v1083_v63 = vpop.f32.mrf.mxu1  ;;  %v1230_v54 = vld [vmem:[#allocation2 + $0x349] sm:$0xff] }
 0x1df   :  { %v1547_v2 = vpop.f32.mrf.mxu2  ;;  %7662 = vmatmul.msk.f32.gmra.mxu3 %vm97_vm1, %v1761_v62  ;;  %7532 = vmatmul.msk.f32.gmra.mxu1 %vm97_vm1, %v1761_v62 }
 0x1e0   :  { %v1681_v7 = vadd.f32 %v1547_v2, %v1078_v1  ;;  %v676_v9 = vpop.f32.mrf.mxu0 }
 0x1e1   :  { %v1081_v24 = vadd.f32 %v1080_v44, %v676_v9 }
 0x1e2   :  { %v2081_v15 = vpop.f32.mrf.mxu3 }
 0x1e3   :  { %v9169_v16 = vadd.f32 %v2081_v15, %v1681_v7  ;;  %7466 = vmatmul.msk.f32.gmra.mxu0 %vm97_vm1, %v353_v12  ;;  %v86_v7 = vld [vmem:[%s11655_s0 + $0x1a8] sm:$0xff]  ;;  %v1231_v15 = vld [vmem:[#allocation2 + $0x351] sm:$0xff] }
 0x1e4   :  { %7597 = vmatmul.msk.f32.gmra.mxu2 %vm97_vm1, %v1228_v13  ;;  %v1086_v22 = vpop.f32.mrf.mxu1  ;;  %231 = vst.msk [vmem:[#allocation2 + $0x3b0] sm:$0xff] %vm97_vm1, %v86_v7  ;;  %v356_v13 = vld [vmem:[#allocation2 + $0x350] sm:$0xff] }
 0x1e7   :  { %v1550_v26 = vpop.f32.mrf.mxu2  ;;  %7663 = vmatmul.msk.f32.gmra.mxu3 %vm97_vm1, %v1762_v19  ;;  %7533 = vmatmul.msk.f32.gmra.mxu1 %vm97_vm1, %v1762_v19 }
 0x1e8   :  { %v1682_v30 = vadd.f32 %v1550_v26, %v1081_v24  ;;  %v679_v33 = vpop.f32.mrf.mxu0 }
 0x1e9   :  { %v1084_v46 = vadd.f32 %v1083_v63, %v679_v33  ;;  %v1764_v63 = vld [vmem:[#allocation2 + $0x367] sm:$0xff]  ;;  %v87_v33 = vld [vmem:[%s11655_s0 + $0x1b0] sm:$0xff] }
 0x1ea   :  { %v2084_v37 = vpop.f32.mrf.mxu3  ;;  %232 = vst.msk [vmem:[#allocation2 + $0x3c8] sm:$0xff] %vm97_vm1, %v87_v33 }
 0x1eb   :  { %v9179_v38 = vadd.f32 %v2084_v37, %v1682_v30  ;;  %7467 = vmatmul.msk.f32.gmra.mxu0 %vm97_vm1, %v354_v34  ;;  %v357_v37 = vld [vmem:[#allocation2 + $0x368] sm:$0xff] }
 0x1ec   :  { %7598 = vmatmul.msk.f32.gmra.mxu2 %vm97_vm1, %v1229_v35  ;;  %v1089_v44 = vpop.f32.mrf.mxu1 }
 0x1ef   :  { %v1553_v49 = vpop.f32.mrf.mxu2  ;;  %7664 = vmatmul.msk.f32.gmra.mxu3 %vm97_vm1, %v1763_v42  ;;  %7534 = vmatmul.msk.f32.gmra.mxu1 %vm97_vm1, %v1763_v42  ;;  %v1232_v42 = vld [vmem:[#allocation2 + $0x369] sm:$0xff] }
 0x1f0   :  { %v1683_v51 = vadd.f32 %v1553_v49, %v1084_v46  ;;  %v682_v52 = vpop.f32.mrf.mxu0 }
 0x1f1   :  { %v1087_v2 = vadd.f32 %v1086_v22, %v682_v52  ;;  %v1765_v22 = vld [vmem:[#allocation2 + $0x36f] sm:$0xff] }
 0x1f2   :  { %v2087_v60 = vpop.f32.mrf.mxu3 }
 0x1f3   :  { %v9189_v62 = vadd.f32 %v2087_v60, %v1683_v51  ;;  %7468 = vmatmul.msk.f32.gmra.mxu0 %vm97_vm1, %v355_v53  ;;  %v88_v53 = vld [vmem:[%s11655_s0 + $0x1b8] sm:$0xff] }
 0x1f4   :  { %7599 = vmatmul.msk.f32.gmra.mxu2 %vm97_vm1, %v1230_v54  ;;  %v1092_v1 = vpop.f32.mrf.mxu1  ;;  %233 = vst.msk [vmem:[#allocation2 + $0x3d0] sm:$0xff] %vm97_vm1, %v88_v53  ;;  %v1235_v53 = vld [vmem:[#allocation2 + $0x391] sm:$0xff] }
 0x1f7   :  { %v1556_v5 = vpop.f32.mrf.mxu2  ;;  %7665 = vmatmul.msk.f32.gmra.mxu3 %vm97_vm1, %v1764_v63  ;;  %7535 = vmatmul.msk.f32.gmra.mxu1 %vm97_vm1, %v1764_v63  ;;  %v358_v63 = vld [vmem:[#allocation2 + $0x370] sm:$0xff] }
 0x1f8   :  { %v1684_v9 = vadd.f32 %v1556_v5, %v1087_v2  ;;  %v685_v12 = vpop.f32.mrf.mxu0  ;;  %v1233_v2 = vld [vmem:[#allocation2 + $0x371] sm:$0xff] }
 0x1f9   :  { %v1090_v28 = vadd.f32 %v1089_v44, %v685_v12  ;;  %v1766_v44 = vld [vmem:[#allocation2 + $0x387] sm:$0xff] }
 0x1fa   :  { %v2090_v19 = vpop.f32.mrf.mxu3 }
 0x1fb   :  { %v9199_v24 = vadd.f32 %v2090_v19, %v1684_v9  ;;  %7469 = vmatmul.msk.f32.gmra.mxu0 %vm97_vm1, %v356_v13 }
 0x1fc   :  { %7600 = vmatmul.msk.f32.gmra.mxu2 %vm97_vm1, %v1231_v15  ;;  %v1095_v26 = vpop.f32.mrf.mxu1  ;;  %v89_v15 = vld [vmem:[%s11655_s0 + $0x1c0] sm:$0xff] }
 0x1fd   :  { %234 = vst.msk [vmem:[#allocation2 + $0x3e8] sm:$0xff] %vm97_vm1, %v89_v15  ;;  %v361_v15 = vld [vmem:[#allocation2 + $0x3a8] sm:$0xff] }
 0x1ff   :  { %v1559_v30 = vpop.f32.mrf.mxu2  ;;  %7666 = vmatmul.msk.f32.gmra.mxu3 %vm97_vm1, %v1765_v22  ;;  %7536 = vmatmul.msk.f32.gmra.mxu1 %vm97_vm1, %v1765_v22 }
 0x200   :  { %v1685_v34 = vadd.f32 %v1559_v30, %v1090_v28  ;;  %v688_v35 = vpop.f32.mrf.mxu0  ;;  %v359_v28 = vld [vmem:[#allocation2 + $0x388] sm:$0xff] }
 0x201   :  { %v1093_v51 = vadd.f32 %v1092_v1, %v688_v35  ;;  %v1767_v1 = vld [vmem:[#allocation2 + $0x38f] sm:$0xff] }
 0x202   :  { %v2093_v46 = vpop.f32.mrf.mxu3  ;;  %v1234_v30 = vld [vmem:[#allocation2 + $0x389] sm:$0xff] }
 0x203   :  { %v9209_v49 = vadd.f32 %v2093_v46, %v1685_v34  ;;  %7470 = vmatmul.msk.f32.gmra.mxu0 %vm97_vm1, %v357_v37  ;;  %v90_v46 = vld [vmem:[%s11655_s0 + $0x1c8] sm:$0xff] }
 0x204   :  { %7601 = vmatmul.msk.f32.gmra.mxu2 %vm97_vm1, %v1232_v42  ;;  %v1098_v50 = vpop.f32.mrf.mxu1  ;;  %235 = vst.msk [vmem:[#allocation2 + $0x3f0] sm:$0xff] %vm97_vm1, %v90_v46 }
 0x207   :  { %v1562_v52 = vpop.f32.mrf.mxu2  ;;  %7667 = vmatmul.msk.f32.gmra.mxu3 %vm97_vm1, %v1766_v44  ;;  %7537 = vmatmul.msk.f32.gmra.mxu1 %vm97_vm1, %v1766_v44 }
 0x208   :  { %v1686_v54 = vadd.f32 %v1562_v52, %v1093_v51  ;;  %v691_v60 = vpop.f32.mrf.mxu0  ;;  %v360_v52 = vld [vmem:[#allocation2 + $0x390] sm:$0xff] }
 0x209   :  { %v1096_v12 = vadd.f32 %v1095_v26, %v691_v60  ;;  %v1768_v26 = vld [vmem:[#allocation2 + $0x3a7] sm:$0xff] }
 0x20a   :  { %v2096_v5 = vpop.f32.mrf.mxu3 }
 0x20b   :  { %v9219_v7 = vadd.f32 %v2096_v5, %v1686_v54  ;;  %7471 = vmatmul.msk.f32.gmra.mxu0 %vm97_vm1, %v358_v63 }
 0x20c   :  { %7602 = vmatmul.msk.f32.gmra.mxu2 %vm97_vm1, %v1233_v2  ;;  %v1101_v9 = vpop.f32.mrf.mxu1 }
 0x20f   :  { %v1565_v13 = vpop.f32.mrf.mxu2  ;;  %7668 = vmatmul.msk.f32.gmra.mxu3 %vm97_vm1, %v1767_v1  ;;  %7538 = vmatmul.msk.f32.gmra.mxu1 %vm97_vm1, %v1767_v1  ;;  %v91_v1 = vld [vmem:[%s11655_s0 + $0x1d0] sm:$0xff] }
 0x210   :  { %v1687_v19 = vadd.f32 %v1565_v13, %v1096_v12  ;;  %v694_v22 = vpop.f32.mrf.mxu0  ;;  %236 = vst.msk [vmem:[#allocation2 + $0x408] sm:$0xff] %vm97_vm1, %v91_v1 }
 0x211   :  { %v1099_v37 = vadd.f32 %v1098_v50, %v694_v22  ;;  %v1769_v50 = vld [vmem:[#allocation2 + $0x3af] sm:$0xff] }
 0x212   :  { %v2099_v33 = vpop.f32.mrf.mxu3 }
 0x213   :  { %v9229_v34 = vadd.f32 %v2099_v33, %v1687_v19  ;;  %7472 = vmatmul.msk.f32.gmra.mxu0 %vm97_vm1, %v359_v28  ;;  %v1236_v19 = vld [vmem:[#allocation2 + $0x3a9] sm:$0xff] }
 0x214   :  { %7603 = vmatmul.msk.f32.gmra.mxu2 %vm97_vm1, %v1234_v30  ;;  %v1104_v35 = vpop.f32.mrf.mxu1 }
 0x217   :  { %v1568_v42 = vpop.f32.mrf.mxu2  ;;  %7669 = vmatmul.msk.f32.gmra.mxu3 %vm97_vm1, %v1768_v26  ;;  %7539 = vmatmul.msk.f32.gmra.mxu1 %vm97_vm1, %v1768_v26 }
 0x218   :  { %v1688_v44 = vadd.f32 %v1568_v42, %v1099_v37  ;;  %v697_v51 = vpop.f32.mrf.mxu0  ;;  %v92_v37 = vld [vmem:[%s11655_s0 + $0x1d8] sm:$0xff] }
 0x219   :  { %v1102_v2 = vadd.f32 %v1101_v9, %v697_v51  ;;  %v1770_v9 = vld [vmem:[#allocation2 + $0x3c7] sm:$0xff]  ;;  %237 = vst.msk [vmem:[#allocation2 + $0x410] sm:$0xff] %vm97_vm1, %v92_v37  ;;  %v1237_v51 = vld [vmem:[#allocation2 + $0x3b1] sm:$0xff] }
 0x21a   :  { %v2102_v54 = vpop.f32.mrf.mxu3  ;;  %v94_v37 = vld [vmem:[%s11655_s0 + $0x1e8] sm:$0xff] }
 0x21b   :  { %v9239_v60 = vadd.f32 %v2102_v54, %v1688_v44  ;;  %7473 = vmatmul.msk.f32.gmra.mxu0 %vm97_vm1, %v360_v52  ;;  %v362_v44 = vld [vmem:[#allocation2 + $0x3b0] sm:$0xff]  ;;  %239 = vst.msk [vmem:[#allocation2 + $0x430] sm:$0xff] %vm97_vm1, %v94_v37 }
 0x21c   :  { %7604 = vmatmul.msk.f32.gmra.mxu2 %vm97_vm1, %v1235_v53  ;;  %v1107_v63 = vpop.f32.mrf.mxu1 }
 0x21f   :  { %v1571_v5 = vpop.f32.mrf.mxu2  ;;  %7670 = vmatmul.msk.f32.gmra.mxu3 %vm97_vm1, %v1769_v50  ;;  %7540 = vmatmul.msk.f32.gmra.mxu1 %vm97_vm1, %v1769_v50 }
 0x220   :  { %v1689_v12 = vadd.f32 %v1571_v5, %v1102_v2  ;;  %v700_v13 = vpop.f32.mrf.mxu0  ;;  %v93_v5 = vld [vmem:[%s11655_s0 + $0x1e0] sm:$0xff] }
 0x221   :  { %v1105_v33 = vadd.f32 %v1104_v35, %v700_v13  ;;  %v1771_v35 = vld [vmem:[#allocation2 + $0x3cf] sm:$0xff]  ;;  %238 = vst.msk [vmem:[#allocation2 + $0x428] sm:$0xff] %vm97_vm1, %v93_v5 }
 0x222   :  { %v2105_v22 = vpop.f32.mrf.mxu3  ;;  %v363_v13 = vld [vmem:[#allocation2 + $0x3c8] sm:$0xff] }
 0x223   :  { %v9249_v28 = vadd.f32 %v2105_v22, %v1689_v12  ;;  %7474 = vmatmul.msk.f32.gmra.mxu0 %vm97_vm1, %v361_v15  ;;  %v1238_v15 = vld [vmem:[#allocation2 + $0x3c9] sm:$0xff] }
 0x224   :  { %7605 = vmatmul.msk.f32.gmra.mxu2 %vm97_vm1, %v1236_v19  ;;  %v1110_v30 = vpop.f32.mrf.mxu1 }
 0x227   :  { %v1574_v26 = vpop.f32.mrf.mxu2  ;;  %7671 = vmatmul.msk.f32.gmra.mxu3 %vm97_vm1, %v1770_v9  ;;  %7541 = vmatmul.msk.f32.gmra.mxu1 %vm97_vm1, %v1770_v9 }
 0x228   :  { %v1690_v42 = vadd.f32 %v1574_v26, %v1105_v33  ;;  %v703_v46 = vpop.f32.mrf.mxu0 }
 0x229   :  { %v1108_v50 = vadd.f32 %v1107_v63, %v703_v46  ;;  %v1772_v63 = vld [vmem:[#allocation2 + $0x3e7] sm:$0xff] }
 0x22a   :  { %v2108_v52 = vpop.f32.mrf.mxu3 }
 0x22b   :  { %v9259_v53 = vadd.f32 %v2108_v52, %v1690_v42  ;;  %7475 = vmatmul.msk.f32.gmra.mxu0 %vm97_vm1, %v362_v44  ;;  %v364_v44 = vld [vmem:[#allocation2 + $0x3d0] sm:$0xff] }
 0x22c   :  { %7606 = vmatmul.msk.f32.gmra.mxu2 %vm97_vm1, %v1237_v51  ;;  %v1113_v54 = vpop.f32.mrf.mxu1  ;;  %v1239_v51 = vld [vmem:[#allocation2 + $0x3d1] sm:$0xff] }
 0x22f   :  { %v1577_v2 = vpop.f32.mrf.mxu2  ;;  %7672 = vmatmul.msk.f32.gmra.mxu3 %vm97_vm1, %v1771_v35  ;;  %7542 = vmatmul.msk.f32.gmra.mxu1 %vm97_vm1, %v1771_v35 }
 0x230   :  { %v1691_v1 = vadd.f32 %v1577_v2, %v1108_v50  ;;  %v706_v12 = vpop.f32.mrf.mxu0 }
 0x231   :  { %v1111_v33 = vadd.f32 %v1110_v30, %v706_v12  ;;  %v1773_v30 = vld [vmem:[#allocation2 + $0x3ef] sm:$0xff] }
 0x232   :  { %v2111_v19 = vpop.f32.mrf.mxu3 }
 0x233   :  { %v9269_v22 = vadd.f32 %v2111_v19, %v1691_v1  ;;  %7476 = vmatmul.msk.f32.gmra.mxu0 %vm97_vm1, %v363_v13  ;;  %v95_v1 = vld [vmem:[%s11655_s0 + $0x1f0] sm:$0xff] }
 0x234   :  { %7607 = vmatmul.msk.f32.gmra.mxu2 %vm97_vm1, %v1238_v15  ;;  %v1116_v9 = vpop.f32.mrf.mxu1  ;;  %240 = vst.msk [vmem:[#allocation2 + $0x448] sm:$0xff] %vm97_vm1, %v95_v1  ;;  %v365_v15 = vld [vmem:[#allocation2 + $0x3e8] sm:$0xff] }
 0x235   :  { %v1240_v19 = vld [vmem:[#allocation2 + $0x3e9] sm:$0xff] }
 0x237   :  { %v1580_v26 = vpop.f32.mrf.mxu2  ;;  %7673 = vmatmul.msk.f32.gmra.mxu3 %vm97_vm1, %v1772_v63  ;;  %7543 = vmatmul.msk.f32.gmra.mxu1 %vm97_vm1, %v1772_v63 }
 0x238   :  { %v1692_v42 = vadd.f32 %v1580_v26, %v1111_v33  ;;  %v709_v46 = vpop.f32.mrf.mxu0 }
 0x239   :  { %v1114_v2 = vadd.f32 %v1113_v54, %v709_v46  ;;  %v1774_v54 = vld [vmem:[#allocation2 + $0x407] sm:$0xff]  ;;  %v96_v46 = vld [vmem:[%s11655_s0 + $0x1f8] sm:$0xff] }
 0x23a   :  { %v2114_v52 = vpop.f32.mrf.mxu3  ;;  %241 = vst.msk [vmem:[#allocation2 + $0x450] sm:$0xff] %vm97_vm1, %v96_v46  ;;  %v1776_v46 = vld [vmem:[#allocation2 + $0x427] sm:$0xff] }
 0x23b   :  { %v9279_v35 = vadd.f32 %v2114_v52, %v1692_v42  ;;  %7477 = vmatmul.msk.f32.gmra.mxu0 %vm97_vm1, %v364_v44  ;;  %v366_v52 = vld [vmem:[#allocation2 + $0x3f0] sm:$0xff] }
 0x23c   :  { %7608 = vmatmul.msk.f32.gmra.mxu2 %vm97_vm1, %v1239_v51  ;;  %v1119_v50 = vpop.f32.mrf.mxu1 }
 0x23f   :  { %v1583_v5 = vpop.f32.mrf.mxu2  ;;  %7674 = vmatmul.msk.f32.gmra.mxu3 %vm97_vm1, %v1773_v30  ;;  %7544 = vmatmul.msk.f32.gmra.mxu1 %vm97_vm1, %v1773_v30  ;;  %v1241_v30 = vld [vmem:[#allocation2 + $0x3f1] sm:$0xff] }
 0x240   :  { %v1693_v12 = vadd.f32 %v1583_v5, %v1114_v2  ;;  %v712_v13 = vpop.f32.mrf.mxu0 }
 0x241   :  { %v1117_v37 = vadd.f32 %v1116_v9, %v712_v13  ;;  %v1775_v9 = vld [vmem:[#allocation2 + $0x40f] sm:$0xff] }
 0x242   :  { %v2117_v63 = vpop.f32.mrf.mxu3 }
 0x243   :  { %v9289_v33 = vadd.f32 %v2117_v63, %v1693_v12  ;;  %7478 = vmatmul.msk.f32.gmra.mxu0 %vm97_vm1, %v365_v15  ;;  %v367_v63 = vld [vmem:[#allocation2 + $0x408] sm:$0xff] }
 0x244   :  { %7609 = vmatmul.msk.f32.gmra.mxu2 %vm97_vm1, %v1240_v19  ;;  %v1122_v26 = vpop.f32.mrf.mxu1 }
 0x245   :  { %11667 = vst [vmem:[#allocation9_spill] sm:$0xff] %v9289_v33 }
 0x247   :  { %v1586_v42 = vpop.f32.mrf.mxu2  ;;  %7675 = vmatmul.msk.f32.gmra.mxu3 %vm97_vm1, %v1774_v54  ;;  %7545 = vmatmul.msk.f32.gmra.mxu1 %vm97_vm1, %v1774_v54  ;;  %v1242_v54 = vld [vmem:[#allocation2 + $0x409] sm:$0xff] }
 0x248   :  { %v1694_v44 = vadd.f32 %v1586_v42, %v1117_v37  ;;  %v715_v51 = vpop.f32.mrf.mxu0 }
 0x249   :  { %v1120_v12 = vadd.f32 %v1119_v50, %v715_v51  ;;  %v7813_v50 = vld [vmem:[%s11656_s1 + $0x18] sm:$0xf]  ;;  %v7747_v51 = vld [vmem:[%s11656_s1 + $0x14] sm:$0xf] }
 0x24a   :  { %v2120_v2 = vpop.f32.mrf.mxu3  ;;  %7814 = vmatpush.msk.msrb.mxu2 %vm565_vm0, %v7813_v50  ;;  %7748 = vmatpush.msk.msrb.mxu1 %vm565_vm0, %v7747_v51 }
 0x24b   :  { %v9299_v5 = vadd.f32 %v2120_v2, %v1694_v44  ;;  %7479 = vmatmul.msk.f32.gmra.mxu0 %vm97_vm1, %v366_v52  ;;  %v7879_v52 = vld [vmem:[%s11656_s1 + $0x1c] sm:$0xf] }
 0x24c   :  { %7610 = vmatmul.msk.f32.gmra.mxu2 %vm97_vm1, %v1241_v30  ;;  %v1125_v1 = vpop.f32.mrf.mxu1  ;;  %7880 = vmatpush.msk.msrb.mxu3 %vm565_vm0, %v7879_v52  ;;  %v369_v52 = vld [vmem:[#allocation2 + $0x428] sm:$0xff] }
 0x24f   :  { %v1589_v13 = vpop.f32.mrf.mxu2  ;;  %7676 = vmatmul.msk.f32.gmra.mxu3 %vm97_vm1, %v1775_v9  ;;  %7546 = vmatmul.msk.f32.gmra.mxu1 %vm97_vm1, %v1775_v9 }
 0x250   :  { %v1695_v15 = vadd.f32 %v1589_v13, %v1120_v12  ;;  %v718_v19 = vpop.f32.mrf.mxu0  ;;  %v368_v13 = vld [vmem:[#allocation2 + $0x410] sm:$0xff] }
 0x251   :  { %v1123_v30 = vadd.f32 %v1122_v26, %v718_v19  ;;  %v1777_v26 = vld [vmem:[#allocation2 + $0x42f] sm:$0xff] }
 0x252   :  { %v2123_v37 = vpop.f32.mrf.mxu3 }
 0x253   :  { %v9305_v42 = vadd.f32 %v2123_v37, %v1695_v15  ;;  %7480 = vmatmul.msk.f32.gmra.mxu0 %vm97_vm1, %v367_v63  ;;  %v1243_v15 = vld [vmem:[#allocation2 + $0x411] sm:$0xff] }
 0x254   :  { %7611 = vmatmul.msk.f32.gmra.mxu2 %vm97_vm1, %v1242_v54  ;;  %v1128_v44 = vpop.f32.mrf.mxu1 }
 0x255   :  { %11668 = vst [vmem:[#allocation10_spill] sm:$0xff] %v9305_v42 }
 0x257   :  { %v1592_v2 = vpop.f32.mrf.mxu2  ;;  %7677 = vmatmul.msk.f32.gmra.mxu3 %vm97_vm1, %v1776_v46  ;;  %7547 = vmatmul.msk.f32.gmra.mxu1 %vm97_vm1, %v1776_v46 }
 0x258   :  { %v1696_v9 = vadd.f32 %v1592_v2, %v1123_v30  ;;  %v721_v12 = vpop.f32.mrf.mxu0  ;;  %v1244_v30 = vld [vmem:[#allocation2 + $0x429] sm:$0xff] }
 0x259   :  { %v1126_v37 = vadd.f32 %v1125_v1, %v721_v12 }
 0x25a   :  { %v2126_v63 = vpop.f32.mrf.mxu3 }
 0x25b   :  { %v9323_v54 = vadd.f32 %v2126_v63, %v1696_v9  ;;  %7481 = vmatmul.msk.f32.gmra.mxu0 %vm97_vm1, %v368_v13  ;;  %v1778_v9 = vld [vmem:[#allocation2 + $0x447] sm:$0xff] }
 0x25c   :  { %7612 = vmatmul.msk.f32.gmra.mxu2 %vm97_vm1, %v1243_v15  ;;  %v1131_v19 = vpop.f32.mrf.mxu1  ;;  %v2784_v15 = vld [vmem:[#allocation2 + $0x29] sm:$0xff] }
 0x25d   :  { %11669 = vst [vmem:[#allocation11_spill] sm:$0xff] %v9323_v54 }
 0x25f   :  { %v1595_v50 = vpop.f32.mrf.mxu2  ;;  %7678 = vmatmul.msk.f32.gmra.mxu3 %vm97_vm1, %v1777_v26  ;;  %7548 = vmatmul.msk.f32.gmra.mxu1 %vm97_vm1, %v1777_v26 }
 0x260   :  { %v1697_v51 = vadd.f32 %v1595_v50, %v1126_v37  ;;  %v724_v46 = vpop.f32.mrf.mxu0  ;;  %v370_v37 = vld [vmem:[#allocation2 + $0x430] sm:$0xff] }
 0x261   :  { %v1129_v1 = vadd.f32 %v1128_v44, %v724_v46  ;;  %v1245_v50 = vld [vmem:[#allocation2 + $0x431] sm:$0xff] }
 0x262   :  { %v2129_v2 = vpop.f32.mrf.mxu3 }
 0x263   :  { %v9329_v42 = vadd.f32 %v2129_v2, %v1697_v51  ;;  %7482 = vmatmul.msk.f32.gmra.mxu0 %vm97_vm1, %v369_v52  ;;  %v1779_v52 = vld [vmem:[#allocation2 + $0x44f] sm:$0xff] }
 0x264   :  { %7613 = vmatmul.msk.f32.gmra.mxu2 %vm97_vm1, %v1244_v30  ;;  %v1134_v13 = vpop.f32.mrf.mxu1  ;;  %v2785_v2 = vld [vmem:[#allocation2 + $0x31] sm:$0xff] }
 0x265   :  { %11670 = vst [vmem:[#allocation12_spill] sm:$0xff] %v9329_v42 }
 0x267   :  { %v1598_v12 = vpop.f32.mrf.mxu2  ;;  %7679 = vmatmul.msk.f32.gmra.mxu3 %vm97_vm1, %v1778_v9  ;;  %7749 = vmatmul.msk.f32.vlgmr.msrb.gmra.mxu1 %vm97_vm1, %v2784_v15 }
 0x268   :  { %v1698_v63 = vadd.f32 %v1598_v12, %v1129_v1  ;;  %v727_v26 = vpop.f32.mrf.mxu0  ;;  %v2250_v1 = vld [vmem:[#allocation2 + $0x28] sm:$0xff] }
 0x269   :  { %v1132_v44 = vadd.f32 %v1131_v19, %v727_v26  ;;  %v3319_v12 = vld [vmem:[#allocation2 + $0x47] sm:$0xff]  ;;  %v7945_v19 = vld [vmem:[%s11656_s1 + $0x20] sm:$0xf] }
 0x26a   :  { %v2132_v54 = vpop.f32.mrf.mxu3  ;;  %7946 = vmatpush.msk.msra.mxu0 %vm565_vm0, %v7945_v19  ;;  %v2787_v19 = vld [vmem:[#allocation2 + $0x51] sm:$0xff] }
 0x26b   :  { %v9335_v51 = vadd.f32 %v2132_v54, %v1698_v63  ;;  %7483 = vmatmul.msk.f32.gmra.mxu0 %vm97_vm1, %v370_v37  ;;  %v3853_v63 = vld [vmem:[#allocation2 + $0x48] sm:$0xff] }
 0x26c   :  { %7614 = vmatmul.msk.f32.gmra.mxu2 %vm97_vm1, %v1245_v50  ;;  %v1137_v30 = vpop.f32.mrf.mxu1  ;;  %v2786_v37 = vld [vmem:[#allocation2 + $0x49] sm:$0xff] }
 0x26d   :  { %11671 = vst [vmem:[#allocation13_spill] sm:$0xff] %v9335_v51 }
 0x26f   :  { %v1601_v46 = vpop.f32.mrf.mxu2  ;;  %7680 = vmatmul.msk.f32.gmra.mxu3 %vm97_vm1, %v1779_v52  ;;  %7750 = vmatmul.msk.f32.gmra.mxu1 %vm97_vm1, %v2785_v2 }
 0x270   :  { %v1699_v9 = vadd.f32 %v1601_v46, %v1132_v44  ;;  %v730_v15 = vpop.f32.mrf.mxu0  ;;  %v2251_v44 = vld [vmem:[#allocation2 + $0x30] sm:$0xff] }
 0x271   :  { %v1135_v50 = vadd.f32 %v1134_v13, %v730_v15  ;;  %v3320_v46 = vld [vmem:[#allocation2 + $0x4f] sm:$0xff] }
 0x272   :  { %v2135_v42 = vpop.f32.mrf.mxu3 }
 0x273   :  { %v9341_v54 = vadd.f32 %v2135_v42, %v1699_v9  ;;  %7683 = vmatmul.msk.f32.vlgmr.msrb.gmra.mxu0 %vm97_vm1, %v2250_v1 }
 0x274   :  { %7815 = vmatmul.msk.f32.vlgmr.msrb.gmra.mxu2 %vm97_vm1, %v3319_v12  ;;  %v1140_v26 = vpop.f32.mrf.mxu1  ;;  %v3854_v12 = vld [vmem:[#allocation2 + $0x50] sm:$0xff] }
 0x275   :  { %11672 = vst [vmem:[#allocation14_spill] sm:$0xff] %v9341_v54 }
 0x277   :  { %v1604_v52 = vpop.f32.mrf.mxu2  ;;  %7881 = vmatmul.msk.f32.vlgmr.msrb.gmra.mxu3 %vm97_vm1, %v3853_v63  ;;  %7751 = vmatmul.msk.f32.gmra.mxu1 %vm97_vm1, %v2786_v37 }
 0x278   :  { %v1700_v2 = vadd.f32 %v1604_v52, %v1135_v50  ;;  %v733_v42 = vpop.f32.mrf.mxu0  ;;  %v3321_v52 = vld [vmem:[#allocation2 + $0x67] sm:$0xff] }
 0x279   :  { %v1138_v13 = vadd.f32 %v1137_v30, %v733_v42 }
 0x27a   :  { %v2138_v9 = vpop.f32.mrf.mxu3 }
 0x27b   :  { %v9351_v1 = vadd.f32 %v2138_v9, %v1700_v2  ;;  %7684 = vmatmul.msk.f32.gmra.mxu0 %vm97_vm1, %v2251_v44  ;;  %v3855_v2 = vld [vmem:[#allocation2 + $0x68] sm:$0xff] }
 0x27c   :  { %7816 = vmatmul.msk.f32.gmra.mxu2 %vm97_vm1, %v3320_v46  ;;  %v1143_v54 = vpop.f32.mrf.mxu1  ;;  %v2788_v46 = vld [vmem:[#allocation2 + $0x69] sm:$0xff] }
 0x27d   :  { %11673 = vst [vmem:[#allocation15_spill] sm:$0xff] %v9351_v1 }
 0x27f   :  { %v1607_v15 = vpop.f32.mrf.mxu2  ;;  %7882 = vmatmul.msk.f32.gmra.mxu3 %vm97_vm1, %v3854_v12  ;;  %7752 = vmatmul.msk.f32.gmra.mxu1 %vm97_vm1, %v2787_v19 }
 0x280   :  { %v1701_v50 = vadd.f32 %v1607_v15, %v1138_v13  ;;  %v736_v37 = vpop.f32.mrf.mxu0  ;;  %v3322_v13 = vld [vmem:[#allocation2 + $0x6f] sm:$0xff] }
 0x281   :  { %v1141_v9 = vadd.f32 %v1140_v26, %v736_v37 }
 0x282   :  { %v2141_v51 = vpop.f32.mrf.mxu3 }
 0x283   :  { %v9357_v33 = vadd.f32 %v2141_v51, %v1701_v50  ;;  %7685 = vmatmul.msk.f32.gmra.mxu0 %vm97_vm1, %v3853_v63  ;;  %v3856_v51 = vld [vmem:[#allocation2 + $0x70] sm:$0xff] }
 0x284   :  { %7817 = vmatmul.msk.f32.gmra.mxu2 %vm97_vm1, %v3321_v52  ;;  %v1146_v44 = vpop.f32.mrf.mxu1  ;;  %v2789_v50 = vld [vmem:[#allocation2 + $0x71] sm:$0xff] }
 0x285   :  { %11674 = vst [vmem:[#allocation16_spill] sm:$0xff] %v9357_v33 }
 0x287   :  { %v1610_v30 = vpop.f32.mrf.mxu2  ;;  %7883 = vmatmul.msk.f32.gmra.mxu3 %vm97_vm1, %v3855_v2  ;;  %7753 = vmatmul.msk.f32.gmra.mxu1 %vm97_vm1, %v2788_v46 }
 0x288   :  { %v1702_v42 = vadd.f32 %v1610_v30, %v1141_v9  ;;  %v739_v19 = vpop.f32.mrf.mxu0  ;;  %v3323_v9 = vld [vmem:[#allocation2 + $0x87] sm:$0xff] }
 0x289   :  { %v1144_v52 = vadd.f32 %v1143_v54, %v739_v19 }
 0x28a   :  { %v2144_v15 = vpop.f32.mrf.mxu3 }
 0x28b   :  { %v9363_v1 = vadd.f32 %v2144_v15, %v1702_v42  ;;  %7686 = vmatmul.msk.f32.gmra.mxu0 %vm97_vm1, %v3854_v12  ;;  %v3857_v12 = vld [vmem:[#allocation2 + $0x88] sm:$0xff] }
 0x28c   :  { %7818 = vmatmul.msk.f32.gmra.mxu2 %vm97_vm1, %v3322_v13  ;;  %v1149_v63 = vpop.f32.mrf.mxu1  ;;  %v2790_v13 = vld [vmem:[#allocation2 + $0x89] sm:$0xff] }
 0x28d   :  { %11675 = vst [vmem:[#allocation17_spill] sm:$0xff] %v9363_v1 }
 0x28f   :  { %v1613_v26 = vpop.f32.mrf.mxu2  ;;  %7884 = vmatmul.msk.f32.gmra.mxu3 %vm97_vm1, %v3856_v51  ;;  %7754 = vmatmul.msk.f32.gmra.mxu1 %vm97_vm1, %v2789_v50 }
 0x290   :  { %v1703_v37 = vadd.f32 %v1613_v26, %v1144_v52  ;;  %v742_v46 = vpop.f32.mrf.mxu0  ;;  %v3324_v52 = vld [vmem:[#allocation2 + $0x8f] sm:$0xff] }
 0x291   :  { %v1147_v15 = vadd.f32 %v1146_v44, %v742_v46 }
 0x292   :  { %v2147_v30 = vpop.f32.mrf.mxu3 }
 0x293   :  { %v9369_v33 = vadd.f32 %v2147_v30, %v1703_v37  ;;  %7687 = vmatmul.msk.f32.gmra.mxu0 %vm97_vm1, %v3855_v2  ;;  %v3858_v2 = vld [vmem:[#allocation2 + $0x90] sm:$0xff] }
 0x294   :  { %7819 = vmatmul.msk.f32.gmra.mxu2 %vm97_vm1, %v3323_v9  ;;  %v1152_v42 = vpop.f32.mrf.mxu1  ;;  %v2791_v9 = vld [vmem:[#allocation2 + $0x91] sm:$0xff] }
 0x295   :  { %11676 = vst [vmem:[#allocation18_spill] sm:$0xff] %v9369_v33 }
 0x297   :  { %v1616_v54 = vpop.f32.mrf.mxu2  ;;  %7885 = vmatmul.msk.f32.gmra.mxu3 %vm97_vm1, %v3857_v12  ;;  %7755 = vmatmul.msk.f32.gmra.mxu1 %vm97_vm1, %v2790_v13 }
 0x298   :  { %v1704_v19 = vadd.f32 %v1616_v54, %v1147_v15  ;;  %v745_v50 = vpop.f32.mrf.mxu0  ;;  %v3325_v15 = vld [vmem:[#allocation2 + $0xa7] sm:$0xff] }
 0x299   :  { %v1150_v30 = vadd.f32 %v1149_v63, %v745_v50 }
 0x29a   :  { %v2150_v26 = vpop.f32.mrf.mxu3 }
 0x29b   :  { %v9375_v1 = vadd.f32 %v2150_v26, %v1704_v19  ;;  %7688 = vmatmul.msk.f32.gmra.mxu0 %vm97_vm1, %v3856_v51  ;;  %v3859_v51 = vld [vmem:[#allocation2 + $0xa8] sm:$0xff] }
 0x29c   :  { %7820 = vmatmul.msk.f32.gmra.mxu2 %vm97_vm1, %v3324_v52  ;;  %v1155_v37 = vpop.f32.mrf.mxu1  ;;  %v2792_v52 = vld [vmem:[#allocation2 + $0xa9] sm:$0xff] }
 0x29d   :  { %11677 = vst [vmem:[#allocation19_spill] sm:$0xff] %v9375_v1 }
 0x29f   :  { %v1619_v44 = vpop.f32.mrf.mxu2  ;;  %7886 = vmatmul.msk.f32.gmra.mxu3 %vm97_vm1, %v3858_v2  ;;  %7756 = vmatmul.msk.f32.gmra.mxu1 %vm97_vm1, %v2791_v9 }
 0x2a0   :  { %v1705_v46 = vadd.f32 %v1619_v44, %v1150_v30  ;;  %v748_v13 = vpop.f32.mrf.mxu0  ;;  %v3326_v30 = vld [vmem:[#allocation2 + $0xaf] sm:$0xff] }
 0x2a1   :  { %v1153_v26 = vadd.f32 %v1152_v42, %v748_v13 }
 0x2a2   :  { %v2153_v54 = vpop.f32.mrf.mxu3 }
 0x2a3   :  { %v9381_v33 = vadd.f32 %v2153_v54, %v1705_v46  ;;  %7689 = vmatmul.msk.f32.gmra.mxu0 %vm97_vm1, %v3857_v12  ;;  %v3860_v12 = vld [vmem:[#allocation2 + $0xb0] sm:$0xff] }
 0x2a4   :  { %7821 = vmatmul.msk.f32.gmra.mxu2 %vm97_vm1, %v3325_v15  ;;  %v1158_v19 = vpop.f32.mrf.mxu1  ;;  %v2793_v15 = vld [vmem:[#allocation2 + $0xb1] sm:$0xff] }
 0x2a5   :  { %11678 = vst [vmem:[#allocation20_spill] sm:$0xff] %v9381_v33 }
 0x2a7   :  { %v1622_v63 = vpop.f32.mrf.mxu2  ;;  %7887 = vmatmul.msk.f32.gmra.mxu3 %vm97_vm1, %v3859_v51  ;;  %7757 = vmatmul.msk.f32.gmra.mxu1 %vm97_vm1, %v2792_v52 }
 0x2a8   :  { %v1706_v50 = vadd.f32 %v1622_v63, %v1153_v26  ;;  %v751_v9 = vpop.f32.mrf.mxu0  ;;  %v3327_v26 = vld [vmem:[#allocation2 + $0xc7] sm:$0xff] }
 0x2a9   :  { %v1156_v54 = vadd.f32 %v1155_v37, %v751_v9 }
 0x2aa   :  { %v2156_v44 = vpop.f32.mrf.mxu3 }
 0x2ab   :  { %v9387_v1 = vadd.f32 %v2156_v44, %v1706_v50  ;;  %7690 = vmatmul.msk.f32.gmra.mxu0 %vm97_vm1, %v3858_v2  ;;  %v3861_v2 = vld [vmem:[#allocation2 + $0xc8] sm:$0xff] }
 0x2ac   :  { %7822 = vmatmul.msk.f32.gmra.mxu2 %vm97_vm1, %v3326_v30  ;;  %v1161_v46 = vpop.f32.mrf.mxu1  ;;  %v2794_v30 = vld [vmem:[#allocation2 + $0xc9] sm:$0xff] }
 0x2ad   :  { %11679 = vst [vmem:[#allocation21_spill] sm:$0xff] %v9387_v1 }
 0x2af   :  { %v1625_v42 = vpop.f32.mrf.mxu2  ;;  %7888 = vmatmul.msk.f32.gmra.mxu3 %vm97_vm1, %v3860_v12  ;;  %7758 = vmatmul.msk.f32.gmra.mxu1 %vm97_vm1, %v2793_v15 }
 0x2b0   :  { %v1707_v13 = vadd.f32 %v1625_v42, %v1156_v54  ;;  %v754_v52 = vpop.f32.mrf.mxu0  ;;  %v3328_v54 = vld [vmem:[#allocation2 + $0xcf] sm:$0xff] }
 0x2b1   :  { %v1159_v44 = vadd.f32 %v1158_v19, %v754_v52 }
 0x2b2   :  { %v2159_v63 = vpop.f32.mrf.mxu3 }
 0x2b3   :  { %v9393_v33 = vadd.f32 %v2159_v63, %v1707_v13  ;;  %7691 = vmatmul.msk.f32.gmra.mxu0 %vm97_vm1, %v3859_v51  ;;  %v3862_v51 = vld [vmem:[#allocation2 + $0xd0] sm:$0xff] }
 0x2b4   :  { %7823 = vmatmul.msk.f32.gmra.mxu2 %vm97_vm1, %v3327_v26  ;;  %v1164_v50 = vpop.f32.mrf.mxu1  ;;  %v2795_v26 = vld [vmem:[#allocation2 + $0xd1] sm:$0xff] }
 0x2b5   :  { %11680 = vst [vmem:[#allocation22_spill] sm:$0xff] %v9393_v33 }
 0x2b7   :  { %v1628_v37 = vpop.f32.mrf.mxu2  ;;  %7889 = vmatmul.msk.f32.gmra.mxu3 %vm97_vm1, %v3861_v2  ;;  %7759 = vmatmul.msk.f32.gmra.mxu1 %vm97_vm1, %v2794_v30 }
 0x2b8   :  { %v1708_v9 = vadd.f32 %v1628_v37, %v1159_v44  ;;  %v757_v15 = vpop.f32.mrf.mxu0  ;;  %v3329_v44 = vld [vmem:[#allocation2 + $0xe7] sm:$0xff] }
 0x2b9   :  { %v1162_v63 = vadd.f32 %v1161_v46, %v757_v15 }
 0x2ba   :  { %v2162_v42 = vpop.f32.mrf.mxu3 }
 0x2bb   :  { %v9399_v1 = vadd.f32 %v2162_v42, %v1708_v9  ;;  %7692 = vmatmul.msk.f32.gmra.mxu0 %vm97_vm1, %v3860_v12  ;;  %v3863_v12 = vld [vmem:[#allocation2 + $0xe8] sm:$0xff] }
 0x2bc   :  { %7824 = vmatmul.msk.f32.gmra.mxu2 %vm97_vm1, %v3328_v54  ;;  %v1167_v13 = vpop.f32.mrf.mxu1  ;;  %v2796_v54 = vld [vmem:[#allocation2 + $0xe9] sm:$0xff] }
 0x2bd   :  { %11681 = vst [vmem:[#allocation23_spill] sm:$0xff] %v9399_v1 }
 0x2bf   :  { %v1631_v19 = vpop.f32.mrf.mxu2  ;;  %7890 = vmatmul.msk.f32.gmra.mxu3 %vm97_vm1, %v3862_v51  ;;  %7760 = vmatmul.msk.f32.gmra.mxu1 %vm97_vm1, %v2795_v26 }
 0x2c0   :  { %v1709_v52 = vadd.f32 %v1631_v19, %v1162_v63  ;;  %v760_v30 = vpop.f32.mrf.mxu0  ;;  %v3330_v63 = vld [vmem:[#allocation2 + $0xef] sm:$0xff] }
 0x2c1   :  { %v1165_v42 = vadd.f32 %v1164_v50, %v760_v30 }
 0x2c2   :  { %v2165_v37 = vpop.f32.mrf.mxu3 }
 0x2c3   :  { %v9405_v33 = vadd.f32 %v2165_v37, %v1709_v52  ;;  %7693 = vmatmul.msk.f32.gmra.mxu0 %vm97_vm1, %v3861_v2  ;;  %v3864_v2 = vld [vmem:[#allocation2 + $0xf0] sm:$0xff] }
 0x2c4   :  { %7825 = vmatmul.msk.f32.gmra.mxu2 %vm97_vm1, %v3329_v44  ;;  %v1170_v9 = vpop.f32.mrf.mxu1  ;;  %v2797_v44 = vld [vmem:[#allocation2 + $0xf1] sm:$0xff] }
 0x2c5   :  { %11682 = vst [vmem:[#allocation24_spill] sm:$0xff] %v9405_v33 }
 0x2c7   :  { %v1634_v46 = vpop.f32.mrf.mxu2  ;;  %7891 = vmatmul.msk.f32.gmra.mxu3 %vm97_vm1, %v3863_v12  ;;  %7761 = vmatmul.msk.f32.gmra.mxu1 %vm97_vm1, %v2796_v54 }
 0x2c8   :  { %v1710_v15 = vadd.f32 %v1634_v46, %v1165_v42  ;;  %v763_v26 = vpop.f32.mrf.mxu0  ;;  %v3331_v42 = vld [vmem:[#allocation2 + $0x107] sm:$0xff] }
 0x2c9   :  { %v1168_v37 = vadd.f32 %v1167_v13, %v763_v26 }
 0x2ca   :  { %v2168_v19 = vpop.f32.mrf.mxu3 }
 0x2cb   :  { %v9411_v1 = vadd.f32 %v2168_v19, %v1710_v15  ;;  %7694 = vmatmul.msk.f32.gmra.mxu0 %vm97_vm1, %v3862_v51  ;;  %v3865_v51 = vld [vmem:[#allocation2 + $0x108] sm:$0xff] }
 0x2cc   :  { %7826 = vmatmul.msk.f32.gmra.mxu2 %vm97_vm1, %v3330_v63  ;;  %v1173_v52 = vpop.f32.mrf.mxu1  ;;  %v2798_v63 = vld [vmem:[#allocation2 + $0x109] sm:$0xff] }
 0x2cd   :  { %11683 = vst [vmem:[#allocation25_spill] sm:$0xff] %v9411_v1 }
 0x2cf   :  { %v1637_v50 = vpop.f32.mrf.mxu2  ;;  %7892 = vmatmul.msk.f32.gmra.mxu3 %vm97_vm1, %v3864_v2  ;;  %7762 = vmatmul.msk.f32.gmra.mxu1 %vm97_vm1, %v2797_v44 }
 0x2d0   :  { %v1711_v30 = vadd.f32 %v1637_v50, %v1168_v37  ;;  %v766_v54 = vpop.f32.mrf.mxu0  ;;  %v3332_v37 = vld [vmem:[#allocation2 + $0x10f] sm:$0xff] }
 0x2d1   :  { %v1171_v19 = vadd.f32 %v1170_v9, %v766_v54 }
 0x2d2   :  { %v2171_v46 = vpop.f32.mrf.mxu3 }
 0x2d3   :  { %v9417_v33 = vadd.f32 %v2171_v46, %v1711_v30  ;;  %7695 = vmatmul.msk.f32.gmra.mxu0 %vm97_vm1, %v3863_v12  ;;  %v3866_v12 = vld [vmem:[#allocation2 + $0x110] sm:$0xff] }
 0x2d4   :  { %7827 = vmatmul.msk.f32.gmra.mxu2 %vm97_vm1, %v3331_v42  ;;  %v1176_v15 = vpop.f32.mrf.mxu1  ;;  %v2799_v42 = vld [vmem:[#allocation2 + $0x111] sm:$0xff] }
 0x2d5   :  { %11684 = vst [vmem:[#allocation26_spill] sm:$0xff] %v9417_v33 }
 0x2d7   :  { %v1640_v13 = vpop.f32.mrf.mxu2  ;;  %7893 = vmatmul.msk.f32.gmra.mxu3 %vm97_vm1, %v3865_v51  ;;  %7763 = vmatmul.msk.f32.gmra.mxu1 %vm97_vm1, %v2798_v63 }
 0x2d8   :  { %v1712_v26 = vadd.f32 %v1640_v13, %v1171_v19  ;;  %v769_v44 = vpop.f32.mrf.mxu0  ;;  %v3333_v19 = vld [vmem:[#allocation2 + $0x127] sm:$0xff] }
 0x2d9   :  { %v1174_v46 = vadd.f32 %v1173_v52, %v769_v44 }
 0x2da   :  { %v2174_v50 = vpop.f32.mrf.mxu3 }
 0x2db   :  { %v9423_v1 = vadd.f32 %v2174_v50, %v1712_v26  ;;  %7696 = vmatmul.msk.f32.gmra.mxu0 %vm97_vm1, %v3864_v2  ;;  %v3867_v2 = vld [vmem:[#allocation2 + $0x128] sm:$0xff] }
 0x2dc   :  { %7828 = vmatmul.msk.f32.gmra.mxu2 %vm97_vm1, %v3332_v37  ;;  %v1179_v30 = vpop.f32.mrf.mxu1  ;;  %v2800_v37 = vld [vmem:[#allocation2 + $0x129] sm:$0xff] }
 0x2dd   :  { %11685 = vst [vmem:[#allocation27_spill] sm:$0xff] %v9423_v1  ;;  %v4395_v1 = vld [vmem:[#allocation2 + $0xc9] sm:$0xff] }
 0x2df   :  { %v1643_v9 = vpop.f32.mrf.mxu2  ;;  %7894 = vmatmul.msk.f32.gmra.mxu3 %vm97_vm1, %v3866_v12  ;;  %7764 = vmatmul.msk.f32.gmra.mxu1 %vm97_vm1, %v2799_v42 }
 0x2e0   :  { %v1713_v54 = vadd.f32 %v1643_v9, %v1174_v46  ;;  %v772_v63 = vpop.f32.mrf.mxu0  ;;  %v3334_v46 = vld [vmem:[#allocation2 + $0x12f] sm:$0xff]  ;;  %v991_v9 = vadd.f32 %v8843_v4, %v8861_v14  ;;  %v3335_v14 = vld [vmem:[#allocation2 + $0x147] sm:$0xff] }
 0x2e1   :  { %v1177_v50 = vadd.f32 %v1176_v15, %v772_v63  ;;  %v3868_v15 = vld [vmem:[#allocation2 + $0x130] sm:$0xff] }
 0x2e2   :  { %v2177_v13 = vpop.f32.mrf.mxu3 }
 0x2e3   :  { %v9429_v33 = vadd.f32 %v2177_v13, %v1713_v54  ;;  %7697 = vmatmul.msk.f32.gmra.mxu0 %vm97_vm1, %v3865_v51  ;;  %v1652_v51 = vadd.f32 %v8871_v20, %v991_v9 }
 0x2e4   :  { %7829 = vmatmul.msk.f32.gmra.mxu2 %vm97_vm1, %v3333_v19  ;;  %v3062_v26 = vpop.f32.mrf.mxu1  ;;  %v2801_v19 = vld [vmem:[#allocation2 + $0x131] sm:$0xff] }
 0x2e5   :  { %11686 = vst [vmem:[#allocation28_spill] sm:$0xff] %v9429_v33 }
 0x2e7   :  { %v1646_v52 = vpop.f32.mrf.mxu2  ;;  %7895 = vmatmul.msk.f32.gmra.mxu3 %vm97_vm1, %v3867_v2  ;;  %7765 = vmatmul.msk.f32.gmra.mxu1 %vm97_vm1, %v2800_v37  ;;  %v2186_v37 = vadd.f32 %v8879_v23, %v1652_v51 }
 0x2e8   :  { %v1714_v44 = vadd.f32 %v1646_v52, %v1177_v50  ;;  %v775_v42 = vpop.f32.mrf.mxu0 }
 0x2e9   :  { %v1180_v50 = vadd.f32 %v1179_v30, %v775_v42  ;;  %v2802_v42 = vld [vmem:[#allocation2 + $0x149] sm:$0xff] }
 0x2ea   :  { %v2180_v54 = vpop.f32.mrf.mxu3 }
 0x2eb   :  { %v9438_v13 = vadd.f32 %v2180_v54, %v1714_v44  ;;  %7698 = vmatmul.msk.f32.gmra.mxu0 %vm97_vm1, %v3866_v12  ;;  %v3869_v12 = vld [vmem:[#allocation2 + $0x148] sm:$0xff] }
 0x2ec   :  { %7830 = vmatmul.msk.f32.gmra.mxu2 %vm97_vm1, %v3334_v46  ;;  %v3065_v63 = vpop.f32.mrf.mxu1 }
 0x2ed   :  { %11687 = vst [vmem:[#allocation29_spill] sm:$0xff] %v9438_v13  ;;  %v4394_v13 = vld [vmem:[#allocation2 + $0xb1] sm:$0xff] }
 0x2ef   :  { %v1649_v52 = vpop.f32.mrf.mxu2  ;;  %7896 = vmatmul.msk.f32.gmra.mxu3 %vm97_vm1, %v3868_v15  ;;  %7766 = vmatmul.msk.f32.gmra.mxu1 %vm97_vm1, %v2801_v19  ;;  %v3336_v19 = vld [vmem:[#allocation2 + $0x14f] sm:$0xff] }
 0x2f0   :  { %v1715_v33 = vadd.f32 %v1649_v52, %v1180_v50  ;;  %v2528_v4 = vpop.f32.mrf.mxu0 }
 0x2f1   :  { %v2720_v20 = vadd.f32 %v2528_v4, %v2186_v37  ;;  %v3870_v37 = vld [vmem:[#allocation2 + $0x150] sm:$0xff] }
 0x2f2   :  { %v2183_v44 = vpop.f32.mrf.mxu3  ;;  %v2803_v4 = vld [vmem:[#allocation2 + $0x151] sm:$0xff] }
 0x2f3   :  { %v9445_v9 = vadd.f32 %v2183_v44, %v1715_v33  ;;  %7699 = vmatmul.msk.f32.gmra.mxu0 %vm97_vm1, %v3867_v2  ;;  %v3254_v46 = vadd.f32 %v3062_v26, %v2720_v20 }
 0x2f4   :  { %7831 = vmatmul.msk.f32.gmra.mxu2 %vm97_vm1, %v3335_v14  ;;  %v3068_v30 = vpop.f32.mrf.mxu1 }
 0x2f5   :  { %11688 = vst [vmem:[#allocation30_spill] sm:$0xff] %v9445_v9  ;;  %v4393_v9 = vld [vmem:[#allocation2 + $0xa9] sm:$0xff] }
 0x2f7   :  { %v3597_v23 = vpop.f32.mrf.mxu2  ;;  %7897 = vmatmul.msk.f32.gmra.mxu3 %vm97_vm1, %v3869_v12  ;;  %7767 = vmatmul.msk.f32.gmra.mxu1 %vm97_vm1, %v2802_v42  ;;  %v3337_v42 = vld [vmem:[#allocation2 + $0x167] sm:$0xff] }
 0x2f8   :  { %v3789_v54 = vadd.f32 %v3597_v23, %v3254_v46  ;;  %v2531_v51 = vpop.f32.mrf.mxu0 }
 0x2f9   :  { %v2721_v50 = vadd.f32 %v2531_v51, %v8889_v36  ;;  %v2804_v51 = vld [vmem:[#allocation2 + $0x169] sm:$0xff] }
 0x2fa   :  { %v4131_v33 = vpop.f32.mrf.mxu3 }
 0x2fb   :  { %v9452_v52 = vadd.f32 %v4131_v33, %v3789_v54  ;;  %v3255_v2 = vadd.f32 %v3065_v63, %v2721_v50  ;;  %7700 = vmatmul.msk.f32.gmra.mxu0 %vm97_vm1, %v3868_v15  ;;  %v3871_v15 = vld [vmem:[#allocation2 + $0x168] sm:$0xff] }
 0x2fc   :  { %7832 = vmatmul.msk.f32.gmra.mxu2 %vm97_vm1, %v3336_v19  ;;  %v3071_v26 = vpop.f32.mrf.mxu1 }
 0x2ff   :  { %v3600_v14 = vpop.f32.mrf.mxu2  ;;  %7898 = vmatmul.msk.f32.gmra.mxu3 %vm97_vm1, %v3870_v37  ;;  %7768 = vmatmul.msk.f32.gmra.mxu1 %vm97_vm1, %v2803_v4 }
 0x300   :  { %v3790_v20 = vadd.f32 %v3600_v14, %v3255_v2  ;;  %v2534_v44 = vpop.f32.mrf.mxu0  ;;  %v3338_v2 = vld [vmem:[#allocation2 + $0x16f] sm:$0xff] }
 0x301   :  { %v2722_v36 = vadd.f32 %v2534_v44, %v8899_v47  ;;  %v2805_v44 = vld [vmem:[#allocation2 + $0x171] sm:$0xff] }
 0x302   :  { %v4134_v46 = vpop.f32.mrf.mxu3 }
 0x303   :  { %v9459_v23 = vadd.f32 %v4134_v46, %v3790_v20  ;;  %v3256_v63 = vadd.f32 %v3068_v30, %v2722_v36  ;;  %7701 = vmatmul.msk.f32.gmra.mxu0 %vm97_vm1, %v3869_v12  ;;  %v3872_v12 = vld [vmem:[#allocation2 + $0x170] sm:$0xff] }
 0x304   :  { %7833 = vmatmul.msk.f32.gmra.mxu2 %vm97_vm1, %v3337_v42  ;;  %v3074_v54 = vpop.f32.mrf.mxu1 }
 0x307   :  { %v3603_v19 = vpop.f32.mrf.mxu2  ;;  %7899 = vmatmul.msk.f32.gmra.mxu3 %vm97_vm1, %v3871_v15  ;;  %7769 = vmatmul.msk.f32.gmra.mxu1 %vm97_vm1, %v2804_v51 }
 0x308   :  { %v3791_v50 = vadd.f32 %v3603_v19, %v3256_v63  ;;  %v2537_v33 = vpop.f32.mrf.mxu0  ;;  %v3339_v63 = vld [vmem:[#allocation2 + $0x187] sm:$0xff] }
 0x309   :  { %v2723_v47 = vadd.f32 %v2537_v33, %v8909_v58  ;;  %v2806_v33 = vld [vmem:[#allocation2 + $0x189] sm:$0xff] }
 0x30a   :  { %v4137_v4 = vpop.f32.mrf.mxu3 }
 0x30b   :  { %v9466_v14 = vadd.f32 %v4137_v4, %v3791_v50  ;;  %v3257_v30 = vadd.f32 %v3071_v26, %v2723_v47  ;;  %7702 = vmatmul.msk.f32.gmra.mxu0 %vm97_vm1, %v3870_v37  ;;  %v3873_v37 = vld [vmem:[#allocation2 + $0x188] sm:$0xff] }
 0x30c   :  { %7834 = vmatmul.msk.f32.gmra.mxu2 %vm97_vm1, %v3338_v2  ;;  %v3077_v20 = vpop.f32.mrf.mxu1 }
 0x30f   :  { %v3606_v42 = vpop.f32.mrf.mxu2  ;;  %7900 = vmatmul.msk.f32.gmra.mxu3 %vm97_vm1, %v3872_v12  ;;  %7770 = vmatmul.msk.f32.gmra.mxu1 %vm97_vm1, %v2805_v44 }
 0x310   :  { %v3792_v36 = vadd.f32 %v3606_v42, %v3257_v30  ;;  %v2540_v46 = vpop.f32.mrf.mxu0  ;;  %v3340_v30 = vld [vmem:[#allocation2 + $0x18f] sm:$0xff] }
 0x311   :  { %v2724_v58 = vadd.f32 %v2540_v46, %v8919_v6  ;;  %v2807_v46 = vld [vmem:[#allocation2 + $0x191] sm:$0xff] }
 0x312   :  { %v4140_v51 = vpop.f32.mrf.mxu3 }
 0x313   :  { %v9473_v19 = vadd.f32 %v4140_v51, %v3792_v36  ;;  %v3258_v26 = vadd.f32 %v3074_v54, %v2724_v58  ;;  %7703 = vmatmul.msk.f32.gmra.mxu0 %vm97_vm1, %v3871_v15  ;;  %v3874_v15 = vld [vmem:[#allocation2 + $0x190] sm:$0xff] }
 0x314   :  { %7835 = vmatmul.msk.f32.gmra.mxu2 %vm97_vm1, %v3339_v63  ;;  %v3080_v50 = vpop.f32.mrf.mxu1 }
 0x317   :  { %v3609_v2 = vpop.f32.mrf.mxu2  ;;  %7901 = vmatmul.msk.f32.gmra.mxu3 %vm97_vm1, %v3873_v37  ;;  %7771 = vmatmul.msk.f32.gmra.mxu1 %vm97_vm1, %v2806_v33 }
 0x318   :  { %v3793_v47 = vadd.f32 %v3609_v2, %v3258_v26  ;;  %v2543_v4 = vpop.f32.mrf.mxu0  ;;  %v3341_v26 = vld [vmem:[#allocation2 + $0x1a7] sm:$0xff] }
 0x319   :  { %v2725_v6 = vadd.f32 %v2543_v4, %v8929_v18  ;;  %v2808_v4 = vld [vmem:[#allocation2 + $0x1a9] sm:$0xff] }
 0x31a   :  { %v4143_v44 = vpop.f32.mrf.mxu3 }
 0x31b   :  { %v9480_v42 = vadd.f32 %v4143_v44, %v3793_v47  ;;  %v3259_v54 = vadd.f32 %v3077_v20, %v2725_v6  ;;  %7704 = vmatmul.msk.f32.gmra.mxu0 %vm97_vm1, %v3872_v12  ;;  %v3875_v12 = vld [vmem:[#allocation2 + $0x1a8] sm:$0xff] }
 0x31c   :  { %7836 = vmatmul.msk.f32.gmra.mxu2 %vm97_vm1, %v3340_v30  ;;  %v3083_v36 = vpop.f32.mrf.mxu1 }
 0x31f   :  { %v3612_v63 = vpop.f32.mrf.mxu2  ;;  %7902 = vmatmul.msk.f32.gmra.mxu3 %vm97_vm1, %v3874_v15  ;;  %7772 = vmatmul.msk.f32.gmra.mxu1 %vm97_vm1, %v2807_v46 }
 0x320   :  { %v3794_v58 = vadd.f32 %v3612_v63, %v3259_v54  ;;  %v2546_v51 = vpop.f32.mrf.mxu0  ;;  %v3342_v54 = vld [vmem:[#allocation2 + $0x1af] sm:$0xff] }
 0x321   :  { %v2726_v18 = vadd.f32 %v2546_v51, %v8939_v31  ;;  %v2809_v51 = vld [vmem:[#allocation2 + $0x1b1] sm:$0xff] }
 0x322   :  { %v4146_v33 = vpop.f32.mrf.mxu3 }
 0x323   :  { %v9487_v2 = vadd.f32 %v4146_v33, %v3794_v58  ;;  %v3260_v20 = vadd.f32 %v3080_v50, %v2726_v18  ;;  %7705 = vmatmul.msk.f32.gmra.mxu0 %vm97_vm1, %v3873_v37  ;;  %v3876_v37 = vld [vmem:[#allocation2 + $0x1b0] sm:$0xff] }
 0x324   :  { %7837 = vmatmul.msk.f32.gmra.mxu2 %vm97_vm1, %v3341_v26  ;;  %v3086_v47 = vpop.f32.mrf.mxu1 }
 0x327   :  { %v3615_v30 = vpop.f32.mrf.mxu2  ;;  %7903 = vmatmul.msk.f32.gmra.mxu3 %vm97_vm1, %v3875_v12  ;;  %7773 = vmatmul.msk.f32.gmra.mxu1 %vm97_vm1, %v2808_v4 }
 0x328   :  { %v3795_v6 = vadd.f32 %v3615_v30, %v3260_v20  ;;  %v2549_v44 = vpop.f32.mrf.mxu0  ;;  %v3343_v20 = vld [vmem:[#allocation2 + $0x1c7] sm:$0xff] }
 0x329   :  { %v2727_v31 = vadd.f32 %v2549_v44, %v8949_v43  ;;  %v2810_v44 = vld [vmem:[#allocation2 + $0x1c9] sm:$0xff] }
 0x32a   :  { %v4149_v46 = vpop.f32.mrf.mxu3 }
 0x32b   :  { %v9494_v63 = vadd.f32 %v4149_v46, %v3795_v6  ;;  %v3261_v50 = vadd.f32 %v3083_v36, %v2727_v31  ;;  %7706 = vmatmul.msk.f32.gmra.mxu0 %vm97_vm1, %v3874_v15  ;;  %v3877_v15 = vld [vmem:[#allocation2 + $0x1c8] sm:$0xff] }
 0x32c   :  { %7838 = vmatmul.msk.f32.gmra.mxu2 %vm97_vm1, %v3342_v54  ;;  %v3089_v58 = vpop.f32.mrf.mxu1 }
 0x32f   :  { %v3618_v26 = vpop.f32.mrf.mxu2  ;;  %7904 = vmatmul.msk.f32.gmra.mxu3 %vm97_vm1, %v3876_v37  ;;  %7774 = vmatmul.msk.f32.gmra.mxu1 %vm97_vm1, %v2809_v51 }
 0x330   :  { %v3796_v18 = vadd.f32 %v3618_v26, %v3261_v50  ;;  %v2552_v33 = vpop.f32.mrf.mxu0  ;;  %v3344_v50 = vld [vmem:[#allocation2 + $0x1cf] sm:$0xff] }
 0x331   :  { %v2728_v43 = vadd.f32 %v2552_v33, %v8959_v55  ;;  %v2811_v33 = vld [vmem:[#allocation2 + $0x1d1] sm:$0xff] }
 0x332   :  { %v4152_v4 = vpop.f32.mrf.mxu3 }
 0x333   :  { %v9501_v30 = vadd.f32 %v4152_v4, %v3796_v18  ;;  %v3262_v36 = vadd.f32 %v3086_v47, %v2728_v43  ;;  %7707 = vmatmul.msk.f32.gmra.mxu0 %vm97_vm1, %v3875_v12  ;;  %v3878_v12 = vld [vmem:[#allocation2 + $0x1d0] sm:$0xff] }
 0x334   :  { %7839 = vmatmul.msk.f32.gmra.mxu2 %vm97_vm1, %v3343_v20  ;;  %v3092_v6 = vpop.f32.mrf.mxu1 }
 0x337   :  { %v3621_v54 = vpop.f32.mrf.mxu2  ;;  %7905 = vmatmul.msk.f32.gmra.mxu3 %vm97_vm1, %v3877_v15  ;;  %7775 = vmatmul.msk.f32.gmra.mxu1 %vm97_vm1, %v2810_v44 }
 0x338   :  { %v3797_v31 = vadd.f32 %v3621_v54, %v3262_v36  ;;  %v2555_v46 = vpop.f32.mrf.mxu0  ;;  %v3345_v36 = vld [vmem:[#allocation2 + $0x1e7] sm:$0xff] }
 0x339   :  { %v2729_v55 = vadd.f32 %v2555_v46, %v8969_v3  ;;  %v2812_v46 = vld [vmem:[#allocation2 + $0x1e9] sm:$0xff] }
 0x33a   :  { %v4155_v51 = vpop.f32.mrf.mxu3 }
 0x33b   :  { %v9508_v26 = vadd.f32 %v4155_v51, %v3797_v31  ;;  %v3263_v47 = vadd.f32 %v3089_v58, %v2729_v55  ;;  %7708 = vmatmul.msk.f32.gmra.mxu0 %vm97_vm1, %v3876_v37  ;;  %v3879_v37 = vld [vmem:[#allocation2 + $0x1e8] sm:$0xff] }
 0x33c   :  { %7840 = vmatmul.msk.f32.gmra.mxu2 %vm97_vm1, %v3344_v50  ;;  %v3095_v18 = vpop.f32.mrf.mxu1 }
 0x33f   :  { %v3624_v20 = vpop.f32.mrf.mxu2  ;;  %7906 = vmatmul.msk.f32.gmra.mxu3 %vm97_vm1, %v3878_v12  ;;  %7776 = vmatmul.msk.f32.gmra.mxu1 %vm97_vm1, %v2811_v33 }
 0x340   :  { %v3798_v43 = vadd.f32 %v3624_v20, %v3263_v47  ;;  %v2558_v4 = vpop.f32.mrf.mxu0  ;;  %v3346_v47 = vld [vmem:[#allocation2 + $0x1ef] sm:$0xff] }
 0x341   :  { %v2730_v3 = vadd.f32 %v2558_v4, %v8979_v17  ;;  %v2813_v4 = vld [vmem:[#allocation2 + $0x1f1] sm:$0xff] }
 0x342   :  { %v4158_v44 = vpop.f32.mrf.mxu3 }
 0x343   :  { %v9515_v54 = vadd.f32 %v4158_v44, %v3798_v43  ;;  %v3264_v58 = vadd.f32 %v3092_v6, %v2730_v3  ;;  %7709 = vmatmul.msk.f32.gmra.mxu0 %vm97_vm1, %v3877_v15  ;;  %v3880_v15 = vld [vmem:[#allocation2 + $0x1f0] sm:$0xff] }
 0x344   :  { %7841 = vmatmul.msk.f32.gmra.mxu2 %vm97_vm1, %v3345_v36  ;;  %v3098_v31 = vpop.f32.mrf.mxu1 }
 0x347   :  { %v3627_v50 = vpop.f32.mrf.mxu2  ;;  %7907 = vmatmul.msk.f32.gmra.mxu3 %vm97_vm1, %v3879_v37  ;;  %7777 = vmatmul.msk.f32.gmra.mxu1 %vm97_vm1, %v2812_v46 }
 0x348   :  { %v3799_v55 = vadd.f32 %v3627_v50, %v3264_v58  ;;  %v2561_v51 = vpop.f32.mrf.mxu0  ;;  %v3347_v58 = vld [vmem:[#allocation2 + $0x207] sm:$0xff] }
 0x349   :  { %v2731_v17 = vadd.f32 %v2561_v51, %v8989_v32  ;;  %v2814_v51 = vld [vmem:[#allocation2 + $0x209] sm:$0xff] }
 0x34a   :  { %v4161_v33 = vpop.f32.mrf.mxu3 }
 0x34b   :  { %v9522_v20 = vadd.f32 %v4161_v33, %v3799_v55  ;;  %v3265_v6 = vadd.f32 %v3095_v18, %v2731_v17  ;;  %7710 = vmatmul.msk.f32.gmra.mxu0 %vm97_vm1, %v3878_v12  ;;  %v3881_v12 = vld [vmem:[#allocation2 + $0x208] sm:$0xff] }
 0x34c   :  { %7842 = vmatmul.msk.f32.gmra.mxu2 %vm97_vm1, %v3346_v47  ;;  %v3101_v43 = vpop.f32.mrf.mxu1 }
 0x34f   :  { %v3630_v36 = vpop.f32.mrf.mxu2  ;;  %7908 = vmatmul.msk.f32.gmra.mxu3 %vm97_vm1, %v3880_v15  ;;  %7778 = vmatmul.msk.f32.gmra.mxu1 %vm97_vm1, %v2813_v4 }
 0x350   :  { %v3800_v3 = vadd.f32 %v3630_v36, %v3265_v6  ;;  %v2564_v44 = vpop.f32.mrf.mxu0  ;;  %v3348_v6 = vld [vmem:[#allocation2 + $0x20f] sm:$0xff] }
 0x351   :  { %v2732_v32 = vadd.f32 %v2564_v44, %v8999_v45  ;;  %v2815_v44 = vld [vmem:[#allocation2 + $0x211] sm:$0xff] }
 0x352   :  { %v4164_v46 = vpop.f32.mrf.mxu3 }
 0x353   :  { %v9529_v50 = vadd.f32 %v4164_v46, %v3800_v3  ;;  %v3266_v18 = vadd.f32 %v3098_v31, %v2732_v32  ;;  %7711 = vmatmul.msk.f32.gmra.mxu0 %vm97_vm1, %v3879_v37  ;;  %v3882_v37 = vld [vmem:[#allocation2 + $0x210] sm:$0xff] }
 0x354   :  { %7843 = vmatmul.msk.f32.gmra.mxu2 %vm97_vm1, %v3347_v58  ;;  %v3104_v55 = vpop.f32.mrf.mxu1 }
 0x357   :  { %v3633_v47 = vpop.f32.mrf.mxu2  ;;  %7909 = vmatmul.msk.f32.gmra.mxu3 %vm97_vm1, %v3881_v12  ;;  %7779 = vmatmul.msk.f32.gmra.mxu1 %vm97_vm1, %v2814_v51 }
 0x358   :  { %v3801_v17 = vadd.f32 %v3633_v47, %v3266_v18  ;;  %v2567_v33 = vpop.f32.mrf.mxu0  ;;  %v3349_v18 = vld [vmem:[#allocation2 + $0x227] sm:$0xff] }
 0x359   :  { %v2733_v45 = vadd.f32 %v2567_v33, %v9009_v59  ;;  %v2816_v33 = vld [vmem:[#allocation2 + $0x269] sm:$0xff] }
 0x35a   :  { %v4167_v4 = vpop.f32.mrf.mxu3 }
 0x35b   :  { %v9536_v36 = vadd.f32 %v4167_v4, %v3801_v17  ;;  %v3267_v31 = vadd.f32 %v3101_v43, %v2733_v45  ;;  %7712 = vmatmul.msk.f32.gmra.mxu0 %vm97_vm1, %v3880_v15  ;;  %v3883_v15 = vld [vmem:[#allocation2 + $0x228] sm:$0xff] }
 0x35c   :  { %7844 = vmatmul.msk.f32.gmra.mxu2 %vm97_vm1, %v3348_v6  ;;  %v3107_v3 = vpop.f32.mrf.mxu1 }
 0x35f   :  { %v3636_v58 = vpop.f32.mrf.mxu2  ;;  %7910 = vmatmul.msk.f32.gmra.mxu3 %vm97_vm1, %v3882_v37  ;;  %7780 = vmatmul.msk.f32.gmra.mxu1 %vm97_vm1, %v2815_v44 }
 0x360   :  { %v3802_v32 = vadd.f32 %v3636_v58, %v3267_v31  ;;  %v2570_v46 = vpop.f32.mrf.mxu0  ;;  %v3350_v31 = vld [vmem:[#allocation2 + $0x22f] sm:$0xff] }
 0x361   :  { %v2734_v59 = vadd.f32 %v2570_v46, %v9019_v10  ;;  %v2817_v46 = vld [vmem:[#allocation2 + $0x271] sm:$0xff] }
 0x362   :  { %v4170_v51 = vpop.f32.mrf.mxu3 }
 0x363   :  { %v9543_v47 = vadd.f32 %v4170_v51, %v3802_v32  ;;  %v3268_v43 = vadd.f32 %v3104_v55, %v2734_v59  ;;  %7713 = vmatmul.msk.f32.gmra.mxu0 %vm97_vm1, %v3881_v12  ;;  %v3884_v12 = vld [vmem:[#allocation2 + $0x230] sm:$0xff] }
 0x364   :  { %7845 = vmatmul.msk.f32.gmra.mxu2 %vm97_vm1, %v3349_v18  ;;  %v3110_v17 = vpop.f32.mrf.mxu1 }
 0x367   :  { %v3639_v6 = vpop.f32.mrf.mxu2  ;;  %7911 = vmatmul.msk.f32.gmra.mxu3 %vm97_vm1, %v3883_v15  ;;  %7781 = vmatmul.msk.f32.gmra.mxu1 %vm97_vm1, %v2816_v33 }
 0x368   :  { %v3803_v45 = vadd.f32 %v3639_v6, %v3268_v43  ;;  %v2573_v4 = vpop.f32.mrf.mxu0  ;;  %v2282_v43 = vld [vmem:[#allocation2 + $0x268] sm:$0xff] }
 0x369   :  { %v2735_v10 = vadd.f32 %v2573_v4, %v9029_v27  ;;  %v3351_v27 = vld [vmem:[#allocation2 + $0x287] sm:$0xff] }
 0x36a   :  { %v4173_v44 = vpop.f32.mrf.mxu3  ;;  %v3885_v6 = vld [vmem:[#allocation2 + $0x288] sm:$0xff] }
 0x36b   :  { %v9550_v58 = vadd.f32 %v4173_v44, %v3803_v45  ;;  %v3269_v55 = vadd.f32 %v3107_v3, %v2735_v10  ;;  %7714 = vmatmul.msk.f32.gmra.mxu0 %vm97_vm1, %v3882_v37  ;;  %v2818_v4 = vld [vmem:[#allocation2 + $0x289] sm:$0xff] }
 0x36c   :  { %7846 = vmatmul.msk.f32.gmra.mxu2 %vm97_vm1, %v3350_v31  ;;  %v3113_v32 = vpop.f32.mrf.mxu1 }
 0x36f   :  { %v3642_v18 = vpop.f32.mrf.mxu2  ;;  %7912 = vmatmul.msk.f32.gmra.mxu3 %vm97_vm1, %v3884_v12  ;;  %7782 = vmatmul.msk.f32.gmra.mxu1 %vm97_vm1, %v2817_v46 }
 0x370   :  { %v3804_v59 = vadd.f32 %v3642_v18, %v3269_v55  ;;  %v2576_v51 = vpop.f32.mrf.mxu0  ;;  %v2283_v55 = vld [vmem:[#allocation2 + $0x270] sm:$0xff] }
 0x371   :  { %v2736_v15 = vadd.f32 %v2576_v51, %v9039_v41  ;;  %v3352_v41 = vld [vmem:[#allocation2 + $0x28f] sm:$0xff] }
 0x372   :  { %v4176_v33 = vpop.f32.mrf.mxu3 }
 0x373   :  { %v9557_v3 = vadd.f32 %v4176_v33, %v3804_v59  ;;  %v3270_v37 = vadd.f32 %v3110_v17, %v2736_v15  ;;  %7715 = vmatmul.msk.f32.gmra.mxu0 %vm97_vm1, %v2282_v43  ;;  %v3886_v59 = vld [vmem:[#allocation2 + $0x290] sm:$0xff] }
 0x374   :  { %7847 = vmatmul.msk.f32.gmra.mxu2 %vm97_vm1, %v3351_v27  ;;  %v3116_v45 = vpop.f32.mrf.mxu1  ;;  %v2819_v43 = vld [vmem:[#allocation2 + $0x291] sm:$0xff] }
 0x377   :  { %v3645_v31 = vpop.f32.mrf.mxu2  ;;  %7913 = vmatmul.msk.f32.gmra.mxu3 %vm97_vm1, %v3885_v6  ;;  %7783 = vmatmul.msk.f32.gmra.mxu1 %vm97_vm1, %v2818_v4 }
 0x378   :  { %v3805_v10 = vadd.f32 %v3645_v31, %v3270_v37  ;;  %v2579_v44 = vpop.f32.mrf.mxu0  ;;  %v3353_v37 = vld [vmem:[#allocation2 + $0x2a7] sm:$0xff] }
 0x379   :  { %v2737_v12 = vadd.f32 %v2579_v44, %v9049_v56 }
 0x37a   :  { %v4179_v46 = vpop.f32.mrf.mxu3 }
 0x37b   :  { %v9564_v17 = vadd.f32 %v4179_v46, %v3805_v10  ;;  %v3271_v18 = vadd.f32 %v3113_v32, %v2737_v12  ;;  %7716 = vmatmul.msk.f32.gmra.mxu0 %vm97_vm1, %v2283_v55  ;;  %v3887_v10 = vld [vmem:[#allocation2 + $0x2a8] sm:$0xff] }
 0x37c   :  { %7848 = vmatmul.msk.f32.gmra.mxu2 %vm97_vm1, %v3352_v41  ;;  %v3119_v51 = vpop.f32.mrf.mxu1  ;;  %v2820_v55 = vld [vmem:[#allocation2 + $0x2a9] sm:$0xff] }
 0x37f   :  { %v3648_v27 = vpop.f32.mrf.mxu2  ;;  %7914 = vmatmul.msk.f32.gmra.mxu3 %vm97_vm1, %v3886_v59  ;;  %7784 = vmatmul.msk.f32.gmra.mxu1 %vm97_vm1, %v2819_v43 }
 0x380   :  { %v3806_v15 = vadd.f32 %v3648_v27, %v3271_v18  ;;  %v2582_v33 = vpop.f32.mrf.mxu0  ;;  %v3354_v18 = vld [vmem:[#allocation2 + $0x2af] sm:$0xff] }
 0x381   :  { %v2738_v56 = vadd.f32 %v2582_v33, %v9059_v8  ;;  %v2821_v33 = vld [vmem:[#allocation2 + $0x2b1] sm:$0xff] }
 0x382   :  { %v4182_v4 = vpop.f32.mrf.mxu3 }
 0x383   :  { %v9571_v31 = vadd.f32 %v4182_v4, %v3806_v15  ;;  %v3272_v32 = vadd.f32 %v3116_v45, %v2738_v56  ;;  %7717 = vmatmul.msk.f32.gmra.mxu0 %vm97_vm1, %v3885_v6  ;;  %v3888_v6 = vld [vmem:[#allocation2 + $0x2b0] sm:$0xff] }
 0x384   :  { %7849 = vmatmul.msk.f32.gmra.mxu2 %vm97_vm1, %v3353_v37  ;;  %v3122_v44 = vpop.f32.mrf.mxu1 }
 0x387   :  { %v3651_v41 = vpop.f32.mrf.mxu2  ;;  %7915 = vmatmul.msk.f32.gmra.mxu3 %vm97_vm1, %v3887_v10  ;;  %7785 = vmatmul.msk.f32.gmra.mxu1 %vm97_vm1, %v2820_v55 }
 0x388   :  { %v3807_v12 = vadd.f32 %v3651_v41, %v3272_v32  ;;  %v2585_v46 = vpop.f32.mrf.mxu0  ;;  %v3355_v32 = vld [vmem:[#allocation2 + $0x2c7] sm:$0xff] }
 0x389   :  { %v2739_v8 = vadd.f32 %v2585_v46, %v9069_v25  ;;  %v2822_v46 = vld [vmem:[#allocation2 + $0x2c9] sm:$0xff] }
 0x38a   :  { %v4185_v43 = vpop.f32.mrf.mxu3 }
 0x38b   :  { %v9578_v27 = vadd.f32 %v4185_v43, %v3807_v12  ;;  %v3273_v45 = vadd.f32 %v3119_v51, %v2739_v8  ;;  %7718 = vmatmul.msk.f32.gmra.mxu0 %vm97_vm1, %v3886_v59  ;;  %v3889_v59 = vld [vmem:[#allocation2 + $0x2c8] sm:$0xff] }
 0x38c   :  { %7850 = vmatmul.msk.f32.gmra.mxu2 %vm97_vm1, %v3354_v18  ;;  %v3125_v15 = vpop.f32.mrf.mxu1 }
 0x38f   :  { %v3654_v37 = vpop.f32.mrf.mxu2  ;;  %7916 = vmatmul.msk.f32.gmra.mxu3 %vm97_vm1, %v3888_v6  ;;  %7786 = vmatmul.msk.f32.gmra.mxu1 %vm97_vm1, %v2821_v33 }
 0x390   :  { %v3808_v56 = vadd.f32 %v3654_v37, %v3273_v45  ;;  %v2588_v4 = vpop.f32.mrf.mxu0  ;;  %v3356_v45 = vld [vmem:[#allocation2 + $0x2cf] sm:$0xff] }
 0x391   :  { %v2740_v25 = vadd.f32 %v2588_v4, %v9079_v40  ;;  %v2823_v4 = vld [vmem:[#allocation2 + $0x2d1] sm:$0xff] }
 0x392   :  { %v4188_v55 = vpop.f32.mrf.mxu3 }
 0x393   :  { %v9585_v41 = vadd.f32 %v4188_v55, %v3808_v56  ;;  %v3274_v51 = vadd.f32 %v3122_v44, %v2740_v25  ;;  %7719 = vmatmul.msk.f32.gmra.mxu0 %vm97_vm1, %v3887_v10  ;;  %v3890_v10 = vld [vmem:[#allocation2 + $0x2d0] sm:$0xff] }
 0x394   :  { %7851 = vmatmul.msk.f32.gmra.mxu2 %vm97_vm1, %v3355_v32  ;;  %v3128_v12 = vpop.f32.mrf.mxu1 }
 0x397   :  { %v3657_v18 = vpop.f32.mrf.mxu2  ;;  %7917 = vmatmul.msk.f32.gmra.mxu3 %vm97_vm1, %v3889_v59  ;;  %7787 = vmatmul.msk.f32.gmra.mxu1 %vm97_vm1, %v2822_v46 }
 0x398   :  { %v3809_v8 = vadd.f32 %v3657_v18, %v3274_v51  ;;  %v2591_v43 = vpop.f32.mrf.mxu0  ;;  %v3357_v51 = vld [vmem:[#allocation2 + $0x2e7] sm:$0xff] }
 0x399   :  { %v2741_v40 = vadd.f32 %v2591_v43, %v9089_v57  ;;  %v2824_v43 = vld [vmem:[#allocation2 + $0x2e9] sm:$0xff] }
 0x39a   :  { %v4191_v33 = vpop.f32.mrf.mxu3 }
 0x39b   :  { %v9592_v37 = vadd.f32 %v4191_v33, %v3809_v8  ;;  %v3275_v44 = vadd.f32 %v3125_v15, %v2741_v40  ;;  %7720 = vmatmul.msk.f32.gmra.mxu0 %vm97_vm1, %v3888_v6  ;;  %v3891_v6 = vld [vmem:[#allocation2 + $0x2e8] sm:$0xff] }
 0x39c   :  { %7852 = vmatmul.msk.f32.gmra.mxu2 %vm97_vm1, %v3356_v45  ;;  %v3131_v56 = vpop.f32.mrf.mxu1 }
 0x39f   :  { %v3660_v32 = vpop.f32.mrf.mxu2  ;;  %7918 = vmatmul.msk.f32.gmra.mxu3 %vm97_vm1, %v3890_v10  ;;  %7788 = vmatmul.msk.f32.gmra.mxu1 %vm97_vm1, %v2823_v4 }
 0x3a0   :  { %v3810_v25 = vadd.f32 %v3660_v32, %v3275_v44  ;;  %v2594_v55 = vpop.f32.mrf.mxu0  ;;  %v3358_v44 = vld [vmem:[#allocation2 + $0x2ef] sm:$0xff] }
 0x3a1   :  { %v2742_v57 = vadd.f32 %v2594_v55, %v9099_v11  ;;  %v2825_v55 = vld [vmem:[#allocation2 + $0x2f1] sm:$0xff] }
 0x3a2   :  { %v4194_v46 = vpop.f32.mrf.mxu3 }
 0x3a3   :  { %v9599_v18 = vadd.f32 %v4194_v46, %v3810_v25  ;;  %v3276_v15 = vadd.f32 %v3128_v12, %v2742_v57  ;;  %7721 = vmatmul.msk.f32.gmra.mxu0 %vm97_vm1, %v3889_v59  ;;  %v3892_v59 = vld [vmem:[#allocation2 + $0x2f0] sm:$0xff] }
 0x3a4   :  { %7853 = vmatmul.msk.f32.gmra.mxu2 %vm97_vm1, %v3357_v51  ;;  %v3134_v8 = vpop.f32.mrf.mxu1 }
 0x3a7   :  { %v3663_v45 = vpop.f32.mrf.mxu2  ;;  %7919 = vmatmul.msk.f32.gmra.mxu3 %vm97_vm1, %v3891_v6  ;;  %7789 = vmatmul.msk.f32.gmra.mxu1 %vm97_vm1, %v2824_v43 }
 0x3a8   :  { %v3811_v40 = vadd.f32 %v3663_v45, %v3276_v15  ;;  %v2597_v33 = vpop.f32.mrf.mxu0  ;;  %v3359_v15 = vld [vmem:[#allocation2 + $0x307] sm:$0xff] }
 0x3a9   :  { %v2743_v11 = vadd.f32 %v2597_v33, %v9109_v29  ;;  %v2826_v33 = vld [vmem:[#allocation2 + $0x309] sm:$0xff] }
 0x3aa   :  { %v4197_v4 = vpop.f32.mrf.mxu3 }
 0x3ab   :  { %v9606_v32 = vadd.f32 %v4197_v4, %v3811_v40  ;;  %v3277_v12 = vadd.f32 %v3131_v56, %v2743_v11  ;;  %7722 = vmatmul.msk.f32.gmra.mxu0 %vm97_vm1, %v3890_v10  ;;  %v3893_v10 = vld [vmem:[#allocation2 + $0x308] sm:$0xff] }
 0x3ac   :  { %7854 = vmatmul.msk.f32.gmra.mxu2 %vm97_vm1, %v3358_v44  ;;  %v3137_v25 = vpop.f32.mrf.mxu1 }
 0x3af   :  { %v3666_v51 = vpop.f32.mrf.mxu2  ;;  %7920 = vmatmul.msk.f32.gmra.mxu3 %vm97_vm1, %v3892_v59  ;;  %7790 = vmatmul.msk.f32.gmra.mxu1 %vm97_vm1, %v2825_v55 }
 0x3b0   :  { %v3812_v57 = vadd.f32 %v3666_v51, %v3277_v12  ;;  %v2600_v46 = vpop.f32.mrf.mxu0  ;;  %v3360_v12 = vld [vmem:[#allocation2 + $0x30f] sm:$0xff] }
 0x3b1   :  { %v2744_v29 = vadd.f32 %v2600_v46, %v9119_v48  ;;  %v2827_v46 = vld [vmem:[#allocation2 + $0x311] sm:$0xff] }
 0x3b2   :  { %v4200_v43 = vpop.f32.mrf.mxu3 }
 0x3b3   :  { %v9613_v45 = vadd.f32 %v4200_v43, %v3812_v57  ;;  %v3278_v56 = vadd.f32 %v3134_v8, %v2744_v29  ;;  %7723 = vmatmul.msk.f32.gmra.mxu0 %vm97_vm1, %v3891_v6  ;;  %v3894_v6 = vld [vmem:[#allocation2 + $0x310] sm:$0xff] }
 0x3b4   :  { %7855 = vmatmul.msk.f32.gmra.mxu2 %vm97_vm1, %v3359_v15  ;;  %v3140_v40 = vpop.f32.mrf.mxu1 }
 0x3b7   :  { %v3669_v44 = vpop.f32.mrf.mxu2  ;;  %7921 = vmatmul.msk.f32.gmra.mxu3 %vm97_vm1, %v3893_v10  ;;  %7791 = vmatmul.msk.f32.gmra.mxu1 %vm97_vm1, %v2826_v33 }
 0x3b8   :  { %v3813_v11 = vadd.f32 %v3669_v44, %v3278_v56  ;;  %v2603_v4 = vpop.f32.mrf.mxu0  ;;  %v3361_v56 = vld [vmem:[#allocation2 + $0x327] sm:$0xff] }
 0x3b9   :  { %v2745_v48 = vadd.f32 %v2603_v4, %v9129_v0  ;;  %v2828_v4 = vld [vmem:[#allocation2 + $0x329] sm:$0xff] }
 0x3ba   :  { %v4203_v55 = vpop.f32.mrf.mxu3 }
 0x3bb   :  { %v9620_v51 = vadd.f32 %v4203_v55, %v3813_v11  ;;  %v3279_v8 = vadd.f32 %v3137_v25, %v2745_v48  ;;  %7724 = vmatmul.msk.f32.gmra.mxu0 %vm97_vm1, %v3892_v59  ;;  %v3895_v59 = vld [vmem:[#allocation2 + $0x328] sm:$0xff] }
 0x3bc   :  { %7856 = vmatmul.msk.f32.gmra.mxu2 %vm97_vm1, %v3360_v12  ;;  %v3143_v57 = vpop.f32.mrf.mxu1 }
 0x3bf   :  { %v3672_v15 = vpop.f32.mrf.mxu2  ;;  %7922 = vmatmul.msk.f32.gmra.mxu3 %vm97_vm1, %v3894_v6  ;;  %7792 = vmatmul.msk.f32.gmra.mxu1 %vm97_vm1, %v2827_v46 }
 0x3c0   :  { %v3814_v29 = vadd.f32 %v3672_v15, %v3279_v8  ;;  %v2606_v43 = vpop.f32.mrf.mxu0  ;;  %v3362_v8 = vld [vmem:[#allocation2 + $0x32f] sm:$0xff] }
 0x3c1   :  { %v2746_v0 = vadd.f32 %v2606_v43, %v9139_v21  ;;  %v2829_v43 = vld [vmem:[#allocation2 + $0x331] sm:$0xff] }
 0x3c2   :  { %v4206_v33 = vpop.f32.mrf.mxu3 }
 0x3c3   :  { %v9627_v44 = vadd.f32 %v4206_v33, %v3814_v29  ;;  %v3280_v25 = vadd.f32 %v3140_v40, %v2746_v0  ;;  %7725 = vmatmul.msk.f32.gmra.mxu0 %vm97_vm1, %v3893_v10  ;;  %v3896_v10 = vld [vmem:[#allocation2 + $0x330] sm:$0xff] }
 0x3c4   :  { %7857 = vmatmul.msk.f32.gmra.mxu2 %vm97_vm1, %v3361_v56  ;;  %v3146_v11 = vpop.f32.mrf.mxu1 }
 0x3c7   :  { %v3675_v12 = vpop.f32.mrf.mxu2  ;;  %7923 = vmatmul.msk.f32.gmra.mxu3 %vm97_vm1, %v3895_v59  ;;  %7793 = vmatmul.msk.f32.gmra.mxu1 %vm97_vm1, %v2828_v4 }
 0x3c8   :  { %v3815_v48 = vadd.f32 %v3675_v12, %v3280_v25  ;;  %v2609_v55 = vpop.f32.mrf.mxu0  ;;  %v3363_v25 = vld [vmem:[#allocation2 + $0x347] sm:$0xff] }
 0x3c9   :  { %v2747_v21 = vadd.f32 %v2609_v55, %v9149_v39  ;;  %v2830_v55 = vld [vmem:[#allocation2 + $0x349] sm:$0xff] }
 0x3ca   :  { %v4209_v46 = vpop.f32.mrf.mxu3 }
 0x3cb   :  { %v9634_v15 = vadd.f32 %v4209_v46, %v3815_v48  ;;  %v3281_v40 = vadd.f32 %v3143_v57, %v2747_v21  ;;  %7726 = vmatmul.msk.f32.gmra.mxu0 %vm97_vm1, %v3894_v6  ;;  %v3897_v6 = vld [vmem:[#allocation2 + $0x348] sm:$0xff] }
 0x3cc   :  { %7858 = vmatmul.msk.f32.gmra.mxu2 %vm97_vm1, %v3362_v8  ;;  %v3149_v29 = vpop.f32.mrf.mxu1 }
 0x3cf   :  { %v3678_v56 = vpop.f32.mrf.mxu2  ;;  %7924 = vmatmul.msk.f32.gmra.mxu3 %vm97_vm1, %v3896_v10  ;;  %7794 = vmatmul.msk.f32.gmra.mxu1 %vm97_vm1, %v2829_v43 }
 0x3d0   :  { %v3816_v0 = vadd.f32 %v3678_v56, %v3281_v40  ;;  %v2612_v33 = vpop.f32.mrf.mxu0  ;;  %v3364_v40 = vld [vmem:[#allocation2 + $0x34f] sm:$0xff] }
 0x3d1   :  { %v2748_v39 = vadd.f32 %v2612_v33, %v9159_v61  ;;  %v2831_v33 = vld [vmem:[#allocation2 + $0x351] sm:$0xff] }
 0x3d2   :  { %v4212_v4 = vpop.f32.mrf.mxu3 }
 0x3d3   :  { %v9641_v12 = vadd.f32 %v4212_v4, %v3816_v0  ;;  %v3282_v57 = vadd.f32 %v3146_v11, %v2748_v39  ;;  %7727 = vmatmul.msk.f32.gmra.mxu0 %vm97_vm1, %v3895_v59  ;;  %v3898_v59 = vld [vmem:[#allocation2 + $0x350] sm:$0xff] }
 0x3d4   :  { %7859 = vmatmul.msk.f32.gmra.mxu2 %vm97_vm1, %v3363_v25  ;;  %v3152_v48 = vpop.f32.mrf.mxu1 }
 0x3d7   :  { %v3681_v8 = vpop.f32.mrf.mxu2  ;;  %7925 = vmatmul.msk.f32.gmra.mxu3 %vm97_vm1, %v3897_v6  ;;  %7795 = vmatmul.msk.f32.gmra.mxu1 %vm97_vm1, %v2830_v55 }
 0x3d8   :  { %v3817_v21 = vadd.f32 %v3681_v8, %v3282_v57  ;;  %v2615_v46 = vpop.f32.mrf.mxu0  ;;  %v3365_v57 = vld [vmem:[#allocation2 + $0x367] sm:$0xff] }
 0x3d9   :  { %v2749_v61 = vadd.f32 %v2615_v46, %v9169_v16  ;;  %v2832_v46 = vld [vmem:[#allocation2 + $0x369] sm:$0xff] }
 0x3da   :  { %v4215_v43 = vpop.f32.mrf.mxu3 }
 0x3db   :  { %v9648_v56 = vadd.f32 %v4215_v43, %v3817_v21  ;;  %v3283_v11 = vadd.f32 %v3149_v29, %v2749_v61  ;;  %7728 = vmatmul.msk.f32.gmra.mxu0 %vm97_vm1, %v3896_v10  ;;  %v3899_v10 = vld [vmem:[#allocation2 + $0x368] sm:$0xff] }
 0x3dc   :  { %7860 = vmatmul.msk.f32.gmra.mxu2 %vm97_vm1, %v3364_v40  ;;  %v3155_v0 = vpop.f32.mrf.mxu1 }
 0x3df   :  { %v3684_v25 = vpop.f32.mrf.mxu2  ;;  %7926 = vmatmul.msk.f32.gmra.mxu3 %vm97_vm1, %v3898_v59  ;;  %7796 = vmatmul.msk.f32.gmra.mxu1 %vm97_vm1, %v2831_v33 }
 0x3e0   :  { %v3818_v39 = vadd.f32 %v3684_v25, %v3283_v11  ;;  %v2618_v4 = vpop.f32.mrf.mxu0  ;;  %v3366_v11 = vld [vmem:[#allocation2 + $0x36f] sm:$0xff] }
 0x3e1   :  { %v2750_v16 = vadd.f32 %v2618_v4, %v9179_v38  ;;  %v2833_v4 = vld [vmem:[#allocation2 + $0x371] sm:$0xff] }
 0x3e2   :  { %v4218_v55 = vpop.f32.mrf.mxu3 }
 0x3e3   :  { %v9655_v8 = vadd.f32 %v4218_v55, %v3818_v39  ;;  %v3284_v29 = vadd.f32 %v3152_v48, %v2750_v16  ;;  %7729 = vmatmul.msk.f32.gmra.mxu0 %vm97_vm1, %v3897_v6  ;;  %v3900_v6 = vld [vmem:[#allocation2 + $0x370] sm:$0xff] }
 0x3e4   :  { %7861 = vmatmul.msk.f32.gmra.mxu2 %vm97_vm1, %v3365_v57  ;;  %v3158_v21 = vpop.f32.mrf.mxu1 }
 0x3e7   :  { %v3687_v40 = vpop.f32.mrf.mxu2  ;;  %7927 = vmatmul.msk.f32.gmra.mxu3 %vm97_vm1, %v3899_v10  ;;  %7797 = vmatmul.msk.f32.gmra.mxu1 %vm97_vm1, %v2832_v46 }
 0x3e8   :  { %v3819_v61 = vadd.f32 %v3687_v40, %v3284_v29  ;;  %v2621_v43 = vpop.f32.mrf.mxu0  ;;  %v3367_v29 = vld [vmem:[#allocation2 + $0x387] sm:$0xff] }
 0x3e9   :  { %v2751_v38 = vadd.f32 %v2621_v43, %v9189_v62 }
 0x3ea   :  { %v4221_v33 = vpop.f32.mrf.mxu3 }
 0x3eb   :  { %v9662_v25 = vadd.f32 %v4221_v33, %v3819_v61  ;;  %v3285_v48 = vadd.f32 %v3155_v0, %v2751_v38  ;;  %7730 = vmatmul.msk.f32.gmra.mxu0 %vm97_vm1, %v3898_v59  ;;  %v3901_v59 = vld [vmem:[#allocation2 + $0x388] sm:$0xff] }
 0x3ec   :  { %7862 = vmatmul.msk.f32.gmra.mxu2 %vm97_vm1, %v3366_v11  ;;  %v3161_v39 = vpop.f32.mrf.mxu1  ;;  %v2834_v61 = vld [vmem:[#allocation2 + $0x389] sm:$0xff] }
 0x3ef   :  { %v3690_v57 = vpop.f32.mrf.mxu2  ;;  %7928 = vmatmul.msk.f32.gmra.mxu3 %vm97_vm1, %v3900_v6  ;;  %7798 = vmatmul.msk.f32.gmra.mxu1 %vm97_vm1, %v2833_v4 }
 0x3f0   :  { %v3820_v16 = vadd.f32 %v3690_v57, %v3285_v48  ;;  %v2624_v55 = vpop.f32.mrf.mxu0  ;;  %v3368_v48 = vld [vmem:[#allocation2 + $0x38f] sm:$0xff] }
 0x3f1   :  { %v2752_v62 = vadd.f32 %v2624_v55, %v9199_v24 }
 0x3f2   :  { %v4224_v46 = vpop.f32.mrf.mxu3 }
 0x3f3   :  { %v9669_v40 = vadd.f32 %v4224_v46, %v3820_v16  ;;  %v3286_v0 = vadd.f32 %v3158_v21, %v2752_v62  ;;  %7731 = vmatmul.msk.f32.gmra.mxu0 %vm97_vm1, %v3899_v10  ;;  %v3902_v10 = vld [vmem:[#allocation2 + $0x390] sm:$0xff]  ;;  %v3369_v46 = vld [vmem:[#allocation2 + $0x3a7] sm:$0xff] }
 0x3f4   :  { %7863 = vmatmul.msk.f32.gmra.mxu2 %vm97_vm1, %v3367_v29  ;;  %v3164_v11 = vpop.f32.mrf.mxu1  ;;  %v2835_v16 = vld [vmem:[#allocation2 + $0x391] sm:$0xff] }
 0x3f7   :  { %v3693_v43 = vpop.f32.mrf.mxu2  ;;  %7929 = vmatmul.msk.f32.gmra.mxu3 %vm97_vm1, %v3901_v59  ;;  %7799 = vmatmul.msk.f32.gmra.mxu1 %vm97_vm1, %v2834_v61 }
 0x3f8   :  { %v3821_v38 = vadd.f32 %v3693_v43, %v3286_v0  ;;  %v2627_v33 = vpop.f32.mrf.mxu0 }
 0x3f9   :  { %v2753_v24 = vadd.f32 %v2627_v33, %v9209_v49 }
 0x3fa   :  { %v4227_v4 = vpop.f32.mrf.mxu3 }
 0x3fb   :  { %v9676_v57 = vadd.f32 %v4227_v4, %v3821_v38  ;;  %v3287_v21 = vadd.f32 %v3161_v39, %v2753_v24  ;;  %7732 = vmatmul.msk.f32.gmra.mxu0 %vm97_vm1, %v3900_v6  ;;  %v3903_v6 = vld [vmem:[#allocation2 + $0x3a8] sm:$0xff] }
 0x3fc   :  { %7864 = vmatmul.msk.f32.gmra.mxu2 %vm97_vm1, %v3368_v48  ;;  %v3167_v0 = vpop.f32.mrf.mxu1  ;;  %v2836_v38 = vld [vmem:[#allocation2 + $0x3a9] sm:$0xff] }
 0x3fd   :  { %v3370_v4 = vld [vmem:[#allocation2 + $0x3af] sm:$0xff] }
 0x3ff   :  { %v3696_v55 = vpop.f32.mrf.mxu2  ;;  %7930 = vmatmul.msk.f32.gmra.mxu3 %vm97_vm1, %v3902_v10  ;;  %7800 = vmatmul.msk.f32.gmra.mxu1 %vm97_vm1, %v2835_v16 }
 0x400   :  { %v3822_v29 = vadd.f32 %v3696_v55, %v3287_v21  ;;  %v2630_v62 = vpop.f32.mrf.mxu0 }
 0x401   :  { %v2754_v49 = vadd.f32 %v2630_v62, %v9219_v7 }
 0x402   :  { %v4230_v61 = vpop.f32.mrf.mxu3 }
 0x403   :  { %v9683_v43 = vadd.f32 %v4230_v61, %v3822_v29  ;;  %v3288_v39 = vadd.f32 %v3164_v11, %v2754_v49  ;;  %7733 = vmatmul.msk.f32.gmra.mxu0 %vm97_vm1, %v3901_v59  ;;  %v3904_v59 = vld [vmem:[#allocation2 + $0x3b0] sm:$0xff]  ;;  %v3371_v61 = vld [vmem:[#allocation2 + $0x3c7] sm:$0xff] }
 0x404   :  { %7865 = vmatmul.msk.f32.gmra.mxu2 %vm97_vm1, %v3369_v46  ;;  %v3170_v16 = vpop.f32.mrf.mxu1  ;;  %v2837_v29 = vld [vmem:[#allocation2 + $0x3b1] sm:$0xff] }
 0x407   :  { %v3699_v33 = vpop.f32.mrf.mxu2  ;;  %7931 = vmatmul.msk.f32.gmra.mxu3 %vm97_vm1, %v3903_v6  ;;  %7801 = vmatmul.msk.f32.gmra.mxu1 %vm97_vm1, %v2836_v38 }
 0x408   :  { %v3823_v48 = vadd.f32 %v3699_v33, %v3288_v39  ;;  %v2633_v24 = vpop.f32.mrf.mxu0 }
 0x409   :  { %v2755_v7 = vadd.f32 %v2633_v24, %v9229_v34 }
 0x40a   :  { %v4233_v21 = vpop.f32.mrf.mxu3 }
 0x40b   :  { %v9690_v55 = vadd.f32 %v4233_v21, %v3823_v48  ;;  %v3289_v11 = vadd.f32 %v3167_v0, %v2755_v7  ;;  %7734 = vmatmul.msk.f32.gmra.mxu0 %vm97_vm1, %v3902_v10  ;;  %v3905_v10 = vld [vmem:[#allocation2 + $0x3c8] sm:$0xff] }
 0x40c   :  { %7866 = vmatmul.msk.f32.gmra.mxu2 %vm97_vm1, %v3370_v4  ;;  %v3173_v33 = vpop.f32.mrf.mxu1  ;;  %v2838_v48 = vld [vmem:[#allocation2 + $0x3c9] sm:$0xff] }
 0x40d   :  { %v3372_v21 = vld [vmem:[#allocation2 + $0x3cf] sm:$0xff] }
 0x40f   :  { %v3702_v62 = vpop.f32.mrf.mxu2  ;;  %7932 = vmatmul.msk.f32.gmra.mxu3 %vm97_vm1, %v3904_v59  ;;  %7802 = vmatmul.msk.f32.gmra.mxu1 %vm97_vm1, %v2837_v29 }
 0x410   :  { %v3824_v46 = vadd.f32 %v3702_v62, %v3289_v11  ;;  %v2636_v49 = vpop.f32.mrf.mxu0  ;;  %v2839_v62 = vld [vmem:[#allocation2 + $0x3d1] sm:$0xff] }
 0x411   :  { %v2756_v34 = vadd.f32 %v2636_v49, %v9239_v60 }
 0x412   :  { %v4236_v39 = vpop.f32.mrf.mxu3 }
 0x413   :  { %v9697_v38 = vadd.f32 %v4236_v39, %v3824_v46  ;;  %v3290_v0 = vadd.f32 %v3170_v16, %v2756_v34  ;;  %7735 = vmatmul.msk.f32.gmra.mxu0 %vm97_vm1, %v3903_v6  ;;  %v3906_v6 = vld [vmem:[#allocation2 + $0x3d0] sm:$0xff]  ;;  %v3373_v39 = vld [vmem:[#allocation2 + $0x3e7] sm:$0xff] }
 0x414   :  { %7867 = vmatmul.msk.f32.gmra.mxu2 %vm97_vm1, %v3371_v61  ;;  %v3176_v49 = vpop.f32.mrf.mxu1 }
 0x417   :  { %v3705_v24 = vpop.f32.mrf.mxu2  ;;  %7933 = vmatmul.msk.f32.gmra.mxu3 %vm97_vm1, %v3905_v10  ;;  %7803 = vmatmul.msk.f32.gmra.mxu1 %vm97_vm1, %v2838_v48 }
 0x418   :  { %v3825_v4 = vadd.f32 %v3705_v24, %v3290_v0  ;;  %v2639_v7 = vpop.f32.mrf.mxu0  ;;  %v2840_v24 = vld [vmem:[#allocation2 + $0x3e9] sm:$0xff] }
 0x419   :  { %v2757_v60 = vadd.f32 %v2639_v7, %v9249_v28 }
 0x41a   :  { %v4239_v11 = vpop.f32.mrf.mxu3 }
 0x41b   :  { %v9704_v29 = vadd.f32 %v4239_v11, %v3825_v4  ;;  %v3291_v16 = vadd.f32 %v3173_v33, %v2757_v60  ;;  %7736 = vmatmul.msk.f32.gmra.mxu0 %vm97_vm1, %v3904_v59  ;;  %v3907_v59 = vld [vmem:[#allocation2 + $0x3e8] sm:$0xff] }
 0x41c   :  { %7868 = vmatmul.msk.f32.gmra.mxu2 %vm97_vm1, %v3372_v21  ;;  %v3179_v60 = vpop.f32.mrf.mxu1  ;;  %v3374_v11 = vld [vmem:[#allocation2 + $0x3ef] sm:$0xff] }
 0x41f   :  { %v3708_v46 = vpop.f32.mrf.mxu2  ;;  %7934 = vmatmul.msk.f32.gmra.mxu3 %vm97_vm1, %v3906_v6  ;;  %7804 = vmatmul.msk.f32.gmra.mxu1 %vm97_vm1, %v2839_v62 }
 0x420   :  { %v3826_v61 = vadd.f32 %v3708_v46, %v3291_v16  ;;  %v2642_v34 = vpop.f32.mrf.mxu0 }
 0x421   :  { %v2758_v28 = vadd.f32 %v2642_v34, %v9259_v53 }
 0x422   :  { %v4242_v0 = vpop.f32.mrf.mxu3 }
 0x423   :  { %v9711_v48 = vadd.f32 %v4242_v0, %v3826_v61  ;;  %v3292_v33 = vadd.f32 %v3176_v49, %v2758_v28  ;;  %7737 = vmatmul.msk.f32.gmra.mxu0 %vm97_vm1, %v3905_v10  ;;  %v3908_v10 = vld [vmem:[#allocation2 + $0x3f0] sm:$0xff]  ;;  %v3375_v28 = vld [vmem:[#allocation2 + $0x407] sm:$0xff] }
 0x424   :  { %7869 = vmatmul.msk.f32.gmra.mxu2 %vm97_vm1, %v3373_v39  ;;  %v2841_v49 = vld [vmem:[#allocation2 + $0x3f1] sm:$0xff] }
 0x427   :  { %v3711_v4 = vpop.f32.mrf.mxu2  ;;  %7935 = vmatmul.msk.f32.gmra.mxu3 %vm97_vm1, %v3907_v59  ;;  %7805 = vmatmul.msk.f32.gmra.mxu1 %vm97_vm1, %v2840_v24 }
 0x428   :  { %v3827_v7 = vadd.f32 %v3711_v4, %v3292_v33  ;;  %v2645_v21 = vpop.f32.mrf.mxu0  ;;  %v2842_v33 = vld [vmem:[#allocation2 + $0x409] sm:$0xff] }
 0x429   :  { %v2759_v53 = vadd.f32 %v2645_v21, %v9269_v22  ;;  %v3376_v4 = vld [vmem:[#allocation2 + $0x40f] sm:$0xff] }
 0x42a   :  { %v4245_v16 = vpop.f32.mrf.mxu3  ;;  %v2843_v21 = vld [vmem:[#allocation2 + $0x411] sm:$0xff] }
 0x42b   :  { %v9718_v62 = vadd.f32 %v4245_v16, %v3827_v7  ;;  %v3293_v46 = vadd.f32 %v3179_v60, %v2759_v53  ;;  %7738 = vmatmul.msk.f32.gmra.mxu0 %vm97_vm1, %v3906_v6  ;;  %v3909_v6 = vld [vmem:[#allocation2 + $0x408] sm:$0xff]  ;;  %v3910_v7 = vld [vmem:[#allocation2 + $0x410] sm:$0xff] }
 0x42c   :  { %7870 = vmatmul.msk.f32.gmra.mxu2 %vm97_vm1, %v3374_v11  ;;  %v3377_v60 = vld [vmem:[#allocation2 + $0x427] sm:$0xff] }
 0x42d   :  { %v3911_v11 = vld [vmem:[#allocation2 + $0x428] sm:$0xff] }
 0x42e   :  { %v2844_v53 = vld [vmem:[#allocation2 + $0x429] sm:$0xff] }
 0x42f   :  { %v3714_v61 = vpop.f32.mrf.mxu2  ;;  %7936 = vmatmul.msk.f32.gmra.mxu3 %vm97_vm1, %v3908_v10  ;;  %7806 = vmatmul.msk.f32.gmra.mxu1 %vm97_vm1, %v2841_v49  ;;  %v2845_v49 = vld [vmem:[#allocation2 + $0x431] sm:$0xff] }
 0x430   :  { %v3828_v34 = vadd.f32 %v3714_v61, %v3293_v46  ;;  %v9724_v39 = vpop.f32.mrf.mxu0  ;;  %v3378_v46 = vld [vmem:[#allocation2 + $0x42f] sm:$0xff] }
 0x432   :  { %v4248_v22 = vpop.f32.mrf.mxu3 }
 0x433   :  { %v9726_v0 = vadd.f32 %v4248_v22, %v3828_v34  ;;  %7739 = vmatmul.msk.f32.gmra.mxu0 %vm97_vm1, %v3907_v59  ;;  %v3379_v34 = vld [vmem:[#allocation2 + $0x447] sm:$0xff] }
 0x434   :  { %7871 = vmatmul.msk.f32.gmra.mxu2 %vm97_vm1, %v3375_v28  ;;  %v3913_v28 = vld [vmem:[#allocation2 + $0x448] sm:$0xff] }
 0x435   :  { %v2846_v22 = vld [vmem:[#allocation2 + $0x449] sm:$0xff] }
 0x437   :  { %7937 = vmatmul.msk.f32.gmra.mxu3 %vm97_vm1, %v3909_v6  ;;  %7807 = vmatmul.msk.f32.gmra.mxu1 %vm97_vm1, %v2842_v33  ;;  %v3380_v33 = vld [vmem:[#allocation2 + $0x44f] sm:$0xff] }
 0x438   :  { %v9732_v24 = vpop.f32.mrf.mxu0 }
 0x439   :  { %11689 = vst [vmem:[#allocation31_spill] sm:$0xff] %v9732_v24 }
 0x43b   :  { %7740 = vmatmul.msk.f32.gmra.mxu0 %vm97_vm1, %v3908_v10  ;;  %v3912_v10 = vld [vmem:[#allocation2 + $0x430] sm:$0xff] }
 0x43c   :  { %7872 = vmatmul.msk.f32.gmra.mxu2 %vm97_vm1, %v3376_v4  ;;  %v3914_v4 = vld [vmem:[#allocation2 + $0x450] sm:$0xff] }
 0x43f   :  { %7938 = vmatmul.msk.f32.gmra.mxu3 %vm97_vm1, %v3910_v7  ;;  %7808 = vmatmul.msk.f32.gmra.mxu1 %vm97_vm1, %v2843_v21 }
 0x440   :  { %v9738_v59 = vpop.f32.mrf.mxu0 }
 0x443   :  { %7741 = vmatmul.msk.f32.gmra.mxu0 %vm97_vm1, %v3909_v6 }
 0x444   :  { %7873 = vmatmul.msk.f32.gmra.mxu2 %vm97_vm1, %v3377_v60  ;;  %v3381_v60 = vld [vmem:[#allocation2 + $0x467] sm:$0xff] }
 0x447   :  { %7939 = vmatmul.msk.f32.gmra.mxu3 %vm97_vm1, %v3911_v11  ;;  %7809 = vmatmul.msk.f32.gmra.mxu1 %vm97_vm1, %v2844_v53 }
 0x448   :  { %v9744_v16 = vpop.f32.mrf.mxu0 }
 0x449   :  { %11690 = vst [vmem:[#allocation32_spill] sm:$0xff] %v9744_v16 }
 0x44b   :  { %7742 = vmatmul.msk.f32.gmra.mxu0 %vm97_vm1, %v3910_v7  ;;  %v2847_v7 = vld [vmem:[#allocation2 + $0x451] sm:$0xff] }
 0x44c   :  { %7874 = vmatmul.msk.f32.gmra.mxu2 %vm97_vm1, %v3378_v46  ;;  %v3382_v46 = vld [vmem:[#allocation2 + $0x46f] sm:$0xff] }
 0x44f   :  { %7940 = vmatmul.msk.f32.gmra.mxu3 %vm97_vm1, %v3912_v10  ;;  %7810 = vmatmul.msk.f32.gmra.mxu1 %vm97_vm1, %v2845_v49  ;;  %v8044_v49 = vld [vmem:[%s11659_s4 + $0x10] sm:$0xff] }
 0x450   :  { %v9750_v61 = vpop.f32.mrf.mxu0  ;;  %5665 = vmatpush.msra.mxu3 %v8044_v49 }
 0x451   :  { %11691 = vst [vmem:[#allocation33_spill] sm:$0xff] %v9750_v61 }
 0x453   :  { %7743 = vmatmul.msk.f32.gmra.mxu0 %vm97_vm1, %v3911_v11  ;;  %v3915_v11 = vld [vmem:[#allocation2 + $0x468] sm:$0xff] }
 0x454   :  { %7875 = vmatmul.msk.f32.gmra.mxu2 %vm97_vm1, %v3379_v34  ;;  %v3916_v34 = vld [vmem:[#allocation2 + $0x470] sm:$0xff] }
 0x457   :  { %7941 = vmatmul.msk.f32.gmra.mxu3 %vm97_vm1, %v3913_v28  ;;  %7811 = vmatmul.msk.f32.gmra.mxu1 %vm97_vm1, %v2846_v22 }
 0x458   :  { %v9756_v6 = vpop.f32.mrf.mxu0 }
 0x459   :  { %11692 = vst [vmem:[#allocation34_spill] sm:$0xff] %v9756_v6 }
 0x45b   :  { %7744 = vmatmul.msk.f32.gmra.mxu0 %vm97_vm1, %v3912_v10  ;;  %v5338_v10 = vld [vmem:[%s11659_s4] sm:$0xff] }
 0x45c   :  { %7876 = vmatmul.msk.f32.gmra.mxu2 %vm97_vm1, %v3380_v33  ;;  %v4387_v33 = vld [vmem:[#allocation2 + $0x49] sm:$0xff] }
 0x45d   :  { %5534 = vmatpush.msra.mxu2 %v5338_v10  ;;  %v4390_v10 = vld [vmem:[#allocation2 + $0x71] sm:$0xff] }
 0x45f   :  { %7942 = vmatmul.msk.f32.gmra.mxu3 %vm97_vm1, %v3914_v4  ;;  %7812 = vmatmul.msk.f32.gmra.mxu1 %vm97_vm1, %v2847_v7  ;;  %v4388_v7 = vld [vmem:[#allocation2 + $0x51] sm:$0xff] }
 0x460   :  { %v9762_v21 = vpop.f32.mrf.mxu0 }
 0x461   :  { %11693 = vst [vmem:[#allocation35_spill] sm:$0xff] %v9762_v21 }
 0x463   :  { %7745 = vmatmul.msk.f32.gmra.mxu0 %vm97_vm1, %v3913_v28  ;;  %v8011_v28 = vld [vmem:[%s11659_s4 + $0x8] sm:$0xff] }
 0x464   :  { %7877 = vmatmul.msk.f32.gmra.mxu2 %vm97_vm1, %v3381_v60  ;;  %5421 = vmatpush.msra.mxu1 %v8011_v28 }
 0x467   :  { %7943 = vmatmul.msk.f32.gmra.mxu3 %vm97_vm1, %v3915_v11  ;;  %v4389_v11 = vld [vmem:[#allocation2 + $0x69] sm:$0xff] }
 0x468   :  { %v9767_v53 = vpop.f32.mrf.mxu0 }
 0x469   :  { %11694 = vst [vmem:[#allocation36_spill] sm:$0xff] %v9767_v53 }
 0x46b   :  { %7746 = vmatmul.msk.f32.gmra.mxu0 %vm97_vm1, %v3914_v4 }
 0x46c   :  { %7878 = vmatmul.msk.f32.gmra.mxu2 %vm97_vm1, %v3382_v46 }
 0x46f   :  { %7944 = vmatmul.msk.f32.gmra.mxu3 %vm97_vm1, %v3916_v34  ;;  %v4391_v34 = vld [vmem:[#allocation2 + $0x89] sm:$0xff] }
 0x470   :  { %v9781_v22 = vpop.f32.mrf.mxu0 }
 0x471   :  { %11695 = vst [vmem:[#allocation37_spill] sm:$0xff] %v9781_v22 }
 0x473   :  { %7947 = vmatmul.msk.f32.vlgmr.msra.gmra.mxu0 %vm97_vm1, %v4387_v33  ;;  %v4392_v33 = vld [vmem:[#allocation2 + $0x91] sm:$0xff] }
 0x478   :  { %v9784_v4 = vpop.f32.mrf.mxu0 }
 0x479   :  { %11696 = vst [vmem:[#allocation38_spill] sm:$0xff] %v9784_v4  ;;  %v9852_v4 = vld [vmem:[%s11658_s3] ss:$0 sm:$0xff] }
 0x47b   :  { %7948 = vmatmul.msk.f32.gmra.mxu0 %vm97_vm1, %v4388_v7 }
 0x480   :  { %v9787_v60 = vpop.f32.mrf.mxu0 }
 0x481   :  { %11697 = vst [vmem:[#allocation39_spill] sm:$0xff] %v9787_v60 }
 0x483   :  { %7949 = vmatmul.msk.f32.gmra.mxu0 %vm97_vm1, %v4389_v11 }
 0x488   :  { %v9790_v46 = vpop.f32.mrf.mxu0 }
 0x489   :  { %11698 = vst [vmem:[#allocation40_spill] sm:$0xff] %v9790_v46  ;;  %v9846_v46 = vpop.f32.mrf.mxu3 }
 0x48a   :  { %11711 = vst [vmem:[#allocation53_spill] sm:$0xff] %v9846_v46 }
 0x48b   :  { %7950 = vmatmul.msk.f32.gmra.mxu0 %vm97_vm1, %v4390_v10 }
 0x490   :  { %v9793_v49 = vpop.f32.mrf.mxu0 }
 0x491   :  { %11699 = vst [vmem:[#allocation41_spill] sm:$0xff] %v9793_v49  ;;  %v9832_v49 = vpop.f32.mrf.mxu2 }
 0x493   :  { %7951 = vmatmul.msk.f32.gmra.mxu0 %vm97_vm1, %v4391_v34 }
 0x498   :  { %v9796_v28 = vpop.f32.mrf.mxu0 }
 0x499   :  { %11700 = vst [vmem:[#allocation42_spill] sm:$0xff] %v9796_v28  ;;  %v4396_v28 = vld [vmem:[#allocation2 + $0xd1] sm:$0xff] }
 0x49b   :  { %7952 = vmatmul.msk.f32.gmra.mxu0 %vm97_vm1, %v4392_v33 }
 0x4a0   :  { %v9799_v7 = vpop.f32.mrf.mxu0 }
 0x4a1   :  { %11701 = vst [vmem:[#allocation43_spill] sm:$0xff] %v9799_v7  ;;  %v4397_v7 = vld [vmem:[#allocation2 + $0xe9] sm:$0xff] }
 0x4a3   :  { %7953 = vmatmul.msk.f32.gmra.mxu0 %vm97_vm1, %v4393_v9 }
 0x4a8   :  { %v9802_v11 = vpop.f32.mrf.mxu0 }
 0x4a9   :  { %11702 = vst [vmem:[#allocation44_spill] sm:$0xff] %v9802_v11  ;;  %v4398_v11 = vld [vmem:[#allocation2 + $0xf1] sm:$0xff] }
 0x4ab   :  { %7954 = vmatmul.msk.f32.gmra.mxu0 %vm97_vm1, %v4394_v13 }
 0x4b0   :  { %v9805_v10 = vpop.f32.mrf.mxu0 }
 0x4b1   :  { %11703 = vst [vmem:[#allocation45_spill] sm:$0xff] %v9805_v10  ;;  %v4399_v10 = vld [vmem:[#allocation2 + $0x109] sm:$0xff] }
 0x4b3   :  { %7955 = vmatmul.msk.f32.gmra.mxu0 %vm97_vm1, %v4395_v1 }
 0x4b8   :  { %v9808_v34 = vpop.f32.mrf.mxu0 }
 0x4b9   :  { %11704 = vst [vmem:[#allocation46_spill] sm:$0xff] %v9808_v34  ;;  %v4400_v34 = vld [vmem:[#allocation2 + $0x111] sm:$0xff] }
 0x4bb   :  { %7956 = vmatmul.msk.f32.gmra.mxu0 %vm97_vm1, %v4396_v28 }
 0x4c0   :  { %v9811_v33 = vpop.f32.mrf.mxu0 }
 0x4c1   :  { %11705 = vst [vmem:[#allocation47_spill] sm:$0xff] %v9811_v33  ;;  %v4401_v33 = vld [vmem:[#allocation2 + $0x129] sm:$0xff] }
 0x4c3   :  { %7957 = vmatmul.msk.f32.gmra.mxu0 %vm97_vm1, %v4397_v7 }
 0x4c8   :  { %v9814_v9 = vpop.f32.mrf.mxu0 }
 0x4c9   :  { %11706 = vst [vmem:[#allocation48_spill] sm:$0xff] %v9814_v9  ;;  %v4402_v9 = vld [vmem:[#allocation2 + $0x131] sm:$0xff] }
 0x4cb   :  { %7958 = vmatmul.msk.f32.gmra.mxu0 %vm97_vm1, %v4398_v11 }
 0x4d0   :  { %v9817_v13 = vpop.f32.mrf.mxu0 }
 0x4d1   :  { %11707 = vst [vmem:[#allocation49_spill] sm:$0xff] %v9817_v13  ;;  %v4403_v13 = vld [vmem:[#allocation2 + $0x149] sm:$0xff] }
 0x4d3   :  { %7959 = vmatmul.msk.f32.gmra.mxu0 %vm97_vm1, %v4399_v10  ;;  %v5339_v10 = vld [vmem:[#allocation4 + $0x8] sm:$0xff] }
 0x4d8   :  { %v9820_v1 = vpop.f32.mrf.mxu0 }
 0x4d9   :  { %11708 = vst [vmem:[#allocation50_spill] sm:$0xff] %v9820_v1  ;;  %v9830_v1 = vpop.f32.mrf.mxu1  ;;  %8012 = vmatmul.msk.f32.vlgmr.msra.gmra.mxu1 %vm5357_vm4, %v5339_v10 }
 0x4db   :  { %7960 = vmatmul.msk.f32.gmra.mxu0 %vm97_vm1, %v4400_v34  ;;  %v9835_v34 = vld [vmem:[#allocation4 + $0x7] sm:$0xff] }
 0x4dc   :  { %8028 = vmatmul.msk.f32.vlgmr.msra.gmra.mxu2 %vm5357_vm4, %v9835_v34 }
 0x4e0   :  { %v9823_v28 = vpop.f32.mrf.mxu0 }
 0x4e1   :  { %11709 = vst [vmem:[#allocation51_spill] sm:$0xff] %v9823_v28  ;;  %v5584_v28 = vld [vmem:[#allocation4 + $0x9] sm:$0xff] }
 0x4e2   :  { %8045 = vmatmul.msk.f32.vlgmr.msra.gmra.mxu3 %vm5357_vm4, %v5584_v28  ;;  %v4406_v28 = vld [vmem:[#allocation2 + $0x171] sm:$0xff] }
 0x4e3   :  { %7961 = vmatmul.msk.f32.gmra.mxu0 %vm97_vm1, %v4401_v33 }
 0x4e8   :  { %v9826_v7 = vpop.f32.mrf.mxu0 }
 0x4e9   :  { %11710 = vst [vmem:[#allocation52_spill] sm:$0xff] %v9826_v7  ;;  %v4404_v7 = vld [vmem:[#allocation2 + $0x151] sm:$0xff] }
 0x4eb   :  { %7962 = vmatmul.msk.f32.gmra.mxu0 %vm97_vm1, %v4402_v9 }
 0x4f0   :  { %v4665_v11 = vpop.f32.mrf.mxu0 }
 0x4f1   :  { %v4857_v9 = vadd.f32 %v4665_v11, %v9452_v52  ;;  %v4405_v11 = vld [vmem:[#allocation2 + $0x169] sm:$0xff] }
 0x4f3   :  { %7963 = vmatmul.msk.f32.gmra.mxu0 %vm97_vm1, %v4403_v13  ;;  %v9843_v13 = vld [vmem:[%s11657_s2] ss:$0 sm:$0xff] }
 0x4f4   :  { %v4925_v10 = vmul.f32 %v9843_v13, %v4857_v9 }
 0x4f6   :  { %v4993_v22 = vadd.f32 %v9852_v4, %v4925_v10  ;;  %v4407_v10 = vld [vmem:[#allocation2 + $0x189] sm:$0xff] }
 0x4f8   :  { %v4668_v33 = vpop.f32.mrf.mxu0  ;;  %v5057_v6 = vmax.f32 %v4993_v22, 0.0 }
 0x4fb   :  { %7964 = vmatmul.msk.f32.gmra.mxu0 %vm97_vm1, %v4404_v7  ;;  %v4858_v7 = vadd.f32 %v4668_v33, %v9459_v23 }
 0x4fd   :  { %v4926_v21 = vmul.f32 %v9843_v13, %v4858_v7 }
 0x500   :  { %v4671_v52 = vpop.f32.mrf.mxu0 }
 0x501   :  { %v4859_v60 = vadd.f32 %v4671_v52, %v9466_v14  ;;  %v4994_v14 = vadd.f32 %v9852_v4, %v4926_v21 }
 0x503   :  { %v4927_v53 = vmul.f32 %v9843_v13, %v4859_v60  ;;  %7965 = vmatmul.msk.f32.gmra.mxu0 %vm97_vm1, %v4405_v11  ;;  %v5058_v33 = vmax.f32 %v4994_v14, 0.0 }
 0x505   :  { %v4995_v9 = vadd.f32 %v9852_v4, %v4927_v53 }
 0x507   :  { %v5059_v61 = vmax.f32 %v4995_v9, 0.0  ;;  %v4409_v9 = vld [vmem:[#allocation2 + $0x1a9] sm:$0xff] }
 0x508   :  { %v4674_v16 = vpop.f32.mrf.mxu0 }
 0x509   :  { %v5121_v46 = vmax.f32 %v5057_v6, %v5059_v61  ;;  %v4860_v24 = vadd.f32 %v4674_v16, %v9473_v19  ;;  %v4408_v6 = vld [vmem:[#allocation2 + $0x191] sm:$0xff] }
 0x50b   :  { %5153 = vst [vmem:[#allocation3] sm:$0xff] %v5121_v46  ;;  %v4928_v23 = vmul.f32 %v9843_v13, %v4860_v24  ;;  %7966 = vmatmul.msk.f32.gmra.mxu0 %vm97_vm1, %v4406_v28  ;;  %v9870_v46 = vpop.f32.mrf.mxu1 }
 0x50d   :  { %v4996_v60 = vadd.f32 %v9852_v4, %v4928_v23 }
 0x50f   :  { %v5060_v53 = vmax.f32 %v4996_v60, 0.0 }
 0x510   :  { %v4677_v22 = vpop.f32.mrf.mxu0 }
 0x511   :  { %v5122_v52 = vmax.f32 %v5058_v33, %v5060_v53  ;;  %v4861_v21 = vadd.f32 %v4677_v22, %v9480_v42  ;;  %v9879_v53 = vpop.f32.mrf.mxu2  ;;  %v9881_v22 = vpop.f32.mrf.mxu3 }
 0x513   :  { %5154 = vst [vmem:[#allocation3 + $0x8] sm:$0xff] %v5122_v52  ;;  %7967 = vmatmul.msk.f32.gmra.mxu0 %vm97_vm1, %v4407_v10  ;;  %v4929_v11 = vmul.f32 %v9843_v13, %v4861_v21 }
 0x515   :  { %v4997_v14 = vadd.f32 %v9852_v4, %v4929_v11 }
 0x518   :  { %v4680_v61 = vpop.f32.mrf.mxu0 }
 0x519   :  { %v4862_v23 = vadd.f32 %v4680_v61, %v9487_v2 }
 0x51a   :  { %v5185_v19 = vld [vmem:[#allocation3] ss:$2 sm:$0xff]  ;;  %v5217_v16 = vld [vmem:[#allocation3 + $0x1] ss:$2 sm:$0xff] }
 0x51b   :  { %7968 = vmatmul.msk.f32.gmra.mxu0 %vm97_vm1, %v4408_v6  ;;  %v5248_v24 = vmax.f32 %v5185_v19, %v5217_v16  ;;  %v4930_v52 = vmul.f32 %v9843_v13, %v4862_v23  ;;  %v4410_v6 = vld [vmem:[#allocation2 + $0x1b1] sm:$0xff] }
 0x51d   :  { %5306 = vst [vmem:[#allocation4 + $0x20] sm:$0xff] %v5248_v24  ;;  %8013 = vmatmul.msk.f32.gmra.mxu1 %vm5357_vm4, %v5248_v24  ;;  %v4998_v21 = vadd.f32 %v9852_v4, %v4930_v52  ;;  %v9895_v52 = vpop.f32.mrf.mxu1 }
 0x520   :  { %v4683_v7 = vpop.f32.mrf.mxu0 }
 0x521   :  { %v4863_v28 = vadd.f32 %v4683_v7, %v9494_v63  ;;  %v5061_v63 = vmax.f32 %v4997_v14, 0.0  ;;  %v5062_v7 = vmax.f32 %v4998_v21, 0.0  ;;  %v4411_v14 = vld [vmem:[#allocation2 + $0x1c9] sm:$0xff] }
 0x523   :  { %v4931_v42 = vmul.f32 %v9843_v13, %v4863_v28  ;;  %7969 = vmatmul.msk.f32.gmra.mxu0 %vm97_vm1, %v4409_v9 }
 0x524   :  { %v5323_v60 = vld [vmem:[#allocation4 + $0x1f] sm:$0xff] }
 0x525   :  { %v5585_v33 = vld [vmem:[#allocation4 + $0x21] sm:$0xff]  ;;  %v4999_v10 = vadd.f32 %v9852_v4, %v4931_v42  ;;  %8029 = vmatmul.msk.f32.gmra.mxu2 %vm5357_vm4, %v5323_v60  ;;  %v4412_v60 = vld [vmem:[#allocation2 + $0x1d1] sm:$0xff] }
 0x526   :  { %8046 = vmatmul.msk.f32.gmra.mxu3 %vm5357_vm4, %v5585_v33 }
 0x527   :  { %v5063_v2 = vmax.f32 %v4999_v10, 0.0 }
 0x528   :  { %v4686_v61 = vpop.f32.mrf.mxu0 }
 0x529   :  { %v5123_v19 = vmax.f32 %v5061_v63, %v5063_v2  ;;  %v4864_v16 = vadd.f32 %v4686_v61, %v9501_v30 }
 0x52b   :  { %5155 = vst [vmem:[#allocation3 + $0x10] sm:$0xff] %v5123_v19  ;;  %v4932_v24 = vmul.f32 %v9843_v13, %v4864_v16  ;;  %7970 = vmatmul.msk.f32.gmra.mxu0 %vm97_vm1, %v4410_v6  ;;  %v4413_v6 = vld [vmem:[#allocation2 + $0x1e9] sm:$0xff] }
 0x52d   :  { %v5000_v11 = vadd.f32 %v9852_v4, %v4932_v24 }
 0x52f   :  { %v5064_v9 = vmax.f32 %v5000_v11, 0.0 }
 0x530   :  { %v4689_v28 = vpop.f32.mrf.mxu0 }
 0x531   :  { %v5124_v23 = vmax.f32 %v5062_v7, %v5064_v9  ;;  %v4865_v10 = vadd.f32 %v4689_v28, %v9508_v26  ;;  %v9904_v7 = vpop.f32.mrf.mxu2  ;;  %v9906_v9 = vpop.f32.mrf.mxu3 }
 0x533   :  { %5156 = vst [vmem:[#allocation3 + $0x18] sm:$0xff] %v5124_v23  ;;  %7971 = vmatmul.msk.f32.gmra.mxu0 %vm97_vm1, %v4411_v14  ;;  %v4933_v2 = vmul.f32 %v9843_v13, %v4865_v10 }
 0x535   :  { %v5001_v16 = vadd.f32 %v9852_v4, %v4933_v2 }
 0x538   :  { %v4692_v42 = vpop.f32.mrf.mxu0 }
 0x539   :  { %v4866_v21 = vadd.f32 %v4692_v42, %v9515_v54  ;;  %v4414_v42 = vld [vmem:[#allocation2 + $0x1f1] sm:$0xff] }
 0x53a   :  { %v5187_v30 = vld [vmem:[#allocation3 + $0x10] ss:$2 sm:$0xff]  ;;  %v5219_v33 = vld [vmem:[#allocation3 + $0x11] ss:$2 sm:$0xff] }
 0x53b   :  { %7972 = vmatmul.msk.f32.gmra.mxu0 %vm97_vm1, %v4412_v60  ;;  %v5249_v63 = vmax.f32 %v5187_v30, %v5219_v33  ;;  %v4934_v14 = vmul.f32 %v9843_v13, %v4866_v21 }
 0x53d   :  { %5307 = vst [vmem:[#allocation4 + $0x38] sm:$0xff] %v5249_v63  ;;  %8014 = vmatmul.msk.f32.gmra.mxu1 %vm5357_vm4, %v5249_v63  ;;  %v5002_v33 = vadd.f32 %v9852_v4, %v4934_v14 }
 0x53f   :  { %v5066_v2 = vmax.f32 %v5002_v33, 0.0 }
 0x540   :  { %v4695_v61 = vpop.f32.mrf.mxu0 }
 0x541   :  { %v4867_v19 = vadd.f32 %v4695_v61, %v9522_v20  ;;  %v5065_v20 = vmax.f32 %v5001_v16, 0.0 }
 0x543   :  { %v4935_v26 = vmul.f32 %v9843_v13, %v4867_v19  ;;  %7973 = vmatmul.msk.f32.gmra.mxu0 %vm97_vm1, %v4413_v6  ;;  %v4415_v19 = vld [vmem:[#allocation2 + $0x209] sm:$0xff] }
 0x544   :  { %v5324_v24 = vld [vmem:[#allocation4 + $0x37] sm:$0xff] }
 0x545   :  { %v5586_v11 = vld [vmem:[#allocation4 + $0x39] sm:$0xff]  ;;  %v5003_v28 = vadd.f32 %v9852_v4, %v4935_v26  ;;  %8030 = vmatmul.msk.f32.gmra.mxu2 %vm5357_vm4, %v5324_v24  ;;  %v4416_v26 = vld [vmem:[#allocation2 + $0x211] sm:$0xff] }
 0x546   :  { %8047 = vmatmul.msk.f32.gmra.mxu3 %vm5357_vm4, %v5586_v11 }
 0x547   :  { %v5067_v54 = vmax.f32 %v5003_v28, 0.0 }
 0x548   :  { %v4698_v23 = vpop.f32.mrf.mxu0 }
 0x549   :  { %v5125_v60 = vmax.f32 %v5065_v20, %v5067_v54  ;;  %v4868_v30 = vadd.f32 %v4698_v23, %v9529_v50  ;;  %v9920_v20 = vpop.f32.mrf.mxu1  ;;  %v4417_v23 = vld [vmem:[#allocation2 + $0x229] sm:$0xff] }
 0x54b   :  { %5157 = vst [vmem:[#allocation3 + $0x20] sm:$0xff] %v5125_v60  ;;  %v4936_v10 = vmul.f32 %v9843_v13, %v4868_v30  ;;  %7974 = vmatmul.msk.f32.gmra.mxu0 %vm97_vm1, %v4414_v42 }
 0x54d   :  { %v5004_v63 = vadd.f32 %v9852_v4, %v4936_v10 }
 0x54f   :  { %v5068_v61 = vmax.f32 %v5004_v63, 0.0  ;;  %v9929_v63 = vpop.f32.mrf.mxu2 }
 0x550   :  { %v4701_v6 = vpop.f32.mrf.mxu0 }
 0x551   :  { %v5126_v16 = vmax.f32 %v5066_v2, %v5068_v61  ;;  %v4869_v11 = vadd.f32 %v4701_v6, %v9536_v36  ;;  %v9931_v2 = vpop.f32.mrf.mxu3 }
 0x553   :  { %5158 = vst [vmem:[#allocation3 + $0x28] sm:$0xff] %v5126_v16  ;;  %7975 = vmatmul.msk.f32.gmra.mxu0 %vm97_vm1, %v4415_v19  ;;  %v4937_v14 = vmul.f32 %v9843_v13, %v4869_v11  ;;  %v4418_v16 = vld [vmem:[#allocation2 + $0x231] sm:$0xff] }
 0x555   :  { %v5005_v60 = vadd.f32 %v9852_v4, %v4937_v14 }
 0x558   :  { %v4704_v21 = vpop.f32.mrf.mxu0 }
 0x559   :  { %v4870_v30 = vadd.f32 %v4704_v21, %v9543_v47 }
 0x55a   :  { %v5189_v50 = vld [vmem:[#allocation3 + $0x20] ss:$2 sm:$0xff]  ;;  %v5221_v24 = vld [vmem:[#allocation3 + $0x21] ss:$2 sm:$0xff] }
 0x55b   :  { %7976 = vmatmul.msk.f32.gmra.mxu0 %vm97_vm1, %v4416_v26  ;;  %v5250_v28 = vmax.f32 %v5189_v50, %v5221_v24  ;;  %v4938_v6 = vmul.f32 %v9843_v13, %v4870_v30  ;;  %v4420_v30 = vld [vmem:[#allocation2 + $0x291] sm:$0xff] }
 0x55d   :  { %5308 = vst [vmem:[#allocation4 + $0x50] sm:$0xff] %v5250_v28  ;;  %8015 = vmatmul.msk.f32.gmra.mxu1 %vm5357_vm4, %v5250_v28  ;;  %v5006_v50 = vadd.f32 %v9852_v4, %v4938_v6 }
 0x55f   :  { %v5070_v28 = vmax.f32 %v5006_v50, 0.0 }
 0x560   :  { %v4707_v54 = vpop.f32.mrf.mxu0 }
 0x561   :  { %v4871_v42 = vadd.f32 %v4707_v54, %v9550_v58  ;;  %v5069_v58 = vmax.f32 %v5005_v60, 0.0 }
 0x563   :  { %v4939_v36 = vmul.f32 %v9843_v13, %v4871_v42  ;;  %7977 = vmatmul.msk.f32.gmra.mxu0 %vm97_vm1, %v4417_v23  ;;  %v4419_v23 = vld [vmem:[#allocation2 + $0x289] sm:$0xff] }
 0x564   :  { %v5325_v33 = vld [vmem:[#allocation4 + $0x4f] sm:$0xff] }
 0x565   :  { %v5587_v10 = vld [vmem:[#allocation4 + $0x51] sm:$0xff]  ;;  %v5007_v61 = vadd.f32 %v9852_v4, %v4939_v36  ;;  %8031 = vmatmul.msk.f32.gmra.mxu2 %vm5357_vm4, %v5325_v33 }
 0x566   :  { %8048 = vmatmul.msk.f32.gmra.mxu3 %vm5357_vm4, %v5587_v10 }
 0x567   :  { %v5071_v47 = vmax.f32 %v5007_v61, 0.0  ;;  %v9945_v61 = vpop.f32.mrf.mxu1 }
 0x568   :  { %v4710_v19 = vpop.f32.mrf.mxu0 }
 0x569   :  { %v5127_v21 = vmax.f32 %v5069_v58, %v5071_v47  ;;  %v4872_v26 = vadd.f32 %v4710_v19, %v9557_v3  ;;  %v4421_v47 = vld [vmem:[#allocation2 + $0x2a9] sm:$0xff] }
 0x56b   :  { %5159 = vst [vmem:[#allocation3 + $0x30] sm:$0xff] %v5127_v21  ;;  %v4940_v24 = vmul.f32 %v9843_v13, %v4872_v26  ;;  %7978 = vmatmul.msk.f32.gmra.mxu0 %vm97_vm1, %v4418_v16 }
 0x56d   :  { %v5008_v11 = vadd.f32 %v9852_v4, %v4940_v24  ;;  %v9954_v24 = vpop.f32.mrf.mxu2 }
 0x56f   :  { %v5072_v14 = vmax.f32 %v5008_v11, 0.0  ;;  %v9956_v11 = vpop.f32.mrf.mxu3 }
 0x570   :  { %v4713_v54 = vpop.f32.mrf.mxu0 }
 0x571   :  { %v5128_v42 = vmax.f32 %v5070_v28, %v5072_v14  ;;  %v4873_v33 = vadd.f32 %v4713_v54, %v9564_v17 }
 0x573   :  { %5160 = vst [vmem:[#allocation3 + $0x38] sm:$0xff] %v5128_v42  ;;  %7979 = vmatmul.msk.f32.gmra.mxu0 %vm97_vm1, %v4419_v23  ;;  %v4941_v58 = vmul.f32 %v9843_v13, %v4873_v33  ;;  %v4422_v23 = vld [vmem:[#allocation2 + $0x2b1] sm:$0xff] }
 0x575   :  { %v5009_v16 = vadd.f32 %v9852_v4, %v4941_v58 }
 0x578   :  { %v4716_v60 = vpop.f32.mrf.mxu0 }
 0x579   :  { %v4874_v21 = vadd.f32 %v4716_v60, %v9571_v31 }
 0x57a   :  { %v5191_v3 = vld [vmem:[#allocation3 + $0x30] ss:$2 sm:$0xff]  ;;  %v5223_v36 = vld [vmem:[#allocation3 + $0x31] ss:$2 sm:$0xff] }
 0x57b   :  { %7980 = vmatmul.msk.f32.gmra.mxu0 %vm97_vm1, %v4420_v30  ;;  %v5251_v10 = vmax.f32 %v5191_v3, %v5223_v36  ;;  %v4942_v14 = vmul.f32 %v9843_v13, %v4874_v21 }
 0x57d   :  { %5309 = vst [vmem:[#allocation4 + $0x68] sm:$0xff] %v5251_v10  ;;  %8016 = vmatmul.msk.f32.gmra.mxu1 %vm5357_vm4, %v5251_v10  ;;  %v5010_v30 = vadd.f32 %v9852_v4, %v4942_v14  ;;  %v4425_v14 = vld [vmem:[#allocation2 + $0x2e9] sm:$0xff] }
 0x57f   :  { %v5074_v33 = vmax.f32 %v5010_v30, 0.0  ;;  %v9979_v30 = vpop.f32.mrf.mxu2 }
 0x580   :  { %v4719_v6 = vpop.f32.mrf.mxu0 }
 0x581   :  { %v4875_v19 = vadd.f32 %v4719_v6, %v9578_v27  ;;  %v5073_v27 = vmax.f32 %v5009_v16, 0.0  ;;  %v4423_v6 = vld [vmem:[#allocation2 + $0x2c9] sm:$0xff]  ;;  %v4424_v16 = vld [vmem:[#allocation2 + $0x2d1] sm:$0xff] }
 0x583   :  { %v4943_v17 = vmul.f32 %v9843_v13, %v4875_v19  ;;  %7981 = vmatmul.msk.f32.gmra.mxu0 %vm97_vm1, %v4421_v47 }
 0x584   :  { %v5326_v26 = vld [vmem:[#allocation4 + $0x67] sm:$0xff] }
 0x585   :  { %v5588_v50 = vld [vmem:[#allocation4 + $0x69] sm:$0xff]  ;;  %v5011_v28 = vadd.f32 %v9852_v4, %v4943_v17  ;;  %8032 = vmatmul.msk.f32.gmra.mxu2 %vm5357_vm4, %v5326_v26 }
 0x586   :  { %8049 = vmatmul.msk.f32.gmra.mxu3 %vm5357_vm4, %v5588_v50  ;;  %v9970_v50 = vpop.f32.mrf.mxu1 }
 0x587   :  { %v5075_v31 = vmax.f32 %v5011_v28, 0.0 }
 0x588   :  { %v4722_v54 = vpop.f32.mrf.mxu0 }
 0x589   :  { %v5129_v42 = vmax.f32 %v5073_v27, %v5075_v31  ;;  %v4876_v60 = vadd.f32 %v4722_v54, %v9585_v41 }
 0x58b   :  { %5161 = vst [vmem:[#allocation3 + $0x40] sm:$0xff] %v5129_v42  ;;  %v4944_v3 = vmul.f32 %v9843_v13, %v4876_v60  ;;  %7982 = vmatmul.msk.f32.gmra.mxu0 %vm97_vm1, %v4422_v23 }
 0x58d   :  { %v5012_v36 = vadd.f32 %v9852_v4, %v4944_v3  ;;  %v9981_v3 = vpop.f32.mrf.mxu3 }
 0x58f   :  { %v5076_v10 = vmax.f32 %v5012_v36, 0.0 }
 0x590   :  { %v4725_v58 = vpop.f32.mrf.mxu0 }
 0x591   :  { %v5130_v47 = vmax.f32 %v5074_v33, %v5076_v10  ;;  %v4877_v17 = vadd.f32 %v4725_v58, %v9592_v37  ;;  %v4426_v58 = vld [vmem:[#allocation2 + $0x2f1] sm:$0xff] }
 0x593   :  { %5162 = vst [vmem:[#allocation3 + $0x48] sm:$0xff] %v5130_v47  ;;  %7983 = vmatmul.msk.f32.gmra.mxu0 %vm97_vm1, %v4423_v6  ;;  %v4945_v28 = vmul.f32 %v9843_v13, %v4877_v17 }
 0x595   :  { %v5013_v54 = vadd.f32 %v9852_v4, %v4945_v28  ;;  %v4427_v28 = vld [vmem:[#allocation2 + $0x309] sm:$0xff] }
 0x598   :  { %v4728_v19 = vpop.f32.mrf.mxu0 }
 0x599   :  { %v4878_v23 = vadd.f32 %v4728_v19, %v9599_v18 }
 0x59a   :  { %v5193_v41 = vld [vmem:[#allocation3 + $0x40] ss:$2 sm:$0xff]  ;;  %v5225_v21 = vld [vmem:[#allocation3 + $0x41] ss:$2 sm:$0xff] }
 0x59b   :  { %7984 = vmatmul.msk.f32.gmra.mxu0 %vm97_vm1, %v4424_v16  ;;  %v5252_v26 = vmax.f32 %v5193_v41, %v5225_v21  ;;  %v4946_v33 = vmul.f32 %v9843_v13, %v4878_v23 }
 0x59d   :  { %5310 = vst [vmem:[#allocation4 + $0x80] sm:$0xff] %v5252_v26  ;;  %8017 = vmatmul.msk.f32.gmra.mxu1 %vm5357_vm4, %v5252_v26  ;;  %v5014_v19 = vadd.f32 %v9852_v4, %v4946_v33 }
 0x59f   :  { %v5078_v21 = vmax.f32 %v5014_v19, 0.0  ;;  %v10006_v19 = vpop.f32.mrf.mxu3 }
 0x5a0   :  { %v4731_v27 = vpop.f32.mrf.mxu0 }
 0x5a1   :  { %v4879_v31 = vadd.f32 %v4731_v27, %v9606_v32  ;;  %v5077_v32 = vmax.f32 %v5013_v54, 0.0 }
 0x5a3   :  { %v4947_v37 = vmul.f32 %v9843_v13, %v4879_v31  ;;  %7985 = vmatmul.msk.f32.gmra.mxu0 %vm97_vm1, %v4425_v14  ;;  %v4428_v31 = vld [vmem:[#allocation2 + $0x311] sm:$0xff] }
 0x5a4   :  { %v5327_v42 = vld [vmem:[#allocation4 + $0x7f] sm:$0xff] }
 0x5a5   :  { %v5589_v60 = vld [vmem:[#allocation4 + $0x81] sm:$0xff]  ;;  %v5015_v36 = vadd.f32 %v9852_v4, %v4947_v37  ;;  %8033 = vmatmul.msk.f32.gmra.mxu2 %vm5357_vm4, %v5327_v42  ;;  %v9995_v42 = vpop.f32.mrf.mxu1 }
 0x5a6   :  { %8050 = vmatmul.msk.f32.gmra.mxu3 %vm5357_vm4, %v5589_v60 }
 0x5a7   :  { %v5079_v18 = vmax.f32 %v5015_v36, 0.0 }
 0x5a8   :  { %v4734_v10 = vpop.f32.mrf.mxu0 }
 0x5a9   :  { %v5131_v6 = vmax.f32 %v5077_v32, %v5079_v18  ;;  %v4880_v47 = vadd.f32 %v4734_v10, %v9613_v45  ;;  %v4429_v32 = vld [vmem:[#allocation2 + $0x329] sm:$0xff] }
 0x5ab   :  { %5163 = vst [vmem:[#allocation3 + $0x50] sm:$0xff] %v5131_v6  ;;  %v4948_v16 = vmul.f32 %v9843_v13, %v4880_v47  ;;  %7986 = vmatmul.msk.f32.gmra.mxu0 %vm97_vm1, %v4426_v58  ;;  %v10004_v47 = vpop.f32.mrf.mxu2 }
 0x5ad   :  { %v5016_v41 = vadd.f32 %v9852_v4, %v4948_v16 }
 0x5af   :  { %v5080_v17 = vmax.f32 %v5016_v41, 0.0 }
 0x5b0   :  { %v4737_v26 = vpop.f32.mrf.mxu0 }
 0x5b1   :  { %v5132_v27 = vmax.f32 %v5078_v21, %v5080_v17  ;;  %v4881_v23 = vadd.f32 %v4737_v26, %v9620_v51  ;;  %v4430_v17 = vld [vmem:[#allocation2 + $0x331] sm:$0xff] }
 0x5b3   :  { %5164 = vst [vmem:[#allocation3 + $0x58] sm:$0xff] %v5132_v27  ;;  %7987 = vmatmul.msk.f32.gmra.mxu0 %vm97_vm1, %v4427_v28  ;;  %v4949_v60 = vmul.f32 %v9843_v13, %v4881_v23 }
 0x5b5   :  { %v5017_v18 = vadd.f32 %v9852_v4, %v4949_v60 }
 0x5b8   :  { %v4740_v14 = vpop.f32.mrf.mxu0 }
 0x5b9   :  { %v4882_v10 = vadd.f32 %v4740_v14, %v9627_v44 }
 0x5ba   :  { %v5195_v45 = vld [vmem:[#allocation3 + $0x50] ss:$2 sm:$0xff]  ;;  %v5227_v54 = vld [vmem:[#allocation3 + $0x51] ss:$2 sm:$0xff] }
 0x5bb   :  { %7988 = vmatmul.msk.f32.gmra.mxu0 %vm97_vm1, %v4428_v31  ;;  %v5253_v37 = vmax.f32 %v5195_v45, %v5227_v54  ;;  %v4950_v41 = vmul.f32 %v9843_v13, %v4882_v10 }
 0x5bd   :  { %5311 = vst [vmem:[#allocation4 + $0x98] sm:$0xff] %v5253_v37  ;;  %8018 = vmatmul.msk.f32.gmra.mxu1 %vm5357_vm4, %v5253_v37  ;;  %v5018_v27 = vadd.f32 %v9852_v4, %v4950_v41  ;;  %v4431_v37 = vld [vmem:[#allocation2 + $0x349] sm:$0xff]  ;;  %v10025_v41 = vpop.f32.mrf.mxu2 }
 0x5bf   :  { %v5082_v45 = vmax.f32 %v5018_v27, 0.0 }
 0x5c0   :  { %v4743_v36 = vpop.f32.mrf.mxu0 }
 0x5c1   :  { %v4883_v33 = vadd.f32 %v4743_v36, %v9634_v15  ;;  %v5081_v15 = vmax.f32 %v5017_v18, 0.0 }
 0x5c3   :  { %v4951_v51 = vmul.f32 %v9843_v13, %v4883_v33  ;;  %7989 = vmatmul.msk.f32.gmra.mxu0 %vm97_vm1, %v4429_v32  ;;  %v4432_v32 = vld [vmem:[#allocation2 + $0x351] sm:$0xff] }
 0x5c4   :  { %v5328_v58 = vld [vmem:[#allocation4 + $0x97] sm:$0xff] }
 0x5c5   :  { %v5590_v6 = vld [vmem:[#allocation4 + $0x99] sm:$0xff]  ;;  %v5019_v16 = vadd.f32 %v9852_v4, %v4951_v51  ;;  %8034 = vmatmul.msk.f32.gmra.mxu2 %vm5357_vm4, %v5328_v58  ;;  %v10020_v51 = vpop.f32.mrf.mxu1 }
 0x5c6   :  { %8051 = vmatmul.msk.f32.gmra.mxu3 %vm5357_vm4, %v5590_v6 }
 0x5c7   :  { %v5083_v44 = vmax.f32 %v5019_v16, 0.0  ;;  %v4433_v16 = vld [vmem:[#allocation2 + $0x369] sm:$0xff] }
 0x5c8   :  { %v4746_v21 = vpop.f32.mrf.mxu0 }
 0x5c9   :  { %v5133_v26 = vmax.f32 %v5081_v15, %v5083_v44  ;;  %v4884_v28 = vadd.f32 %v4746_v21, %v9641_v12 }
 0x5cb   :  { %5165 = vst [vmem:[#allocation3 + $0x60] sm:$0xff] %v5133_v26  ;;  %v4952_v14 = vmul.f32 %v9843_v13, %v4884_v28  ;;  %7990 = vmatmul.msk.f32.gmra.mxu0 %vm97_vm1, %v4430_v17  ;;  %v10031_v28 = vpop.f32.mrf.mxu3 }
 0x5cd   :  { %v5020_v31 = vadd.f32 %v9852_v4, %v4952_v14 }
 0x5cf   :  { %v5084_v54 = vmax.f32 %v5020_v31, 0.0 }
 0x5d0   :  { %v4749_v23 = vpop.f32.mrf.mxu0 }
 0x5d1   :  { %v5134_v60 = vmax.f32 %v5082_v45, %v5084_v54  ;;  %v4885_v18 = vadd.f32 %v4749_v23, %v9648_v56 }
 0x5d3   :  { %5166 = vst [vmem:[#allocation3 + $0x68] sm:$0xff] %v5134_v60  ;;  %7991 = vmatmul.msk.f32.gmra.mxu0 %vm97_vm1, %v4431_v37  ;;  %v4953_v58 = vmul.f32 %v9843_v13, %v4885_v18 }
 0x5d5   :  { %v5021_v44 = vadd.f32 %v9852_v4, %v4953_v58 }
 0x5d8   :  { %v4752_v36 = vpop.f32.mrf.mxu0 }
 0x5d9   :  { %v4886_v56 = vadd.f32 %v4752_v36, %v9655_v8  ;;  %v4434_v8 = vld [vmem:[#allocation2 + $0x371] sm:$0xff]  ;;  %v10041_v36 = vpop.f32.mrf.mxu2 }
 0x5da   :  { %v5197_v12 = vld [vmem:[#allocation3 + $0x60] ss:$2 sm:$0xff]  ;;  %v5229_v33 = vld [vmem:[#allocation3 + $0x61] ss:$2 sm:$0xff] }
 0x5db   :  { %7992 = vmatmul.msk.f32.gmra.mxu0 %vm97_vm1, %v4432_v32  ;;  %v5254_v10 = vmax.f32 %v5197_v12, %v5229_v33  ;;  %v4954_v14 = vmul.f32 %v9843_v13, %v4886_v56 }
 0x5dd   :  { %5312 = vst [vmem:[#allocation4 + $0xb0] sm:$0xff] %v5254_v10  ;;  %8019 = vmatmul.msk.f32.gmra.mxu1 %vm5357_vm4, %v5254_v10  ;;  %v5022_v37 = vadd.f32 %v9852_v4, %v4954_v14  ;;  %v4435_v10 = vld [vmem:[#allocation2 + $0x389] sm:$0xff] }
 0x5de   :  { %v4437_v14 = vld [vmem:[#allocation2 + $0x3a9] sm:$0xff] }
 0x5df   :  { %v5086_v12 = vmax.f32 %v5022_v37, 0.0 }
 0x5e0   :  { %v4755_v6 = vpop.f32.mrf.mxu0 }
 0x5e1   :  { %v4887_v15 = vadd.f32 %v4755_v6, %v9662_v25  ;;  %v5085_v25 = vmax.f32 %v5021_v44, 0.0  ;;  %v10047_v6 = vpop.f32.mrf.mxu1 }
 0x5e3   :  { %v4955_v21 = vmul.f32 %v9843_v13, %v4887_v15  ;;  %7993 = vmatmul.msk.f32.gmra.mxu0 %vm97_vm1, %v4433_v16  ;;  %v4436_v15 = vld [vmem:[#allocation2 + $0x391] sm:$0xff] }
 0x5e4   :  { %v5329_v17 = vld [vmem:[#allocation4 + $0xaf] sm:$0xff] }
 0x5e5   :  { %v5591_v26 = vld [vmem:[#allocation4 + $0xb1] sm:$0xff]  ;;  %v5023_v27 = vadd.f32 %v9852_v4, %v4955_v21  ;;  %8035 = vmatmul.msk.f32.gmra.mxu2 %vm5357_vm4, %v5329_v17  ;;  %v5592_v17 = vld [vmem:[#allocation4 + $0xf9] sm:$0xff] }
 0x5e6   :  { %8052 = vmatmul.msk.f32.gmra.mxu3 %vm5357_vm4, %v5591_v26  ;;  %v10055_v26 = vpop.f32.mrf.mxu3 }
 0x5e7   :  { %v5087_v31 = vmax.f32 %v5023_v27, 0.0 }
 0x5e8   :  { %v4758_v45 = vpop.f32.mrf.mxu0 }
 0x5e9   :  { %v5135_v54 = vmax.f32 %v5085_v25, %v5087_v31  ;;  %v4888_v23 = vadd.f32 %v4758_v45, %v9669_v40  ;;  %v5347_v40 = vld [vmem:[#allocation4 + $0xf8] sm:$0xff] }
 0x5ea   :  { %8020 = vmatmul.msk.f32.gmra.mxu1 %vm5357_vm4, %v5347_v40 }
 0x5eb   :  { %5167 = vst [vmem:[#allocation3 + $0x70] sm:$0xff] %v5135_v54  ;;  %v4956_v60 = vmul.f32 %v9843_v13, %v4888_v23  ;;  %7994 = vmatmul.msk.f32.gmra.mxu0 %vm97_vm1, %v4434_v8 }
 0x5ed   :  { %v5024_v32 = vadd.f32 %v9852_v4, %v4956_v60  ;;  %8036 = vmatmul.msk.f32.gmra.mxu2 %vm5357_vm4, %v9835_v34 }
 0x5ee   :  { %8053 = vmatmul.msk.f32.gmra.mxu3 %vm5357_vm4, %v5592_v17 }
 0x5ef   :  { %v5088_v33 = vmax.f32 %v5024_v32, 0.0 }
 0x5f0   :  { %v4761_v18 = vpop.f32.mrf.mxu0 }
 0x5f1   :  { %v5136_v58 = vmax.f32 %v5086_v12, %v5088_v33  ;;  %v4889_v21 = vadd.f32 %v4761_v18, %v9676_v57  ;;  %v4438_v12 = vld [vmem:[#allocation2 + $0x3b1] sm:$0xff] }
 0x5f3   :  { %5168 = vst [vmem:[#allocation3 + $0x78] sm:$0xff] %v5136_v58  ;;  %7995 = vmatmul.msk.f32.gmra.mxu0 %vm97_vm1, %v4435_v10  ;;  %v4957_v27 = vmul.f32 %v9843_v13, %v4889_v21  ;;  %v4440_v21 = vld [vmem:[#allocation2 + $0x3d1] sm:$0xff] }
 0x5f5   :  { %v5025_v45 = vadd.f32 %v9852_v4, %v4957_v27 }
 0x5f7   :  { %v5089_v23 = vmax.f32 %v5025_v45, 0.0 }
 0x5f8   :  { %v4764_v16 = vpop.f32.mrf.mxu0 }
 0x5f9   :  { %v4890_v57 = vadd.f32 %v4764_v16, %v9683_v43 }
 0x5fa   :  { %v5199_v44 = vld [vmem:[#allocation3 + $0x70] ss:$2 sm:$0xff]  ;;  %v5231_v56 = vld [vmem:[#allocation3 + $0x71] ss:$2 sm:$0xff] }
 0x5fb   :  { %7996 = vmatmul.msk.f32.gmra.mxu0 %vm97_vm1, %v4436_v15  ;;  %v10052_v34 = vmax.f32 %v5199_v44, %v5231_v56  ;;  %v4958_v37 = vmul.f32 %v9843_v13, %v4890_v57  ;;  %v4439_v15 = vld [vmem:[#allocation2 + $0x3c9] sm:$0xff] }
 0x5fc   :  { %v4441_v57 = vld [vmem:[#allocation2 + $0x3e9] sm:$0xff] }
 0x5fd   :  { %5313 = vst [vmem:[#allocation4 + $0xc8] sm:$0xff] %v10052_v34 }
 0x600   :  { %v4767_v25 = vpop.f32.mrf.mxu0 }
 0x601   :  { %v4891_v31 = vadd.f32 %v4767_v25, %v9690_v55  ;;  %v5026_v55 = vadd.f32 %v9852_v4, %v4958_v37 }
 0x603   :  { %v4959_v8 = vmul.f32 %v9843_v13, %v4891_v31  ;;  %7997 = vmatmul.msk.f32.gmra.mxu0 %vm97_vm1, %v4437_v14  ;;  %v5090_v58 = vmax.f32 %v5026_v55, 0.0  ;;  %v10076_v14 = vpop.f32.mrf.mxu1 }
 0x605   :  { %v5027_v54 = vadd.f32 %v9852_v4, %v4959_v8 }
 0x607   :  { %v5091_v60 = vmax.f32 %v5027_v54, 0.0 }
 0x608   :  { %v4770_v32 = vpop.f32.mrf.mxu0 }
 0x609   :  { %v5137_v33 = vmax.f32 %v5089_v23, %v5091_v60  ;;  %v4892_v18 = vadd.f32 %v4770_v32, %v9697_v38  ;;  %v10091_v32 = vpop.f32.mrf.mxu2 }
 0x60b   :  { %5169 = vst [vmem:[#allocation3 + $0x80] sm:$0xff] %v5137_v33  ;;  %v4960_v43 = vmul.f32 %v9843_v13, %v4892_v18  ;;  %7998 = vmatmul.msk.f32.gmra.mxu0 %vm97_vm1, %v4438_v12  ;;  %v10093_v12 = vpop.f32.mrf.mxu3 }
 0x60d   :  { %v5028_v10 = vadd.f32 %v9852_v4, %v4960_v43  ;;  %v4442_v43 = vld [vmem:[#allocation2 + $0x3f1] sm:$0xff] }
 0x60f   :  { %v5092_v40 = vmax.f32 %v5028_v10, 0.0 }
 0x610   :  { %v4773_v16 = vpop.f32.mrf.mxu0 }
 0x611   :  { %v5138_v44 = vmax.f32 %v5090_v58, %v5092_v40  ;;  %v4893_v27 = vadd.f32 %v4773_v16, %v9704_v29 }
 0x613   :  { %5170 = vst [vmem:[#allocation3 + $0x88] sm:$0xff] %v5138_v44  ;;  %7999 = vmatmul.msk.f32.gmra.mxu0 %vm97_vm1, %v4439_v15  ;;  %v4961_v31 = vmul.f32 %v9843_v13, %v4893_v27  ;;  %v2760_v44 = vadd.f32 %v9724_v39, %v9279_v35  ;;  %v4444_v35 = vld [vmem:[#allocation2 + $0x411] sm:$0xff]  ;;  %v11714_v39 = vld [vmem:[#allocation53_spill] sm:$0xff] }
 0x615   :  { %v5029_v54 = vadd.f32 %v9852_v4, %v4961_v31  ;;  %v3294_v31 = vadd.f32 %v9830_v1, %v2760_v44 }
 0x618   :  { %v4776_v56 = vpop.f32.mrf.mxu0 }
 0x619   :  { %v4894_v29 = vadd.f32 %v4776_v56, %v9711_v48  ;;  %v5093_v48 = vmax.f32 %v5029_v54, 0.0 }
 0x61a   :  { %v5201_v38 = vld [vmem:[#allocation3 + $0x80] ss:$2 sm:$0xff]  ;;  %v5233_v17 = vld [vmem:[#allocation3 + $0x81] ss:$2 sm:$0xff] }
 0x61b   :  { %8000 = vmatmul.msk.f32.gmra.mxu0 %vm97_vm1, %v4440_v21  ;;  %v10074_v25 = vmax.f32 %v5201_v38, %v5233_v17  ;;  %v4443_v17 = vld [vmem:[#allocation2 + $0x409] sm:$0xff] }
 0x61d   :  { %5314 = vst [vmem:[#allocation4 + $0x110] sm:$0xff] %v10074_v25  ;;  %8021 = vmatmul.msk.f32.gmra.mxu1 %vm5357_vm4, %v10074_v25 }
 0x620   :  { %v4779_v45 = vpop.f32.mrf.mxu0 }
 0x621   :  { %v4895_v8 = vadd.f32 %v4779_v45, %v9718_v62  ;;  %v4962_v62 = vmul.f32 %v9843_v13, %v4894_v29  ;;  %v2762_v45 = vadd.f32 %v9738_v59, %v9299_v5  ;;  %v11715_v59 = vld [vmem:[#allocation10_spill] sm:$0xff] }
 0x623   :  { %v4963_v23 = vmul.f32 %v9843_v13, %v4895_v8  ;;  %8001 = vmatmul.msk.f32.gmra.mxu0 %vm97_vm1, %v4441_v57  ;;  %v5030_v40 = vadd.f32 %v9852_v4, %v4962_v62  ;;  %v11712_v57 = vld [vmem:[#allocation9_spill] sm:$0xff]  ;;  %v11713_v8 = vld [vmem:[#allocation31_spill] sm:$0xff] }
 0x624   :  { %v10087_v37 = vld [vmem:[#allocation4 + $0x10f] sm:$0xff]  ;;  %v2761_v54 = vadd.f32 %v11713_v8, %v11712_v57 }
 0x625   :  { %v10089_v60 = vld [vmem:[#allocation4 + $0x111] sm:$0xff]  ;;  %v5031_v33 = vadd.f32 %v9852_v4, %v4963_v23  ;;  %8037 = vmatmul.msk.f32.gmra.mxu2 %vm5357_vm4, %v10087_v37  ;;  %v5094_v56 = vmax.f32 %v5030_v40, 0.0  ;;  %v4445_v40 = vld [vmem:[#allocation2 + $0x429] sm:$0xff] }
 0x626   :  { %8054 = vmatmul.msk.f32.gmra.mxu3 %vm5357_vm4, %v10089_v60  ;;  %v3295_v1 = vadd.f32 %v9870_v46, %v2761_v54  ;;  %v4446_v8 = vld [vmem:[#allocation2 + $0x431] sm:$0xff] }
 0x627   :  { %v5095_v18 = vmax.f32 %v5031_v33, 0.0  ;;  %v3296_v33 = vadd.f32 %v9895_v52, %v2762_v45 }
 0x628   :  { %v4782_v55 = vpop.f32.mrf.mxu0  ;;  %v3830_v5 = vadd.f32 %v9879_v53, %v3295_v1 }
 0x629   :  { %v5139_v10 = vmax.f32 %v5093_v48, %v5095_v18  ;;  %v4896_v58 = vadd.f32 %v4782_v55, %v9726_v0  ;;  %v3829_v0 = vadd.f32 %v9832_v49, %v3294_v31  ;;  %v3831_v18 = vadd.f32 %v9904_v7, %v3296_v33  ;;  %v10144_v31 = vpop.f32.mrf.mxu3  ;;  %v11717_v33 = vld [vmem:[#allocation11_spill] sm:$0xff] }
 0x62b   :  { %5171 = vst [vmem:[#allocation3 + $0x90] sm:$0xff] %v5139_v10  ;;  %v4964_v16 = vmul.f32 %v9843_v13, %v4896_v58  ;;  %8002 = vmatmul.msk.f32.gmra.mxu0 %vm97_vm1, %v4442_v43  ;;  %v4363_v23 = vadd.f32 %v11714_v39, %v3829_v0  ;;  %v11716_v43 = vld [vmem:[#allocation32_spill] sm:$0xff]  ;;  %v10125_v58 = vpop.f32.mrf.mxu1  ;;  %v4365_v46 = vadd.f32 %v9906_v9, %v3831_v18 }
 0x62c   :  { %v2763_v10 = vadd.f32 %v11716_v43, %v11715_v59 }
 0x62d   :  { %v5032_v15 = vadd.f32 %v9852_v4, %v4964_v16  ;;  %v4364_v16 = vadd.f32 %v9881_v22, %v3830_v5 }
 0x62e   :  { %v3297_v53 = vadd.f32 %v9920_v20, %v2763_v10  ;;  %v11720_v10 = vld [vmem:[#allocation35_spill] sm:$0xff] }
 0x62f   :  { %v5096_v21 = vmax.f32 %v5032_v15, 0.0 }
 0x630   :  { %v4785_v38 = vpop.f32.mrf.mxu0  ;;  %v3832_v44 = vadd.f32 %v9929_v63, %v3297_v53 }
 0x631   :  { %v5140_v27 = vmax.f32 %v5094_v56, %v5096_v21  ;;  %v4897_v55 = vadd.f32 %v4785_v38, %v4363_v23 }
 0x632   :  { %v4366_v20 = vadd.f32 %v9931_v2, %v3832_v44 }
 0x633   :  { %5172 = vst [vmem:[#allocation3 + $0x98] sm:$0xff] %v5140_v27  ;;  %8003 = vmatmul.msk.f32.gmra.mxu0 %vm97_vm1, %v4443_v17  ;;  %v4965_v52 = vmul.f32 %v9843_v13, %v4897_v55  ;;  %v10142_v27 = vpop.f32.mrf.mxu2  ;;  %v4447_v55 = vld [vmem:[#allocation2 + $0x449] sm:$0xff] }
 0x635   :  { %v5033_v56 = vadd.f32 %v9852_v4, %v4965_v52  ;;  %v11721_v52 = vld [vmem:[#allocation12_spill] sm:$0xff] }
 0x637   :  { %v5097_v63 = vmax.f32 %v5033_v56, 0.0 }
 0x638   :  { %v4788_v29 = vpop.f32.mrf.mxu0 }
 0x639   :  { %v4898_v21 = vadd.f32 %v4788_v29, %v4364_v16  ;;  %v4448_v16 = vld [vmem:[#allocation2 + $0x451] sm:$0xff] }
 0x63a   :  { %v5203_v48 = vld [vmem:[#allocation3 + $0x90] ss:$2 sm:$0xff]  ;;  %v5235_v62 = vld [vmem:[#allocation3 + $0x91] ss:$2 sm:$0xff] }
 0x63b   :  { %8004 = vmatmul.msk.f32.gmra.mxu0 %vm97_vm1, %v4444_v35  ;;  %v10120_v49 = vmax.f32 %v5203_v48, %v5235_v62  ;;  %v4966_v0 = vmul.f32 %v9843_v13, %v4898_v21  ;;  %v11718_v48 = vld [vmem:[#allocation33_spill] sm:$0xff] }
 0x63c   :  { %v2764_v2 = vadd.f32 %v11718_v48, %v11717_v33  ;;  %v10203_v48 = vpop.f32.mrf.mxu3 }
 0x63d   :  { %5315 = vst [vmem:[#allocation4 + $0x128] sm:$0xff] %v10120_v49  ;;  %8022 = vmatmul.msk.f32.gmra.mxu1 %vm5357_vm4, %v10120_v49  ;;  %v5034_v35 = vadd.f32 %v9852_v4, %v4966_v0 }
 0x63e   :  { %v3298_v59 = vadd.f32 %v9945_v61, %v2764_v2 }
 0x63f   :  { %v5098_v62 = vmax.f32 %v5034_v35, 0.0 }
 0x640   :  { %v4791_v7 = vpop.f32.mrf.mxu0  ;;  %v3833_v43 = vadd.f32 %v9954_v24, %v3298_v59  ;;  %v4450_v59 = vld [vmem:[#allocation2 + $0x471] sm:$0xff] }
 0x641   :  { %v4899_v15 = vadd.f32 %v4791_v7, %v4365_v46 }
 0x642   :  { %v4367_v53 = vadd.f32 %v9956_v11, %v3833_v43 }
 0x643   :  { %v4967_v38 = vmul.f32 %v9843_v13, %v4899_v15  ;;  %8005 = vmatmul.msk.f32.gmra.mxu0 %vm97_vm1, %v4445_v40 }
 0x644   :  { %v10138_v17 = vld [vmem:[#allocation4 + $0x127] sm:$0xff] }
 0x645   :  { %v10140_v9 = vld [vmem:[#allocation4 + $0x129] sm:$0xff]  ;;  %v5035_v22 = vadd.f32 %v9852_v4, %v4967_v38  ;;  %8038 = vmatmul.msk.f32.gmra.mxu2 %vm5357_vm4, %v10138_v17 }
 0x646   :  { %8055 = vmatmul.msk.f32.gmra.mxu3 %vm5357_vm4, %v10140_v9 }
 0x647   :  { %v5099_v45 = vmax.f32 %v5035_v22, 0.0 }
 0x648   :  { %v4794_v57 = vpop.f32.mrf.mxu0 }
 0x649   :  { %v5141_v54 = vmax.f32 %v5097_v63, %v5099_v45  ;;  %v4900_v29 = vadd.f32 %v4794_v57, %v4366_v20  ;;  %v11723_v20 = vld [vmem:[#allocation14_spill] sm:$0xff]  ;;  %v11724_v63 = vld [vmem:[#allocation36_spill] sm:$0xff]  ;;  %v10176_v45 = vpop.f32.mrf.mxu1 }
 0x64a   :  { %v2767_v0 = vadd.f32 %v11724_v63, %v11723_v20  ;;  %v11727_v63 = vld [vmem:[#allocation17_spill] sm:$0xff] }
 0x64b   :  { %5173 = vst [vmem:[#allocation3 + $0xa0] sm:$0xff] %v5141_v54  ;;  %v4968_v39 = vmul.f32 %v9843_v13, %v4900_v29  ;;  %8006 = vmatmul.msk.f32.gmra.mxu0 %vm97_vm1, %v4446_v8  ;;  %v11719_v13 = vld [vmem:[#allocation13_spill] sm:$0xff] }
 0x64c   :  { %v2766_v46 = vadd.f32 %v11720_v10, %v11719_v13  ;;  %v3301_v8 = vadd.f32 %v10020_v51, %v2767_v0  ;;  %v3750_v51 = vpop.f32.mrf.mxu2  ;;  %v11728_v0 = vld [vmem:[#allocation39_spill] sm:$0xff] }
 0x64d   :  { %v5036_v23 = vadd.f32 %v9852_v4, %v4968_v39  ;;  %v11722_v4 = vld [vmem:[#allocation34_spill] sm:$0xff] }
 0x64e   :  { %v2765_v7 = vadd.f32 %v11722_v4, %v11721_v52  ;;  %v3300_v15 = vadd.f32 %v9995_v42, %v2766_v46  ;;  %v3836_v29 = vadd.f32 %v10025_v41, %v3301_v8  ;;  %v11726_v4 = vld [vmem:[#allocation37_spill] sm:$0xff] }
 0x64f   :  { %v5100_v1 = vmax.f32 %v5036_v23, 0.0 }
 0x650   :  { %v4797_v18 = vpop.f32.mrf.mxu0  ;;  %v3299_v61 = vadd.f32 %v9970_v50, %v2765_v7  ;;  %v3835_v21 = vadd.f32 %v10004_v47, %v3300_v15  ;;  %v10185_v50 = vld [vmem:[%s11657_s2] ss:$0 sm:$0xff]  ;;  %v4449_v47 = vld [vmem:[#allocation2 + $0x469] sm:$0xff]  ;;  %v4370_v2 = vadd.f32 %v10031_v28, %v3836_v29  ;;  %v11725_v28 = vld [vmem:[#allocation15_spill] sm:$0xff] }
 0x651   :  { %v5142_v5 = vmax.f32 %v5098_v62, %v5100_v1  ;;  %v4901_v38 = vadd.f32 %v4797_v18, %v4367_v53  ;;  %v10211_v62 = vpop.f32.mrf.mxu1  ;;  %v2768_v7 = vadd.f32 %v11726_v4, %v11725_v28 }
 0x652   :  { %v3834_v22 = vadd.f32 %v9979_v30, %v3299_v61  ;;  %v4369_v11 = vadd.f32 %v10006_v19, %v3835_v21  ;;  %v10194_v19 = vld [vmem:[%s11658_s3] ss:$0 sm:$0xff]  ;;  %s8456_s3 = smov [#allocation6]  }
 0x653   :  { %5174 = vst [vmem:[#allocation3 + $0xa8] sm:$0xff] %v5142_v5  ;;  %8007 = vmatmul.msk.f32.gmra.mxu0 %vm97_vm1, %v4447_v55  ;;  %v4969_v42 = vmul.f32 %v10185_v50, %v4901_v38  ;;  %v3302_v61 = vadd.f32 %v10047_v6, %v2768_v7  ;;  %v8078_v21 = vld [vmem:[%s11659_s4 + $0x20] sm:$0xff]  ;;  %v8095_v38 = vld [vmem:[%s11659_s4 + $0x28] sm:$0xff]  ;;  %v2770_v6 = vadd.f32 %v11728_v0, %v11727_v63  ;;  %v11733_v0 = vld [vmem:[#allocation19_spill] sm:$0xff]  ;;  %s7407_s20 = sshll.u32 %s8456_s3, 4  ;;  %s7408_s20 = int_to_ptr.vmem [resolvable:$true] %s7407_s20 }
 0x654   :  { %v4368_v57 = vadd.f32 %v9981_v3, %v3834_v22  ;;  %v8061_v22 = vld [vmem:[%s11659_s4 + $0x18] sm:$0xff]  ;;  %5959 = vmatpush.msrb.mxu2 %v8078_v21  ;;  %6106 = vmatpush.msrb.mxu3 %v8095_v38 }
 0x655   :  { %v5037_v35 = vadd.f32 %v10194_v19, %v4969_v42  ;;  %v3837_v20 = vadd.f32 %v10041_v36, %v3302_v61  ;;  %5812 = vmatpush.msrb.mxu1 %v8061_v22  ;;  %v11729_v42 = vld [vmem:[#allocation16_spill] sm:$0xff] }
 0x657   :  { %v5101_v1 = vmax.f32 %v5037_v35, 0.0  ;;  %v4371_v8 = vadd.f32 %v10055_v26, %v3837_v20 }
 0x658   :  { %v4800_v40 = vpop.f32.mrf.mxu0 }
 0x659   :  { %v4902_v39 = vadd.f32 %v4800_v40, %v4368_v57  ;;  %v10220_v15 = vpop.f32.mrf.mxu1 }
 0x65a   :  { %v5205_v44 = vld [vmem:[#allocation3 + $0xa0] ss:$2 sm:$0xff]  ;;  %v5237_v56 = vld [vmem:[#allocation3 + $0xa1] ss:$2 sm:$0xff] }
 0x65b   :  { %8008 = vmatmul.msk.f32.gmra.mxu0 %vm97_vm1, %v4448_v16  ;;  %v10171_v24 = vmax.f32 %v5205_v44, %v5237_v56  ;;  %v4970_v18 = vmul.f32 %v10185_v50, %v4902_v39  ;;  %v10222_v56 = vpop.f32.mrf.mxu2 }
 0x65d   :  { %5316 = vst [vmem:[#allocation4 + $0x140] sm:$0xff] %v10171_v24  ;;  %8023 = vmatmul.msk.f32.gmra.mxu1 %vm5357_vm4, %v10171_v24  ;;  %v5038_v10 = vadd.f32 %v10194_v19, %v4970_v18 }
 0x65f   :  { %v5102_v40 = vmax.f32 %v5038_v10, 0.0 }
 0x660   :  { %v4803_v30 = vpop.f32.mrf.mxu0 }
 0x661   :  { %v4903_v54 = vadd.f32 %v4803_v30, %v4369_v11  ;;  %v10237_v11 = vpop.f32.mrf.mxu3  ;;  %v11730_v30 = vld [vmem:[#allocation38_spill] sm:$0xff] }
 0x663   :  { %v4971_v23 = vmul.f32 %v10185_v50, %v4903_v54  ;;  %8009 = vmatmul.msk.f32.gmra.mxu0 %vm97_vm1, %v4449_v47  ;;  %v2769_v47 = vadd.f32 %v11730_v30, %v11729_v42  ;;  %v3304_v54 = vadd.f32 %v10125_v58, %v2770_v6  ;;  %v11734_v6 = vld [vmem:[#allocation41_spill] sm:$0xff] }
 0x664   :  { %v10199_v33 = vld [vmem:[#allocation4 + $0x13f] sm:$0xff]  ;;  %v2772_v42 = vadd.f32 %v11734_v6, %v11733_v0 }
 0x665   :  { %v10201_v3 = vld [vmem:[#allocation4 + $0x141] sm:$0xff]  ;;  %v5039_v41 = vadd.f32 %v10194_v19, %v4971_v23  ;;  %8039 = vmatmul.msk.f32.gmra.mxu2 %vm5357_vm4, %v10199_v33  ;;  %v3303_v39 = vadd.f32 %v10076_v14, %v2769_v47  ;;  %v3839_v36 = vadd.f32 %v10142_v27, %v3304_v54  ;;  %v3224_v23 = vpop.f32.mrf.mxu1 }
 0x666   :  { %8056 = vmatmul.msk.f32.gmra.mxu3 %vm5357_vm4, %v10201_v3 }
 0x667   :  { %v5103_v55 = vmax.f32 %v5039_v41, 0.0  ;;  %v3838_v18 = vadd.f32 %v10091_v32, %v3303_v39  ;;  %v4373_v26 = vadd.f32 %v10144_v31, %v3839_v36  ;;  %v11735_v36 = vld [vmem:[#allocation21_spill] sm:$0xff] }
 0x668   :  { %v4806_v5 = vpop.f32.mrf.mxu0 }
 0x669   :  { %v5143_v43 = vmax.f32 %v5101_v1, %v5103_v55  ;;  %v4904_v13 = vadd.f32 %v4806_v5, %v4370_v2  ;;  %v3756_v1 = vpop.f32.mrf.mxu2  ;;  %v11731_v55 = vld [vmem:[#allocation18_spill] sm:$0xff]  ;;  %v11732_v5 = vld [vmem:[#allocation40_spill] sm:$0xff]  ;;  %v4290_v58 = vpop.f32.mrf.mxu3 }
 0x66b   :  { %5175 = vst [vmem:[#allocation3 + $0xb0] sm:$0xff] %v5143_v43  ;;  %v4972_v46 = vmul.f32 %v10185_v50, %v4904_v13  ;;  %8010 = vmatmul.msk.f32.gmra.mxu0 %vm97_vm1, %v4450_v59  ;;  %v2771_v59 = vadd.f32 %v11732_v5, %v11731_v55  ;;  %v4372_v43 = vadd.f32 %v10093_v12, %v3838_v18  ;;  %v11737_v55 = vld [vmem:[#allocation20_spill] sm:$0xff]  ;;  %v11738_v5 = vld [vmem:[#allocation42_spill] sm:$0xff] }
 0x66d   :  { %v5040_v52 = vadd.f32 %v10194_v19, %v4972_v46  ;;  %v3305_v13 = vadd.f32 %v10176_v45, %v2771_v59  ;;  %v3227_v31 = vpop.f32.mrf.mxu1  ;;  %v2773_v59 = vadd.f32 %v11738_v5, %v11737_v55  ;;  %v11741_v5 = vld [vmem:[#allocation23_spill] sm:$0xff] }
 0x66f   :  { %v5104_v16 = vmax.f32 %v5040_v52, 0.0  ;;  %v3840_v32 = vadd.f32 %v3750_v51, %v3305_v13 }
 0x670   :  { %v4809_v53 = vpop.f32.mrf.mxu0 }
 0x671   :  { %v5144_v44 = vmax.f32 %v5102_v40, %v5104_v16  ;;  %v4905_v41 = vadd.f32 %v4809_v53, %v4371_v8  ;;  %v3759_v12 = vpop.f32.mrf.mxu2  ;;  %v4374_v45 = vadd.f32 %v10203_v48, %v3840_v32  ;;  %v4293_v38 = vpop.f32.mrf.mxu3  ;;  %v3307_v32 = vadd.f32 %v10220_v15, %v2773_v59  ;;  %v11742_v59 = vld [vmem:[#allocation45_spill] sm:$0xff] }
 0x673   :  { %5176 = vst [vmem:[#allocation3 + $0xb8] sm:$0xff] %v5144_v44  ;;  %v4973_v14 = vmul.f32 %v10185_v50, %v4905_v41  ;;  %v11736_v41 = vld [vmem:[#allocation43_spill] sm:$0xff] }
 0x674   :  { %v2774_v18 = vadd.f32 %v11736_v41, %v11735_v36 }
 0x675   :  { %v5041_v46 = vadd.f32 %v10194_v19, %v4973_v14  ;;  %v10275_v30 = vpop.f32.mrf.mxu1 }
 0x677   :  { %v5105_v51 = vmax.f32 %v5041_v46, 0.0 }
 0x678   :  { %v4812_v57 = vpop.f32.mrf.mxu0 }
 0x679   :  { %v4906_v52 = vadd.f32 %v4812_v57, %v4372_v43  ;;  %v3762_v57 = vpop.f32.mrf.mxu2  ;;  %v3308_v43 = vadd.f32 %v3224_v23, %v2774_v18 }
 0x67a   :  { %v5207_v29 = vld [vmem:[#allocation3 + $0xb0] ss:$2 sm:$0xff]  ;;  %v5239_v35 = vld [vmem:[#allocation3 + $0xb1] ss:$2 sm:$0xff] }
 0x67b   :  { %v10245_v2 = vmax.f32 %v5207_v29, %v5239_v35  ;;  %v4974_v16 = vmul.f32 %v10185_v50, %v4906_v52  ;;  %v3306_v29 = vadd.f32 %v10211_v62, %v2772_v42  ;;  %v4296_v35 = vpop.f32.mrf.mxu3  ;;  %v3843_v46 = vadd.f32 %v3759_v12, %v3308_v43 }
 0x67d   :  { %5317 = vst [vmem:[#allocation4 + $0x158] sm:$0xff] %v10245_v2  ;;  %8024 = vmatmul.msk.f32.gmra.mxu1 %vm5357_vm4, %v10245_v2  ;;  %v5042_v22 = vadd.f32 %v10194_v19, %v4974_v16  ;;  %v3841_v39 = vadd.f32 %v10222_v56, %v3306_v29  ;;  %v10287_v62 = vpop.f32.mrf.mxu1  ;;  %v4377_v23 = vadd.f32 %v4293_v38, %v3843_v46  ;;  %v11743_v46 = vld [vmem:[#allocation25_spill] sm:$0xff] }
 0x67f   :  { %v5106_v48 = vmax.f32 %v5042_v22, 0.0 }
 0x680   :  { %v4815_v27 = vpop.f32.mrf.mxu0 }
 0x681   :  { %v4907_v10 = vadd.f32 %v4815_v27, %v4373_v26  ;;  %v8354_v26 = vld [vmem:[%s11662_s7 + $0x678] sm:$0xff]  ;;  %v4375_v27 = vadd.f32 %v10237_v11, %v3841_v39  ;;  %v3765_v13 = vpop.f32.mrf.mxu2 }
 0x682   :  { %7249 = vmatpush.msrb.mxu0 %v8354_v26 }
 0x683   :  { %v4975_v28 = vmul.f32 %v10185_v50, %v4907_v10  ;;  %v4299_v11 = vpop.f32.mrf.mxu3 }
 0x684   :  { %v10259_v4 = vld [vmem:[#allocation4 + $0x157] sm:$0xff] }
 0x685   :  { %v10261_v7 = vld [vmem:[#allocation4 + $0x159] sm:$0xff]  ;;  %v5043_v40 = vadd.f32 %v10194_v19, %v4975_v28  ;;  %8040 = vmatmul.msk.f32.gmra.mxu2 %vm5357_vm4, %v10259_v4  ;;  %v3236_v22 = vpop.f32.mrf.mxu1 }
 0x686   :  { %8057 = vmatmul.msk.f32.gmra.mxu3 %vm5357_vm4, %v10261_v7 }
 0x687   :  { %v5107_v53 = vmax.f32 %v5043_v40, 0.0  ;;  %v3842_v40 = vadd.f32 %v3756_v1, %v3307_v32 }
 0x688   :  { %v4818_v44 = vpop.f32.mrf.mxu0 }
 0x689   :  { %v5145_v61 = vmax.f32 %v5105_v51, %v5107_v53  ;;  %v4908_v21 = vadd.f32 %v4818_v44, %v4374_v45  ;;  %v11739_v45 = vld [vmem:[#allocation22_spill] sm:$0xff]  ;;  %v11740_v51 = vld [vmem:[#allocation44_spill] sm:$0xff]  ;;  %v3768_v0 = vpop.f32.mrf.mxu2 }
 0x68a   :  { %v2775_v16 = vadd.f32 %v11740_v51, %v11739_v45  ;;  %v11745_v45 = vld [vmem:[#allocation24_spill] sm:$0xff]  ;;  %v11746_v51 = vld [vmem:[#allocation46_spill] sm:$0xff] }
 0x68b   :  { %5177 = vst [vmem:[#allocation3 + $0xc0] sm:$0xff] %v5145_v61  ;;  %v4976_v20 = vmul.f32 %v10185_v50, %v4908_v21  ;;  %v4376_v61 = vadd.f32 %v4290_v58, %v3842_v40 }
 0x68c   :  { %v3309_v15 = vadd.f32 %v3227_v31, %v2775_v16  ;;  %v2777_v16 = vadd.f32 %v11746_v51, %v11745_v45 }
 0x68d   :  { %v5044_v63 = vadd.f32 %v10194_v19, %v4976_v20  ;;  %v3239_v41 = vpop.f32.mrf.mxu1 }
 0x68e   :  { %v3844_v21 = vadd.f32 %v3762_v57, %v3309_v15  ;;  %v4302_v57 = vpop.f32.mrf.mxu3 }
 0x68f   :  { %v5108_v47 = vmax.f32 %v5044_v63, 0.0 }
 0x690   :  { %v4821_v8 = vpop.f32.mrf.mxu0  ;;  %v4378_v58 = vadd.f32 %v4296_v35, %v3844_v21  ;;  %v2776_v35 = vadd.f32 %v11742_v59, %v11741_v5 }
 0x691   :  { %v5146_v54 = vmax.f32 %v5106_v48, %v5108_v47  ;;  %v4909_v52 = vadd.f32 %v4821_v8, %v4375_v27  ;;  %v3771_v55 = vpop.f32.mrf.mxu2 }
 0x693   :  { %5178 = vst [vmem:[#allocation3 + $0xc8] sm:$0xff] %v5146_v54  ;;  %v4977_v53 = vmul.f32 %v10185_v50, %v4909_v52  ;;  %v11744_v52 = vld [vmem:[#allocation47_spill] sm:$0xff] }
 0x694   :  { %v2778_v40 = vadd.f32 %v11744_v52, %v11743_v46 }
 0x695   :  { %v5045_v1 = vadd.f32 %v10194_v19, %v4977_v53  ;;  %v8353_v53 = vld [vmem:[%s11662_s7 + $0x670] sm:$0xff] }
 0x696   :  { %7250 = vmatpush.msrb.mxu0 %v8353_v53  ;;  %v11750_v53 = vld [vmem:[#allocation49_spill] sm:$0xff] }
 0x697   :  { %v5109_v31 = vmax.f32 %v5045_v1, 0.0 }
 0x698   :  { %v4824_v14 = vpop.f32.mrf.mxu0 }
 0x699   :  { %v4910_v20 = vadd.f32 %v4824_v14, %v4376_v61 }
 0x69a   :  { %v5209_v10 = vld [vmem:[#allocation3 + $0xc0] ss:$2 sm:$0xff]  ;;  %v5241_v56 = vld [vmem:[#allocation3 + $0xc1] ss:$2 sm:$0xff] }
 0x69b   :  { %v10290_v28 = vmax.f32 %v5209_v10, %v5241_v56  ;;  %v4978_v48 = vmul.f32 %v10185_v50, %v4910_v20  ;;  %v4305_v10 = vpop.f32.mrf.mxu3  ;;  %v3310_v56 = vadd.f32 %v10275_v30, %v2776_v35 }
 0x69d   :  { %5318 = vst [vmem:[#allocation4 + $0x170] sm:$0xff] %v10290_v28  ;;  %8025 = vmatmul.msk.f32.gmra.mxu1 %vm5357_vm4, %v10290_v28  ;;  %v5046_v39 = vadd.f32 %v10194_v19, %v4978_v48  ;;  %v3845_v32 = vadd.f32 %v3765_v13, %v3310_v56  ;;  %v3311_v13 = vadd.f32 %v10287_v62, %v2777_v16  ;;  %v11748_v48 = vld [vmem:[#allocation48_spill] sm:$0xff]  ;;  %v11749_v16 = vld [vmem:[#allocation27_spill] sm:$0xff] }
 0x69f   :  { %v5110_v26 = vmax.f32 %v5046_v39, 0.0  ;;  %v4379_v15 = vadd.f32 %v4299_v11, %v3845_v32 }
 0x6a0   :  { %v4827_v44 = vpop.f32.mrf.mxu0 }
 0x6a1   :  { %v4911_v12 = vadd.f32 %v4827_v44, %v4377_v23  ;;  %v3242_v23 = vpop.f32.mrf.mxu1  ;;  %v3774_v44 = vpop.f32.mrf.mxu2 }
 0x6a3   :  { %v4979_v63 = vmul.f32 %v10185_v50, %v4911_v12  ;;  %v3312_v12 = vadd.f32 %v3236_v22, %v2778_v40 }
 0x6a4   :  { %v10300_v6 = vld [vmem:[#allocation4 + $0x16f] sm:$0xff] }
 0x6a5   :  { %v10302_v42 = vld [vmem:[#allocation4 + $0x171] sm:$0xff]  ;;  %v5047_v38 = vadd.f32 %v10194_v19, %v4979_v63  ;;  %8041 = vmatmul.msk.f32.gmra.mxu2 %vm5357_vm4, %v10300_v6  ;;  %v3847_v1 = vadd.f32 %v3771_v55, %v3312_v12 }
 0x6a6   :  { %8058 = vmatmul.msk.f32.gmra.mxu3 %vm5357_vm4, %v10302_v42 }
 0x6a7   :  { %v5111_v47 = vmax.f32 %v5047_v38, 0.0  ;;  %v4308_v38 = vpop.f32.mrf.mxu3  ;;  %v4381_v11 = vadd.f32 %v4305_v10, %v3847_v1  ;;  %v8352_v1 = vld [vmem:[%s11662_s7 + $0x668] sm:$0xff] }
 0x6a8   :  { %v4830_v8 = vpop.f32.mrf.mxu0  ;;  %7251 = vmatpush.msrb.mxu0 %v8352_v1 }
 0x6a9   :  { %v5147_v54 = vmax.f32 %v5109_v31, %v5111_v47  ;;  %v4912_v29 = vadd.f32 %v4830_v8, %v4378_v58  ;;  %v3846_v58 = vadd.f32 %v3768_v0, %v3311_v13  ;;  %v11747_v31 = vld [vmem:[#allocation26_spill] sm:$0xff]  ;;  %v3777_v39 = vpop.f32.mrf.mxu2 }
 0x6aa   :  { %v2779_v47 = vadd.f32 %v11748_v48, %v11747_v31 }
 0x6ab   :  { %5179 = vst [vmem:[#allocation3 + $0xd0] sm:$0xff] %v5147_v54  ;;  %v4980_v36 = vmul.f32 %v10185_v50, %v4912_v29  ;;  %v4380_v54 = vadd.f32 %v4302_v57, %v3846_v58  ;;  %v11752_v58 = vld [vmem:[#allocation51_spill] sm:$0xff] }
 0x6ac   :  { %v3313_v62 = vadd.f32 %v3239_v41, %v2779_v47 }
 0x6ad   :  { %v5048_v18 = vadd.f32 %v10194_v19, %v4980_v36  ;;  %v3245_v36 = vpop.f32.mrf.mxu1 }
 0x6af   :  { %v5112_v14 = vmax.f32 %v5048_v18, 0.0  ;;  %v3848_v18 = vadd.f32 %v3774_v44, %v3313_v62  ;;  %v4311_v57 = vpop.f32.mrf.mxu3  ;;  %v2780_v44 = vadd.f32 %v11750_v53, %v11749_v16 }
 0x6b0   :  { %v4833_v27 = vpop.f32.mrf.mxu0 }
 0x6b1   :  { %v5148_v43 = vmax.f32 %v5110_v26, %v5112_v14  ;;  %v4913_v20 = vadd.f32 %v4833_v27, %v4379_v15  ;;  %v4382_v41 = vadd.f32 %v4308_v38, %v3848_v18  ;;  %v3780_v40 = vpop.f32.mrf.mxu2  ;;  %v3314_v13 = vadd.f32 %v3242_v23, %v2780_v44  ;;  %v11751_v38 = vld [vmem:[#allocation29_spill] sm:$0xff] }
 0x6b2   :  { %v2782_v31 = vadd.f32 %v11752_v58, %v11751_v38 }
 0x6b3   :  { %5180 = vst [vmem:[#allocation3 + $0xd8] sm:$0xff] %v5148_v43  ;;  %v4981_v22 = vmul.f32 %v10185_v50, %v4913_v20  ;;  %v3849_v20 = vadd.f32 %v3777_v39, %v3314_v13 }
 0x6b5   :  { %v5049_v0 = vadd.f32 %v10194_v19, %v4981_v22  ;;  %v3248_v45 = vpop.f32.mrf.mxu1  ;;  %v11754_v22 = vld [vmem:[#allocation50_spill] sm:$0xff]  ;;  %v4383_v62 = vadd.f32 %v4311_v57, %v3849_v20 }
 0x6b7   :  { %v5113_v14 = vmax.f32 %v5049_v0, 0.0  ;;  %v4314_v12 = vpop.f32.mrf.mxu3 }
 0x6b8   :  { %v4836_v61 = vpop.f32.mrf.mxu0 }
 0x6b9   :  { %v4914_v55 = vadd.f32 %v4836_v61, %v4380_v54  ;;  %v3783_v48 = vpop.f32.mrf.mxu2 }
 0x6ba   :  { %v5211_v21 = vld [vmem:[#allocation3 + $0xd0] ss:$2 sm:$0xff]  ;;  %v5243_v30 = vld [vmem:[#allocation3 + $0xd1] ss:$2 sm:$0xff] }
 0x6bb   :  { %v10324_v63 = vmax.f32 %v5211_v21, %v5243_v30  ;;  %v4982_v27 = vmul.f32 %v10185_v50, %v4914_v55 }
 0x6bd   :  { %5319 = vst [vmem:[#allocation4 + $0x188] sm:$0xff] %v10324_v63  ;;  %8026 = vmatmul.msk.f32.gmra.mxu1 %vm5357_vm4, %v10324_v63  ;;  %v5050_v46 = vadd.f32 %v10194_v19, %v4982_v27  ;;  %v3251_v47 = vpop.f32.mrf.mxu1  ;;  %v11756_v27 = vld [vmem:[#allocation52_spill] sm:$0xff] }
 0x6bf   :  { %v5114_v61 = vmax.f32 %v5050_v46, 0.0  ;;  %v4317_v18 = vpop.f32.mrf.mxu3 }
 0x6c0   :  { %v4839_v8 = vpop.f32.mrf.mxu0 }
 0x6c1   :  { %v4915_v29 = vadd.f32 %v4839_v8, %v4381_v11  ;;  %v11753_v11 = vld [vmem:[#allocation28_spill] sm:$0xff] }
 0x6c2   :  { %v2781_v8 = vadd.f32 %v11754_v22, %v11753_v11  ;;  %v8129_v22 = vld [vmem:[%s11659_s4 + $0x38] sm:$0xff] }
 0x6c3   :  { %v4983_v5 = vmul.f32 %v10185_v50, %v4915_v29  ;;  %v3316_v29 = vadd.f32 %v3248_v45, %v2782_v31  ;;  %6401 = vmatpush.msra.mxu2 %v8129_v22  ;;  %v8416_v22 = vld [vmem:[#allocation4 + $0x97] sm:$0xff] }
 0x6c4   :  { %v10334_v59 = vld [vmem:[#allocation4 + $0x187] sm:$0xff]  ;;  %v3315_v55 = vadd.f32 %v3245_v36, %v2781_v8 }
 0x6c5   :  { %v10336_v35 = vld [vmem:[#allocation4 + $0x189] sm:$0xff]  ;;  %v5051_v26 = vadd.f32 %v10194_v19, %v4983_v5  ;;  %8042 = vmatmul.msk.f32.gmra.mxu2 %vm5357_vm4, %v10334_v59  ;;  %v3851_v5 = vadd.f32 %v3783_v48, %v3316_v29  ;;  %v6025_v29 = vld [vmem:[#allocation4 + $0x21] sm:$0xff] }
 0x6c6   :  { %8059 = vmatmul.msk.f32.gmra.mxu3 %vm5357_vm4, %v10336_v35  ;;  %v3850_v39 = vadd.f32 %v3780_v40, %v3315_v55  ;;  %v8351_v55 = vld [vmem:[%s11662_s7 + $0x660] sm:$0xff] }
 0x6c7   :  { %v5115_v43 = vmax.f32 %v5051_v26, 0.0  ;;  %v4385_v57 = vadd.f32 %v4317_v18, %v3851_v5  ;;  %v4320_v44 = vpop.f32.mrf.mxu3  ;;  %v10390_v18 = vld [vmem:[#allocation4 + $0x37] sm:$0xff]  ;;  %7252 = vmatpush.msrb.mxu0 %v8351_v55  ;;  %v8419_v55 = vld [vmem:[#allocation4 + $0xaf] sm:$0xff] }
 0x6c8   :  { %v4842_v10 = vpop.f32.mrf.mxu0  ;;  %v4384_v46 = vadd.f32 %v4314_v12, %v3850_v39  ;;  %v5731_v12 = vld [vmem:[#allocation4 + $0x1f] sm:$0xff] }
 0x6c9   :  { %v5149_v56 = vmax.f32 %v5113_v14, %v5115_v43  ;;  %v4916_v32 = vadd.f32 %v4842_v10, %v4382_v41  ;;  %v11755_v14 = vld [vmem:[#allocation30_spill] sm:$0xff]  ;;  %v10363_v10 = vpop.f32.mrf.mxu1 }
 0x6ca   :  { %v2783_v43 = vadd.f32 %v11756_v27, %v11755_v14  ;;  %v10408_v14 = vld [vmem:[#allocation4 + $0x38] sm:$0xff] }
 0x6cb   :  { %5181 = vst [vmem:[#allocation3 + $0xe0] sm:$0xff] %v5149_v56  ;;  %v4984_v52 = vmul.f32 %v10185_v50, %v4916_v32  ;;  %v3786_v32 = vpop.f32.mrf.mxu2  ;;  %v10410_v27 = vld [vmem:[#allocation4 + $0x39] sm:$0xff] }
 0x6cd   :  { %v5052_v51 = vadd.f32 %v10194_v19, %v4984_v52  ;;  %v3317_v52 = vadd.f32 %v3251_v47, %v2783_v43  ;;  %v10416_v43 = vld [vmem:[#allocation4 + $0x4f] sm:$0xff] }
 0x6cf   :  { %v5116_v15 = vmax.f32 %v5052_v51, 0.0  ;;  %v3852_v51 = vadd.f32 %v3786_v32, %v3317_v52 }
 0x6d0   :  { %v4845_v21 = vpop.f32.mrf.mxu0 }
 0x6d1   :  { %v5150_v30 = vmax.f32 %v5114_v61, %v5116_v15  ;;  %v4917_v26 = vadd.f32 %v4845_v21, %v4383_v62  ;;  %v10379_v38 = vpop.f32.mrf.mxu1  ;;  %v5878_v62 = vld [vmem:[#allocation4 + $0x20] sm:$0xff] }
 0x6d3   :  { %5182 = vst [vmem:[#allocation3 + $0xe8] sm:$0xff] %v5150_v30  ;;  %v4985_v56 = vmul.f32 %v10185_v50, %v4917_v26  ;;  %v4386_v30 = vadd.f32 %v4320_v44, %v3852_v51  ;;  %v10386_v8 = vpop.f32.mrf.mxu2  ;;  %v10430_v51 = vld [vmem:[#allocation4 + $0x51] sm:$0xff] }
 0x6d5   :  { %v5053_v40 = vadd.f32 %v10194_v19, %v4985_v56 }
 0x6d7   :  { %v5117_v13 = vmax.f32 %v5053_v40, 0.0  ;;  %v10436_v40 = vld [vmem:[#allocation4 + $0x67] sm:$0xff] }
 0x6d8   :  { %v4848_v54 = vpop.f32.mrf.mxu0 }
 0x6d9   :  { %v4918_v16 = vadd.f32 %v4848_v54, %v4384_v46  ;;  %v10388_v54 = vpop.f32.mrf.mxu3  ;;  %v10406_v26 = vpop.f32.mrf.mxu1 }
 0x6da   :  { %v5213_v23 = vld [vmem:[#allocation3 + $0xe0] ss:$2 sm:$0xff]  ;;  %v5245_v0 = vld [vmem:[#allocation3 + $0xe1] ss:$2 sm:$0xff] }
 0x6db   :  { %v10356_v41 = vmax.f32 %v5213_v23, %v5245_v0  ;;  %v4986_v1 = vmul.f32 %v10185_v50, %v4918_v16  ;;  %v8112_v0 = vld [vmem:[%s11659_s4 + $0x30] sm:$0xff] }
 0x6dc   :  { %6254 = vmatpush.msra.mxu1 %v8112_v0 }
 0x6dd   :  { %5320 = vst [vmem:[#allocation4 + $0x1a0] sm:$0xff] %v10356_v41  ;;  %8027 = vmatmul.msk.f32.gmra.mxu1 %vm5357_vm4, %v10356_v41  ;;  %v5054_v47 = vadd.f32 %v10194_v19, %v4986_v1  ;;  %v8413_v1 = vld [vmem:[#allocation4 + $0x7f] sm:$0xff] }
 0x6e0   :  { %v4851_v36 = vpop.f32.mrf.mxu0 }
 0x6e1   :  { %v4919_v45 = vadd.f32 %v4851_v36, %v4385_v57  ;;  %v10418_v57 = vpop.f32.mrf.mxu2  ;;  %v10420_v56 = vpop.f32.mrf.mxu3 }
 0x6e2   :  { %v10424_v32 = vpop.f32.mrf.mxu1 }
 0x6e3   :  { %v4987_v53 = vmul.f32 %v10185_v50, %v4919_v45  ;;  %v10428_v45 = vld [vmem:[#allocation4 + $0x50] sm:$0xff] }
 0x6e4   :  { %v10368_v61 = vld [vmem:[#allocation4 + $0x19f] sm:$0xff] }
 0x6e5   :  { %v10370_v15 = vld [vmem:[#allocation4 + $0x1a1] sm:$0xff]  ;;  %v5055_v21 = vadd.f32 %v10194_v19, %v4987_v53  ;;  %8043 = vmatmul.msk.f32.gmra.mxu2 %vm5357_vm4, %v10368_v61  ;;  %8062 = vmatmul.msk.f32.vlgmr.msrb.gmra.mxu1 %vm5357_vm4, %v5731_v12  ;;  %v10449_v12 = vld [vmem:[#allocation4 + $0x69] sm:$0xff] }
 0x6e6   :  { %8060 = vmatmul.msk.f32.gmra.mxu3 %vm5357_vm4, %v10370_v15 }
 0x6e7   :  { %v5119_v20 = vmax.f32 %v5055_v21, 0.0  ;;  %v10447_v21 = vld [vmem:[#allocation4 + $0x68] sm:$0xff] }
 0x6e8   :  { %v4854_v58 = vpop.f32.mrf.mxu0 }
 0x6e9   :  { %v5151_v31 = vmax.f32 %v5117_v13, %v5119_v20  ;;  %v4920_v48 = vadd.f32 %v4854_v58, %v4386_v30  ;;  %v10439_v16 = vpop.f32.mrf.mxu2  ;;  %v10441_v53 = vpop.f32.mrf.mxu3  ;;  %v8414_v58 = vld [vmem:[#allocation4 + $0x80] sm:$0xff] }
 0x6ea   :  { %v10445_v44 = vpop.f32.mrf.mxu1 }
 0x6eb   :  { %5183 = vst [vmem:[#allocation3 + $0xf0] sm:$0xff] %v5151_v31  ;;  %v4988_v11 = vmul.f32 %v10185_v50, %v4920_v48  ;;  %v8146_v50 = vld [vmem:[%s11659_s4 + $0x40] sm:$0xff]  ;;  %v8350_v48 = vld [vmem:[%s11662_s7 + $0x658] sm:$0xff] }
 0x6ec   :  { %6548 = vmatpush.msra.mxu3 %v8146_v50  ;;  %v8415_v31 = vld [vmem:[#allocation4 + $0x81] sm:$0xff]  ;;  %7253 = vmatpush.msrb.mxu0 %v8350_v48 }
 0x6ed   :  { %v5056_v23 = vadd.f32 %v10194_v19, %v4988_v11  ;;  %8079 = vmatmul.msk.f32.vlgmr.msrb.gmra.mxu2 %vm5357_vm4, %v5878_v62  ;;  %8063 = vmatmul.msk.f32.gmra.mxu1 %vm5357_vm4, %v10390_v18  ;;  %v5118_v19 = vmax.f32 %v5054_v47, 0.0 }
 0x6ee   :  { %8096 = vmatmul.msk.f32.vlgmr.msrb.gmra.mxu3 %vm5357_vm4, %v6025_v29  ;;  %v8417_v29 = vld [vmem:[#allocation4 + $0x98] sm:$0xff] }
 0x6ef   :  { %v5120_v5 = vmax.f32 %v5056_v23, 0.0  ;;  %v8418_v23 = vld [vmem:[#allocation4 + $0x99] sm:$0xff] }
 0x6f1   :  { %v5152_v39 = vmax.f32 %v5118_v19, %v5120_v5  ;;  %v10455_v30 = vpop.f32.mrf.mxu2  ;;  %v10457_v13 = vpop.f32.mrf.mxu3  ;;  %v8420_v5 = vld [vmem:[#allocation4 + $0xb0] sm:$0xff] }
 0x6f2   :  { %v10460_v20 = vpop.f32.mrf.mxu1 }
 0x6f3   :  { %5184 = vst [vmem:[#allocation3 + $0xf8] sm:$0xff] %v5152_v39  ;;  %v8421_v39 = vld [vmem:[#allocation4 + $0xb1] sm:$0xff] }
 0x6f5   :  { %8080 = vmatmul.msk.f32.gmra.mxu2 %vm5357_vm4, %v10408_v14  ;;  %8064 = vmatmul.msk.f32.gmra.mxu1 %vm5357_vm4, %v10416_v43 }
 0x6f6   :  { %8097 = vmatmul.msk.f32.gmra.mxu3 %vm5357_vm4, %v10410_v27 }
 0x6f9   :  { %v10467_v47 = vpop.f32.mrf.mxu2  ;;  %v10469_v11 = vpop.f32.mrf.mxu3 }
 0x6fa   :  { %v5215_v36 = vld [vmem:[#allocation3 + $0xf0] ss:$2 sm:$0xff]  ;;  %v5247_v46 = vld [vmem:[#allocation3 + $0xf1] ss:$2 sm:$0xff]  ;;  %v10472_v62 = vpop.f32.mrf.mxu1 }
 0x6fb   :  { %v10426_v52 = vmax.f32 %v5215_v36, %v5247_v46  ;;  %v10485_v36 = vld [vmem:[#allocation4 + $0xc7] sm:$0xff] }
 0x6fd   :  { %11757 = vst [vmem:[#allocation9_spill] sm:$0xff] %v10426_v52  ;;  %8081 = vmatmul.msk.f32.gmra.mxu2 %vm5357_vm4, %v10428_v45  ;;  %8065 = vmatmul.msk.f32.gmra.mxu1 %vm5357_vm4, %v10436_v40 }
 0x6fe   :  { %8098 = vmatmul.msk.f32.gmra.mxu3 %vm5357_vm4, %v10430_v51  ;;  %5321 = vst [vmem:[#allocation4 + $0x1b8] sm:$0xff] %v10426_v52 }
 0x701   :  { %v10476_v50 = vpop.f32.mrf.mxu2  ;;  %v10478_v0 = vpop.f32.mrf.mxu3 }
 0x702   :  { %v10481_v19 = vpop.f32.mrf.mxu1 }
 0x705   :  { %8082 = vmatmul.msk.f32.gmra.mxu2 %vm5357_vm4, %v10447_v21  ;;  %8066 = vmatmul.msk.f32.gmra.mxu1 %vm5357_vm4, %v8413_v1 }
 0x706   :  { %8099 = vmatmul.msk.f32.gmra.mxu3 %vm5357_vm4, %v10449_v12 }
 0x709   :  { %v10487_v46 = vpop.f32.mrf.mxu2  ;;  %v10489_v1 = vpop.f32.mrf.mxu3 }
 0x70d   :  { %8083 = vmatmul.msk.f32.gmra.mxu2 %vm5357_vm4, %v8414_v58  ;;  %8067 = vmatmul.msk.f32.gmra.mxu1 %vm5357_vm4, %v8416_v22  ;;  %v10493_v58 = vpop.f32.mrf.mxu1 }
 0x70e   :  { %8100 = vmatmul.msk.f32.gmra.mxu3 %vm5357_vm4, %v8415_v31  ;;  %11758 = vst [vmem:[#allocation31_spill] sm:$0xff] %v10493_v58  ;;  %v10495_v31 = vld [vmem:[#allocation4 + $0xc9] sm:$0xff] }
 0x711   :  { %v10501_v48 = vpop.f32.mrf.mxu2  ;;  %v10503_v22 = vpop.f32.mrf.mxu3 }
 0x715   :  { %8084 = vmatmul.msk.f32.gmra.mxu2 %vm5357_vm4, %v8417_v29  ;;  %8068 = vmatmul.msk.f32.gmra.mxu1 %vm5357_vm4, %v8419_v55  ;;  %v10507_v29 = vpop.f32.mrf.mxu1 }
 0x716   :  { %8101 = vmatmul.msk.f32.gmra.mxu3 %vm5357_vm4, %v8418_v23  ;;  %11759 = vst [vmem:[#allocation53_spill] sm:$0xff] %v10507_v29 }
 0x719   :  { %v10516_v23 = vpop.f32.mrf.mxu2  ;;  %v10518_v55 = vpop.f32.mrf.mxu3 }
 0x71a   :  { %11760 = vst [vmem:[#allocation10_spill] sm:$0xff] %v10516_v23 }
 0x71b   :  { %11761 = vst [vmem:[#allocation32_spill] sm:$0xff] %v10518_v55  ;;  %v5537_v55 = vadd.f32 %v10386_v8, %v10363_v10  ;;  %v5540_v10 = vadd.f32 %v10418_v57, %v10379_v38  ;;  %v5543_v57 = vadd.f32 %v10439_v16, %v10406_v26  ;;  %v5546_v26 = vadd.f32 %v10455_v30, %v10424_v32 }
 0x71c   :  { %v5549_v32 = vadd.f32 %v10467_v47, %v10445_v44  ;;  %v5552_v44 = vadd.f32 %v10476_v50, %v10460_v20 }
 0x71d   :  { %8085 = vmatmul.msk.f32.gmra.mxu2 %vm5357_vm4, %v8420_v5  ;;  %8069 = vmatmul.msk.f32.gmra.mxu1 %vm5357_vm4, %v10485_v36 }
 0x71e   :  { %8102 = vmatmul.msk.f32.gmra.mxu3 %vm5357_vm4, %v8421_v39 }
 0x725   :  { %8086 = vmatmul.msk.f32.gmra.mxu2 %vm5357_vm4, %v10052_v34  ;;  %8070 = vmatmul.msk.f32.gmra.mxu1 %vm5357_vm4, %v10087_v37  ;;  %v8349_v34 = vld [vmem:[%s11662_s7 + $0x650] sm:$0xff]  ;;  %v10522_v37 = vpop.f32.mrf.mxu1 }
 0x726   :  { %8103 = vmatmul.msk.f32.gmra.mxu3 %vm5357_vm4, %v10495_v31  ;;  %7254 = vmatpush.msrb.mxu0 %v8349_v34  ;;  %11762 = vst [vmem:[#allocation11_spill] sm:$0xff] %v10522_v37 }
 0x72d   :  { %8087 = vmatmul.msk.f32.gmra.mxu2 %vm5357_vm4, %v10074_v25  ;;  %8071 = vmatmul.msk.f32.gmra.mxu1 %vm5357_vm4, %v10138_v17  ;;  %v10530_v25 = vpop.f32.mrf.mxu2  ;;  %v10534_v5 = vpop.f32.mrf.mxu1 }
 0x72e   :  { %8104 = vmatmul.msk.f32.gmra.mxu3 %vm5357_vm4, %v10089_v60  ;;  %11763 = vst [vmem:[#allocation33_spill] sm:$0xff] %v10530_v25  ;;  %v10532_v60 = vpop.f32.mrf.mxu3 }
 0x72f   :  { %11764 = vst [vmem:[#allocation13_spill] sm:$0xff] %v10532_v60  ;;  %v10597_v60 = vld [vmem:[#allocation4 + $0x1b9] sm:$0xff] }
 0x730   :  { %11765 = vst [vmem:[#allocation35_spill] sm:$0xff] %v10534_v5 }
 0x731   :  { %11775 = vst [vmem:[#allocation38_spill] sm:$0xff] %v10597_v60 }
 0x735   :  { %8088 = vmatmul.msk.f32.gmra.mxu2 %vm5357_vm4, %v10120_v49  ;;  %8072 = vmatmul.msk.f32.gmra.mxu1 %vm5357_vm4, %v10199_v33  ;;  %v10542_v49 = vpop.f32.mrf.mxu2 }
 0x736   :  { %8105 = vmatmul.msk.f32.gmra.mxu3 %vm5357_vm4, %v10140_v9  ;;  %11766 = vst [vmem:[#allocation12_spill] sm:$0xff] %v10542_v49  ;;  %v10544_v17 = vpop.f32.mrf.mxu3  ;;  %v10546_v9 = vpop.f32.mrf.mxu1 }
 0x737   :  { %11767 = vst [vmem:[#allocation34_spill] sm:$0xff] %v10544_v17 }
 0x738   :  { %11768 = vst [vmem:[#allocation14_spill] sm:$0xff] %v10546_v9 }
 0x73d   :  { %8089 = vmatmul.msk.f32.gmra.mxu2 %vm5357_vm4, %v10171_v24  ;;  %8073 = vmatmul.msk.f32.gmra.mxu1 %vm5357_vm4, %v10259_v4  ;;  %v10554_v24 = vpop.f32.mrf.mxu2 }
 0x73e   :  { %8106 = vmatmul.msk.f32.gmra.mxu3 %vm5357_vm4, %v10201_v3  ;;  %11769 = vst [vmem:[#allocation36_spill] sm:$0xff] %v10554_v24  ;;  %v10556_v3 = vpop.f32.mrf.mxu3  ;;  %v10558_v39 = vpop.f32.mrf.mxu1 }
 0x73f   :  { %11770 = vst [vmem:[#allocation15_spill] sm:$0xff] %v10556_v3  ;;  %v8348_v3 = vld [vmem:[%s11662_s7 + $0x648] sm:$0xff] }
 0x740   :  { %7255 = vmatpush.msrb.mxu0 %v8348_v3  ;;  %v10589_v3 = vld [vmem:[#allocation4 + $0x1b7] sm:$0xff] }
 0x745   :  { %8090 = vmatmul.msk.f32.gmra.mxu2 %vm5357_vm4, %v10245_v2  ;;  %8074 = vmatmul.msk.f32.gmra.mxu1 %vm5357_vm4, %v10300_v6  ;;  %v10566_v34 = vpop.f32.mrf.mxu2 }
 0x746   :  { %8107 = vmatmul.msk.f32.gmra.mxu3 %vm5357_vm4, %v10261_v7  ;;  %11771 = vst [vmem:[#allocation37_spill] sm:$0xff] %v10566_v34  ;;  %v10568_v9 = vpop.f32.mrf.mxu3  ;;  %v10570_v5 = vpop.f32.mrf.mxu1 }
 0x747   :  { %11772 = vst [vmem:[#allocation17_spill] sm:$0xff] %v10568_v9 }
 0x74d   :  { %8091 = vmatmul.msk.f32.gmra.mxu2 %vm5357_vm4, %v10290_v28  ;;  %8075 = vmatmul.msk.f32.gmra.mxu1 %vm5357_vm4, %v10334_v59  ;;  %v10581_v24 = vpop.f32.mrf.mxu2 }
 0x74e   :  { %8108 = vmatmul.msk.f32.gmra.mxu3 %vm5357_vm4, %v10302_v42  ;;  %v10583_v34 = vpop.f32.mrf.mxu3 }
 0x755   :  { %8092 = vmatmul.msk.f32.gmra.mxu2 %vm5357_vm4, %v10324_v63  ;;  %8076 = vmatmul.msk.f32.gmra.mxu1 %vm5357_vm4, %v10368_v61  ;;  %v10593_v17 = vpop.f32.mrf.mxu2 }
 0x756   :  { %8109 = vmatmul.msk.f32.gmra.mxu3 %vm5357_vm4, %v10336_v35  ;;  %11773 = vst [vmem:[#allocation39_spill] sm:$0xff] %v10593_v17  ;;  %v10595_v49 = vpop.f32.mrf.mxu3  ;;  %v5715_v17 = vadd.f32 %v10388_v54, %v5537_v55  ;;  %v8347_v54 = vld [vmem:[%s11662_s7 + $0x640] sm:$0xff] }
 0x757   :  { %11774 = vst [vmem:[#allocation16_spill] sm:$0xff] %v10595_v49  ;;  %7256 = vmatpush.msrb.mxu0 %v8347_v54  ;;  %v6324_v54 = vld [vmem:[#allocation4 + $0x98] sm:$0xff] }
 0x75a   :  { %v5468_v9 = vpop.f32.mrf.mxu1 }
 0x75d   :  { %8093 = vmatmul.msk.f32.gmra.mxu2 %vm5357_vm4, %v10356_v41  ;;  %8077 = vmatmul.msk.f32.gmra.mxu1 %vm5357_vm4, %v10589_v3 }
 0x75e   :  { %8110 = vmatmul.msk.f32.gmra.mxu3 %vm5357_vm4, %v10370_v15 }
 0x762   :  { %v5814_v37 = vpop.f32.mrf.mxu1 }
 0x765   :  { %8094 = vmatmul.msk.f32.gmra.mxu2 %vm5357_vm4, %v10426_v52  ;;  %8113 = vmatmul.msk.f32.vlgmr.msra.gmra.mxu1 %vm5357_vm4, %v10390_v18  ;;  %v5862_v18 = vadd.f32 %v5814_v37, %v5715_v17  ;;  %v6470_v17 = vld [vmem:[#allocation4 + $0x81] sm:$0xff] }
 0x766   :  { %8111 = vmatmul.msk.f32.gmra.mxu3 %vm5357_vm4, %v10597_v60 }
 0x768   :  { %v5581_v25 = vpop.f32.mrf.mxu2 }
 0x769   :  { %v5712_v29 = vpop.f32.mrf.mxu3  ;;  %v5582_v23 = vadd.f32 %v5581_v25, %v5468_v9 }
 0x76a   :  { %v5817_v49 = vpop.f32.mrf.mxu1 }
 0x76b   :  { %v10607_v58 = vadd.f32 %v5712_v29, %v5582_v23 }
 0x76d   :  { %8130 = vmatmul.msk.f32.vlgmr.msra.gmra.mxu2 %vm5357_vm4, %v10408_v14  ;;  %8114 = vmatmul.msk.f32.gmra.mxu1 %vm5357_vm4, %v10416_v43  ;;  %v5716_v14 = vadd.f32 %v10420_v56, %v5540_v10  ;;  %v5717_v56 = vadd.f32 %v10441_v53, %v5543_v57  ;;  %v6323_v53 = vld [vmem:[#allocation4 + $0x80] sm:$0xff] }
 0x76e   :  { %8147 = vmatmul.msk.f32.vlgmr.msra.gmra.mxu3 %vm5357_vm4, %v10410_v27 }
 0x76f   :  { %v5863_v38 = vadd.f32 %v5817_v49, %v5716_v14  ;;  %v6471_v14 = vld [vmem:[#allocation4 + $0x99] sm:$0xff] }
 0x770   :  { %v5961_v60 = vpop.f32.mrf.mxu2 }
 0x771   :  { %v6108_v52 = vpop.f32.mrf.mxu3  ;;  %v6009_v8 = vadd.f32 %v5961_v60, %v5862_v18 }
 0x772   :  { %v5820_v23 = vpop.f32.mrf.mxu1 }
 0x773   :  { %v10618_v29 = vadd.f32 %v6108_v52, %v6009_v8 }
 0x775   :  { %8131 = vmatmul.msk.f32.gmra.mxu2 %vm5357_vm4, %v10428_v45  ;;  %8115 = vmatmul.msk.f32.gmra.mxu1 %vm5357_vm4, %v10436_v40  ;;  %v6176_v45 = vld [vmem:[#allocation4 + $0x7f] sm:$0xff] }
 0x776   :  { %8148 = vmatmul.msk.f32.gmra.mxu3 %vm5357_vm4, %v10430_v51  ;;  %v5864_v51 = vadd.f32 %v5820_v23, %v5717_v56  ;;  %v6325_v56 = vld [vmem:[#allocation4 + $0xb0] sm:$0xff] }
 0x778   :  { %v5964_v27 = vpop.f32.mrf.mxu2 }
 0x779   :  { %v6111_v43 = vpop.f32.mrf.mxu3  ;;  %v6010_v52 = vadd.f32 %v5964_v27, %v5863_v38  ;;  %v6178_v38 = vld [vmem:[#allocation4 + $0xaf] sm:$0xff] }
 0x77a   :  { %v5823_v37 = vpop.f32.mrf.mxu1 }
 0x77b   :  { %v10632_v55 = vadd.f32 %v6111_v43, %v6010_v52 }
 0x77d   :  { %8132 = vmatmul.msk.f32.gmra.mxu2 %vm5357_vm4, %v10447_v21  ;;  %8116 = vmatmul.msk.f32.gmra.mxu1 %vm5357_vm4, %v6176_v45  ;;  %v5718_v21 = vadd.f32 %v10457_v13, %v5546_v26  ;;  %v5719_v13 = vadd.f32 %v10469_v11, %v5549_v32  ;;  %v8346_v11 = vld [vmem:[%s11662_s7 + $0x638] sm:$0xff]  ;;  %v8424_v32 = vld [vmem:[#allocation4 + $0x127] sm:$0xff] }
 0x77e   :  { %8149 = vmatmul.msk.f32.gmra.mxu3 %vm5357_vm4, %v10449_v12  ;;  %v6177_v12 = vld [vmem:[#allocation4 + $0x97] sm:$0xff]  ;;  %7257 = vmatpush.msrb.mxu0 %v8346_v11 }
 0x77f   :  { %v5865_v9 = vadd.f32 %v5823_v37, %v5718_v21  ;;  %v6472_v45 = vld [vmem:[#allocation4 + $0xb1] sm:$0xff] }
 0x780   :  { %v5967_v40 = vpop.f32.mrf.mxu2 }
 0x781   :  { %v6114_v25 = vpop.f32.mrf.mxu3  ;;  %v6011_v16 = vadd.f32 %v5967_v40, %v5864_v51  ;;  %v5720_v51 = vadd.f32 %v10478_v0, %v5552_v44  ;;  %v8422_v0 = vld [vmem:[#allocation4 + $0xc8] sm:$0xff]  ;;  %v8427_v44 = vld [vmem:[#allocation4 + $0x140] sm:$0xff] }
 0x782   :  { %v5826_v49 = vpop.f32.mrf.mxu1 }
 0x783   :  { %v10642_v60 = vadd.f32 %v6114_v25, %v6011_v16  ;;  %v5866_v27 = vadd.f32 %v5826_v49, %v5719_v13  ;;  %v5555_v25 = vadd.f32 %v10487_v46, %v10472_v62  ;;  %v5558_v46 = vadd.f32 %v10501_v48, %v10481_v19  ;;  %v8425_v13 = vld [vmem:[#allocation4 + $0x128] sm:$0xff] }
 0x785   :  { %8133 = vmatmul.msk.f32.gmra.mxu2 %vm5357_vm4, %v6323_v53  ;;  %8117 = vmatmul.msk.f32.gmra.mxu1 %vm5357_vm4, %v6177_v12  ;;  %v5721_v53 = vadd.f32 %v10489_v1, %v5555_v25  ;;  %v6474_v1 = vld [vmem:[#allocation4 + $0xe1] sm:$0xff] }
 0x786   :  { %8150 = vmatmul.msk.f32.gmra.mxu3 %vm5357_vm4, %v6470_v17  ;;  %v10676_v17 = vld [vmem:[#allocation4 + $0x7] sm:$0xff] }
 0x788   :  { %v5970_v18 = vpop.f32.mrf.mxu2 }
 0x789   :  { %v6117_v10 = vpop.f32.mrf.mxu3  ;;  %v6012_v30 = vadd.f32 %v5970_v18, %v5865_v9  ;;  %v6327_v9 = vld [vmem:[#allocation4 + $0xe0] sm:$0xff] }
 0x78a   :  { %v5829_v23 = vpop.f32.mrf.mxu1 }
 0x78b   :  { %v10650_v8 = vadd.f32 %v6117_v10, %v6012_v30  ;;  %v5867_v20 = vadd.f32 %v5829_v23, %v5720_v51 }
 0x78d   :  { %8134 = vmatmul.msk.f32.gmra.mxu2 %vm5357_vm4, %v6324_v54  ;;  %8118 = vmatmul.msk.f32.gmra.mxu1 %vm5357_vm4, %v6178_v38  ;;  %v8426_v38 = vld [vmem:[#allocation4 + $0x129] sm:$0xff] }
 0x78e   :  { %8151 = vmatmul.msk.f32.gmra.mxu3 %vm5357_vm4, %v6471_v14 }
 0x790   :  { %v5973_v43 = vpop.f32.mrf.mxu2 }
 0x791   :  { %v6120_v57 = vpop.f32.mrf.mxu3  ;;  %v6013_v47 = vadd.f32 %v5973_v43, %v5866_v27 }
 0x792   :  { %v5832_v37 = vpop.f32.mrf.mxu1 }
 0x793   :  { %v10658_v52 = vadd.f32 %v6120_v57, %v6013_v47  ;;  %v8345_v57 = vld [vmem:[%s11662_s7 + $0x630] sm:$0xff]  ;;  %v8428_v47 = vld [vmem:[#allocation4 + $0x141] sm:$0xff] }
 0x794   :  { %7258 = vmatpush.msrb.mxu0 %v8345_v57 }
 0x795   :  { %8135 = vmatmul.msk.f32.gmra.mxu2 %vm5357_vm4, %v6325_v56  ;;  %8119 = vmatmul.msk.f32.gmra.mxu1 %vm5357_vm4, %v10485_v36  ;;  %v5868_v36 = vadd.f32 %v5832_v37, %v5721_v53  ;;  %v11778_v53 = vld [vmem:[#allocation9_spill] sm:$0xff] }
 0x796   :  { %8152 = vmatmul.msk.f32.gmra.mxu3 %vm5357_vm4, %v6472_v45 }
 0x798   :  { %v5976_v50 = vpop.f32.mrf.mxu2 }
 0x799   :  { %v6123_v40 = vpop.f32.mrf.mxu3  ;;  %v6014_v26 = vadd.f32 %v5976_v50, %v5867_v20  ;;  %v11776_v50 = vld [vmem:[#allocation39_spill] sm:$0xff] }
 0x79a   :  { %v5835_v49 = vpop.f32.mrf.mxu1 }
 0x79b   :  { %v10670_v16 = vadd.f32 %v6123_v40, %v6014_v26  ;;  %v5579_v40 = vadd.f32 %v11776_v50, %v10570_v5  ;;  %v11777_v26 = vld [vmem:[#allocation16_spill] sm:$0xff] }
 0x79c   :  { %v8191_v50 = vld [vmem:[%s11662_s7 + $0x160] sm:$0xff] }
 0x79d   :  { %8136 = vmatmul.msk.f32.gmra.mxu2 %vm5357_vm4, %v8422_v0  ;;  %8120 = vmatmul.msk.f32.gmra.mxu1 %vm5357_vm4, %v10676_v17  ;;  %v11779_v0 = vld [vmem:[#allocation38_spill] sm:$0xff] }
 0x79e   :  { %8153 = vmatmul.msk.f32.gmra.mxu3 %vm5357_vm4, %v10495_v31  ;;  %v5722_v31 = vadd.f32 %v10503_v22, %v5558_v46 }
 0x7a0   :  { %v5979_v21 = vpop.f32.mrf.mxu2  ;;  %v5869_v30 = vadd.f32 %v5835_v49, %v5722_v31  ;;  %v5729_v49 = vadd.f32 %v11777_v26, %v5579_v40  ;;  %v6739_v31 = vld [vmem:[%s11662_s7 + $0x70] sm:$0xff]  ;;  %v8174_v26 = vld [vmem:[%s11662_s7 + $0xd8] sm:$0xff] }
 0x7a1   :  { %v6126_v62 = vpop.f32.mrf.mxu3  ;;  %v6015_v12 = vadd.f32 %v5979_v21, %v5868_v36 }
 0x7a2   :  { %v10684_v10 = vpop.f32.mrf.mxu1 }
 0x7a3   :  { %v10682_v18 = vadd.f32 %v6126_v62, %v6015_v12  ;;  %v6335_v12 = vld [vmem:[#allocation4 + $0x1d0] sm:$0xff] }
 0x7a5   :  { %8137 = vmatmul.msk.f32.gmra.mxu2 %vm5357_vm4, %v6327_v9  ;;  %8121 = vmatmul.msk.f32.gmra.mxu1 %vm5357_vm4, %v8424_v32  ;;  %v6482_v9 = vld [vmem:[#allocation4 + $0x1d1] sm:$0xff] }
 0x7a6   :  { %8154 = vmatmul.msk.f32.gmra.mxu3 %vm5357_vm4, %v6474_v1  ;;  %v8177_v32 = vld [vmem:[%s11662_s7 + $0xf0] sm:$0xff] }
 0x7a8   :  { %v5982_v23 = vpop.f32.mrf.mxu2 }
 0x7a9   :  { %v6129_v54 = vpop.f32.mrf.mxu3  ;;  %v6016_v19 = vadd.f32 %v5982_v23, %v5869_v30 }
 0x7aa   :  { %v10692_v14 = vpop.f32.mrf.mxu1 }
 0x7ab   :  { %v10690_v48 = vadd.f32 %v6129_v54, %v6016_v19  ;;  %v6738_v19 = vld [vmem:[%s11662_s7 + $0x68] sm:$0xff] }
 0x7ad   :  { %8138 = vmatmul.msk.f32.gmra.mxu2 %vm5357_vm4, %v8425_v13  ;;  %8122 = vmatmul.msk.f32.gmra.mxu1 %vm5357_vm4, %v10199_v33  ;;  %v8192_v13 = vld [vmem:[%s11662_s7 + $0x168] sm:$0xff] }
 0x7ae   :  { %8155 = vmatmul.msk.f32.gmra.mxu3 %vm5357_vm4, %v8426_v38  ;;  %v8176_v38 = vld [vmem:[%s11662_s7 + $0xe8] sm:$0xff] }
 0x7b0   :  { %v10698_v22 = vpop.f32.mrf.mxu2 }
 0x7b1   :  { %v10700_v27 = vpop.f32.mrf.mxu3 }
 0x7b2   :  { %v10702_v43 = vpop.f32.mrf.mxu1 }
 0x7b5   :  { %8139 = vmatmul.msk.f32.gmra.mxu2 %vm5357_vm4, %v8427_v44  ;;  %8123 = vmatmul.msk.f32.gmra.mxu1 %vm5357_vm4, %v10259_v4 }
 0x7b6   :  { %8156 = vmatmul.msk.f32.gmra.mxu3 %vm5357_vm4, %v8428_v47 }
 0x7b8   :  { %v10711_v33 = vpop.f32.mrf.mxu2 }
 0x7b9   :  { %v10713_v37 = vpop.f32.mrf.mxu3 }
 0x7ba   :  { %v10715_v11 = vpop.f32.mrf.mxu1 }
 0x7bd   :  { %8140 = vmatmul.msk.f32.gmra.mxu2 %vm5357_vm4, %v10245_v2  ;;  %8124 = vmatmul.msk.f32.gmra.mxu1 %vm5357_vm4, %v10300_v6 }
 0x7be   :  { %8157 = vmatmul.msk.f32.gmra.mxu3 %vm5357_vm4, %v10261_v7 }
 0x7c0   :  { %v10723_v56 = vpop.f32.mrf.mxu2 }
 0x7c1   :  { %v10725_v45 = vpop.f32.mrf.mxu3 }
 0x7c2   :  { %v10727_v4 = vpop.f32.mrf.mxu1 }
 0x7c5   :  { %8141 = vmatmul.msk.f32.gmra.mxu2 %vm5357_vm4, %v10290_v28  ;;  %8125 = vmatmul.msk.f32.gmra.mxu1 %vm5357_vm4, %v10334_v59  ;;  %v5576_v59 = vadd.f32 %v10581_v24, %v10558_v39  ;;  %v6740_v24 = vld [vmem:[%s11662_s7 + $0x78] sm:$0xff] }
 0x7c6   :  { %8158 = vmatmul.msk.f32.gmra.mxu3 %vm5357_vm4, %v10302_v42  ;;  %6787 = vmatpush.msrb.mxu2 %v6740_v24  ;;  %v8178_v39 = vld [vmem:[%s11662_s7 + $0xf8] sm:$0xff] }
 0x7c7   :  { %v5728_v20 = vadd.f32 %v10583_v34, %v5576_v59  ;;  %6764 = vmatpush.msrb.mxu1 %v8178_v39 }
 0x7c8   :  { %v10735_v2 = vpop.f32.mrf.mxu2  ;;  %6788 = vmatpush.msrb.mxu2 %v6739_v31 }
 0x7c9   :  { %v10737_v7 = vpop.f32.mrf.mxu3  ;;  %6765 = vmatpush.msrb.mxu1 %v8177_v32 }
 0x7ca   :  { %v5853_v6 = vpop.f32.mrf.mxu1  ;;  %6789 = vmatpush.msrb.mxu2 %v6738_v19  ;;  %v8188_v19 = vld [vmem:[%s11662_s7 + $0x148] sm:$0xff] }
 0x7cb   :  { %6766 = vmatpush.msrb.mxu1 %v8176_v38 }
 0x7cd   :  { %8142 = vmatmul.msk.f32.gmra.mxu2 %vm5357_vm4, %v10324_v63  ;;  %8126 = vmatmul.msk.f32.gmra.mxu1 %vm5357_vm4, %v10368_v61  ;;  %v5875_v63 = vadd.f32 %v5853_v6, %v5728_v20 }
 0x7ce   :  { %8159 = vmatmul.msk.f32.gmra.mxu3 %vm5357_vm4, %v10336_v35 }
 0x7d0   :  { %v10745_v28 = vpop.f32.mrf.mxu2 }
 0x7d1   :  { %v10747_v42 = vpop.f32.mrf.mxu3 }
 0x7d2   :  { %v5856_v51 = vpop.f32.mrf.mxu1 }
 0x7d3   :  { %v5876_v36 = vadd.f32 %v5856_v51, %v5729_v49 }
 0x7d5   :  { %8143 = vmatmul.msk.f32.gmra.mxu2 %vm5357_vm4, %v10356_v41  ;;  %8127 = vmatmul.msk.f32.gmra.mxu1 %vm5357_vm4, %v10589_v3  ;;  %v8344_v41 = vld [vmem:[%s11662_s7 + $0x628] sm:$0xff] }
 0x7d6   :  { %8160 = vmatmul.msk.f32.gmra.mxu3 %vm5357_vm4, %v10370_v15  ;;  %v8194_v15 = vld [vmem:[%s11662_s7 + $0x178] sm:$0xff]  ;;  %7259 = vmatpush.msrb.mxu0 %v8344_v41 }
 0x7d7   :  { %6828 = vmatpush.msrb.mxu3 %v8194_v15 }
 0x7d8   :  { %v6000_v35 = vpop.f32.mrf.mxu2 }
 0x7d9   :  { %v6147_v61 = vpop.f32.mrf.mxu3  ;;  %v6022_v25 = vadd.f32 %v6000_v35, %v5875_v63  ;;  %v10810_v63 = vld [vmem:[%s11660_s5] ss:$0 sm:$0xff] }
 0x7da   :  { %v5859_v34 = vpop.f32.mrf.mxu1 }
 0x7db   :  { %v10772_v5 = vadd.f32 %v6147_v61, %v6022_v25  ;;  %v5877_v3 = vadd.f32 %v5859_v34, %v10607_v58  ;;  %v6737_v61 = vld [vmem:[%s11662_s7 + $0x60] sm:$0xff]  ;;  %v6736_v34 = vld [vmem:[%s11662_s7 + $0x58] sm:$0xff] }
 0x7dc   :  { %6790 = vmatpush.msrb.mxu2 %v6737_v61  ;;  %v10825_v25 = vld [vmem:[%s11661_s6] ss:$0 sm:$0xff] }
 0x7dd   :  { %8144 = vmatmul.msk.f32.gmra.mxu2 %vm5357_vm4, %v11778_v53  ;;  %8128 = vmatmul.msk.f32.gmra.mxu1 %vm5357_vm4, %v10676_v17  ;;  %v8193_v17 = vld [vmem:[%s11662_s7 + $0x170] sm:$0xff] }
 0x7de   :  { %8161 = vmatmul.msk.f32.gmra.mxu3 %vm5357_vm4, %v11779_v0  ;;  %6791 = vmatpush.msrb.mxu2 %v6736_v34  ;;  %v6730_v34 = vld [vmem:[%s11662_s7 + $0x28] sm:$0xff] }
 0x7df   :  { %6829 = vmatpush.msrb.mxu3 %v8193_v17 }
 0x7e0   :  { %v6003_v21 = vpop.f32.mrf.mxu2 }
 0x7e1   :  { %v6150_v62 = vpop.f32.mrf.mxu3  ;;  %v6023_v46 = vadd.f32 %v6003_v21, %v5876_v36  ;;  %6830 = vmatpush.msrb.mxu3 %v8192_v13  ;;  %v8173_v21 = vld [vmem:[%s11662_s7 + $0xd0] sm:$0xff] }
 0x7e2   :  { %v6256_v58 = vpop.f32.mrf.mxu1 }
 0x7e3   :  { %v10782_v1 = vadd.f32 %v6150_v62, %v6023_v46  ;;  %v6304_v47 = vadd.f32 %v6256_v58, %v10618_v29  ;;  %v8175_v29 = vld [vmem:[%s11662_s7 + $0xe0] sm:$0xff]  ;;  %6831 = vmatpush.msrb.mxu3 %v8191_v50  ;;  %v8172_v58 = vld [vmem:[%s11662_s7 + $0xc8] sm:$0xff] }
 0x7e4   :  { %6767 = vmatpush.msrb.mxu1 %v8175_v29  ;;  %v8168_v50 = vld [vmem:[%s11662_s7 + $0xa8] sm:$0xff]  ;;  %v6731_v29 = vld [vmem:[%s11662_s7 + $0x30] sm:$0xff] }
 0x7e5   :  { %8145 = vmatmul.msk.f32.gmra.mxu2 %vm5357_vm4, %v6335_v12  ;;  %v6735_v12 = vld [vmem:[%s11662_s7 + $0x50] sm:$0xff] }
 0x7e6   :  { %8162 = vmatmul.msk.f32.gmra.mxu3 %vm5357_vm4, %v6482_v9  ;;  %6768 = vmatpush.msrb.mxu1 %v8174_v26  ;;  %v8189_v9 = vld [vmem:[%s11662_s7 + $0x150] sm:$0xff] }
 0x7e7   :  { %6792 = vmatpush.msrb.mxu2 %v6735_v12  ;;  %v8182_v12 = vld [vmem:[%s11662_s7 + $0x118] sm:$0xff] }
 0x7e8   :  { %v6006_v30 = vpop.f32.mrf.mxu2  ;;  %6769 = vmatpush.msrb.mxu1 %v8173_v21 }
 0x7e9   :  { %v6153_v23 = vpop.f32.mrf.mxu3  ;;  %v6024_v54 = vadd.f32 %v6006_v30, %v5877_v3  ;;  %v8343_v3 = vld [vmem:[%s11662_s7 + $0x620] sm:$0xff] }
 0x7ea   :  { %v6259_v44 = vpop.f32.mrf.mxu1  ;;  %7260 = vmatpush.msrb.mxu0 %v8343_v3  ;;  %6770 = vmatpush.msrb.mxu1 %v8172_v58  ;;  %v8184_v3 = vld [vmem:[%s11662_s7 + $0x128] sm:$0xff] }
 0x7eb   :  { %v10804_v57 = vadd.f32 %v6153_v23, %v6024_v54  ;;  %v6305_v40 = vadd.f32 %v6259_v44, %v10632_v55  ;;  %v8190_v55 = vld [vmem:[%s11662_s7 + $0x158] sm:$0xff]  ;;  %v6734_v54 = vld [vmem:[%s11662_s7 + $0x48] sm:$0xff] }
 0x7ec   :  { %6832 = vmatpush.msrb.mxu3 %v8190_v55  ;;  %6793 = vmatpush.msrb.mxu2 %v6734_v54  ;;  %v8170_v44 = vld [vmem:[%s11662_s7 + $0xb8] sm:$0xff] }
 0x7ee   :  { %6833 = vmatpush.msrb.mxu3 %v8189_v9 }
 0x7f0   :  { %v6403_v6 = vpop.f32.mrf.mxu2  ;;  %6834 = vmatpush.msrb.mxu3 %v8188_v19  ;;  %v8163_v19 = vld [vmem:[%s11662_s7 + $0x80] sm:$0xff] }
 0x7f1   :  { %v6550_v59 = vpop.f32.mrf.mxu3  ;;  %v6451_v51 = vadd.f32 %v6403_v6, %v6304_v47  ;;  %v6733_v47 = vld [vmem:[%s11662_s7 + $0x40] sm:$0xff] }
 0x7f2   :  { %v6262_v20 = vpop.f32.mrf.mxu1  ;;  %v8187_v6 = vld [vmem:[%s11662_s7 + $0x140] sm:$0xff]  ;;  %6794 = vmatpush.msrb.mxu2 %v6733_v47 }
 0x7f3   :  { %v6598_v35 = vadd.f32 %v6550_v59, %v6451_v51  ;;  %v6306_v46 = vadd.f32 %v6262_v20, %v10642_v60  ;;  %v8171_v60 = vld [vmem:[%s11662_s7 + $0xc0] sm:$0xff]  ;;  %6835 = vmatpush.msrb.mxu3 %v8187_v6  ;;  %v8169_v51 = vld [vmem:[%s11662_s7 + $0xb0] sm:$0xff]  ;;  %v6732_v20 = vld [vmem:[%s11662_s7 + $0x38] sm:$0xff] }
 0x7f4   :  { %6771 = vmatpush.msrb.mxu1 %v8171_v60  ;;  %6795 = vmatpush.msrb.mxu2 %v6732_v20  ;;  %v8209_v20 = vld [vmem:[%s11662_s7 + $0x1f0] sm:$0xff] }
 0x7f5   :  { %v6618_v15 = vmul.f32 %v10810_v63, %v6598_v35  ;;  %v8186_v35 = vld [vmem:[%s11662_s7 + $0x138] sm:$0xff] }
 0x7f6   :  { %6772 = vmatpush.msrb.mxu1 %v8170_v44  ;;  %6836 = vmatpush.msrb.mxu3 %v8186_v35  ;;  %v8210_v44 = vld [vmem:[%s11662_s7 + $0x1f8] sm:$0xff] }
 0x7f7   :  { %v6638_v0 = vadd.f32 %v10825_v25, %v6618_v15  ;;  %6796 = vmatpush.msrb.mxu2 %v6731_v29  ;;  %v8226_v35 = vld [vmem:[%s11662_s7 + $0x278] sm:$0xff]  ;;  %v8208_v29 = vld [vmem:[%s11662_s7 + $0x1e8] sm:$0xff] }
 0x7f8   :  { %v6406_v24 = vpop.f32.mrf.mxu2  ;;  %6773 = vmatpush.msrb.mxu1 %v8169_v51  ;;  %v8179_v51 = vld [vmem:[%s11662_s7 + $0x100] sm:$0xff] }
 0x7f9   :  { %v6553_v41 = vpop.f32.mrf.mxu3  ;;  %v6452_v39 = vadd.f32 %v6406_v24, %v6305_v40  ;;  %v6654_v32 = vmax.f32 %v6638_v0, 0.0  ;;  %v8185_v40 = vld [vmem:[%s11662_s7 + $0x130] sm:$0xff]  ;;  %6797 = vmatpush.msrb.mxu2 %v6730_v34  ;;  %v8183_v0 = vld [vmem:[%s11662_s7 + $0x120] sm:$0xff]  ;;  %v8224_v34 = vld [vmem:[%s11662_s7 + $0x268] sm:$0xff] }
 0x7fa   :  { %v6265_v53 = vpop.f32.mrf.mxu1  ;;  %6837 = vmatpush.msrb.mxu3 %v8185_v40  ;;  %6774 = vmatpush.msrb.mxu1 %v8168_v50  ;;  %v8225_v40 = vld [vmem:[%s11662_s7 + $0x270] sm:$0xff] }
 0x7fb   :  { %v6599_v49 = vadd.f32 %v6553_v41, %v6452_v39  ;;  %v6307_v61 = vadd.f32 %v6265_v53, %v10650_v8  ;;  %v8167_v39 = vld [vmem:[%s11662_s7 + $0xa0] sm:$0xff] }
 0x7fc   :  { %6838 = vmatpush.msrb.mxu3 %v8184_v3  ;;  %6775 = vmatpush.msrb.mxu1 %v8167_v39  ;;  %v6729_v53 = vld [vmem:[%s11662_s7 + $0x20] sm:$0xff]  ;;  %v8240_v3 = vld [vmem:[%s11662_s7 + $0x2e8] sm:$0xff] }
 0x7fd   :  { %v6619_v36 = vmul.f32 %v10810_v63, %v6599_v49  ;;  %v8166_v49 = vld [vmem:[%s11662_s7 + $0x98] sm:$0xff]  ;;  %6798 = vmatpush.msrb.mxu2 %v6729_v53  ;;  %v8207_v39 = vld [vmem:[%s11662_s7 + $0x1e0] sm:$0xff] }
 0x7fe   :  { %6839 = vmatpush.msrb.mxu3 %v8183_v0  ;;  %6776 = vmatpush.msrb.mxu1 %v8166_v49  ;;  %v8206_v49 = vld [vmem:[%s11662_s7 + $0x1d8] sm:$0xff]  ;;  %v8223_v53 = vld [vmem:[%s11662_s7 + $0x260] sm:$0xff] }
 0x7ff   :  { %v6639_v62 = vadd.f32 %v10825_v25, %v6619_v36  ;;  %v8239_v0 = vld [vmem:[%s11662_s7 + $0x2e0] sm:$0xff] }
 0x800   :  { %v6409_v31 = vpop.f32.mrf.mxu2  ;;  %6840 = vmatpush.msrb.mxu3 %v8182_v12  ;;  %v8238_v12 = vld [vmem:[%s11662_s7 + $0x2d8] sm:$0xff] }
 0x801   :  { %v6556_v17 = vpop.f32.mrf.mxu3  ;;  %v6655_v30 = vmax.f32 %v6639_v62, 0.0  ;;  %v6453_v23 = vadd.f32 %v6409_v31, %v6306_v46  ;;  %v8165_v62 = vld [vmem:[%s11662_s7 + $0x90] sm:$0xff]  ;;  %v6728_v46 = vld [vmem:[%s11662_s7 + $0x18] sm:$0xff]  ;;  %v8164_v31 = vld [vmem:[%s11662_s7 + $0x88] sm:$0xff] }
 0x802   :  { %v6268_v38 = vpop.f32.mrf.mxu1  ;;  %6799 = vmatpush.msrb.mxu2 %v6728_v46  ;;  %6777 = vmatpush.msrb.mxu1 %v8165_v62  ;;  %v8205_v62 = vld [vmem:[%s11662_s7 + $0x1d0] sm:$0xff]  ;;  %v8222_v46 = vld [vmem:[%s11662_s7 + $0x258] sm:$0xff] }
 0x803   :  { %v6670_v13 = vmax.f32 %v6654_v32, %v6655_v30  ;;  %v6600_v59 = vadd.f32 %v6556_v17, %v6453_v23  ;;  %v6308_v58 = vadd.f32 %v6268_v38, %v10658_v52  ;;  %v6727_v17 = vld [vmem:[%s11662_s7 + $0x10] sm:$0xff]  ;;  %v8180_v38 = vld [vmem:[%s11662_s7 + $0x108] sm:$0xff] }
 0x804   :  { %v8181_v32 = vld [vmem:[%s11662_s7 + $0x110] sm:$0xff]  ;;  %6800 = vmatpush.msrb.mxu2 %v6727_v17  ;;  %6778 = vmatpush.msrb.mxu1 %v8164_v31  ;;  %v8204_v31 = vld [vmem:[%s11662_s7 + $0x1c8] sm:$0xff] }
 0x805   :  { %6678 = vst [vmem:[#allocation5] sm:$0xff] %v6670_v13  ;;  %v6620_v15 = vmul.f32 %v10810_v63, %v6600_v59  ;;  %6841 = vmatpush.msrb.mxu3 %v8181_v32  ;;  %v6726_v13 = vld [vmem:[%s11662_s7 + $0x8] sm:$0xff]  ;;  %v6725_v59 = vld [vmem:[%s11662_s7] sm:$0xff]  ;;  %v8221_v17 = vld [vmem:[%s11662_s7 + $0x250] sm:$0xff] }
 0x806   :  { %6801 = vmatpush.msrb.mxu2 %v6726_v13  ;;  %6779 = vmatpush.msrb.mxu1 %v8163_v19  ;;  %v8237_v32 = vld [vmem:[%s11662_s7 + $0x2d0] sm:$0xff]  ;;  %v8220_v19 = vld [vmem:[%s11662_s7 + $0x248] sm:$0xff] }
 0x807   :  { %v6640_v36 = vadd.f32 %v10825_v25, %v6620_v15  ;;  %6842 = vmatpush.msrb.mxu3 %v8180_v38  ;;  %v8236_v13 = vld [vmem:[%s11662_s7 + $0x2c8] sm:$0xff]  ;;  %v11780_v38 = vld [vmem:[#allocation31_spill] sm:$0xff] }
 0x808   :  { %v6412_v24 = vpop.f32.mrf.mxu2  ;;  %6870 = vmatpush.msra.mxu1 %v8210_v44  ;;  %6802 = vmatpush.msrb.mxu2 %v6725_v59  ;;  %v11781_v44 = vld [vmem:[#allocation10_spill] sm:$0xff] }
 0x809   :  { %v6559_v41 = vpop.f32.mrf.mxu3  ;;  %v6454_v8 = vadd.f32 %v6412_v24, %v6307_v61  ;;  %v6656_v60 = vmax.f32 %v6640_v36, 0.0  ;;  %v8242_v61 = vld [vmem:[%s11662_s7 + $0x2f8] sm:$0xff]  ;;  %6843 = vmatpush.msrb.mxu3 %v8179_v51  ;;  %v8241_v24 = vld [vmem:[%s11662_s7 + $0x2f0] sm:$0xff] }
 0x80a   :  { %v6271_v26 = vpop.f32.mrf.mxu1  ;;  %6913 = vmatpush.msra.mxu2 %v8226_v35  ;;  %6871 = vmatpush.msra.mxu1 %v8209_v20  ;;  %v8202_v51 = vld [vmem:[%s11662_s7 + $0x1b8] sm:$0xff]  ;;  %v8219_v20 = vld [vmem:[%s11662_s7 + $0x240] sm:$0xff] }
 0x80b   :  { %v6601_v55 = vadd.f32 %v6559_v41, %v6454_v8  ;;  %6954 = vmatpush.msra.mxu3 %v8242_v61  ;;  %v6309_v41 = vadd.f32 %v6271_v26, %v10670_v16  ;;  %v8342_v26 = vld [vmem:[%s11662_s7 + $0x618] sm:$0xff]  ;;  %v8235_v35 = vld [vmem:[%s11662_s7 + $0x2c0] sm:$0xff] }
 0x80c   :  { %6914 = vmatpush.msra.mxu2 %v8225_v40  ;;  %6872 = vmatpush.msra.mxu1 %v8208_v29  ;;  %v8201_v29 = vld [vmem:[%s11662_s7 + $0x1b0] sm:$0xff]  ;;  %v8218_v40 = vld [vmem:[%s11662_s7 + $0x238] sm:$0xff] }
 0x80d   :  { %v6621_v21 = vmul.f32 %v10810_v63, %v6601_v55  ;;  %6955 = vmatpush.msra.mxu3 %v8241_v24  ;;  %7261 = vmatpush.msrb.mxu0 %v8342_v26  ;;  %v8234_v24 = vld [vmem:[%s11662_s7 + $0x2b8] sm:$0xff]  ;;  %v11783_v26 = vld [vmem:[#allocation53_spill] sm:$0xff] }
 0x80e   :  { %6915 = vmatpush.msra.mxu2 %v8224_v34  ;;  %6873 = vmatpush.msra.mxu1 %v8207_v39  ;;  %v8200_v39 = vld [vmem:[%s11662_s7 + $0x1a8] sm:$0xff]  ;;  %v8217_v34 = vld [vmem:[%s11662_s7 + $0x230] sm:$0xff] }
 0x80f   :  { %v6641_v9 = vadd.f32 %v10825_v25, %v6621_v21  ;;  %6956 = vmatpush.msra.mxu3 %v8240_v3  ;;  %v8233_v3 = vld [vmem:[%s11662_s7 + $0x2b0] sm:$0xff] }
 0x810   :  { %v6415_v30 = vpop.f32.mrf.mxu2  ;;  %6916 = vmatpush.msra.mxu2 %v8223_v53  ;;  %6874 = vmatpush.msra.mxu1 %v8206_v49  ;;  %v11784_v49 = vld [vmem:[#allocation33_spill] sm:$0xff] }
 0x811   :  { %v6562_v23 = vpop.f32.mrf.mxu3  ;;  %v6657_v54 = vmax.f32 %v6641_v9, 0.0  ;;  %v6455_v52 = vadd.f32 %v6415_v30, %v6308_v58  ;;  %6957 = vmatpush.msra.mxu3 %v8239_v0  ;;  %v5564_v53 = vadd.f32 %v11784_v49, %v11783_v26 }
 0x812   :  { %v6274_v6 = vpop.f32.mrf.mxu1  ;;  %6917 = vmatpush.msra.mxu2 %v8222_v46  ;;  %6875 = vmatpush.msra.mxu1 %v8205_v62  ;;  %v8199_v62 = vld [vmem:[%s11662_s7 + $0x1a0] sm:$0xff]  ;;  %v8216_v46 = vld [vmem:[%s11662_s7 + $0x228] sm:$0xff] }
 0x813   :  { %v6671_v47 = vmax.f32 %v6656_v60, %v6657_v54  ;;  %v6602_v50 = vadd.f32 %v6562_v23, %v6455_v52  ;;  %v6310_v23 = vadd.f32 %v6274_v6, %v10682_v18  ;;  %6958 = vmatpush.msra.mxu3 %v8238_v12  ;;  %v8203_v52 = vld [vmem:[%s11662_s7 + $0x1c0] sm:$0xff]  ;;  %v5561_v18 = vadd.f32 %v11781_v44, %v11780_v38  ;;  %v8196_v38 = vld [vmem:[%s11662_s7 + $0x188] sm:$0xff]  ;;  %v8213_v44 = vld [vmem:[%s11662_s7 + $0x210] sm:$0xff] }
 0x814   :  { %6918 = vmatpush.msra.mxu2 %v8221_v17  ;;  %6876 = vmatpush.msra.mxu1 %v8204_v31  ;;  %v8231_v31 = vld [vmem:[%s11662_s7 + $0x2a0] sm:$0xff] }
 0x815   :  { %6679 = vst [vmem:[#allocation5 + $0x8] sm:$0xff] %v6671_v47  ;;  %v6622_v55 = vmul.f32 %v10810_v63, %v6602_v50  ;;  %6959 = vmatpush.msra.mxu3 %v8237_v32  ;;  %v11785_v32 = vld [vmem:[#allocation13_spill] sm:$0xff] }
 0x816   :  { %6919 = vmatpush.msra.mxu2 %v8220_v19  ;;  %6877 = vmatpush.msra.mxu1 %v8203_v52 }
 0x817   :  { %v6642_v9 = vadd.f32 %v10825_v25, %v6622_v55  ;;  %6960 = vmatpush.msra.mxu3 %v8236_v13 }
 0x818   :  { %v6418_v15 = vpop.f32.mrf.mxu2  ;;  %6920 = vmatpush.msra.mxu2 %v8219_v20  ;;  %6878 = vmatpush.msra.mxu1 %v8202_v51  ;;  %v11787_v51 = vld [vmem:[#allocation12_spill] sm:$0xff] }
 0x819   :  { %v6565_v8 = vpop.f32.mrf.mxu3  ;;  %v6456_v16 = vadd.f32 %v6418_v15, %v6309_v41  ;;  %v6658_v47 = vmax.f32 %v6642_v9, 0.0  ;;  %v11782_v41 = vld [vmem:[#allocation32_spill] sm:$0xff]  ;;  %6961 = vmatpush.msra.mxu3 %v8235_v35 }
 0x81a   :  { %v6277_v21 = vpop.f32.mrf.mxu1  ;;  %v5723_v15 = vadd.f32 %v11782_v41, %v5561_v18  ;;  %6921 = vmatpush.msra.mxu2 %v8218_v40  ;;  %6879 = vmatpush.msra.mxu1 %v8201_v29  ;;  %v8198_v9 = vld [vmem:[%s11662_s7 + $0x198] sm:$0xff]  ;;  %v8229_v18 = vld [vmem:[%s11662_s7 + $0x290] sm:$0xff]  ;;  %v8195_v29 = vld [vmem:[%s11662_s7 + $0x180] sm:$0xff] }
 0x81b   :  { %v6603_v36 = vadd.f32 %v6565_v8, %v6456_v16  ;;  %v6311_v16 = vadd.f32 %v6277_v21, %v10690_v48  ;;  %6962 = vmatpush.msra.mxu3 %v8234_v24  ;;  %v8212_v40 = vld [vmem:[%s11662_s7 + $0x208] sm:$0xff] }
 0x81c   :  { %v5870_v55 = vadd.f32 %v10684_v10, %v5723_v15  ;;  %6922 = vmatpush.msra.mxu2 %v8217_v34  ;;  %6880 = vmatpush.msra.mxu1 %v8200_v39  ;;  %v8232_v10 = vld [vmem:[%s11662_s7 + $0x2a8] sm:$0xff]  ;;  %v8227_v39 = vld [vmem:[%s11662_s7 + $0x280] sm:$0xff] }
 0x81d   :  { %v6623_v58 = vmul.f32 %v10810_v63, %v6603_v36  ;;  %6963 = vmatpush.msra.mxu3 %v8233_v3 }
 0x81e   :  { %v6017_v48 = vadd.f32 %v10698_v22, %v5870_v55  ;;  %6923 = vmatpush.msra.mxu2 %v8216_v46  ;;  %6881 = vmatpush.msra.mxu1 %v8199_v62  ;;  %v11788_v55 = vld [vmem:[#allocation34_spill] sm:$0xff]  ;;  %v11789_v62 = vld [vmem:[#allocation35_spill] sm:$0xff]  ;;  %v11790_v46 = vld [vmem:[#allocation36_spill] sm:$0xff] }
 0x81f   :  { %v6643_v30 = vadd.f32 %v10825_v25, %v6623_v58  ;;  %v8215_v58 = vld [vmem:[%s11662_s7 + $0x220] sm:$0xff]  ;;  %6964 = vmatpush.msra.mxu3 %v8232_v10  ;;  %v5570_v10 = vadd.f32 %v11790_v46, %v11789_v62 }
 0x820   :  { %v6421_v60 = vpop.f32.mrf.mxu2  ;;  %6924 = vmatpush.msra.mxu2 %v8215_v58  ;;  %6882 = vmatpush.msra.mxu1 %v8198_v9  ;;  %v6164_v52 = vadd.f32 %v10700_v27, %v6017_v48 }
 0x821   :  { %v6568_v54 = vpop.f32.mrf.mxu3  ;;  %v6659_v6 = vmax.f32 %v6643_v30, 0.0  ;;  %v6457_v59 = vadd.f32 %v6421_v60, %v6310_v23  ;;  %v5724_v30 = vadd.f32 %v11785_v32, %v5564_v53  ;;  %v8197_v23 = vld [vmem:[%s11662_s7 + $0x190] sm:$0xff]  ;;  %v8214_v60 = vld [vmem:[%s11662_s7 + $0x218] sm:$0xff]  ;;  %6965 = vmatpush.msra.mxu3 %v8231_v31 }
 0x822   :  { %v6280_v50 = vpop.f32.mrf.mxu1  ;;  %6925 = vmatpush.msra.mxu2 %v8214_v60  ;;  %6883 = vmatpush.msra.mxu1 %v8197_v23  ;;  %v11791_v31 = vld [vmem:[#allocation15_spill] sm:$0xff]  ;;  %v11792_v60 = vld [vmem:[#allocation14_spill] sm:$0xff] }
 0x823   :  { %v6672_v61 = vmax.f32 %v6658_v47, %v6659_v6  ;;  %v6604_v8 = vadd.f32 %v6568_v54, %v6457_v59  ;;  %v8230_v54 = vld [vmem:[%s11662_s7 + $0x298] sm:$0xff]  ;;  %v5871_v27 = vadd.f32 %v10692_v14, %v5724_v30  ;;  %v6312_v6 = vadd.f32 %v6280_v50, %v6164_v52  ;;  %v8228_v14 = vld [vmem:[%s11662_s7 + $0x288] sm:$0xff] }
 0x824   :  { %6966 = vmatpush.msra.mxu3 %v8230_v54  ;;  %6926 = vmatpush.msra.mxu2 %v8213_v44  ;;  %v11786_v59 = vld [vmem:[#allocation11_spill] sm:$0xff]  ;;  %v11793_v54 = vld [vmem:[#allocation37_spill] sm:$0xff] }
 0x825   :  { %6680 = vst [vmem:[#allocation5 + $0x10] sm:$0xff] %v6672_v61  ;;  %v6624_v21 = vmul.f32 %v10810_v63, %v6604_v8  ;;  %v5567_v20 = vadd.f32 %v11787_v51, %v11786_v59  ;;  %6884 = vmatpush.msra.mxu1 %v8196_v38  ;;  %v6018_v50 = vadd.f32 %v10711_v33, %v5871_v27  ;;  %v8211_v8 = vld [vmem:[%s11662_s7 + $0x200] sm:$0xff] }
 0x826   :  { %6967 = vmatpush.msra.mxu3 %v8229_v18  ;;  %6927 = vmatpush.msra.mxu2 %v8212_v40  ;;  %v5573_v52 = vadd.f32 %v11793_v54, %v11792_v60  ;;  %v8288_v54 = vld [vmem:[%s11662_s7 + $0x468] sm:$0xff] }
 0x827   :  { %v6644_v19 = vadd.f32 %v10825_v25, %v6624_v21  ;;  %6885 = vmatpush.msra.mxu1 %v8195_v29  ;;  %v5725_v33 = vadd.f32 %v11788_v55, %v5567_v20 }
 0x828   :  { %v6424_v0 = vpop.f32.mrf.mxu2  ;;  %6968 = vmatpush.msra.mxu3 %v8228_v14  ;;  %6928 = vmatpush.msra.mxu2 %v8211_v8 }
 0x829   :  { %v6571_v36 = vpop.f32.mrf.mxu3  ;;  %v6458_v12 = vadd.f32 %v6424_v0, %v6311_v16  ;;  %v6660_v24 = vmax.f32 %v6644_v19, 0.0  ;;  %v6165_v16 = vadd.f32 %v10713_v37, %v6018_v50  ;;  %v5872_v49 = vadd.f32 %v10702_v43, %v5725_v33  ;;  %v8341_v37 = vld [vmem:[%s11662_s7 + $0x610] sm:$0xff] }
 0x82a   :  { %v6283_v22 = vpop.f32.mrf.mxu1  ;;  %6969 = vmatpush.msra.mxu3 %v8227_v39  ;;  %7262 = vmatpush.msrb.mxu0 %v8341_v37  ;;  %v5726_v43 = vadd.f32 %v11791_v31, %v5570_v10  ;;  %v8257_v10 = vld [vmem:[%s11662_s7 + $0x370] sm:$0xff]  ;;  %v8256_v31 = vld [vmem:[%s11662_s7 + $0x368] sm:$0xff] }
 0x82b   :  { %v6605_v17 = vadd.f32 %v6571_v36, %v6458_v12  ;;  %v6313_v53 = vadd.f32 %v6283_v22, %v6165_v16  ;;  %v6019_v48 = vadd.f32 %v10723_v56, %v5872_v49 }
 0x82c   :  { %v5873_v56 = vadd.f32 %v10715_v11, %v5726_v43  ;;  %v8273_v43 = vld [vmem:[%s11662_s7 + $0x3f0] sm:$0xff] }
 0x82d   :  { %v6625_v13 = vmul.f32 %v10810_v63, %v6605_v17  ;;  %v6166_v17 = vadd.f32 %v10725_v45, %v6019_v48  ;;  %v8274_v48 = vld [vmem:[%s11662_s7 + $0x3f8] sm:$0xff] }
 0x82e   :  { %v6020_v38 = vadd.f32 %v10735_v2, %v5873_v56  ;;  %v8255_v56 = vld [vmem:[%s11662_s7 + $0x360] sm:$0xff] }
 0x82f   :  { %v6645_v47 = vadd.f32 %v10825_v25, %v6625_v13 }
 0x830   :  { %v6427_v35 = vpop.f32.mrf.mxu2  ;;  %v6167_v51 = vadd.f32 %v10737_v7, %v6020_v38  ;;  %v8271_v38 = vld [vmem:[%s11662_s7 + $0x3e0] sm:$0xff] }
 0x831   :  { %v6574_v61 = vpop.f32.mrf.mxu3  ;;  %v6661_v41 = vmax.f32 %v6645_v47, 0.0  ;;  %v6459_v15 = vadd.f32 %v6427_v35, %v6312_v6  ;;  %v11794_v47 = vld [vmem:[#allocation17_spill] sm:$0xff] }
 0x832   :  { %v6286_v3 = vpop.f32.mrf.mxu1  ;;  %v5727_v6 = vadd.f32 %v11794_v47, %v5573_v52  ;;  %v6686_v35 = vld [vmem:[#allocation5] ss:$2 sm:$0xf]  ;;  %v6688_v52 = vld [vmem:[#allocation5 + $0x8] ss:$2 sm:$0xf] }
 0x833   :  { %v6673_v34 = vmax.f32 %v6660_v24, %v6661_v41  ;;  %v6606_v26 = vadd.f32 %v6574_v61, %v6459_v15  ;;  %v6314_v23 = vadd.f32 %v6286_v3, %v6166_v17  ;;  %v6702_v61 = vld [vmem:[#allocation5 + $0x1] ss:$2 sm:$0xf] }
 0x834   :  { %v5874_v20 = vadd.f32 %v10727_v4, %v5727_v6  ;;  %v6717_v41 = vmax.f32 %v6686_v35, %v6702_v61 }
 0x835   :  { %6681 = vst [vmem:[#allocation5 + $0x18] sm:$0xff] %v6673_v34  ;;  %v6626_v21 = vmul.f32 %v10810_v63, %v6606_v26 }
 0x836   :  { %v6021_v40 = vadd.f32 %v10745_v28, %v5874_v20  ;;  %v6760_v55 = vrot.slane %v6717_v41, 1  ;;  %v8258_v28 = vld [vmem:[%s11662_s7 + $0x378] sm:$0xff]  ;;  %v6824_v16 = vrot.slane %v6717_v41, 2 }
 0x837   :  { %v6646_v22 = vadd.f32 %v10825_v25, %v6626_v21  ;;  %v8286_v20 = vld [vmem:[%s11662_s7 + $0x458] sm:$0xff] }
 0x838   :  { %v6430_v0 = vpop.f32.mrf.mxu2  ;;  %v6168_v8 = vadd.f32 %v10747_v42, %v6021_v40  ;;  %v8269_v40 = vld [vmem:[%s11662_s7 + $0x3d0] sm:$0xff] }
 0x839   :  { %v6577_v36 = vpop.f32.mrf.mxu3  ;;  %v6460_v12 = vadd.f32 %v6430_v0, %v6313_v53  ;;  %v6662_v44 = vmax.f32 %v6646_v22, 0.0  ;;  %v8289_v22 = vld [vmem:[%s11662_s7 + $0x470] sm:$0xff] }
 0x83a   :  { %v6289_v58 = vpop.f32.mrf.mxu1 }
 0x83b   :  { %v6607_v9 = vadd.f32 %v6577_v36, %v6460_v12  ;;  %v6315_v29 = vadd.f32 %v6289_v58, %v6167_v51  ;;  %v8290_v58 = vld [vmem:[%s11662_s7 + $0x478] sm:$0xff] }
 0x83d   :  { %v6627_v32 = vmul.f32 %v10810_v63, %v6607_v9 }
 0x83f   :  { %v6647_v30 = vadd.f32 %v10825_v25, %v6627_v32 }
 0x840   :  { %v6433_v19 = vpop.f32.mrf.mxu2 }
 0x841   :  { %v6580_v13 = vpop.f32.mrf.mxu3  ;;  %v6663_v18 = vmax.f32 %v6647_v30, 0.0  ;;  %v6461_v27 = vadd.f32 %v6433_v19, %v6314_v23  ;;  %v8272_v30 = vld [vmem:[%s11662_s7 + $0x3e8] sm:$0xff]  ;;  %v6866_v23 = vrot.slane %v6717_v41, 3 }
 0x842   :  { %v6292_v11 = vpop.f32.mrf.mxu1  ;;  %v8340_v19 = vld [vmem:[%s11662_s7 + $0x608] sm:$0xff] }
 0x843   :  { %v6674_v45 = vmax.f32 %v6662_v44, %v6663_v18  ;;  %v6608_v59 = vadd.f32 %v6580_v13, %v6461_v27  ;;  %v6316_v33 = vadd.f32 %v6292_v11, %v6168_v8  ;;  %v8254_v13 = vld [vmem:[%s11662_s7 + $0x358] sm:$0xff]  ;;  %v6704_v44 = vld [vmem:[#allocation5 + $0x9] ss:$2 sm:$0xf]  ;;  %7263 = vmatpush.msrb.mxu0 %v8340_v19  ;;  %v8245_v19 = vld [vmem:[%s11662_s7 + $0x310] sm:$0xff] }
 0x844   :  { %v11205_v35 = vmax.f32 %v6688_v52, %v6704_v44  ;;  %v8278_v44 = vld [vmem:[%s11662_s7 + $0x418] sm:$0xff] }
 0x845   :  { %6682 = vst [vmem:[#allocation5 + $0x20] sm:$0xff] %v6674_v45  ;;  %v6628_v2 = vmul.f32 %v10810_v63, %v6608_v59  ;;  %v8287_v45 = vld [vmem:[%s11662_s7 + $0x460] sm:$0xff]  ;;  %v8253_v59 = vld [vmem:[%s11662_s7 + $0x350] sm:$0xff] }
 0x847   :  { %v6648_v7 = vadd.f32 %v10825_v25, %v6628_v2 }
 0x848   :  { %v6436_v14 = vpop.f32.mrf.mxu2 }
 0x849   :  { %v6583_v50 = vpop.f32.mrf.mxu3  ;;  %v6462_v24 = vadd.f32 %v6436_v14, %v6315_v29  ;;  %v6664_v36 = vmax.f32 %v6648_v7, 0.0  ;;  %v8252_v29 = vld [vmem:[%s11662_s7 + $0x348] sm:$0xff]  ;;  %v8285_v14 = vld [vmem:[%s11662_s7 + $0x450] sm:$0xff] }
 0x84a   :  { %v6295_v53 = vpop.f32.mrf.mxu1 }
 0x84b   :  { %v6609_v15 = vadd.f32 %v6583_v50, %v6462_v24  ;;  %v6317_v18 = vadd.f32 %v6295_v53, %v10772_v5  ;;  %v8270_v5 = vld [vmem:[%s11662_s7 + $0x3d8] sm:$0xff]  ;;  %v8251_v50 = vld [vmem:[%s11662_s7 + $0x340] sm:$0xff]  ;;  %v8268_v24 = vld [vmem:[%s11662_s7 + $0x3c8] sm:$0xff] }
 0x84c   :  { %v6694_v39 = vld [vmem:[#allocation5 + $0x20] ss:$2 sm:$0xf]  ;;  %v6710_v34 = vld [vmem:[#allocation5 + $0x21] ss:$2 sm:$0xf] }
 0x84d   :  { %v6629_v4 = vmul.f32 %v10810_v63, %v6609_v15  ;;  %v6721_v3 = vmax.f32 %v6694_v39, %v6710_v34  ;;  %v8284_v39 = vld [vmem:[%s11662_s7 + $0x448] sm:$0xff] }
 0x84f   :  { %v6649_v26 = vadd.f32 %v10825_v25, %v6629_v4  ;;  %v6762_v49 = vsel %vm6761_vm5, %v6721_v3, %v6760_v55  ;;  %v6784_v42 = vrot.slane %v6721_v3, 7  ;;  %v6825_v0 = vrot.slane %v6721_v3, 1 }
 0x850   :  { %v6439_v62 = vpop.f32.mrf.mxu2  ;;  %6780 = vmatmul.f32.vlgmr.msrb.gmra.mxu1 %v6762_v49  ;;  %v6867_v32 = vrot.slane %v6721_v3, 2  ;;  %v6951_v4 = vrot.slane %v11205_v35, 1  ;;  %v8250_v3 = vld [vmem:[%s11662_s7 + $0x338] sm:$0xff] }
 0x851   :  { %v6586_v46 = vpop.f32.mrf.mxu3  ;;  %v6665_v21 = vmax.f32 %v6649_v26, 0.0  ;;  %v6463_v12 = vadd.f32 %v6439_v62, %v6316_v33  ;;  %6996 = vmatpush.msrb.mxu1 %v8258_v28  ;;  %v6785_v37 = vsel %vm6761_vm5, %v6784_v42, %v6717_v41  ;;  %v6826_v9 = vsel %vm6761_vm5, %v6825_v0, %v6824_v16  ;;  %v8267_v16 = vld [vmem:[%s11662_s7 + $0x3c0] sm:$0xff] }
 0x852   :  { %6803 = vmatmul.f32.vlgmr.msrb.gmra.mxu2 %v6785_v37  ;;  %6844 = vmatmul.f32.vlgmr.msrb.gmra.mxu3 %v6826_v9  ;;  %v6868_v27 = vsel %vm6761_vm5, %v6867_v32, %v6866_v23  ;;  %v6298_v61 = vpop.f32.mrf.mxu1  ;;  %v8283_v26 = vld [vmem:[%s11662_s7 + $0x440] sm:$0xff]  ;;  %v8265_v37 = vld [vmem:[%s11662_s7 + $0x3b0] sm:$0xff]  ;;  %v8280_v32 = vld [vmem:[%s11662_s7 + $0x428] sm:$0xff] }
 0x853   :  { %v6675_v17 = vmax.f32 %v6664_v36, %v6665_v21  ;;  %6997 = vmatpush.msrb.mxu1 %v8257_v10  ;;  %7038 = vmatpush.msrb.mxu2 %v8274_v48  ;;  %v6610_v60 = vadd.f32 %v6586_v46, %v6463_v12  ;;  %v6318_v33 = vadd.f32 %v6298_v61, %v10782_v1  ;;  %v8249_v1 = vld [vmem:[%s11662_s7 + $0x330] sm:$0xff]  ;;  %v8266_v10 = vld [vmem:[%s11662_s7 + $0x3b8] sm:$0xff]  ;;  %v8248_v21 = vld [vmem:[%s11662_s7 + $0x328] sm:$0xff] }
 0x854   :  { %7081 = vmatpush.msrb.mxu3 %v8290_v58  ;;  %v8282_v48 = vld [vmem:[%s11662_s7 + $0x438] sm:$0xff]  ;;  %v8281_v9 = vld [vmem:[%s11662_s7 + $0x430] sm:$0xff]  ;;  %v8263_v23 = vld [vmem:[%s11662_s7 + $0x3a0] sm:$0xff] }
 0x855   :  { %6683 = vst [vmem:[#allocation5 + $0x28] sm:$0xff] %v6675_v17  ;;  %6998 = vmatpush.msrb.mxu1 %v8256_v31  ;;  %7039 = vmatpush.msrb.mxu2 %v8273_v43  ;;  %v6630_v51 = vmul.f32 %v10810_v63, %v6610_v60  ;;  %v8247_v31 = vld [vmem:[%s11662_s7 + $0x320] sm:$0xff]  ;;  %v8260_v61 = vld [vmem:[%s11662_s7 + $0x388] sm:$0xff] }
 0x856   :  { %7082 = vmatpush.msrb.mxu3 %v8289_v22  ;;  %v8339_v43 = vld [vmem:[%s11662_s7 + $0x600] sm:$0xff]  ;;  %v8264_v22 = vld [vmem:[%s11662_s7 + $0x3a8] sm:$0xff] }
 0x857   :  { %6999 = vmatpush.msrb.mxu1 %v8255_v56  ;;  %7040 = vmatpush.msrb.mxu2 %v8272_v30  ;;  %v6650_v8 = vadd.f32 %v10825_v25, %v6630_v51  ;;  %v8246_v56 = vld [vmem:[%s11662_s7 + $0x318] sm:$0xff]  ;;  %v8279_v60 = vld [vmem:[%s11662_s7 + $0x420] sm:$0xff] }
 0x858   :  { %7083 = vmatpush.msrb.mxu3 %v8288_v54  ;;  %v6442_v47 = vpop.f32.mrf.mxu2  ;;  %6886 = vmatmul.f32.vlgmr.msra.gmra.mxu1 %v6868_v27 }
 0x859   :  { %v6589_v6 = vpop.f32.mrf.mxu3  ;;  %v6464_v11 = vadd.f32 %v6442_v47, %v6317_v18  ;;  %7000 = vmatpush.msrb.mxu1 %v8254_v13  ;;  %7041 = vmatpush.msrb.mxu2 %v8271_v38  ;;  %v6666_v0 = vmax.f32 %v6650_v8, 0.0  ;;  %v8262_v38 = vld [vmem:[%s11662_s7 + $0x398] sm:$0xff]  ;;  %v8244_v18 = vld [vmem:[%s11662_s7 + $0x308] sm:$0xff]  ;;  %v8277_v47 = vld [vmem:[%s11662_s7 + $0x410] sm:$0xff] }
 0x85a   :  { %7084 = vmatpush.msrb.mxu3 %v8287_v45  ;;  %v6301_v58 = vpop.f32.mrf.mxu1  ;;  %7264 = vmatpush.msrb.mxu0 %v8339_v43  ;;  %v8261_v45 = vld [vmem:[%s11662_s7 + $0x390] sm:$0xff] }
 0x85b   :  { %v6611_v2 = vadd.f32 %v6589_v6, %v6464_v11  ;;  %7001 = vmatpush.msrb.mxu1 %v8253_v59  ;;  %7042 = vmatpush.msrb.mxu2 %v8270_v5  ;;  %v6319_v30 = vadd.f32 %v6301_v58, %v10804_v57  ;;  %v8243_v6 = vld [vmem:[%s11662_s7 + $0x300] sm:$0xff]  ;;  %v8300_v58 = vld [vmem:[%s11662_s7 + $0x4c8] sm:$0xff]  ;;  %v8333_v43 = vld [vmem:[%s11662_s7 + $0x5d0] sm:$0xff] }
 0x85c   :  { %7085 = vmatpush.msrb.mxu3 %v8286_v20  ;;  %v6696_v41 = vld [vmem:[#allocation5 + $0x28] ss:$2 sm:$0xf]  ;;  %v6712_v15 = vld [vmem:[#allocation5 + $0x29] ss:$2 sm:$0xf] }
 0x85d   :  { %v6631_v7 = vmul.f32 %v10810_v63, %v6611_v2  ;;  %7002 = vmatpush.msrb.mxu1 %v8252_v29  ;;  %7043 = vmatpush.msrb.mxu2 %v8269_v40  ;;  %v11227_v34 = vmax.f32 %v6696_v41, %v6712_v15  ;;  %v8276_v29 = vld [vmem:[%s11662_s7 + $0x408] sm:$0xff]  ;;  %v6690_v40 = vld [vmem:[#allocation5 + $0x10] ss:$2 sm:$0xf]  ;;  %v8306_v41 = vld [vmem:[%s11662_s7 + $0x4f8] sm:$0xff] }
 0x85e   :  { %7086 = vmatpush.msrb.mxu3 %v8285_v14  ;;  %v6992_v14 = vrot.slane %v11205_v35, 2  ;;  %v8259_v15 = vld [vmem:[%s11662_s7 + $0x380] sm:$0xff] }
 0x85f   :  { %v6651_v55 = vadd.f32 %v10825_v25, %v6631_v7  ;;  %7003 = vmatpush.msrb.mxu1 %v8251_v50  ;;  %7044 = vmatpush.msrb.mxu2 %v8268_v24  ;;  %v6952_v28 = vsel %vm6761_vm5, %v11227_v34, %v6951_v4  ;;  %v6910_v49 = vrot.slane %v11227_v34, 7  ;;  %v6993_v59 = vrot.slane %v11227_v34, 1  ;;  %v6706_v24 = vld [vmem:[#allocation5 + $0x11] ss:$2 sm:$0xf] }
 0x860   :  { %7087 = vmatpush.msrb.mxu3 %v8284_v39  ;;  %v6445_v53 = vpop.f32.mrf.mxu2  ;;  %v7035_v50 = vrot.slane %v11227_v34, 2  ;;  %v8275_v39 = vld [vmem:[%s11662_s7 + $0x400] sm:$0xff] }
 0x861   :  { %v6592_v42 = vpop.f32.mrf.mxu3  ;;  %v6667_v36 = vmax.f32 %v6651_v55, 0.0  ;;  %v6465_v62 = vadd.f32 %v6445_v53, %v6318_v33  ;;  %6970 = vmatmul.f32.vlgmr.msra.gmra.mxu3 %v6952_v28  ;;  %7004 = vmatpush.msrb.mxu1 %v8250_v3  ;;  %v6911_v46 = vsel %vm6761_vm5, %v6910_v49, %v11205_v35  ;;  %v6994_v7 = vsel %vm6761_vm5, %v6993_v59, %v6992_v14  ;;  %v8305_v3 = vld [vmem:[%s11662_s7 + $0x4f0] sm:$0xff]  ;;  %v8322_v55 = vld [vmem:[%s11662_s7 + $0x578] sm:$0xff]  ;;  %v8304_v49 = vld [vmem:[%s11662_s7 + $0x4e8] sm:$0xff] }
 0x862   :  { %7045 = vmatpush.msrb.mxu2 %v8267_v16  ;;  %7088 = vmatpush.msrb.mxu3 %v8283_v26  ;;  %v11340_v33 = vmax.f32 %v6690_v40, %v6706_v24  ;;  %v8321_v53 = vld [vmem:[%s11662_s7 + $0x570] sm:$0xff]  ;;  %v8312_v59 = vld [vmem:[%s11662_s7 + $0x528] sm:$0xff]  ;;  %v8326_v40 = vld [vmem:[%s11662_s7 + $0x598] sm:$0xff] }
 0x863   :  { %v6676_v12 = vmax.f32 %v6666_v0, %v6667_v36  ;;  %6929 = vmatmul.f32.vlgmr.msra.gmra.mxu2 %v6911_v46  ;;  %7005 = vmatpush.msrb.mxu1 %v8249_v1  ;;  %v6612_v17 = vadd.f32 %v6592_v42, %v6465_v62  ;;  %v8337_v42 = vld [vmem:[%s11662_s7 + $0x5f0] sm:$0xff]  ;;  %v8303_v1 = vld [vmem:[%s11662_s7 + $0x4e0] sm:$0xff]  ;;  %v8320_v0 = vld [vmem:[%s11662_s7 + $0x568] sm:$0xff] }
 0x864   :  { %7046 = vmatpush.msrb.mxu2 %v8266_v10  ;;  %7089 = vmatpush.msrb.mxu3 %v8282_v48  ;;  %v8336_v36 = vld [vmem:[%s11662_s7 + $0x5e8] sm:$0xff]  ;;  %v8302_v62 = vld [vmem:[%s11662_s7 + $0x4d8] sm:$0xff]  ;;  %v8319_v46 = vld [vmem:[%s11662_s7 + $0x560] sm:$0xff] }
 0x865   :  { %6684 = vst [vmem:[#allocation5 + $0x30] sm:$0xff] %v6676_v12  ;;  %7006 = vmatpush.msrb.mxu1 %v8248_v21  ;;  %v6632_v13 = vmul.f32 %v10810_v63, %v6612_v17  ;;  %v8335_v10 = vld [vmem:[%s11662_s7 + $0x5e0] sm:$0xff]  ;;  %v8301_v48 = vld [vmem:[%s11662_s7 + $0x4d0] sm:$0xff]  ;;  %v8318_v21 = vld [vmem:[%s11662_s7 + $0x558] sm:$0xff] }
 0x866   :  { %7047 = vmatpush.msrb.mxu2 %v8265_v37  ;;  %7090 = vmatpush.msrb.mxu3 %v8281_v9  ;;  %v8334_v12 = vld [vmem:[%s11662_s7 + $0x5d8] sm:$0xff]  ;;  %v8292_v14 = vld [vmem:[%s11662_s7 + $0x488] sm:$0xff]  ;;  %v8325_v24 = vld [vmem:[%s11662_s7 + $0x590] sm:$0xff] }
 0x867   :  { %7007 = vmatpush.msrb.mxu1 %v8247_v31  ;;  %v6652_v11 = vadd.f32 %v10825_v25, %v6632_v13  ;;  %v6692_v37 = vld [vmem:[#allocation5 + $0x18] ss:$2 sm:$0xf]  ;;  %v6708_v9 = vld [vmem:[#allocation5 + $0x19] ss:$2 sm:$0xf] }
 0x868   :  { %7048 = vmatpush.msrb.mxu2 %v8264_v22  ;;  %7091 = vmatpush.msrb.mxu3 %v8280_v32  ;;  %v6448_v54 = vpop.f32.mrf.mxu2  ;;  %v8317_v31 = vld [vmem:[%s11662_s7 + $0x550] sm:$0xff]  ;;  %v8299_v32 = vld [vmem:[%s11662_s7 + $0x4c0] sm:$0xff] }
 0x869   :  { %v6595_v52 = vpop.f32.mrf.mxu3  ;;  %v6466_v57 = vadd.f32 %v6448_v54, %v6319_v30  ;;  %7008 = vmatpush.msrb.mxu1 %v8246_v56  ;;  %v6668_v34 = vmax.f32 %v6652_v11, 0.0  ;;  %v8316_v30 = vld [vmem:[%s11662_s7 + $0x548] sm:$0xff]  ;;  %v11407_v54 = vmax.f32 %v6692_v37, %v6708_v9  ;;  %v8331_v13 = vld [vmem:[%s11662_s7 + $0x5c0] sm:$0xff]  ;;  %v8381_v9 = vld [vmem:[%s11662_s7 + $0x750] sm:$0xff] }
 0x86a   :  { %7049 = vmatpush.msrb.mxu2 %v8263_v23  ;;  %7092 = vmatpush.msrb.mxu3 %v8279_v60  ;;  %v8332_v23 = vld [vmem:[%s11662_s7 + $0x5c8] sm:$0xff]  ;;  %v8298_v60 = vld [vmem:[%s11662_s7 + $0x4b8] sm:$0xff]  ;;  %v8311_v11 = vld [vmem:[%s11662_s7 + $0x520] sm:$0xff] }
 0x86b   :  { %v6613_v27 = vadd.f32 %v6595_v52, %v6466_v57  ;;  %7009 = vmatpush.msrb.mxu1 %v8245_v19  ;;  %v8315_v19 = vld [vmem:[%s11662_s7 + $0x540] sm:$0xff]  ;;  %v8297_v57 = vld [vmem:[%s11662_s7 + $0x4b0] sm:$0xff]  ;;  %v8364_v37 = vld [vmem:[%s11662_s7 + $0x6c8] sm:$0xff] }
 0x86c   :  { %7050 = vmatpush.msrb.mxu2 %v8262_v38  ;;  %7093 = vmatpush.msrb.mxu3 %v8278_v44  ;;  %v6698_v5 = vld [vmem:[#allocation5 + $0x30] ss:$2 sm:$0xf]  ;;  %v6714_v51 = vld [vmem:[#allocation5 + $0x31] ss:$2 sm:$0xf] }
 0x86d   :  { %v6633_v20 = vmul.f32 %v10810_v63, %v6613_v27  ;;  %7010 = vmatpush.msrb.mxu1 %v8244_v18  ;;  %v11317_v2 = vmax.f32 %v6698_v5, %v6714_v51  ;;  %v8314_v44 = vld [vmem:[%s11662_s7 + $0x538] sm:$0xff]  ;;  %v8296_v27 = vld [vmem:[%s11662_s7 + $0x4a8] sm:$0xff] }
 0x86e   :  { %7051 = vmatpush.msrb.mxu2 %v8261_v45  ;;  %7094 = vmatpush.msrb.mxu3 %v8277_v47  ;;  %v8330_v18 = vld [vmem:[%s11662_s7 + $0x5b8] sm:$0xff]  ;;  %v8313_v45 = vld [vmem:[%s11662_s7 + $0x530] sm:$0xff]  ;;  %v8328_v5 = vld [vmem:[%s11662_s7 + $0x5a8] sm:$0xff] }
 0x86f   :  { %v6653_v63 = vadd.f32 %v10825_v25, %v6633_v20  ;;  %7011 = vmatpush.msrb.mxu1 %v8243_v6  ;;  %v7078_v8 = vrot.slane %v11317_v2, 7  ;;  %v7034_v25 = vrot.slane %v11205_v35, 3  ;;  %v8338_v35 = vld [vmem:[%s11662_s7 + $0x5f8] sm:$0xff]  ;;  %v8329_v47 = vld [vmem:[%s11662_s7 + $0x5b0] sm:$0xff]  ;;  %v8295_v6 = vld [vmem:[%s11662_s7 + $0x4a0] sm:$0xff] }
 0x870   :  { %7052 = vmatpush.msrb.mxu2 %v8260_v61  ;;  %7095 = vmatpush.msrb.mxu3 %v8276_v29  ;;  %v8294_v51 = vld [vmem:[%s11662_s7 + $0x498] sm:$0xff]  ;;  %v8327_v20 = vld [vmem:[%s11662_s7 + $0x5a0] sm:$0xff]  ;;  %v8293_v61 = vld [vmem:[%s11662_s7 + $0x490] sm:$0xff] }
 0x871   :  { %v6669_v4 = vmax.f32 %v6653_v63, 0.0  ;;  %7012 = vmatmul.f32.vlgmr.msrb.gmra.mxu1 %v6994_v7  ;;  %v7036_v28 = vsel %vm6761_vm5, %v7035_v50, %v7034_v25  ;;  %v7079_v26 = vsel %vm6761_vm5, %v7078_v8, %v11340_v33  ;;  %v8310_v29 = vld [vmem:[%s11662_s7 + $0x518] sm:$0xff]  ;;  %v8309_v50 = vld [vmem:[%s11662_s7 + $0x510] sm:$0xff]  ;;  %v8291_v63 = vld [vmem:[%s11662_s7 + $0x480] sm:$0xff]  ;;  %v7119_v8 = vrot.slane %v11340_v33, 1 }
 0x872   :  { %7122 = vmatpush.msra.mxu1 %v8306_v41  ;;  %7053 = vmatpush.msrb.mxu2 %v8259_v15  ;;  %v8308_v41 = vld [vmem:[%s11662_s7 + $0x508] sm:$0xff]  ;;  %v7161_v7 = vrot.slane %v11317_v2, 1  ;;  %v8307_v25 = vld [vmem:[%s11662_s7 + $0x500] sm:$0xff] }
 0x873   :  { %v6677_v16 = vmax.f32 %v6668_v34, %v6669_v4  ;;  %7096 = vmatpush.msrb.mxu3 %v8275_v39  ;;  %7054 = vmatmul.f32.vlgmr.msrb.gmra.mxu2 %v7036_v28  ;;  %v8324_v15 = vld [vmem:[%s11662_s7 + $0x588] sm:$0xff]  ;;  %v8370_v39 = vld [vmem:[%s11662_s7 + $0x6f8] sm:$0xff]  ;;  %v7203_v34 = vrot.slane %v11317_v2, 2  ;;  %v7120_v4 = vsel %vm6761_vm5, %v11317_v2, %v7119_v8  ;;  %v7202_v28 = vrot.slane %v11340_v33, 3 }
 0x874   :  { %7123 = vmatpush.msra.mxu1 %v8305_v3  ;;  %7164 = vmatpush.msra.mxu2 %v8322_v55  ;;  %v8323_v3 = vld [vmem:[%s11662_s7 + $0x580] sm:$0xff]  ;;  %v7160_v55 = vrot.slane %v11340_v33, 2  ;;  %v8386_v2 = vld [vmem:[%s11662_s7 + $0x778] sm:$0xff]  ;;  %v7328_v8 = vrot.slane %v11407_v54, 2 }
 0x875   :  { %6685 = vst [vmem:[#allocation5 + $0x38] sm:$0xff] %v6677_v16  ;;  %7206 = vmatpush.msra.mxu3 %v8338_v35  ;;  %v8369_v35 = vld [vmem:[%s11662_s7 + $0x6f0] sm:$0xff]  ;;  %v7204_v33 = vsel %vm6761_vm5, %v7203_v34, %v7202_v28 }
 0x876   :  { %7097 = vmatmul.f32.vlgmr.msrb.gmra.mxu3 %v7079_v26  ;;  %7124 = vmatpush.msra.mxu1 %v8304_v49  ;;  %v7162_v16 = vsel %vm6761_vm5, %v7161_v7, %v7160_v55  ;;  %v8402_v26 = vld [vmem:[%s11662_s7 + $0x7f8] sm:$0xff]  ;;  %v8368_v49 = vld [vmem:[%s11662_s7 + $0x6e8] sm:$0xff]  ;;  %v7370_v7 = vrot.slane %v11407_v54, 3 }
 0x877   :  { %7165 = vmatpush.msra.mxu2 %v8321_v53  ;;  %7207 = vmatpush.msra.mxu3 %v8337_v42  ;;  %v8385_v53 = vld [vmem:[%s11662_s7 + $0x770] sm:$0xff] }
 0x878   :  { %7125 = vmatpush.msra.mxu1 %v8303_v1  ;;  %v8401_v42 = vld [vmem:[%s11662_s7 + $0x7f0] sm:$0xff]  ;;  %v8367_v1 = vld [vmem:[%s11662_s7 + $0x6e0] sm:$0xff] }
 0x879   :  { %7166 = vmatpush.msra.mxu2 %v8320_v0  ;;  %7208 = vmatpush.msra.mxu3 %v8336_v36  ;;  %v8384_v0 = vld [vmem:[%s11662_s7 + $0x768] sm:$0xff] }
 0x87a   :  { %7126 = vmatpush.msra.mxu1 %v8302_v62  ;;  %v8400_v36 = vld [vmem:[%s11662_s7 + $0x7e8] sm:$0xff]  ;;  %v8366_v62 = vld [vmem:[%s11662_s7 + $0x6d8] sm:$0xff] }
 0x87b   :  { %7167 = vmatpush.msra.mxu2 %v8319_v46  ;;  %7209 = vmatpush.msra.mxu3 %v8335_v10  ;;  %v8383_v46 = vld [vmem:[%s11662_s7 + $0x760] sm:$0xff] }
 0x87c   :  { %7127 = vmatpush.msra.mxu1 %v8301_v48  ;;  %v6700_v17 = vld [vmem:[#allocation5 + $0x38] ss:$2 sm:$0xf]  ;;  %v6716_v22 = vld [vmem:[#allocation5 + $0x39] ss:$2 sm:$0xf] }
 0x87d   :  { %7168 = vmatpush.msra.mxu2 %v8318_v21  ;;  %7210 = vmatpush.msra.mxu3 %v8334_v12  ;;  %v11396_v56 = vmax.f32 %v6700_v17, %v6716_v22  ;;  %v8399_v10 = vld [vmem:[%s11662_s7 + $0x7e0] sm:$0xff]  ;;  %v8365_v48 = vld [vmem:[%s11662_s7 + $0x6d0] sm:$0xff]  ;;  %v8382_v21 = vld [vmem:[%s11662_s7 + $0x758] sm:$0xff] }
 0x87e   :  { %7128 = vmatpush.msra.mxu1 %v8300_v58  ;;  %v8398_v12 = vld [vmem:[%s11662_s7 + $0x7d8] sm:$0xff]  ;;  %v8397_v58 = vld [vmem:[%s11662_s7 + $0x7d0] sm:$0xff]  ;;  %v8396_v17 = vld [vmem:[%s11662_s7 + $0x7c8] sm:$0xff] }
 0x87f   :  { %7169 = vmatpush.msra.mxu2 %v8317_v31  ;;  %7211 = vmatpush.msra.mxu3 %v8333_v43  ;;  %v7246_v52 = vrot.slane %v11396_v56, 7  ;;  %v8363_v31 = vld [vmem:[%s11662_s7 + $0x6c0] sm:$0xff]  ;;  %v8380_v43 = vld [vmem:[%s11662_s7 + $0x748] sm:$0xff]  ;;  %v8362_v22 = vld [vmem:[%s11662_s7 + $0x6b8] sm:$0xff] }
 0x880   :  { %7129 = vmatpush.msra.mxu1 %v8299_v32  ;;  %v8379_v32 = vld [vmem:[%s11662_s7 + $0x740] sm:$0xff] }
 0x881   :  { %7170 = vmatpush.msra.mxu2 %v8316_v30  ;;  %7212 = vmatpush.msra.mxu3 %v8332_v23  ;;  %v7247_v38 = vsel %vm6761_vm5, %v7246_v52, %v11407_v54  ;;  %v8395_v30 = vld [vmem:[%s11662_s7 + $0x7c0] sm:$0xff]  ;;  %v8361_v23 = vld [vmem:[%s11662_s7 + $0x6b0] sm:$0xff]  ;;  %v8394_v52 = vld [vmem:[%s11662_s7 + $0x7b8] sm:$0xff] }
 0x882   :  { %7130 = vmatpush.msra.mxu1 %v8298_v60  ;;  %7265 = vmatmul.f32.vlgmr.msrb.gmra.mxu0 %v7247_v38  ;;  %v8378_v60 = vld [vmem:[%s11662_s7 + $0x738] sm:$0xff]  ;;  %v8359_v38 = vld [vmem:[%s11662_s7 + $0x6a0] sm:$0xff] }
 0x883   :  { %7171 = vmatpush.msra.mxu2 %v8315_v19  ;;  %7213 = vmatpush.msra.mxu3 %v8331_v13  ;;  %v8360_v19 = vld [vmem:[%s11662_s7 + $0x6a8] sm:$0xff]  ;;  %v8377_v13 = vld [vmem:[%s11662_s7 + $0x730] sm:$0xff] }
 0x884   :  { %7131 = vmatpush.msra.mxu1 %v8297_v57  ;;  %v8393_v57 = vld [vmem:[%s11662_s7 + $0x7b0] sm:$0xff] }
 0x885   :  { %7172 = vmatpush.msra.mxu2 %v8314_v44  ;;  %7214 = vmatpush.msra.mxu3 %v8330_v18  ;;  %v8376_v44 = vld [vmem:[%s11662_s7 + $0x728] sm:$0xff] }
 0x886   :  { %7132 = vmatpush.msra.mxu1 %v8296_v27  ;;  %v8392_v18 = vld [vmem:[%s11662_s7 + $0x7a8] sm:$0xff]  ;;  %v8358_v27 = vld [vmem:[%s11662_s7 + $0x698] sm:$0xff] }
 0x887   :  { %7173 = vmatpush.msra.mxu2 %v8313_v45  ;;  %7215 = vmatpush.msra.mxu3 %v8329_v47  ;;  %v8375_v45 = vld [vmem:[%s11662_s7 + $0x720] sm:$0xff] }
 0x888   :  { %7133 = vmatpush.msra.mxu1 %v8295_v6  ;;  %v8391_v47 = vld [vmem:[%s11662_s7 + $0x7a0] sm:$0xff]  ;;  %v8357_v6 = vld [vmem:[%s11662_s7 + $0x690] sm:$0xff] }
 0x889   :  { %7174 = vmatpush.msra.mxu2 %v8312_v59  ;;  %7216 = vmatpush.msra.mxu3 %v8328_v5  ;;  %v8374_v59 = vld [vmem:[%s11662_s7 + $0x718] sm:$0xff] }
 0x88a   :  { %7134 = vmatpush.msra.mxu1 %v8294_v51  ;;  %v8390_v5 = vld [vmem:[%s11662_s7 + $0x798] sm:$0xff]  ;;  %v8356_v51 = vld [vmem:[%s11662_s7 + $0x688] sm:$0xff] }
 0x88b   :  { %7175 = vmatpush.msra.mxu2 %v8311_v11  ;;  %7217 = vmatpush.msra.mxu3 %v8327_v20  ;;  %v8373_v11 = vld [vmem:[%s11662_s7 + $0x710] sm:$0xff] }
 0x88c   :  { %7135 = vmatpush.msra.mxu1 %v8293_v61  ;;  %v8389_v20 = vld [vmem:[%s11662_s7 + $0x790] sm:$0xff]  ;;  %v8355_v61 = vld [vmem:[%s11662_s7 + $0x680] sm:$0xff] }
 0x88d   :  { %7176 = vmatpush.msra.mxu2 %v8310_v29  ;;  %7218 = vmatpush.msra.mxu3 %v8326_v40  ;;  %v8372_v29 = vld [vmem:[%s11662_s7 + $0x708] sm:$0xff] }
 0x88e   :  { %7136 = vmatpush.msra.mxu1 %v8292_v14  ;;  %v8388_v40 = vld [vmem:[%s11662_s7 + $0x788] sm:$0xff]  ;;  %v7287_v14 = vrot.slane %v11407_v54, 1 }
 0x88f   :  { %7177 = vmatpush.msra.mxu2 %v8309_v50  ;;  %7219 = vmatpush.msra.mxu3 %v8325_v24  ;;  %v7329_v50 = vrot.slane %v11396_v56, 1  ;;  %v7371_v24 = vrot.slane %v11396_v56, 2 }
 0x890   :  { %7137 = vmatpush.msra.mxu1 %v8291_v63  ;;  %v8371_v63 = vld [vmem:[%s11662_s7 + $0x700] sm:$0xff] }
 0x891   :  { %7178 = vmatpush.msra.mxu2 %v8308_v41  ;;  %7220 = vmatpush.msra.mxu3 %v8324_v15  ;;  %v8387_v41 = vld [vmem:[%s11662_s7 + $0x780] sm:$0xff]  ;;  %v7288_v15 = vsel %vm6761_vm5, %v11396_v56, %v7287_v14 }
 0x892   :  { %7138 = vmatmul.f32.vlgmr.msra.gmra.mxu1 %v7120_v4 }
 0x893   :  { %7290 = vmatpush.msrb.mxu1 %v8370_v39  ;;  %7179 = vmatpush.msra.mxu2 %v8307_v25  ;;  %v7330_v39 = vsel %vm6761_vm5, %v7329_v50, %v7328_v8  ;;  %v7372_v25 = vsel %vm6761_vm5, %v7371_v24, %v7370_v7 }
 0x894   :  { %7221 = vmatpush.msra.mxu3 %v8323_v3  ;;  %7180 = vmatmul.f32.vlgmr.msra.gmra.mxu2 %v7162_v16 }
 0x895   :  { %7222 = vmatmul.f32.vlgmr.msra.gmra.mxu3 %v7204_v33  ;;  %7291 = vmatpush.msrb.mxu1 %v8369_v35 }
 0x896   :  { %7332 = vmatpush.msrb.mxu2 %v8386_v2  ;;  %7374 = vmatpush.msrb.mxu3 %v8402_v26 }
 0x897   :  { %7292 = vmatpush.msrb.mxu1 %v8368_v49 }
 0x898   :  { %7333 = vmatpush.msrb.mxu2 %v8385_v53  ;;  %7375 = vmatpush.msrb.mxu3 %v8401_v42 }
 0x899   :  { %7293 = vmatpush.msrb.mxu1 %v8367_v1 }
 0x89a   :  { %7334 = vmatpush.msrb.mxu2 %v8384_v0  ;;  %7376 = vmatpush.msrb.mxu3 %v8400_v36 }
 0x89b   :  { %7294 = vmatpush.msrb.mxu1 %v8366_v62 }
 0x89c   :  { %7335 = vmatpush.msrb.mxu2 %v8383_v46  ;;  %7377 = vmatpush.msrb.mxu3 %v8399_v10 }
 0x89d   :  { %7295 = vmatpush.msrb.mxu1 %v8365_v48 }
 0x89e   :  { %7336 = vmatpush.msrb.mxu2 %v8382_v21  ;;  %7378 = vmatpush.msrb.mxu3 %v8398_v12 }
 0x89f   :  { %7296 = vmatpush.msrb.mxu1 %v8364_v37 }
 0x8a0   :  { %7337 = vmatpush.msrb.mxu2 %v8381_v9  ;;  %7379 = vmatpush.msrb.mxu3 %v8397_v58 }
 0x8a1   :  { %7297 = vmatpush.msrb.mxu1 %v8363_v31 }
 0x8a2   :  { %7338 = vmatpush.msrb.mxu2 %v8380_v43  ;;  %7380 = vmatpush.msrb.mxu3 %v8396_v17  ;;  %v8409_v17 = vld [vmem:[%s11663_s8] ss:$0 sm:$0xff] }
 0x8a3   :  { %7298 = vmatpush.msrb.mxu1 %v8362_v22 }
 0x8a4   :  { %7339 = vmatpush.msrb.mxu2 %v8379_v32  ;;  %7381 = vmatpush.msrb.mxu3 %v8395_v30 }
 0x8a5   :  { %7299 = vmatpush.msrb.mxu1 %v8361_v23 }
 0x8a6   :  { %7340 = vmatpush.msrb.mxu2 %v8378_v60  ;;  %7382 = vmatpush.msrb.mxu3 %v8394_v52 }
 0x8a7   :  { %7300 = vmatpush.msrb.mxu1 %v8360_v19 }
 0x8a8   :  { %7341 = vmatpush.msrb.mxu2 %v8377_v13  ;;  %7383 = vmatpush.msrb.mxu3 %v8393_v57 }
 0x8a9   :  { %7301 = vmatpush.msrb.mxu1 %v8359_v38 }
 0x8aa   :  { %7342 = vmatpush.msrb.mxu2 %v8376_v44  ;;  %7384 = vmatpush.msrb.mxu3 %v8392_v18 }
 0x8ab   :  { %7302 = vmatpush.msrb.mxu1 %v8358_v27 }
 0x8ac   :  { %7343 = vmatpush.msrb.mxu2 %v8375_v45  ;;  %7385 = vmatpush.msrb.mxu3 %v8391_v47 }
 0x8ad   :  { %7303 = vmatpush.msrb.mxu1 %v8357_v6 }
 0x8ae   :  { %7344 = vmatpush.msrb.mxu2 %v8374_v59  ;;  %7386 = vmatpush.msrb.mxu3 %v8390_v5 }
 0x8af   :  { %7304 = vmatpush.msrb.mxu1 %v8356_v51 }
 0x8b0   :  { %7345 = vmatpush.msrb.mxu2 %v8373_v11  ;;  %7387 = vmatpush.msrb.mxu3 %v8389_v20 }
 0x8b1   :  { %7305 = vmatpush.msrb.mxu1 %v8355_v61 }
 0x8b2   :  { %7346 = vmatpush.msrb.mxu2 %v8372_v29  ;;  %7388 = vmatpush.msrb.mxu3 %v8388_v40 }
 0x8b3   :  { %7306 = vmatmul.f32.vlgmr.msrb.gmra.mxu1 %v7288_v15 }
 0x8b4   :  { %7347 = vmatpush.msrb.mxu2 %v8371_v63  ;;  %7389 = vmatpush.msrb.mxu3 %v8387_v41 }
 0x8b5   :  { %7348 = vmatmul.f32.vlgmr.msrb.gmra.mxu2 %v7330_v39  ;;  %7390 = vmatmul.f32.vlgmr.msrb.gmra.mxu3 %v7372_v25 }
 0x8cd   :  { %v6781_v34 = vpop.f32.mrf.mxu1 }
 0x8d5   :  { %v6804_v4 = vpop.f32.mrf.mxu2  ;;  %v6845_v55 = vpop.f32.mrf.mxu3 }
 0x8d6   :  { %v6805_v3 = vadd.f32 %v6804_v4, %v6781_v34  ;;  %v6887_v35 = vpop.f32.mrf.mxu1 }
 0x8d8   :  { %v6848_v28 = vadd.f32 %v6845_v55, %v6805_v3 }
 0x8da   :  { %v6890_v16 = vadd.f32 %v6887_v35, %v6848_v28 }
 0x8e4   :  { %v6971_v26 = vpop.f32.mrf.mxu3 }
 0x8e6   :  { %v6930_v56 = vpop.f32.mrf.mxu2 }
 0x8e7   :  { %v6933_v2 = vadd.f32 %v6930_v56, %v6890_v16 }
 0x8e9   :  { %v6974_v33 = vadd.f32 %v6971_v26, %v6933_v2 }
 0x8ee   :  { %v7013_v54 = vpop.f32.mrf.mxu1 }
 0x8ef   :  { %v7016_v53 = vadd.f32 %v7013_v54, %v6974_v33 }
 0x8f6   :  { %v7055_v49 = vpop.f32.mrf.mxu2 }
 0x8f7   :  { %v7058_v42 = vadd.f32 %v7055_v49, %v7016_v53 }
 0x8f9   :  { %v7098_v1 = vpop.f32.mrf.mxu3 }
 0x8fa   :  { %v7101_v36 = vadd.f32 %v7098_v1, %v7058_v42 }
 0x8ff   :  { %v7266_v12 = vpop.f32.mrf.mxu0 }
 0x90f   :  { %v7139_v0 = vpop.f32.mrf.mxu1 }
 0x910   :  { %v7142_v46 = vadd.f32 %v7139_v0, %v7101_v36 }
 0x917   :  { %v7181_v62 = vpop.f32.mrf.mxu2 }
 0x918   :  { %v7184_v10 = vadd.f32 %v7181_v62, %v7142_v46  ;;  %v7223_v48 = vpop.f32.mrf.mxu3 }
 0x91a   :  { %v7226_v21 = vadd.f32 %v7223_v48, %v7184_v10 }
 0x91c   :  { %v7269_v9 = vadd.f32 %v7266_v12, %v7226_v21 }
 0x930   :  { %v7307_v37 = vpop.f32.mrf.mxu1 }
 0x931   :  { %v7310_v58 = vadd.f32 %v7307_v37, %v7269_v9 }
 0x938   :  { %v7349_v31 = vpop.f32.mrf.mxu2  ;;  %v7391_v22 = vpop.f32.mrf.mxu3 }
 0x939   :  { %v7352_v43 = vadd.f32 %v7349_v31, %v7310_v58 }
 0x93b   :  { %v7394_v32 = vadd.f32 %v7391_v22, %v7352_v43 }
 0x93d   :  { %v7399_v30 = vadd.f32 %v8409_v17, %v7394_v32 }
 0x93f   :  { %7401 = vst.msk [vmem:[#allocation6] sm:$0x3] %vm7400_vm6, %v7399_v30 }
 0x940   :  { %7412 = dma.vmem_to_hbm [thread:$0]  %s7408_s20, 32, %s7410_s22, [#allocation7]  }
 0x941   :  { %8453 = dma.done.wait [#allocation7], 32  }
 0x942   :  { %8454 = vsyncadd [#allocation7], 4294967264 }
 0x943   :  { %7417 = vsyncpa [#allocation7], 1 }

</bundles_post_ra>
